<compile_context>
chip_gen: v7x
topology: tpu7x:2x2x1
jax: 0.10.0
libtpu: 0.0.40
codegen_flags: <defaults>
</compile_context>

<pallas_src>
import functools

import jax
import jax.numpy as jnp
from jax import lax
from jax.experimental import pallas as pl
from jax.experimental.pallas import tpu as pltpu

_LANE = 128

# MXU operand dtype.  Set to jnp.bfloat16 on v6e/v7x for ~2x MXU throughput at
# production sizes (accumulation stays f32 via preferred_element_type); f32
# keeps numerics matched to the PyTorch reference.
_MXU_DTYPE = jnp.float32


def _mxdot(a, b):
    return jnp.dot(a.astype(_MXU_DTYPE), b.astype(_MXU_DTYPE),
                   preferred_element_type=jnp.float32)


def _ceil_to(x, m):
    return ((x + m - 1) // m) * m


# ----------------------------------------------------------------------------
# The fused Pallas kernel (stem + all layers + head, one sample per grid step)
# ----------------------------------------------------------------------------
def _mtgnn_kernel(x_ref, xcol0_ref, *rest, n_nodes, np_lane, t_in, layers,
                  c_res, c_conv, c_skip, gdep, alpha, eps):
    NP = np_lane
    o_ref = rest[-1]
    wit = iter(rest[:-1])

    def W():
        return next(wit)[...]

    start_w = W(); start_b = W()
    skip0_w = W(); skip0_b = W()
    m1t = W(); m2t = W()                       # (NP, NP) = padded A_norm^T (both branches)

    # ---- stem: start_conv (1x1) + skip0 (full-time conv) -------------------
    x = _mxdot(start_w, x_ref[...]) + start_b             # (c_res, t_in*NP)
    skip = _mxdot(skip0_w, xcol0_ref[...]) + skip0_b      # (c_skip, NP)

    t_cur = t_in
    for _layer in range(layers):
        L = t_cur - 6
        wfg = W(); bfg = W(); skip_wf = W(); skip_b = W()
        g12_w = W(); g_b = W(); ln_w = W(); ln_b = W()

        # -- dilated inception: 4 filter + 4 gate branches as ONE fused matmul
        #    over a 7-tap im2col; every tap is a contiguous lane-aligned slice.
        xcol = jnp.concatenate([x[:, k * NP:(k + L) * NP] for k in range(7)], axis=0)
        yg = _mxdot(wfg, xcol) + bfg                       # (2*c_conv, L*NP)
        filt = jnp.tanh(yg[:c_conv, :])
        gate = 0.5 * (jnp.tanh(0.5 * yg[c_conv:, :]) + 1.0)   # exact sigmoid, 1 EUP op
        xg = filt * gate                                   # (c_conv, L*NP)

        # -- time-stacked view (rows ordered (t, c)); reused by the skip conv
        #    and by the node-mixing matmuls below.
        if L == 1:
            xg_t = xg
        else:
            xg_t = jnp.concatenate(
                [xg[:, t * NP:(t + 1) * NP] for t in range(L)], axis=0)   # (L*c_conv, NP)
        skip = skip + _mxdot(skip_wf, xg_t) + skip_b

        # -- dual mixprop.  Node mixing = ONE (L*c_conv, NP) x (NP, NP) matmul
        #    per hop/branch against padded A_norm^T (no kron(I, A) operator).
        def unstack(hs):
            if L == 1:
                return hs
            return jnp.concatenate(
                [hs[t * c_conv:(t + 1) * c_conv, :] for t in range(L)], axis=1)

        h1s = xg_t
        h2s = xg_t
        hops1 = [xg]
        hops2 = [xg]
        for _ in range(gdep):
            h1s = alpha * xg_t + (1.0 - alpha) * _mxdot(h1s, m1t)
            h2s = alpha * xg_t + (1.0 - alpha) * _mxdot(h2s, m2t)
            hops1.append(unstack(h1s))
            hops2.append(unstack(h2s))
        # Output projection of BOTH branches & all hops: one K=2*(gdep+1)*c_conv matmul.
        H = jnp.concatenate(hops1 + hops2, axis=0)         # (2*(gdep+1)*c_conv, L*NP)
        acc = _mxdot(g12_w, H) + g_b                       # (c_res, L*NP)

        # -- residual add: last L time steps of the layer input (lane-aligned).
        acc = acc + x[:, (t_cur - L) * NP:]

        # -- per-sample LayerNorm over (c_res, N, L); padded node lanes are
        #    masked out of the statistics only (they never leak into real lanes).
        cnt = float(c_res * n_nodes * L)
        if n_nodes == NP:
            mu = jnp.sum(acc) / cnt
            xc = acc - mu
            var = jnp.sum(xc * xc) / cnt
        else:
            lane_n = lax.broadcasted_iota(jnp.int32, acc.shape, 1) % NP
            mask = (lane_n < n_nodes).astype(jnp.float32)
            mu = jnp.sum(acc * mask) / cnt
            xc = acc - mu
            var = jnp.sum(xc * xc * mask) / cnt
        x = xc * lax.rsqrt(var + eps) * ln_w + ln_b
        t_cur = L

    # ---- head: skipE + relu + end_conv_1 + relu + end_conv_2 ---------------
    skipE_w = W(); skipE_b = W()
    end1_w = W(); end1_b = W()
    end2_w = W(); end2_b = W()
    if t_cur == 1:
        x_e = x
    else:
        x_e = jnp.concatenate([x[:, t * NP:(t + 1) * NP] for t in range(t_cur)], axis=0)
    s = jnp.maximum(skip + _mxdot(skipE_w, x_e) + skipE_b, 0.0)
    h = jnp.maximum(_mxdot(end1_w, s) + end1_b, 0.0)
    o_ref[...] = (_mxdot(end2_w, h) + end2_b).astype(o_ref.dtype)


# ----------------------------------------------------------------------------
# pallas_call wrapper
# ----------------------------------------------------------------------------
def _bcast_spec(a):
    nd = a.ndim
    return pl.BlockSpec(a.shape, lambda b, _nd=nd: (0,) * _nd)


def _run_mtgnn(x_slab, xcol0, weights, *, cfg_static, out_dim):
    B = x_slab.shape[0]
    NP = cfg_static["np_lane"]
    kern = functools.partial(_mtgnn_kernel, **cfg_static)
    in_specs = [
        pl.BlockSpec((None,) + tuple(x_slab.shape[1:]), lambda b: (b, 0, 0)),
        pl.BlockSpec((None,) + tuple(xcol0.shape[1:]), lambda b: (b, 0, 0)),
    ] + [_bcast_spec(w) for w in weights]
    return pl.pallas_call(
        kern,
        grid=(B,),
        out_shape=jax.ShapeDtypeStruct((B, out_dim, NP), jnp.float32),
        in_specs=in_specs,
        out_specs=pl.BlockSpec((None, out_dim, NP), lambda b: (b, 0, 0)),
        compiler_params=pltpu.CompilerParams(
            dimension_semantics=("parallel",),          # batch across TCs on v7x
            vmem_limit_bytes=32 * 1024 * 1024),
    )(x_slab, xcol0, *weights)


# ----------------------------------------------------------------------------
# Parameter initialization (deterministic, PyTorch-like layouts)
# ----------------------------------------------------------------------------
class KeyGen:
    def __init__(self, key):
        self.key = key

    def __call__(self):
        self.key, sub = jax.random.split(self.key)
        return sub


def _normal(kg, shape, scale=0.1):
    return scale * jax.random.normal(kg(), shape, dtype=jnp.float32)


def init_params(key, cfg):
    kg = KeyGen(key)
    P = {}
    C_res, C_conv = cfg["residual_channels"], cfg["conv_channels"]
    C_skip, C_end = cfg["skip_channels"], cfg["end_channels"]
    N, D, in_dim = cfg["num_nodes"], cfg["node_dim"], cfg["in_dim"]
    gdep, layers = cfg["gcn_depth"], cfg["layers"]
    rf = layers * 6 + 1
    t_in = max(cfg["seq_length"], rf)
    t_last = t_in - 6 * layers

    P["start_w"] = _normal(kg, (C_res, in_dim)); P["start_b"] = _normal(kg, (C_res,), 0.01)
    P["emb1"] = _normal(kg, (N, D), 1.0); P["emb2"] = _normal(kg, (N, D), 1.0)
    P["lin1_w"] = _normal(kg, (D, D)); P["lin1_b"] = _normal(kg, (D,), 0.01)
    P["lin2_w"] = _normal(kg, (D, D)); P["lin2_b"] = _normal(kg, (D,), 0.01)
    P["skip0_w"] = _normal(kg, (C_skip, in_dim, t_in)); P["skip0_b"] = _normal(kg, (C_skip,), 0.01)
    P["skipE_w"] = _normal(kg, (C_skip, C_res, t_last)); P["skipE_b"] = _normal(kg, (C_skip,), 0.01)
    P["end1_w"] = _normal(kg, (C_end, C_skip)); P["end1_b"] = _normal(kg, (C_end,), 0.01)
    P["end2_w"] = _normal(kg, (cfg["out_dim"], C_end)); P["end2_b"] = _normal(kg, (cfg["out_dim"],), 0.01)

    cpart = C_conv // 4
    layer_params = []
    for j in range(1, layers + 1):
        t_j = t_in - 6 * j
        lp = {}
        lp["filter_w"] = [_normal(kg, (cpart, C_res, ker)) for ker in (2, 3, 5, 7)]
        lp["filter_b"] = [_normal(kg, (cpart,), 0.01) for _ in range(4)]
        lp["gate_w"] = [_normal(kg, (cpart, C_res, ker)) for ker in (2, 3, 5, 7)]
        lp["gate_b"] = [_normal(kg, (cpart,), 0.01) for _ in range(4)]
        lp["skip_w"] = _normal(kg, (C_skip, C_conv, t_j)); lp["skip_b"] = _normal(kg, (C_skip,), 0.01)
        lp["g1_w"] = _normal(kg, (C_res, (gdep + 1) * C_conv)); lp["g1_b"] = _normal(kg, (C_res,), 0.01)
        lp["g2_w"] = _normal(kg, (C_res, (gdep + 1) * C_conv)); lp["g2_b"] = _normal(kg, (C_res,), 0.01)
        lp["ln_w"] = jnp.ones((C_res, N, t_j), jnp.float32)   # LayerNorm reset: ones
        lp["ln_b"] = jnp.zeros((C_res, N, t_j), jnp.float32)  # LayerNorm reset: zeros
        layer_params.append(lp)
    P["layers"] = layer_params
    return P


# ----------------------------------------------------------------------------
# Weight packing into the fused-kernel layouts (done ONCE, outside the forward)
# ----------------------------------------------------------------------------
def _pack_inception(ws, bs):
    """4 branches (cpart, c_in, ker) for ker in (2,3,5,7) -> (C_conv, 7*c_in)."""
    blocks = []
    for w in ws:
        cpart, cin, ker = w.shape
        wu = jnp.zeros((cpart, cin, 7), jnp.float32).at[:, :, 7 - ker:].set(w)
        blocks.append(wu)
    Wt = jnp.concatenate(blocks, axis=0)                    # (C_conv, c_in, 7)
    Wflat = jnp.transpose(Wt, (0, 2, 1)).reshape(Wt.shape[0], 7 * Wt.shape[1])
    return Wflat, jnp.concatenate(bs, axis=0)


def _flatten_tconv(w):
    """(C_out, C_in, K) -> (C_out, K*C_in), column index = t*C_in + ci."""
    co, ci, k = w.shape
    return jnp.transpose(w, (0, 2, 1)).reshape(co, k * ci)


def _pad_ln(p, np_lane):
    """(C, N, T) -> (C, T*NP) with columns ordered (t, n), node axis zero-padded."""
    c, n, t = p.shape
    pt = jnp.transpose(p, (0, 2, 1))                        # (C, T, N)
    pt = jnp.pad(pt, ((0, 0), (0, 0), (0, np_lane - n)))
    return pt.reshape(c, t * np_lane)


def pack_params(params, cfg, np_lane):
    kp = {}
    kp["start_w"] = params["start_w"]
    kp["start_b"] = params["start_b"].reshape(-1, 1)
    kp["skip0_wf"] = _flatten_tconv(params["skip0_w"])
    kp["skip0_b"] = params["skip0_b"].reshape(-1, 1)
    kp["skipE_wf"] = _flatten_tconv(params["skipE_w"])
    kp["skipE_b"] = params["skipE_b"].reshape(-1, 1)
    kp["end1_w"] = params["end1_w"]; kp["end1_b"] = params["end1_b"].reshape(-1, 1)
    kp["end2_w"] = params["end2_w"]; kp["end2_b"] = params["end2_b"].reshape(-1, 1)
    for k in ("emb1", "emb2", "lin1_w", "lin1_b", "lin2_w", "lin2_b"):
        kp[k] = params[k]
    kp["layers"] = []
    for lp in params["layers"]:
        wf, bf = _pack_inception(lp["filter_w"], lp["filter_b"])
        wg, bg = _pack_inception(lp["gate_w"], lp["gate_b"])
        kp["layers"].append({
            "wfg": jnp.concatenate([wf, wg], axis=0),
            "bfg": jnp.concatenate([bf, bg], axis=0).reshape(-1, 1),
            "skip_wf": _flatten_tconv(lp["skip_w"]),
            "skip_b": lp["skip_b"].reshape(-1, 1),
            "g12_w": jnp.concatenate([lp["g1_w"], lp["g2_w"]], axis=1),
            "g_b": (lp["g1_b"] + lp["g2_b"]).reshape(-1, 1),
            "ln_w": _pad_ln(lp["ln_w"], np_lane),
            "ln_b": _pad_ln(lp["ln_b"], np_lane),
        })
    return kp


def _flatten_weights(kp, m1t, m2t):
    ws = [kp["start_w"], kp["start_b"], kp["skip0_wf"], kp["skip0_b"], m1t, m2t]
    for lp in kp["layers"]:
        ws += [lp["wfg"], lp["bfg"], lp["skip_wf"], lp["skip_b"],
               lp["g12_w"], lp["g_b"], lp["ln_w"], lp["ln_b"]]
    ws += [kp["skipE_wf"], kp["skipE_b"], kp["end1_w"], kp["end1_b"],
           kp["end2_w"], kp["end2_b"]]
    return ws


# ----------------------------------------------------------------------------
# MTGNN forward
# ----------------------------------------------------------------------------
def mtgnn_forward(kp, x_in, cfg, noise_key):
    layers = cfg["layers"]
    rf = layers * 6 + 1                     # dilation_exponential == 1, kernel 7
    seq = cfg["seq_length"]
    N = cfg["num_nodes"]
    NP = _ceil_to(N, _LANE)
    B = x_in.shape[0]
    in_dim = cfg["in_dim"]
    t_in = max(seq, rf)
    tanhalpha = float(cfg["tanhalpha"])

    # -- graph constructor + top-k + mixprop normalization (plain XLA, runs once)
    # TODO(synk): top_k / scatter sparsification has no clean Pallas equivalent;
    # the NxN adjacency is far below a vreg so it stays in XLA.
    n1 = jnp.tanh(tanhalpha * (kp["emb1"] @ kp["lin1_w"].T + kp["lin1_b"]))
    n2 = jnp.tanh(tanhalpha * (kp["emb2"] @ kp["lin2_w"].T + kp["lin2_b"]))
    a = n1 @ n2.T - n2 @ n1.T
    adj = jax.nn.relu(jnp.tanh(tanhalpha * a))
    noise = jax.random.uniform(noise_key, (N, N), jnp.float32) * 0.01   # matches torch.rand_like*0.01
    _, idx = lax.top_k(adj + noise, cfg["subgraph_size"])
    mask = jnp.zeros((N, N), jnp.float32).at[jnp.arange(N)[:, None], idx].set(1.0)
    adp = adj * mask

    def _norm_adj(m):
        m = m + jnp.eye(N, dtype=jnp.float32)
        return m / jnp.sum(m, axis=1, keepdims=True)

    pad = ((0, NP - N), (0, NP - N))
    m1t = jnp.pad(_norm_adj(adp).T, pad)        # (NP, NP); zero outside real nodes
    m2t = jnp.pad(_norm_adj(adp.T).T, pad)

    # -- per-sample channel-major slabs (C, T*NP), columns ordered (t, n),
    #    node axis padded to a 128-lane stride (lane-aligned slices everywhere).
    x4 = jnp.transpose(x_in, (0, 3, 1, 2)).astype(jnp.float32)       # (B, Cin, seq, N)
    x4 = jnp.pad(x4, ((0, 0), (0, 0), (t_in - seq, 0), (0, NP - N)))
    x_slab = x4.reshape(B, in_dim, t_in * NP)
    xcol0 = jnp.transpose(x4, (0, 2, 1, 3)).reshape(B, t_in * in_dim, NP)  # skip0 im2col

    weights = _flatten_weights(kp, m1t, m2t)
    cfg_static = dict(n_nodes=N, np_lane=NP, t_in=t_in, layers=layers,
                      c_res=cfg["residual_channels"], c_conv=cfg["conv_channels"],
                      c_skip=cfg["skip_channels"], gdep=cfg["gcn_depth"],
                      alpha=float(cfg["propalpha"]), eps=1e-5)
    out = _run_mtgnn(x_slab, xcol0, weights, cfg_static=cfg_static,
                     out_dim=cfg["out_dim"])                          # (B, out_dim, NP)
    return out[:, :, :N][..., None]                                   # (B, out_dim, N, 1)


# ----------------------------------------------------------------------------
# Main
# ----------------------------------------------------------------------------
if __name__ == "__main__":
    cfg = dict(
        gcn_true=True, buildA_true=True,
        gcn_depth=2, num_nodes=10, subgraph_size=4, node_dim=16,
        conv_channels=16, residual_channels=16, skip_channels=32, end_channels=64,
        seq_length=12, in_dim=2, out_dim=12, layers=3,
        propalpha=0.05, tanhalpha=3, dropout=0.3,
    )
    B = 2
    key = jax.random.PRNGKey(0)
    kparam, kinput, knoise = jax.random.split(key, 3)

    params = init_params(kparam, cfg)
    NP = _ceil_to(cfg["num_nodes"], _LANE)
    kp = pack_params(params, cfg, NP)
    x = jax.random.normal(
        kinput, (B, cfg["seq_length"], cfg["num_nodes"], cfg["in_dim"]),
        dtype=jnp.float32)

    fwd = jax.jit(lambda kp_, x_, key_: mtgnn_forward(kp_, x_, cfg, key_))
    out = jax.block_until_ready(fwd(kp, x, knoise))
    assert out.shape == (B, cfg["out_dim"], cfg["num_nodes"], 1), out.shape
    assert bool(jnp.all(jnp.isfinite(out)))
    print("KERNEL_OK")
</pallas_src>

<mosaic_0001>
module attributes {stable_mosaic.version = 11 : i64} {
  func.func @_mtgnn_kernel(%arg0: i32, %arg1: memref<1x2x2432xf32, #tpu.memory_space<vmem>>, %arg2: memref<1x38x128xf32, #tpu.memory_space<vmem>>, %arg3: memref<16x2xf32, #tpu.memory_space<vmem>>, %arg4: memref<16x1xf32, #tpu.memory_space<vmem>>, %arg5: memref<32x38xf32, #tpu.memory_space<vmem>>, %arg6: memref<32x1xf32, #tpu.memory_space<vmem>>, %arg7: memref<128x128xf32, #tpu.memory_space<vmem>>, %arg8: memref<128x128xf32, #tpu.memory_space<vmem>>, %arg9: memref<32x112xf32, #tpu.memory_space<vmem>>, %arg10: memref<32x1xf32, #tpu.memory_space<vmem>>, %arg11: memref<32x208xf32, #tpu.memory_space<vmem>>, %arg12: memref<32x1xf32, #tpu.memory_space<vmem>>, %arg13: memref<16x96xf32, #tpu.memory_space<vmem>>, %arg14: memref<16x1xf32, #tpu.memory_space<vmem>>, %arg15: memref<16x1664xf32, #tpu.memory_space<vmem>>, %arg16: memref<16x1664xf32, #tpu.memory_space<vmem>>, %arg17: memref<32x112xf32, #tpu.memory_space<vmem>>, %arg18: memref<32x1xf32, #tpu.memory_space<vmem>>, %arg19: memref<32x112xf32, #tpu.memory_space<vmem>>, %arg20: memref<32x1xf32, #tpu.memory_space<vmem>>, %arg21: memref<16x96xf32, #tpu.memory_space<vmem>>, %arg22: memref<16x1xf32, #tpu.memory_space<vmem>>, %arg23: memref<16x896xf32, #tpu.memory_space<vmem>>, %arg24: memref<16x896xf32, #tpu.memory_space<vmem>>, %arg25: memref<32x112xf32, #tpu.memory_space<vmem>>, %arg26: memref<32x1xf32, #tpu.memory_space<vmem>>, %arg27: memref<32x16xf32, #tpu.memory_space<vmem>>, %arg28: memref<32x1xf32, #tpu.memory_space<vmem>>, %arg29: memref<16x96xf32, #tpu.memory_space<vmem>>, %arg30: memref<16x1xf32, #tpu.memory_space<vmem>>, %arg31: memref<16x128xf32, #tpu.memory_space<vmem>>, %arg32: memref<16x128xf32, #tpu.memory_space<vmem>>, %arg33: memref<32x16xf32, #tpu.memory_space<vmem>>, %arg34: memref<32x1xf32, #tpu.memory_space<vmem>>, %arg35: memref<64x32xf32, #tpu.memory_space<vmem>>, %arg36: memref<64x1xf32, #tpu.memory_space<vmem>>, %arg37: memref<12x64xf32, #tpu.memory_space<vmem>>, %arg38: memref<12x1xf32, #tpu.memory_space<vmem>>, %arg39: memref<1x12x128xf32, #tpu.memory_space<vmem>>) attributes {dimension_semantics = [#tpu.dimension_semantics<parallel>], iteration_bounds = array<i64: 2>, scalar_prefetch = 0 : i64, scratch_operands = 0 : i64, tpu.core_type = #tpu.core_type<tc>, window_params = [{transform_indices = @transform_0, window_bounds = array<i64: 1, 2, 2432>}, {transform_indices = @transform_1, window_bounds = array<i64: 1, 38, 128>}, {pipeline_mode = #tpu.pipeline_mode<synchronous>, transform_indices = @transform_2, window_bounds = array<i64: 16, 2>}, {pipeline_mode = #tpu.pipeline_mode<synchronous>, transform_indices = @transform_3, window_bounds = array<i64: 16, 1>}, {pipeline_mode = #tpu.pipeline_mode<synchronous>, transform_indices = @transform_4, window_bounds = array<i64: 32, 38>}, {pipeline_mode = #tpu.pipeline_mode<synchronous>, transform_indices = @transform_5, window_bounds = array<i64: 32, 1>}, {pipeline_mode = #tpu.pipeline_mode<synchronous>, transform_indices = @transform_6, window_bounds = array<i64: 128, 128>}, {pipeline_mode = #tpu.pipeline_mode<synchronous>, transform_indices = @transform_7, window_bounds = array<i64: 128, 128>}, {pipeline_mode = #tpu.pipeline_mode<synchronous>, transform_indices = @transform_8, window_bounds = array<i64: 32, 112>}, {pipeline_mode = #tpu.pipeline_mode<synchronous>, transform_indices = @transform_9, window_bounds = array<i64: 32, 1>}, {pipeline_mode = #tpu.pipeline_mode<synchronous>, transform_indices = @transform_10, window_bounds = array<i64: 32, 208>}, {pipeline_mode = #tpu.pipeline_mode<synchronous>, transform_indices = @transform_11, window_bounds = array<i64: 32, 1>}, {pipeline_mode = #tpu.pipeline_mode<synchronous>, transform_indices = @transform_12, window_bounds = array<i64: 16, 96>}, {pipeline_mode = #tpu.pipeline_mode<synchronous>, transform_indices = @transform_13, window_bounds = array<i64: 16, 1>}, {pipeline_mode = #tpu.pipeline_mode<synchronous>, transform_indices = @transform_14, window_bounds = array<i64: 16, 1664>}, {pipeline_mode = #tpu.pipeline_mode<synchronous>, transform_indices = @transform_15, window_bounds = array<i64: 16, 1664>}, {pipeline_mode = #tpu.pipeline_mode<synchronous>, transform_indices = @transform_16, window_bounds = array<i64: 32, 112>}, {pipeline_mode = #tpu.pipeline_mode<synchronous>, transform_indices = @transform_17, window_bounds = array<i64: 32, 1>}, {pipeline_mode = #tpu.pipeline_mode<synchronous>, transform_indices = @transform_18, window_bounds = array<i64: 32, 112>}, {pipeline_mode = #tpu.pipeline_mode<synchronous>, transform_indices = @transform_19, window_bounds = array<i64: 32, 1>}, {pipeline_mode = #tpu.pipeline_mode<synchronous>, transform_indices = @transform_20, window_bounds = array<i64: 16, 96>}, {pipeline_mode = #tpu.pipeline_mode<synchronous>, transform_indices = @transform_21, window_bounds = array<i64: 16, 1>}, {pipeline_mode = #tpu.pipeline_mode<synchronous>, transform_indices = @transform_22, window_bounds = array<i64: 16, 896>}, {pipeline_mode = #tpu.pipeline_mode<synchronous>, transform_indices = @transform_23, window_bounds = array<i64: 16, 896>}, {pipeline_mode = #tpu.pipeline_mode<synchronous>, transform_indices = @transform_24, window_bounds = array<i64: 32, 112>}, {pipeline_mode = #tpu.pipeline_mode<synchronous>, transform_indices = @transform_25, window_bounds = array<i64: 32, 1>}, {pipeline_mode = #tpu.pipeline_mode<synchronous>, transform_indices = @transform_26, window_bounds = array<i64: 32, 16>}, {pipeline_mode = #tpu.pipeline_mode<synchronous>, transform_indices = @transform_27, window_bounds = array<i64: 32, 1>}, {pipeline_mode = #tpu.pipeline_mode<synchronous>, transform_indices = @transform_28, window_bounds = array<i64: 16, 96>}, {pipeline_mode = #tpu.pipeline_mode<synchronous>, transform_indices = @transform_29, window_bounds = array<i64: 16, 1>}, {pipeline_mode = #tpu.pipeline_mode<synchronous>, transform_indices = @transform_30, window_bounds = array<i64: 16, 128>}, {pipeline_mode = #tpu.pipeline_mode<synchronous>, transform_indices = @transform_31, window_bounds = array<i64: 16, 128>}, {pipeline_mode = #tpu.pipeline_mode<synchronous>, transform_indices = @transform_32, window_bounds = array<i64: 32, 16>}, {pipeline_mode = #tpu.pipeline_mode<synchronous>, transform_indices = @transform_33, window_bounds = array<i64: 32, 1>}, {pipeline_mode = #tpu.pipeline_mode<synchronous>, transform_indices = @transform_34, window_bounds = array<i64: 64, 32>}, {pipeline_mode = #tpu.pipeline_mode<synchronous>, transform_indices = @transform_35, window_bounds = array<i64: 64, 1>}, {pipeline_mode = #tpu.pipeline_mode<synchronous>, transform_indices = @transform_36, window_bounds = array<i64: 12, 64>}, {pipeline_mode = #tpu.pipeline_mode<synchronous>, transform_indices = @transform_37, window_bounds = array<i64: 12, 1>}, {transform_indices = @transform_38, window_bounds = array<i64: 1, 12, 128>}]} {
    %c0 = arith.constant 0 : index
    %c0_0 = arith.constant 0 : index
    %0 = vector.load %arg3[%c0, %c0_0] : memref<16x2xf32, #tpu.memory_space<vmem>>, vector<16x2xf32>
    %c0_1 = arith.constant 0 : index
    %c0_2 = arith.constant 0 : index
    %1 = vector.load %arg4[%c0_1, %c0_2] : memref<16x1xf32, #tpu.memory_space<vmem>>, vector<16x1xf32>
    %c0_3 = arith.constant 0 : index
    %c0_4 = arith.constant 0 : index
    %2 = vector.load %arg5[%c0_3, %c0_4] : memref<32x38xf32, #tpu.memory_space<vmem>>, vector<32x38xf32>
    %c0_5 = arith.constant 0 : index
    %c0_6 = arith.constant 0 : index
    %3 = vector.load %arg6[%c0_5, %c0_6] : memref<32x1xf32, #tpu.memory_space<vmem>>, vector<32x1xf32>
    %c0_7 = arith.constant 0 : index
    %c0_8 = arith.constant 0 : index
    %4 = vector.load %arg7[%c0_7, %c0_8] : memref<128x128xf32, #tpu.memory_space<vmem>>, vector<128x128xf32>
    %c0_9 = arith.constant 0 : index
    %c0_10 = arith.constant 0 : index
    %5 = vector.load %arg8[%c0_9, %c0_10] : memref<128x128xf32, #tpu.memory_space<vmem>>, vector<128x128xf32>
    %c0_11 = arith.constant 0 : index
    %c0_12 = arith.constant 0 : index
    %c0_13 = arith.constant 0 : index
    %6 = vector.load %arg1[%c0_11, %c0_12, %c0_13] : memref<1x2x2432xf32, #tpu.memory_space<vmem>>, vector<1x2x2432xf32>
    %7 = vector.shape_cast %6 : vector<1x2x2432xf32> to vector<2x2432xf32>
    %cst = arith.constant dense<0.000000e+00> : vector<16x2432xf32>
    %8 = tpu.matmul %0, %7, %cst {dimension_numbers = #tpu.dot_dimension_numbers<[1], [0], [0], [1], [0, 0, 1, 1], [], []>} : vector<16x2xf32>, vector<2x2432xf32>, vector<16x2432xf32> -> vector<16x2432xf32>
    %9 = vector.broadcast %1 : vector<16x1xf32> to vector<16x2432xf32>
    %10 = arith.addf %8, %9 : vector<16x2432xf32>
    %c0_14 = arith.constant 0 : index
    %c0_15 = arith.constant 0 : index
    %c0_16 = arith.constant 0 : index
    %11 = vector.load %arg2[%c0_14, %c0_15, %c0_16] : memref<1x38x128xf32, #tpu.memory_space<vmem>>, vector<1x38x128xf32>
    %12 = vector.shape_cast %11 : vector<1x38x128xf32> to vector<38x128xf32>
    %cst_17 = arith.constant dense<0.000000e+00> : vector<32x128xf32>
    %13 = tpu.matmul %2, %12, %cst_17 {dimension_numbers = #tpu.dot_dimension_numbers<[1], [0], [0], [1], [0, 0, 1, 1], [], []>} : vector<32x38xf32>, vector<38x128xf32>, vector<32x128xf32> -> vector<32x128xf32>
    %14 = vector.broadcast %3 : vector<32x1xf32> to vector<32x128xf32>
    %15 = arith.addf %13, %14 : vector<32x128xf32>
    %c0_18 = arith.constant 0 : index
    %c0_19 = arith.constant 0 : index
    %16 = vector.load %arg9[%c0_18, %c0_19] : memref<32x112xf32, #tpu.memory_space<vmem>>, vector<32x112xf32>
    %c0_20 = arith.constant 0 : index
    %c0_21 = arith.constant 0 : index
    %17 = vector.load %arg10[%c0_20, %c0_21] : memref<32x1xf32, #tpu.memory_space<vmem>>, vector<32x1xf32>
    %c0_22 = arith.constant 0 : index
    %c0_23 = arith.constant 0 : index
    %18 = vector.load %arg11[%c0_22, %c0_23] : memref<32x208xf32, #tpu.memory_space<vmem>>, vector<32x208xf32>
    %c0_24 = arith.constant 0 : index
    %c0_25 = arith.constant 0 : index
    %19 = vector.load %arg12[%c0_24, %c0_25] : memref<32x1xf32, #tpu.memory_space<vmem>>, vector<32x1xf32>
    %c0_26 = arith.constant 0 : index
    %c0_27 = arith.constant 0 : index
    %20 = vector.load %arg13[%c0_26, %c0_27] : memref<16x96xf32, #tpu.memory_space<vmem>>, vector<16x96xf32>
    %c0_28 = arith.constant 0 : index
    %c0_29 = arith.constant 0 : index
    %21 = vector.load %arg14[%c0_28, %c0_29] : memref<16x1xf32, #tpu.memory_space<vmem>>, vector<16x1xf32>
    %c0_30 = arith.constant 0 : index
    %c0_31 = arith.constant 0 : index
    %22 = vector.load %arg15[%c0_30, %c0_31] : memref<16x1664xf32, #tpu.memory_space<vmem>>, vector<16x1664xf32>
    %c0_32 = arith.constant 0 : index
    %c0_33 = arith.constant 0 : index
    %23 = vector.load %arg16[%c0_32, %c0_33] : memref<16x1664xf32, #tpu.memory_space<vmem>>, vector<16x1664xf32>
    %24 = vector.extract_strided_slice %10 {offsets = [0, 0], sizes = [16, 1664], strides = [1, 1]} : vector<16x2432xf32> to vector<16x1664xf32>
    %25 = vector.extract_strided_slice %10 {offsets = [0, 128], sizes = [16, 1664], strides = [1, 1]} : vector<16x2432xf32> to vector<16x1664xf32>
    %26 = vector.extract_strided_slice %10 {offsets = [0, 256], sizes = [16, 1664], strides = [1, 1]} : vector<16x2432xf32> to vector<16x1664xf32>
    %27 = vector.extract_strided_slice %10 {offsets = [0, 384], sizes = [16, 1664], strides = [1, 1]} : vector<16x2432xf32> to vector<16x1664xf32>
    %28 = vector.extract_strided_slice %10 {offsets = [0, 512], sizes = [16, 1664], strides = [1, 1]} : vector<16x2432xf32> to vector<16x1664xf32>
    %29 = vector.extract_strided_slice %10 {offsets = [0, 640], sizes = [16, 1664], strides = [1, 1]} : vector<16x2432xf32> to vector<16x1664xf32>
    %30 = vector.extract_strided_slice %10 {offsets = [0, 768], sizes = [16, 1664], strides = [1, 1]} : vector<16x2432xf32> to vector<16x1664xf32>
    %31 = tpu.concatenate %24, %25, %26, %27, %28, %29, %30 in 0 : vector<16x1664xf32>, vector<16x1664xf32>, vector<16x1664xf32>, vector<16x1664xf32>, vector<16x1664xf32>, vector<16x1664xf32>, vector<16x1664xf32> -> vector<112x1664xf32>
    %cst_34 = arith.constant dense<0.000000e+00> : vector<32x1664xf32>
    %32 = tpu.matmul %16, %31, %cst_34 {dimension_numbers = #tpu.dot_dimension_numbers<[1], [0], [0], [1], [0, 0, 1, 1], [], []>} : vector<32x112xf32>, vector<112x1664xf32>, vector<32x1664xf32> -> vector<32x1664xf32>
    %33 = vector.broadcast %17 : vector<32x1xf32> to vector<32x1664xf32>
    %34 = arith.addf %32, %33 : vector<32x1664xf32>
    %35 = vector.extract_strided_slice %34 {offsets = [0, 0], sizes = [16, 1664], strides = [1, 1]} : vector<32x1664xf32> to vector<16x1664xf32>
    %36 = math.tanh %35 : vector<16x1664xf32>
    %37 = vector.extract_strided_slice %34 {offsets = [16, 0], sizes = [16, 1664], strides = [1, 1]} : vector<32x1664xf32> to vector<16x1664xf32>
    %cst_35 = arith.constant 5.000000e-01 : f32
    %38 = vector.broadcast %cst_35 : f32 to vector<16x1664xf32>
    %39 = arith.mulf %38, %37 : vector<16x1664xf32>
    %40 = math.tanh %39 : vector<16x1664xf32>
    %cst_36 = arith.constant 1.000000e+00 : f32
    %41 = vector.broadcast %cst_36 : f32 to vector<16x1664xf32>
    %42 = arith.addf %40, %41 : vector<16x1664xf32>
    %cst_37 = arith.constant 5.000000e-01 : f32
    %43 = vector.broadcast %cst_37 : f32 to vector<16x1664xf32>
    %44 = arith.mulf %43, %42 : vector<16x1664xf32>
    %45 = arith.mulf %36, %44 : vector<16x1664xf32>
    %46 = vector.extract_strided_slice %45 {offsets = [0, 0], sizes = [16, 128], strides = [1, 1]} : vector<16x1664xf32> to vector<16x128xf32>
    %47 = vector.extract_strided_slice %45 {offsets = [0, 128], sizes = [16, 128], strides = [1, 1]} : vector<16x1664xf32> to vector<16x128xf32>
    %48 = vector.extract_strided_slice %45 {offsets = [0, 256], sizes = [16, 128], strides = [1, 1]} : vector<16x1664xf32> to vector<16x128xf32>
    %49 = vector.extract_strided_slice %45 {offsets = [0, 384], sizes = [16, 128], strides = [1, 1]} : vector<16x1664xf32> to vector<16x128xf32>
    %50 = vector.extract_strided_slice %45 {offsets = [0, 512], sizes = [16, 128], strides = [1, 1]} : vector<16x1664xf32> to vector<16x128xf32>
    %51 = vector.extract_strided_slice %45 {offsets = [0, 640], sizes = [16, 128], strides = [1, 1]} : vector<16x1664xf32> to vector<16x128xf32>
    %52 = vector.extract_strided_slice %45 {offsets = [0, 768], sizes = [16, 128], strides = [1, 1]} : vector<16x1664xf32> to vector<16x128xf32>
    %53 = vector.extract_strided_slice %45 {offsets = [0, 896], sizes = [16, 128], strides = [1, 1]} : vector<16x1664xf32> to vector<16x128xf32>
    %54 = vector.extract_strided_slice %45 {offsets = [0, 1024], sizes = [16, 128], strides = [1, 1]} : vector<16x1664xf32> to vector<16x128xf32>
    %55 = vector.extract_strided_slice %45 {offsets = [0, 1152], sizes = [16, 128], strides = [1, 1]} : vector<16x1664xf32> to vector<16x128xf32>
    %56 = vector.extract_strided_slice %45 {offsets = [0, 1280], sizes = [16, 128], strides = [1, 1]} : vector<16x1664xf32> to vector<16x128xf32>
    %57 = vector.extract_strided_slice %45 {offsets = [0, 1408], sizes = [16, 128], strides = [1, 1]} : vector<16x1664xf32> to vector<16x128xf32>
    %58 = vector.extract_strided_slice %45 {offsets = [0, 1536], sizes = [16, 128], strides = [1, 1]} : vector<16x1664xf32> to vector<16x128xf32>
    %59 = tpu.concatenate %46, %47, %48, %49, %50, %51, %52, %53, %54, %55, %56, %57, %58 in 0 : vector<16x128xf32>, vector<16x128xf32>, vector<16x128xf32>, vector<16x128xf32>, vector<16x128xf32>, vector<16x128xf32>, vector<16x128xf32>, vector<16x128xf32>, vector<16x128xf32>, vector<16x128xf32>, vector<16x128xf32>, vector<16x128xf32>, vector<16x128xf32> -> vector<208x128xf32>
    %cst_38 = arith.constant dense<0.000000e+00> : vector<32x128xf32>
    %60 = tpu.matmul %18, %59, %cst_38 {dimension_numbers = #tpu.dot_dimension_numbers<[1], [0], [0], [1], [0, 0, 1, 1], [], []>} : vector<32x208xf32>, vector<208x128xf32>, vector<32x128xf32> -> vector<32x128xf32>
    %61 = arith.addf %15, %60 : vector<32x128xf32>
    %62 = vector.broadcast %19 : vector<32x1xf32> to vector<32x128xf32>
    %63 = arith.addf %61, %62 : vector<32x128xf32>
    %cst_39 = arith.constant 5.000000e-02 : f32
    %64 = vector.broadcast %cst_39 : f32 to vector<208x128xf32>
    %65 = arith.mulf %64, %59 : vector<208x128xf32>
    %cst_40 = arith.constant dense<0.000000e+00> : vector<208x128xf32>
    %66 = tpu.matmul %59, %4, %cst_40 {dimension_numbers = #tpu.dot_dimension_numbers<[1], [0], [0], [1], [0, 0, 1, 1], [], []>} : vector<208x128xf32>, vector<128x128xf32>, vector<208x128xf32> -> vector<208x128xf32>
    %cst_41 = arith.constant 0.949999988 : f32
    %67 = vector.broadcast %cst_41 : f32 to vector<208x128xf32>
    %68 = arith.mulf %67, %66 : vector<208x128xf32>
    %69 = arith.addf %65, %68 : vector<208x128xf32>
    %cst_42 = arith.constant 5.000000e-02 : f32
    %70 = vector.broadcast %cst_42 : f32 to vector<208x128xf32>
    %71 = arith.mulf %70, %59 : vector<208x128xf32>
    %cst_43 = arith.constant dense<0.000000e+00> : vector<208x128xf32>
    %72 = tpu.matmul %59, %5, %cst_43 {dimension_numbers = #tpu.dot_dimension_numbers<[1], [0], [0], [1], [0, 0, 1, 1], [], []>} : vector<208x128xf32>, vector<128x128xf32>, vector<208x128xf32> -> vector<208x128xf32>
    %cst_44 = arith.constant 0.949999988 : f32
    %73 = vector.broadcast %cst_44 : f32 to vector<208x128xf32>
    %74 = arith.mulf %73, %72 : vector<208x128xf32>
    %75 = arith.addf %71, %74 : vector<208x128xf32>
    %76 = vector.extract_strided_slice %69 {offsets = [0, 0], sizes = [16, 128], strides = [1, 1]} : vector<208x128xf32> to vector<16x128xf32>
    %77 = vector.extract_strided_slice %69 {offsets = [16, 0], sizes = [16, 128], strides = [1, 1]} : vector<208x128xf32> to vector<16x128xf32>
    %78 = vector.extract_strided_slice %69 {offsets = [32, 0], sizes = [16, 128], strides = [1, 1]} : vector<208x128xf32> to vector<16x128xf32>
    %79 = vector.extract_strided_slice %69 {offsets = [48, 0], sizes = [16, 128], strides = [1, 1]} : vector<208x128xf32> to vector<16x128xf32>
    %80 = vector.extract_strided_slice %69 {offsets = [64, 0], sizes = [16, 128], strides = [1, 1]} : vector<208x128xf32> to vector<16x128xf32>
    %81 = vector.extract_strided_slice %69 {offsets = [80, 0], sizes = [16, 128], strides = [1, 1]} : vector<208x128xf32> to vector<16x128xf32>
    %82 = vector.extract_strided_slice %69 {offsets = [96, 0], sizes = [16, 128], strides = [1, 1]} : vector<208x128xf32> to vector<16x128xf32>
    %83 = vector.extract_strided_slice %69 {offsets = [112, 0], sizes = [16, 128], strides = [1, 1]} : vector<208x128xf32> to vector<16x128xf32>
    %84 = vector.extract_strided_slice %69 {offsets = [128, 0], sizes = [16, 128], strides = [1, 1]} : vector<208x128xf32> to vector<16x128xf32>
    %85 = vector.extract_strided_slice %69 {offsets = [144, 0], sizes = [16, 128], strides = [1, 1]} : vector<208x128xf32> to vector<16x128xf32>
    %86 = vector.extract_strided_slice %69 {offsets = [160, 0], sizes = [16, 128], strides = [1, 1]} : vector<208x128xf32> to vector<16x128xf32>
    %87 = vector.extract_strided_slice %69 {offsets = [176, 0], sizes = [16, 128], strides = [1, 1]} : vector<208x128xf32> to vector<16x128xf32>
    %88 = vector.extract_strided_slice %69 {offsets = [192, 0], sizes = [16, 128], strides = [1, 1]} : vector<208x128xf32> to vector<16x128xf32>
    %89 = tpu.concatenate %76, %77, %78, %79, %80, %81, %82, %83, %84, %85, %86, %87, %88 in 1 : vector<16x128xf32>, vector<16x128xf32>, vector<16x128xf32>, vector<16x128xf32>, vector<16x128xf32>, vector<16x128xf32>, vector<16x128xf32>, vector<16x128xf32>, vector<16x128xf32>, vector<16x128xf32>, vector<16x128xf32>, vector<16x128xf32>, vector<16x128xf32> -> vector<16x1664xf32>
    %90 = vector.extract_strided_slice %75 {offsets = [0, 0], sizes = [16, 128], strides = [1, 1]} : vector<208x128xf32> to vector<16x128xf32>
    %91 = vector.extract_strided_slice %75 {offsets = [16, 0], sizes = [16, 128], strides = [1, 1]} : vector<208x128xf32> to vector<16x128xf32>
    %92 = vector.extract_strided_slice %75 {offsets = [32, 0], sizes = [16, 128], strides = [1, 1]} : vector<208x128xf32> to vector<16x128xf32>
    %93 = vector.extract_strided_slice %75 {offsets = [48, 0], sizes = [16, 128], strides = [1, 1]} : vector<208x128xf32> to vector<16x128xf32>
    %94 = vector.extract_strided_slice %75 {offsets = [64, 0], sizes = [16, 128], strides = [1, 1]} : vector<208x128xf32> to vector<16x128xf32>
    %95 = vector.extract_strided_slice %75 {offsets = [80, 0], sizes = [16, 128], strides = [1, 1]} : vector<208x128xf32> to vector<16x128xf32>
    %96 = vector.extract_strided_slice %75 {offsets = [96, 0], sizes = [16, 128], strides = [1, 1]} : vector<208x128xf32> to vector<16x128xf32>
    %97 = vector.extract_strided_slice %75 {offsets = [112, 0], sizes = [16, 128], strides = [1, 1]} : vector<208x128xf32> to vector<16x128xf32>
    %98 = vector.extract_strided_slice %75 {offsets = [128, 0], sizes = [16, 128], strides = [1, 1]} : vector<208x128xf32> to vector<16x128xf32>
    %99 = vector.extract_strided_slice %75 {offsets = [144, 0], sizes = [16, 128], strides = [1, 1]} : vector<208x128xf32> to vector<16x128xf32>
    %100 = vector.extract_strided_slice %75 {offsets = [160, 0], sizes = [16, 128], strides = [1, 1]} : vector<208x128xf32> to vector<16x128xf32>
    %101 = vector.extract_strided_slice %75 {offsets = [176, 0], sizes = [16, 128], strides = [1, 1]} : vector<208x128xf32> to vector<16x128xf32>
    %102 = vector.extract_strided_slice %75 {offsets = [192, 0], sizes = [16, 128], strides = [1, 1]} : vector<208x128xf32> to vector<16x128xf32>
    %103 = tpu.concatenate %90, %91, %92, %93, %94, %95, %96, %97, %98, %99, %100, %101, %102 in 1 : vector<16x128xf32>, vector<16x128xf32>, vector<16x128xf32>, vector<16x128xf32>, vector<16x128xf32>, vector<16x128xf32>, vector<16x128xf32>, vector<16x128xf32>, vector<16x128xf32>, vector<16x128xf32>, vector<16x128xf32>, vector<16x128xf32>, vector<16x128xf32> -> vector<16x1664xf32>
    %cst_45 = arith.constant 5.000000e-02 : f32
    %104 = vector.broadcast %cst_45 : f32 to vector<208x128xf32>
    %105 = arith.mulf %104, %59 : vector<208x128xf32>
    %cst_46 = arith.constant dense<0.000000e+00> : vector<208x128xf32>
    %106 = tpu.matmul %69, %4, %cst_46 {dimension_numbers = #tpu.dot_dimension_numbers<[1], [0], [0], [1], [0, 0, 1, 1], [], []>} : vector<208x128xf32>, vector<128x128xf32>, vector<208x128xf32> -> vector<208x128xf32>
    %cst_47 = arith.constant 0.949999988 : f32
    %107 = vector.broadcast %cst_47 : f32 to vector<208x128xf32>
    %108 = arith.mulf %107, %106 : vector<208x128xf32>
    %109 = arith.addf %105, %108 : vector<208x128xf32>
    %cst_48 = arith.constant 5.000000e-02 : f32
    %110 = vector.broadcast %cst_48 : f32 to vector<208x128xf32>
    %111 = arith.mulf %110, %59 : vector<208x128xf32>
    %cst_49 = arith.constant dense<0.000000e+00> : vector<208x128xf32>
    %112 = tpu.matmul %75, %5, %cst_49 {dimension_numbers = #tpu.dot_dimension_numbers<[1], [0], [0], [1], [0, 0, 1, 1], [], []>} : vector<208x128xf32>, vector<128x128xf32>, vector<208x128xf32> -> vector<208x128xf32>
    %cst_50 = arith.constant 0.949999988 : f32
    %113 = vector.broadcast %cst_50 : f32 to vector<208x128xf32>
    %114 = arith.mulf %113, %112 : vector<208x128xf32>
    %115 = arith.addf %111, %114 : vector<208x128xf32>
    %116 = vector.extract_strided_slice %109 {offsets = [0, 0], sizes = [16, 128], strides = [1, 1]} : vector<208x128xf32> to vector<16x128xf32>
    %117 = vector.extract_strided_slice %109 {offsets = [16, 0], sizes = [16, 128], strides = [1, 1]} : vector<208x128xf32> to vector<16x128xf32>
    %118 = vector.extract_strided_slice %109 {offsets = [32, 0], sizes = [16, 128], strides = [1, 1]} : vector<208x128xf32> to vector<16x128xf32>
    %119 = vector.extract_strided_slice %109 {offsets = [48, 0], sizes = [16, 128], strides = [1, 1]} : vector<208x128xf32> to vector<16x128xf32>
    %120 = vector.extract_strided_slice %109 {offsets = [64, 0], sizes = [16, 128], strides = [1, 1]} : vector<208x128xf32> to vector<16x128xf32>
    %121 = vector.extract_strided_slice %109 {offsets = [80, 0], sizes = [16, 128], strides = [1, 1]} : vector<208x128xf32> to vector<16x128xf32>
    %122 = vector.extract_strided_slice %109 {offsets = [96, 0], sizes = [16, 128], strides = [1, 1]} : vector<208x128xf32> to vector<16x128xf32>
    %123 = vector.extract_strided_slice %109 {offsets = [112, 0], sizes = [16, 128], strides = [1, 1]} : vector<208x128xf32> to vector<16x128xf32>
    %124 = vector.extract_strided_slice %109 {offsets = [128, 0], sizes = [16, 128], strides = [1, 1]} : vector<208x128xf32> to vector<16x128xf32>
    %125 = vector.extract_strided_slice %109 {offsets = [144, 0], sizes = [16, 128], strides = [1, 1]} : vector<208x128xf32> to vector<16x128xf32>
    %126 = vector.extract_strided_slice %109 {offsets = [160, 0], sizes = [16, 128], strides = [1, 1]} : vector<208x128xf32> to vector<16x128xf32>
    %127 = vector.extract_strided_slice %109 {offsets = [176, 0], sizes = [16, 128], strides = [1, 1]} : vector<208x128xf32> to vector<16x128xf32>
    %128 = vector.extract_strided_slice %109 {offsets = [192, 0], sizes = [16, 128], strides = [1, 1]} : vector<208x128xf32> to vector<16x128xf32>
    %129 = tpu.concatenate %116, %117, %118, %119, %120, %121, %122, %123, %124, %125, %126, %127, %128 in 1 : vector<16x128xf32>, vector<16x128xf32>, vector<16x128xf32>, vector<16x128xf32>, vector<16x128xf32>, vector<16x128xf32>, vector<16x128xf32>, vector<16x128xf32>, vector<16x128xf32>, vector<16x128xf32>, vector<16x128xf32>, vector<16x128xf32>, vector<16x128xf32> -> vector<16x1664xf32>
    %130 = vector.extract_strided_slice %115 {offsets = [0, 0], sizes = [16, 128], strides = [1, 1]} : vector<208x128xf32> to vector<16x128xf32>
    %131 = vector.extract_strided_slice %115 {offsets = [16, 0], sizes = [16, 128], strides = [1, 1]} : vector<208x128xf32> to vector<16x128xf32>
    %132 = vector.extract_strided_slice %115 {offsets = [32, 0], sizes = [16, 128], strides = [1, 1]} : vector<208x128xf32> to vector<16x128xf32>
    %133 = vector.extract_strided_slice %115 {offsets = [48, 0], sizes = [16, 128], strides = [1, 1]} : vector<208x128xf32> to vector<16x128xf32>
    %134 = vector.extract_strided_slice %115 {offsets = [64, 0], sizes = [16, 128], strides = [1, 1]} : vector<208x128xf32> to vector<16x128xf32>
    %135 = vector.extract_strided_slice %115 {offsets = [80, 0], sizes = [16, 128], strides = [1, 1]} : vector<208x128xf32> to vector<16x128xf32>
    %136 = vector.extract_strided_slice %115 {offsets = [96, 0], sizes = [16, 128], strides = [1, 1]} : vector<208x128xf32> to vector<16x128xf32>
    %137 = vector.extract_strided_slice %115 {offsets = [112, 0], sizes = [16, 128], strides = [1, 1]} : vector<208x128xf32> to vector<16x128xf32>
    %138 = vector.extract_strided_slice %115 {offsets = [128, 0], sizes = [16, 128], strides = [1, 1]} : vector<208x128xf32> to vector<16x128xf32>
    %139 = vector.extract_strided_slice %115 {offsets = [144, 0], sizes = [16, 128], strides = [1, 1]} : vector<208x128xf32> to vector<16x128xf32>
    %140 = vector.extract_strided_slice %115 {offsets = [160, 0], sizes = [16, 128], strides = [1, 1]} : vector<208x128xf32> to vector<16x128xf32>
    %141 = vector.extract_strided_slice %115 {offsets = [176, 0], sizes = [16, 128], strides = [1, 1]} : vector<208x128xf32> to vector<16x128xf32>
    %142 = vector.extract_strided_slice %115 {offsets = [192, 0], sizes = [16, 128], strides = [1, 1]} : vector<208x128xf32> to vector<16x128xf32>
    %143 = tpu.concatenate %130, %131, %132, %133, %134, %135, %136, %137, %138, %139, %140, %141, %142 in 1 : vector<16x128xf32>, vector<16x128xf32>, vector<16x128xf32>, vector<16x128xf32>, vector<16x128xf32>, vector<16x128xf32>, vector<16x128xf32>, vector<16x128xf32>, vector<16x128xf32>, vector<16x128xf32>, vector<16x128xf32>, vector<16x128xf32>, vector<16x128xf32> -> vector<16x1664xf32>
    %144 = tpu.concatenate %45, %89, %129, %45, %103, %143 in 0 : vector<16x1664xf32>, vector<16x1664xf32>, vector<16x1664xf32>, vector<16x1664xf32>, vector<16x1664xf32>, vector<16x1664xf32> -> vector<96x1664xf32>
    %cst_51 = arith.constant dense<0.000000e+00> : vector<16x1664xf32>
    %145 = tpu.matmul %20, %144, %cst_51 {dimension_numbers = #tpu.dot_dimension_numbers<[1], [0], [0], [1], [0, 0, 1, 1], [], []>} : vector<16x96xf32>, vector<96x1664xf32>, vector<16x1664xf32> -> vector<16x1664xf32>
    %146 = vector.broadcast %21 : vector<16x1xf32> to vector<16x1664xf32>
    %147 = arith.addf %145, %146 : vector<16x1664xf32>
    %148 = vector.extract_strided_slice %10 {offsets = [0, 768], sizes = [16, 1664], strides = [1, 1]} : vector<16x2432xf32> to vector<16x1664xf32>
    %149 = arith.addf %147, %148 : vector<16x1664xf32>
    %150 = tpu.iota {dimensions = array<i32: 1>} : vector<16x1664xi32>
    %c128_i32 = arith.constant 128 : i32
    %c0_i32 = arith.constant 0 : i32
    %151 = arith.cmpi eq, %c128_i32, %c0_i32 : i32
    %c1_i32 = arith.constant 1 : i32
    %152 = arith.select %151, %c1_i32, %c128_i32 : i32
    %153 = vector.broadcast %152 : i32 to vector<16x1664xi32>
    %154 = arith.remsi %150, %153 : vector<16x1664xi32>
    %c0_i32_52 = arith.constant 0 : i32
    %155 = vector.broadcast %c0_i32_52 : i32 to vector<16x1664xi32>
    %156 = arith.cmpi ne, %154, %155 : vector<16x1664xi32>
    %c0_i32_53 = arith.constant 0 : i32
    %157 = vector.broadcast %c0_i32_53 : i32 to vector<16x1664xi32>
    %158 = arith.cmpi slt, %154, %157 : vector<16x1664xi32>
    %c0_i32_54 = arith.constant 0 : i32
    %159 = arith.cmpi slt, %152, %c0_i32_54 : i32
    %160 = vector.broadcast %159 : i1 to vector<16x1664xi1>
    %161 = vector.broadcast %160 : vector<16x1664xi1> to vector<16x1664xi1>
    %162 = arith.xori %158, %161 : vector<16x1664xi1>
    %163 = arith.andi %162, %156 : vector<16x1664xi1>
    %164 = vector.broadcast %152 : i32 to vector<16x1664xi32>
    %165 = arith.addi %154, %164 : vector<16x1664xi32>
    %166 = arith.select %163, %165, %154 : vector<16x1664xi1>, vector<16x1664xi32>
    %c10_i32 = arith.constant 10 : i32
    %167 = vector.broadcast %c10_i32 : i32 to vector<16x1664xi32>
    %168 = arith.cmpi slt, %166, %167 : vector<16x1664xi32>
    %169 = arith.extui %168 : vector<16x1664xi1> to vector<16x1664xi32>
    %170 = arith.sitofp %169 : vector<16x1664xi32> to vector<16x1664xf32>
    %171 = arith.mulf %149, %170 : vector<16x1664xf32>
    %172 = vector.shape_cast %171 : vector<16x1664xf32> to vector<1x16x1664xf32>
    %cst_55 = arith.constant dense<0.000000e+00> : vector<1xf32>
    %173 = vector.multi_reduction <add>, %172, %cst_55 [1, 2] : vector<1x16x1664xf32> to vector<1xf32>
    %174 = vector.shape_cast %173 : vector<1xf32> to vector<1x1x1xf32>
    %175 = vector.extract %174[0, 0, 0] : f32 from vector<1x1x1xf32>
    %cst_56 = arith.constant 2.080000e+03 : f32
    %176 = arith.divf %175, %cst_56 : f32
    %177 = vector.broadcast %176 : f32 to vector<16x1664xf32>
    %178 = arith.subf %149, %177 : vector<16x1664xf32>
    %179 = arith.mulf %178, %178 : vector<16x1664xf32>
    %180 = arith.mulf %179, %170 : vector<16x1664xf32>
    %181 = vector.shape_cast %180 : vector<16x1664xf32> to vector<1x16x1664xf32>
    %cst_57 = arith.constant dense<0.000000e+00> : vector<1xf32>
    %182 = vector.multi_reduction <add>, %181, %cst_57 [1, 2] : vector<1x16x1664xf32> to vector<1xf32>
    %183 = vector.shape_cast %182 : vector<1xf32> to vector<1x1x1xf32>
    %184 = vector.extract %183[0, 0, 0] : f32 from vector<1x1x1xf32>
    %cst_58 = arith.constant 2.080000e+03 : f32
    %185 = arith.divf %184, %cst_58 : f32
    %cst_59 = arith.constant 9.99999974E-6 : f32
    %186 = arith.addf %185, %cst_59 : f32
    %187 = math.rsqrt %186 : f32
    %188 = vector.broadcast %187 : f32 to vector<16x1664xf32>
    %189 = arith.mulf %178, %188 : vector<16x1664xf32>
    %190 = arith.mulf %189, %22 : vector<16x1664xf32>
    %191 = arith.addf %190, %23 : vector<16x1664xf32>
    %c0_60 = arith.constant 0 : index
    %c0_61 = arith.constant 0 : index
    %192 = vector.load %arg17[%c0_60, %c0_61] : memref<32x112xf32, #tpu.memory_space<vmem>>, vector<32x112xf32>
    %c0_62 = arith.constant 0 : index
    %c0_63 = arith.constant 0 : index
    %193 = vector.load %arg18[%c0_62, %c0_63] : memref<32x1xf32, #tpu.memory_space<vmem>>, vector<32x1xf32>
    %c0_64 = arith.constant 0 : index
    %c0_65 = arith.constant 0 : index
    %194 = vector.load %arg19[%c0_64, %c0_65] : memref<32x112xf32, #tpu.memory_space<vmem>>, vector<32x112xf32>
    %c0_66 = arith.constant 0 : index
    %c0_67 = arith.constant 0 : index
    %195 = vector.load %arg20[%c0_66, %c0_67] : memref<32x1xf32, #tpu.memory_space<vmem>>, vector<32x1xf32>
    %c0_68 = arith.constant 0 : index
    %c0_69 = arith.constant 0 : index
    %196 = vector.load %arg21[%c0_68, %c0_69] : memref<16x96xf32, #tpu.memory_space<vmem>>, vector<16x96xf32>
    %c0_70 = arith.constant 0 : index
    %c0_71 = arith.constant 0 : index
    %197 = vector.load %arg22[%c0_70, %c0_71] : memref<16x1xf32, #tpu.memory_space<vmem>>, vector<16x1xf32>
    %c0_72 = arith.constant 0 : index
    %c0_73 = arith.constant 0 : index
    %198 = vector.load %arg23[%c0_72, %c0_73] : memref<16x896xf32, #tpu.memory_space<vmem>>, vector<16x896xf32>
    %c0_74 = arith.constant 0 : index
    %c0_75 = arith.constant 0 : index
    %199 = vector.load %arg24[%c0_74, %c0_75] : memref<16x896xf32, #tpu.memory_space<vmem>>, vector<16x896xf32>
    %200 = vector.extract_strided_slice %191 {offsets = [0, 0], sizes = [16, 896], strides = [1, 1]} : vector<16x1664xf32> to vector<16x896xf32>
    %201 = vector.extract_strided_slice %191 {offsets = [0, 128], sizes = [16, 896], strides = [1, 1]} : vector<16x1664xf32> to vector<16x896xf32>
    %202 = vector.extract_strided_slice %191 {offsets = [0, 256], sizes = [16, 896], strides = [1, 1]} : vector<16x1664xf32> to vector<16x896xf32>
    %203 = vector.extract_strided_slice %191 {offsets = [0, 384], sizes = [16, 896], strides = [1, 1]} : vector<16x1664xf32> to vector<16x896xf32>
    %204 = vector.extract_strided_slice %191 {offsets = [0, 512], sizes = [16, 896], strides = [1, 1]} : vector<16x1664xf32> to vector<16x896xf32>
    %205 = vector.extract_strided_slice %191 {offsets = [0, 640], sizes = [16, 896], strides = [1, 1]} : vector<16x1664xf32> to vector<16x896xf32>
    %206 = vector.extract_strided_slice %191 {offsets = [0, 768], sizes = [16, 896], strides = [1, 1]} : vector<16x1664xf32> to vector<16x896xf32>
    %207 = tpu.concatenate %200, %201, %202, %203, %204, %205, %206 in 0 : vector<16x896xf32>, vector<16x896xf32>, vector<16x896xf32>, vector<16x896xf32>, vector<16x896xf32>, vector<16x896xf32>, vector<16x896xf32> -> vector<112x896xf32>
    %cst_76 = arith.constant dense<0.000000e+00> : vector<32x896xf32>
    %208 = tpu.matmul %192, %207, %cst_76 {dimension_numbers = #tpu.dot_dimension_numbers<[1], [0], [0], [1], [0, 0, 1, 1], [], []>} : vector<32x112xf32>, vector<112x896xf32>, vector<32x896xf32> -> vector<32x896xf32>
    %209 = vector.broadcast %193 : vector<32x1xf32> to vector<32x896xf32>
    %210 = arith.addf %208, %209 : vector<32x896xf32>
    %211 = vector.extract_strided_slice %210 {offsets = [0, 0], sizes = [16, 896], strides = [1, 1]} : vector<32x896xf32> to vector<16x896xf32>
    %212 = math.tanh %211 : vector<16x896xf32>
    %213 = vector.extract_strided_slice %210 {offsets = [16, 0], sizes = [16, 896], strides = [1, 1]} : vector<32x896xf32> to vector<16x896xf32>
    %cst_77 = arith.constant 5.000000e-01 : f32
    %214 = vector.broadcast %cst_77 : f32 to vector<16x896xf32>
    %215 = arith.mulf %214, %213 : vector<16x896xf32>
    %216 = math.tanh %215 : vector<16x896xf32>
    %cst_78 = arith.constant 1.000000e+00 : f32
    %217 = vector.broadcast %cst_78 : f32 to vector<16x896xf32>
    %218 = arith.addf %216, %217 : vector<16x896xf32>
    %cst_79 = arith.constant 5.000000e-01 : f32
    %219 = vector.broadcast %cst_79 : f32 to vector<16x896xf32>
    %220 = arith.mulf %219, %218 : vector<16x896xf32>
    %221 = arith.mulf %212, %220 : vector<16x896xf32>
    %222 = vector.extract_strided_slice %221 {offsets = [0, 0], sizes = [16, 128], strides = [1, 1]} : vector<16x896xf32> to vector<16x128xf32>
    %223 = vector.extract_strided_slice %221 {offsets = [0, 128], sizes = [16, 128], strides = [1, 1]} : vector<16x896xf32> to vector<16x128xf32>
    %224 = vector.extract_strided_slice %221 {offsets = [0, 256], sizes = [16, 128], strides = [1, 1]} : vector<16x896xf32> to vector<16x128xf32>
    %225 = vector.extract_strided_slice %221 {offsets = [0, 384], sizes = [16, 128], strides = [1, 1]} : vector<16x896xf32> to vector<16x128xf32>
    %226 = vector.extract_strided_slice %221 {offsets = [0, 512], sizes = [16, 128], strides = [1, 1]} : vector<16x896xf32> to vector<16x128xf32>
    %227 = vector.extract_strided_slice %221 {offsets = [0, 640], sizes = [16, 128], strides = [1, 1]} : vector<16x896xf32> to vector<16x128xf32>
    %228 = vector.extract_strided_slice %221 {offsets = [0, 768], sizes = [16, 128], strides = [1, 1]} : vector<16x896xf32> to vector<16x128xf32>
    %229 = tpu.concatenate %222, %223, %224, %225, %226, %227, %228 in 0 : vector<16x128xf32>, vector<16x128xf32>, vector<16x128xf32>, vector<16x128xf32>, vector<16x128xf32>, vector<16x128xf32>, vector<16x128xf32> -> vector<112x128xf32>
    %cst_80 = arith.constant dense<0.000000e+00> : vector<32x128xf32>
    %230 = tpu.matmul %194, %229, %cst_80 {dimension_numbers = #tpu.dot_dimension_numbers<[1], [0], [0], [1], [0, 0, 1, 1], [], []>} : vector<32x112xf32>, vector<112x128xf32>, vector<32x128xf32> -> vector<32x128xf32>
    %231 = arith.addf %63, %230 : vector<32x128xf32>
    %232 = vector.broadcast %195 : vector<32x1xf32> to vector<32x128xf32>
    %233 = arith.addf %231, %232 : vector<32x128xf32>
    %cst_81 = arith.constant 5.000000e-02 : f32
    %234 = vector.broadcast %cst_81 : f32 to vector<112x128xf32>
    %235 = arith.mulf %234, %229 : vector<112x128xf32>
    %cst_82 = arith.constant dense<0.000000e+00> : vector<112x128xf32>
    %236 = tpu.matmul %229, %4, %cst_82 {dimension_numbers = #tpu.dot_dimension_numbers<[1], [0], [0], [1], [0, 0, 1, 1], [], []>} : vector<112x128xf32>, vector<128x128xf32>, vector<112x128xf32> -> vector<112x128xf32>
    %cst_83 = arith.constant 0.949999988 : f32
    %237 = vector.broadcast %cst_83 : f32 to vector<112x128xf32>
    %238 = arith.mulf %237, %236 : vector<112x128xf32>
    %239 = arith.addf %235, %238 : vector<112x128xf32>
    %cst_84 = arith.constant 5.000000e-02 : f32
    %240 = vector.broadcast %cst_84 : f32 to vector<112x128xf32>
    %241 = arith.mulf %240, %229 : vector<112x128xf32>
    %cst_85 = arith.constant dense<0.000000e+00> : vector<112x128xf32>
    %242 = tpu.matmul %229, %5, %cst_85 {dimension_numbers = #tpu.dot_dimension_numbers<[1], [0], [0], [1], [0, 0, 1, 1], [], []>} : vector<112x128xf32>, vector<128x128xf32>, vector<112x128xf32> -> vector<112x128xf32>
    %cst_86 = arith.constant 0.949999988 : f32
    %243 = vector.broadcast %cst_86 : f32 to vector<112x128xf32>
    %244 = arith.mulf %243, %242 : vector<112x128xf32>
    %245 = arith.addf %241, %244 : vector<112x128xf32>
    %246 = vector.extract_strided_slice %239 {offsets = [0, 0], sizes = [16, 128], strides = [1, 1]} : vector<112x128xf32> to vector<16x128xf32>
    %247 = vector.extract_strided_slice %239 {offsets = [16, 0], sizes = [16, 128], strides = [1, 1]} : vector<112x128xf32> to vector<16x128xf32>
    %248 = vector.extract_strided_slice %239 {offsets = [32, 0], sizes = [16, 128], strides = [1, 1]} : vector<112x128xf32> to vector<16x128xf32>
    %249 = vector.extract_strided_slice %239 {offsets = [48, 0], sizes = [16, 128], strides = [1, 1]} : vector<112x128xf32> to vector<16x128xf32>
    %250 = vector.extract_strided_slice %239 {offsets = [64, 0], sizes = [16, 128], strides = [1, 1]} : vector<112x128xf32> to vector<16x128xf32>
    %251 = vector.extract_strided_slice %239 {offsets = [80, 0], sizes = [16, 128], strides = [1, 1]} : vector<112x128xf32> to vector<16x128xf32>
    %252 = vector.extract_strided_slice %239 {offsets = [96, 0], sizes = [16, 128], strides = [1, 1]} : vector<112x128xf32> to vector<16x128xf32>
    %253 = tpu.concatenate %246, %247, %248, %249, %250, %251, %252 in 1 : vector<16x128xf32>, vector<16x128xf32>, vector<16x128xf32>, vector<16x128xf32>, vector<16x128xf32>, vector<16x128xf32>, vector<16x128xf32> -> vector<16x896xf32>
    %254 = vector.extract_strided_slice %245 {offsets = [0, 0], sizes = [16, 128], strides = [1, 1]} : vector<112x128xf32> to vector<16x128xf32>
    %255 = vector.extract_strided_slice %245 {offsets = [16, 0], sizes = [16, 128], strides = [1, 1]} : vector<112x128xf32> to vector<16x128xf32>
    %256 = vector.extract_strided_slice %245 {offsets = [32, 0], sizes = [16, 128], strides = [1, 1]} : vector<112x128xf32> to vector<16x128xf32>
    %257 = vector.extract_strided_slice %245 {offsets = [48, 0], sizes = [16, 128], strides = [1, 1]} : vector<112x128xf32> to vector<16x128xf32>
    %258 = vector.extract_strided_slice %245 {offsets = [64, 0], sizes = [16, 128], strides = [1, 1]} : vector<112x128xf32> to vector<16x128xf32>
    %259 = vector.extract_strided_slice %245 {offsets = [80, 0], sizes = [16, 128], strides = [1, 1]} : vector<112x128xf32> to vector<16x128xf32>
    %260 = vector.extract_strided_slice %245 {offsets = [96, 0], sizes = [16, 128], strides = [1, 1]} : vector<112x128xf32> to vector<16x128xf32>
    %261 = tpu.concatenate %254, %255, %256, %257, %258, %259, %260 in 1 : vector<16x128xf32>, vector<16x128xf32>, vector<16x128xf32>, vector<16x128xf32>, vector<16x128xf32>, vector<16x128xf32>, vector<16x128xf32> -> vector<16x896xf32>
    %cst_87 = arith.constant 5.000000e-02 : f32
    %262 = vector.broadcast %cst_87 : f32 to vector<112x128xf32>
    %263 = arith.mulf %262, %229 : vector<112x128xf32>
    %cst_88 = arith.constant dense<0.000000e+00> : vector<112x128xf32>
    %264 = tpu.matmul %239, %4, %cst_88 {dimension_numbers = #tpu.dot_dimension_numbers<[1], [0], [0], [1], [0, 0, 1, 1], [], []>} : vector<112x128xf32>, vector<128x128xf32>, vector<112x128xf32> -> vector<112x128xf32>
    %cst_89 = arith.constant 0.949999988 : f32
    %265 = vector.broadcast %cst_89 : f32 to vector<112x128xf32>
    %266 = arith.mulf %265, %264 : vector<112x128xf32>
    %267 = arith.addf %263, %266 : vector<112x128xf32>
    %cst_90 = arith.constant 5.000000e-02 : f32
    %268 = vector.broadcast %cst_90 : f32 to vector<112x128xf32>
    %269 = arith.mulf %268, %229 : vector<112x128xf32>
    %cst_91 = arith.constant dense<0.000000e+00> : vector<112x128xf32>
    %270 = tpu.matmul %245, %5, %cst_91 {dimension_numbers = #tpu.dot_dimension_numbers<[1], [0], [0], [1], [0, 0, 1, 1], [], []>} : vector<112x128xf32>, vector<128x128xf32>, vector<112x128xf32> -> vector<112x128xf32>
    %cst_92 = arith.constant 0.949999988 : f32
    %271 = vector.broadcast %cst_92 : f32 to vector<112x128xf32>
    %272 = arith.mulf %271, %270 : vector<112x128xf32>
    %273 = arith.addf %269, %272 : vector<112x128xf32>
    %274 = vector.extract_strided_slice %267 {offsets = [0, 0], sizes = [16, 128], strides = [1, 1]} : vector<112x128xf32> to vector<16x128xf32>
    %275 = vector.extract_strided_slice %267 {offsets = [16, 0], sizes = [16, 128], strides = [1, 1]} : vector<112x128xf32> to vector<16x128xf32>
    %276 = vector.extract_strided_slice %267 {offsets = [32, 0], sizes = [16, 128], strides = [1, 1]} : vector<112x128xf32> to vector<16x128xf32>
    %277 = vector.extract_strided_slice %267 {offsets = [48, 0], sizes = [16, 128], strides = [1, 1]} : vector<112x128xf32> to vector<16x128xf32>
    %278 = vector.extract_strided_slice %267 {offsets = [64, 0], sizes = [16, 128], strides = [1, 1]} : vector<112x128xf32> to vector<16x128xf32>
    %279 = vector.extract_strided_slice %267 {offsets = [80, 0], sizes = [16, 128], strides = [1, 1]} : vector<112x128xf32> to vector<16x128xf32>
    %280 = vector.extract_strided_slice %267 {offsets = [96, 0], sizes = [16, 128], strides = [1, 1]} : vector<112x128xf32> to vector<16x128xf32>
    %281 = tpu.concatenate %274, %275, %276, %277, %278, %279, %280 in 1 : vector<16x128xf32>, vector<16x128xf32>, vector<16x128xf32>, vector<16x128xf32>, vector<16x128xf32>, vector<16x128xf32>, vector<16x128xf32> -> vector<16x896xf32>
    %282 = vector.extract_strided_slice %273 {offsets = [0, 0], sizes = [16, 128], strides = [1, 1]} : vector<112x128xf32> to vector<16x128xf32>
    %283 = vector.extract_strided_slice %273 {offsets = [16, 0], sizes = [16, 128], strides = [1, 1]} : vector<112x128xf32> to vector<16x128xf32>
    %284 = vector.extract_strided_slice %273 {offsets = [32, 0], sizes = [16, 128], strides = [1, 1]} : vector<112x128xf32> to vector<16x128xf32>
    %285 = vector.extract_strided_slice %273 {offsets = [48, 0], sizes = [16, 128], strides = [1, 1]} : vector<112x128xf32> to vector<16x128xf32>
    %286 = vector.extract_strided_slice %273 {offsets = [64, 0], sizes = [16, 128], strides = [1, 1]} : vector<112x128xf32> to vector<16x128xf32>
    %287 = vector.extract_strided_slice %273 {offsets = [80, 0], sizes = [16, 128], strides = [1, 1]} : vector<112x128xf32> to vector<16x128xf32>
    %288 = vector.extract_strided_slice %273 {offsets = [96, 0], sizes = [16, 128], strides = [1, 1]} : vector<112x128xf32> to vector<16x128xf32>
    %289 = tpu.concatenate %282, %283, %284, %285, %286, %287, %288 in 1 : vector<16x128xf32>, vector<16x128xf32>, vector<16x128xf32>, vector<16x128xf32>, vector<16x128xf32>, vector<16x128xf32>, vector<16x128xf32> -> vector<16x896xf32>
    %290 = tpu.concatenate %221, %253, %281, %221, %261, %289 in 0 : vector<16x896xf32>, vector<16x896xf32>, vector<16x896xf32>, vector<16x896xf32>, vector<16x896xf32>, vector<16x896xf32> -> vector<96x896xf32>
    %cst_93 = arith.constant dense<0.000000e+00> : vector<16x896xf32>
    %291 = tpu.matmul %196, %290, %cst_93 {dimension_numbers = #tpu.dot_dimension_numbers<[1], [0], [0], [1], [0, 0, 1, 1], [], []>} : vector<16x96xf32>, vector<96x896xf32>, vector<16x896xf32> -> vector<16x896xf32>
    %292 = vector.broadcast %197 : vector<16x1xf32> to vector<16x896xf32>
    %293 = arith.addf %291, %292 : vector<16x896xf32>
    %294 = vector.extract_strided_slice %191 {offsets = [0, 768], sizes = [16, 896], strides = [1, 1]} : vector<16x1664xf32> to vector<16x896xf32>
    %295 = arith.addf %293, %294 : vector<16x896xf32>
    %296 = tpu.iota {dimensions = array<i32: 1>} : vector<16x896xi32>
    %c128_i32_94 = arith.constant 128 : i32
    %c0_i32_95 = arith.constant 0 : i32
    %297 = arith.cmpi eq, %c128_i32_94, %c0_i32_95 : i32
    %c1_i32_96 = arith.constant 1 : i32
    %298 = arith.select %297, %c1_i32_96, %c128_i32_94 : i32
    %299 = vector.broadcast %298 : i32 to vector<16x896xi32>
    %300 = arith.remsi %296, %299 : vector<16x896xi32>
    %c0_i32_97 = arith.constant 0 : i32
    %301 = vector.broadcast %c0_i32_97 : i32 to vector<16x896xi32>
    %302 = arith.cmpi ne, %300, %301 : vector<16x896xi32>
    %c0_i32_98 = arith.constant 0 : i32
    %303 = vector.broadcast %c0_i32_98 : i32 to vector<16x896xi32>
    %304 = arith.cmpi slt, %300, %303 : vector<16x896xi32>
    %c0_i32_99 = arith.constant 0 : i32
    %305 = arith.cmpi slt, %298, %c0_i32_99 : i32
    %306 = vector.broadcast %305 : i1 to vector<16x896xi1>
    %307 = vector.broadcast %306 : vector<16x896xi1> to vector<16x896xi1>
    %308 = arith.xori %304, %307 : vector<16x896xi1>
    %309 = arith.andi %308, %302 : vector<16x896xi1>
    %310 = vector.broadcast %298 : i32 to vector<16x896xi32>
    %311 = arith.addi %300, %310 : vector<16x896xi32>
    %312 = arith.select %309, %311, %300 : vector<16x896xi1>, vector<16x896xi32>
    %c10_i32_100 = arith.constant 10 : i32
    %313 = vector.broadcast %c10_i32_100 : i32 to vector<16x896xi32>
    %314 = arith.cmpi slt, %312, %313 : vector<16x896xi32>
    %315 = arith.extui %314 : vector<16x896xi1> to vector<16x896xi32>
    %316 = arith.sitofp %315 : vector<16x896xi32> to vector<16x896xf32>
    %317 = arith.mulf %295, %316 : vector<16x896xf32>
    %318 = vector.shape_cast %317 : vector<16x896xf32> to vector<1x16x896xf32>
    %cst_101 = arith.constant dense<0.000000e+00> : vector<1xf32>
    %319 = vector.multi_reduction <add>, %318, %cst_101 [1, 2] : vector<1x16x896xf32> to vector<1xf32>
    %320 = vector.shape_cast %319 : vector<1xf32> to vector<1x1x1xf32>
    %321 = vector.extract %320[0, 0, 0] : f32 from vector<1x1x1xf32>
    %cst_102 = arith.constant 1.120000e+03 : f32
    %322 = arith.divf %321, %cst_102 : f32
    %323 = vector.broadcast %322 : f32 to vector<16x896xf32>
    %324 = arith.subf %295, %323 : vector<16x896xf32>
    %325 = arith.mulf %324, %324 : vector<16x896xf32>
    %326 = arith.mulf %325, %316 : vector<16x896xf32>
    %327 = vector.shape_cast %326 : vector<16x896xf32> to vector<1x16x896xf32>
    %cst_103 = arith.constant dense<0.000000e+00> : vector<1xf32>
    %328 = vector.multi_reduction <add>, %327, %cst_103 [1, 2] : vector<1x16x896xf32> to vector<1xf32>
    %329 = vector.shape_cast %328 : vector<1xf32> to vector<1x1x1xf32>
    %330 = vector.extract %329[0, 0, 0] : f32 from vector<1x1x1xf32>
    %cst_104 = arith.constant 1.120000e+03 : f32
    %331 = arith.divf %330, %cst_104 : f32
    %cst_105 = arith.constant 9.99999974E-6 : f32
    %332 = arith.addf %331, %cst_105 : f32
    %333 = math.rsqrt %332 : f32
    %334 = vector.broadcast %333 : f32 to vector<16x896xf32>
    %335 = arith.mulf %324, %334 : vector<16x896xf32>
    %336 = arith.mulf %335, %198 : vector<16x896xf32>
    %337 = arith.addf %336, %199 : vector<16x896xf32>
    %c0_106 = arith.constant 0 : index
    %c0_107 = arith.constant 0 : index
    %338 = vector.load %arg25[%c0_106, %c0_107] : memref<32x112xf32, #tpu.memory_space<vmem>>, vector<32x112xf32>
    %c0_108 = arith.constant 0 : index
    %c0_109 = arith.constant 0 : index
    %339 = vector.load %arg26[%c0_108, %c0_109] : memref<32x1xf32, #tpu.memory_space<vmem>>, vector<32x1xf32>
    %c0_110 = arith.constant 0 : index
    %c0_111 = arith.constant 0 : index
    %340 = vector.load %arg27[%c0_110, %c0_111] : memref<32x16xf32, #tpu.memory_space<vmem>>, vector<32x16xf32>
    %c0_112 = arith.constant 0 : index
    %c0_113 = arith.constant 0 : index
    %341 = vector.load %arg28[%c0_112, %c0_113] : memref<32x1xf32, #tpu.memory_space<vmem>>, vector<32x1xf32>
    %c0_114 = arith.constant 0 : index
    %c0_115 = arith.constant 0 : index
    %342 = vector.load %arg29[%c0_114, %c0_115] : memref<16x96xf32, #tpu.memory_space<vmem>>, vector<16x96xf32>
    %c0_116 = arith.constant 0 : index
    %c0_117 = arith.constant 0 : index
    %343 = vector.load %arg30[%c0_116, %c0_117] : memref<16x1xf32, #tpu.memory_space<vmem>>, vector<16x1xf32>
    %c0_118 = arith.constant 0 : index
    %c0_119 = arith.constant 0 : index
    %344 = vector.load %arg31[%c0_118, %c0_119] : memref<16x128xf32, #tpu.memory_space<vmem>>, vector<16x128xf32>
    %c0_120 = arith.constant 0 : index
    %c0_121 = arith.constant 0 : index
    %345 = vector.load %arg32[%c0_120, %c0_121] : memref<16x128xf32, #tpu.memory_space<vmem>>, vector<16x128xf32>
    %346 = vector.extract_strided_slice %337 {offsets = [0, 0], sizes = [16, 128], strides = [1, 1]} : vector<16x896xf32> to vector<16x128xf32>
    %347 = vector.extract_strided_slice %337 {offsets = [0, 128], sizes = [16, 128], strides = [1, 1]} : vector<16x896xf32> to vector<16x128xf32>
    %348 = vector.extract_strided_slice %337 {offsets = [0, 256], sizes = [16, 128], strides = [1, 1]} : vector<16x896xf32> to vector<16x128xf32>
    %349 = vector.extract_strided_slice %337 {offsets = [0, 384], sizes = [16, 128], strides = [1, 1]} : vector<16x896xf32> to vector<16x128xf32>
    %350 = vector.extract_strided_slice %337 {offsets = [0, 512], sizes = [16, 128], strides = [1, 1]} : vector<16x896xf32> to vector<16x128xf32>
    %351 = vector.extract_strided_slice %337 {offsets = [0, 640], sizes = [16, 128], strides = [1, 1]} : vector<16x896xf32> to vector<16x128xf32>
    %352 = vector.extract_strided_slice %337 {offsets = [0, 768], sizes = [16, 128], strides = [1, 1]} : vector<16x896xf32> to vector<16x128xf32>
    %353 = tpu.concatenate %346, %347, %348, %349, %350, %351, %352 in 0 : vector<16x128xf32>, vector<16x128xf32>, vector<16x128xf32>, vector<16x128xf32>, vector<16x128xf32>, vector<16x128xf32>, vector<16x128xf32> -> vector<112x128xf32>
    %cst_122 = arith.constant dense<0.000000e+00> : vector<32x128xf32>
    %354 = tpu.matmul %338, %353, %cst_122 {dimension_numbers = #tpu.dot_dimension_numbers<[1], [0], [0], [1], [0, 0, 1, 1], [], []>} : vector<32x112xf32>, vector<112x128xf32>, vector<32x128xf32> -> vector<32x128xf32>
    %355 = vector.broadcast %339 : vector<32x1xf32> to vector<32x128xf32>
    %356 = arith.addf %354, %355 : vector<32x128xf32>
    %357 = vector.extract_strided_slice %356 {offsets = [0, 0], sizes = [16, 128], strides = [1, 1]} : vector<32x128xf32> to vector<16x128xf32>
    %358 = math.tanh %357 : vector<16x128xf32>
    %359 = vector.extract_strided_slice %356 {offsets = [16, 0], sizes = [16, 128], strides = [1, 1]} : vector<32x128xf32> to vector<16x128xf32>
    %cst_123 = arith.constant 5.000000e-01 : f32
    %360 = vector.broadcast %cst_123 : f32 to vector<16x128xf32>
    %361 = arith.mulf %360, %359 : vector<16x128xf32>
    %362 = math.tanh %361 : vector<16x128xf32>
    %cst_124 = arith.constant 1.000000e+00 : f32
    %363 = vector.broadcast %cst_124 : f32 to vector<16x128xf32>
    %364 = arith.addf %362, %363 : vector<16x128xf32>
    %cst_125 = arith.constant 5.000000e-01 : f32
    %365 = vector.broadcast %cst_125 : f32 to vector<16x128xf32>
    %366 = arith.mulf %365, %364 : vector<16x128xf32>
    %367 = arith.mulf %358, %366 : vector<16x128xf32>
    %cst_126 = arith.constant dense<0.000000e+00> : vector<32x128xf32>
    %368 = tpu.matmul %340, %367, %cst_126 {dimension_numbers = #tpu.dot_dimension_numbers<[1], [0], [0], [1], [0, 0, 1, 1], [], []>} : vector<32x16xf32>, vector<16x128xf32>, vector<32x128xf32> -> vector<32x128xf32>
    %369 = arith.addf %233, %368 : vector<32x128xf32>
    %370 = vector.broadcast %341 : vector<32x1xf32> to vector<32x128xf32>
    %371 = arith.addf %369, %370 : vector<32x128xf32>
    %cst_127 = arith.constant 5.000000e-02 : f32
    %372 = vector.broadcast %cst_127 : f32 to vector<16x128xf32>
    %373 = arith.mulf %372, %367 : vector<16x128xf32>
    %cst_128 = arith.constant dense<0.000000e+00> : vector<16x128xf32>
    %374 = tpu.matmul %367, %4, %cst_128 {dimension_numbers = #tpu.dot_dimension_numbers<[1], [0], [0], [1], [0, 0, 1, 1], [], []>} : vector<16x128xf32>, vector<128x128xf32>, vector<16x128xf32> -> vector<16x128xf32>
    %cst_129 = arith.constant 0.949999988 : f32
    %375 = vector.broadcast %cst_129 : f32 to vector<16x128xf32>
    %376 = arith.mulf %375, %374 : vector<16x128xf32>
    %377 = arith.addf %373, %376 : vector<16x128xf32>
    %cst_130 = arith.constant 5.000000e-02 : f32
    %378 = vector.broadcast %cst_130 : f32 to vector<16x128xf32>
    %379 = arith.mulf %378, %367 : vector<16x128xf32>
    %cst_131 = arith.constant dense<0.000000e+00> : vector<16x128xf32>
    %380 = tpu.matmul %367, %5, %cst_131 {dimension_numbers = #tpu.dot_dimension_numbers<[1], [0], [0], [1], [0, 0, 1, 1], [], []>} : vector<16x128xf32>, vector<128x128xf32>, vector<16x128xf32> -> vector<16x128xf32>
    %cst_132 = arith.constant 0.949999988 : f32
    %381 = vector.broadcast %cst_132 : f32 to vector<16x128xf32>
    %382 = arith.mulf %381, %380 : vector<16x128xf32>
    %383 = arith.addf %379, %382 : vector<16x128xf32>
    %cst_133 = arith.constant 5.000000e-02 : f32
    %384 = vector.broadcast %cst_133 : f32 to vector<16x128xf32>
    %385 = arith.mulf %384, %367 : vector<16x128xf32>
    %cst_134 = arith.constant dense<0.000000e+00> : vector<16x128xf32>
    %386 = tpu.matmul %377, %4, %cst_134 {dimension_numbers = #tpu.dot_dimension_numbers<[1], [0], [0], [1], [0, 0, 1, 1], [], []>} : vector<16x128xf32>, vector<128x128xf32>, vector<16x128xf32> -> vector<16x128xf32>
    %cst_135 = arith.constant 0.949999988 : f32
    %387 = vector.broadcast %cst_135 : f32 to vector<16x128xf32>
    %388 = arith.mulf %387, %386 : vector<16x128xf32>
    %389 = arith.addf %385, %388 : vector<16x128xf32>
    %cst_136 = arith.constant 5.000000e-02 : f32
    %390 = vector.broadcast %cst_136 : f32 to vector<16x128xf32>
    %391 = arith.mulf %390, %367 : vector<16x128xf32>
    %cst_137 = arith.constant dense<0.000000e+00> : vector<16x128xf32>
    %392 = tpu.matmul %383, %5, %cst_137 {dimension_numbers = #tpu.dot_dimension_numbers<[1], [0], [0], [1], [0, 0, 1, 1], [], []>} : vector<16x128xf32>, vector<128x128xf32>, vector<16x128xf32> -> vector<16x128xf32>
    %cst_138 = arith.constant 0.949999988 : f32
    %393 = vector.broadcast %cst_138 : f32 to vector<16x128xf32>
    %394 = arith.mulf %393, %392 : vector<16x128xf32>
    %395 = arith.addf %391, %394 : vector<16x128xf32>
    %396 = tpu.concatenate %367, %377, %389, %367, %383, %395 in 0 : vector<16x128xf32>, vector<16x128xf32>, vector<16x128xf32>, vector<16x128xf32>, vector<16x128xf32>, vector<16x128xf32> -> vector<96x128xf32>
    %cst_139 = arith.constant dense<0.000000e+00> : vector<16x128xf32>
    %397 = tpu.matmul %342, %396, %cst_139 {dimension_numbers = #tpu.dot_dimension_numbers<[1], [0], [0], [1], [0, 0, 1, 1], [], []>} : vector<16x96xf32>, vector<96x128xf32>, vector<16x128xf32> -> vector<16x128xf32>
    %398 = vector.broadcast %343 : vector<16x1xf32> to vector<16x128xf32>
    %399 = arith.addf %397, %398 : vector<16x128xf32>
    %400 = vector.extract_strided_slice %337 {offsets = [0, 768], sizes = [16, 128], strides = [1, 1]} : vector<16x896xf32> to vector<16x128xf32>
    %401 = arith.addf %399, %400 : vector<16x128xf32>
    %402 = tpu.iota {dimensions = array<i32: 1>} : vector<16x128xi32>
    %c128_i32_140 = arith.constant 128 : i32
    %c0_i32_141 = arith.constant 0 : i32
    %403 = arith.cmpi eq, %c128_i32_140, %c0_i32_141 : i32
    %c1_i32_142 = arith.constant 1 : i32
    %404 = arith.select %403, %c1_i32_142, %c128_i32_140 : i32
    %405 = vector.broadcast %404 : i32 to vector<16x128xi32>
    %406 = arith.remsi %402, %405 : vector<16x128xi32>
    %c0_i32_143 = arith.constant 0 : i32
    %407 = vector.broadcast %c0_i32_143 : i32 to vector<16x128xi32>
    %408 = arith.cmpi ne, %406, %407 : vector<16x128xi32>
    %c0_i32_144 = arith.constant 0 : i32
    %409 = vector.broadcast %c0_i32_144 : i32 to vector<16x128xi32>
    %410 = arith.cmpi slt, %406, %409 : vector<16x128xi32>
    %c0_i32_145 = arith.constant 0 : i32
    %411 = arith.cmpi slt, %404, %c0_i32_145 : i32
    %412 = vector.broadcast %411 : i1 to vector<16x128xi1>
    %413 = vector.broadcast %412 : vector<16x128xi1> to vector<16x128xi1>
    %414 = arith.xori %410, %413 : vector<16x128xi1>
    %415 = arith.andi %414, %408 : vector<16x128xi1>
    %416 = vector.broadcast %404 : i32 to vector<16x128xi32>
    %417 = arith.addi %406, %416 : vector<16x128xi32>
    %418 = arith.select %415, %417, %406 : vector<16x128xi1>, vector<16x128xi32>
    %c10_i32_146 = arith.constant 10 : i32
    %419 = vector.broadcast %c10_i32_146 : i32 to vector<16x128xi32>
    %420 = arith.cmpi slt, %418, %419 : vector<16x128xi32>
    %421 = arith.extui %420 : vector<16x128xi1> to vector<16x128xi32>
    %422 = arith.sitofp %421 : vector<16x128xi32> to vector<16x128xf32>
    %423 = arith.mulf %401, %422 : vector<16x128xf32>
    %424 = vector.shape_cast %423 : vector<16x128xf32> to vector<1x16x128xf32>
    %cst_147 = arith.constant dense<0.000000e+00> : vector<1xf32>
    %425 = vector.multi_reduction <add>, %424, %cst_147 [1, 2] : vector<1x16x128xf32> to vector<1xf32>
    %426 = vector.shape_cast %425 : vector<1xf32> to vector<1x1x1xf32>
    %427 = vector.extract %426[0, 0, 0] : f32 from vector<1x1x1xf32>
    %cst_148 = arith.constant 1.600000e+02 : f32
    %428 = arith.divf %427, %cst_148 : f32
    %429 = vector.broadcast %428 : f32 to vector<16x128xf32>
    %430 = arith.subf %401, %429 : vector<16x128xf32>
    %431 = arith.mulf %430, %430 : vector<16x128xf32>
    %432 = arith.mulf %431, %422 : vector<16x128xf32>
    %433 = vector.shape_cast %432 : vector<16x128xf32> to vector<1x16x128xf32>
    %cst_149 = arith.constant dense<0.000000e+00> : vector<1xf32>
    %434 = vector.multi_reduction <add>, %433, %cst_149 [1, 2] : vector<1x16x128xf32> to vector<1xf32>
    %435 = vector.shape_cast %434 : vector<1xf32> to vector<1x1x1xf32>
    %436 = vector.extract %435[0, 0, 0] : f32 from vector<1x1x1xf32>
    %cst_150 = arith.constant 1.600000e+02 : f32
    %437 = arith.divf %436, %cst_150 : f32
    %cst_151 = arith.constant 9.99999974E-6 : f32
    %438 = arith.addf %437, %cst_151 : f32
    %439 = math.rsqrt %438 : f32
    %440 = vector.broadcast %439 : f32 to vector<16x128xf32>
    %441 = arith.mulf %430, %440 : vector<16x128xf32>
    %442 = arith.mulf %441, %344 : vector<16x128xf32>
    %443 = arith.addf %442, %345 : vector<16x128xf32>
    %c0_152 = arith.constant 0 : index
    %c0_153 = arith.constant 0 : index
    %444 = vector.load %arg33[%c0_152, %c0_153] : memref<32x16xf32, #tpu.memory_space<vmem>>, vector<32x16xf32>
    %c0_154 = arith.constant 0 : index
    %c0_155 = arith.constant 0 : index
    %445 = vector.load %arg34[%c0_154, %c0_155] : memref<32x1xf32, #tpu.memory_space<vmem>>, vector<32x1xf32>
    %c0_156 = arith.constant 0 : index
    %c0_157 = arith.constant 0 : index
    %446 = vector.load %arg35[%c0_156, %c0_157] : memref<64x32xf32, #tpu.memory_space<vmem>>, vector<64x32xf32>
    %c0_158 = arith.constant 0 : index
    %c0_159 = arith.constant 0 : index
    %447 = vector.load %arg36[%c0_158, %c0_159] : memref<64x1xf32, #tpu.memory_space<vmem>>, vector<64x1xf32>
    %c0_160 = arith.constant 0 : index
    %c0_161 = arith.constant 0 : index
    %448 = vector.load %arg37[%c0_160, %c0_161] : memref<12x64xf32, #tpu.memory_space<vmem>>, vector<12x64xf32>
    %c0_162 = arith.constant 0 : index
    %c0_163 = arith.constant 0 : index
    %449 = vector.load %arg38[%c0_162, %c0_163] : memref<12x1xf32, #tpu.memory_space<vmem>>, vector<12x1xf32>
    %cst_164 = arith.constant dense<0.000000e+00> : vector<32x128xf32>
    %450 = tpu.matmul %444, %443, %cst_164 {dimension_numbers = #tpu.dot_dimension_numbers<[1], [0], [0], [1], [0, 0, 1, 1], [], []>} : vector<32x16xf32>, vector<16x128xf32>, vector<32x128xf32> -> vector<32x128xf32>
    %451 = arith.addf %371, %450 : vector<32x128xf32>
    %452 = vector.broadcast %445 : vector<32x1xf32> to vector<32x128xf32>
    %453 = arith.addf %451, %452 : vector<32x128xf32>
    %cst_165 = arith.constant 0.000000e+00 : f32
    %454 = vector.broadcast %cst_165 : f32 to vector<32x128xf32>
    %455 = arith.maximumf %453, %454 : vector<32x128xf32>
    %cst_166 = arith.constant dense<0.000000e+00> : vector<64x128xf32>
    %456 = tpu.matmul %446, %455, %cst_166 {dimension_numbers = #tpu.dot_dimension_numbers<[1], [0], [0], [1], [0, 0, 1, 1], [], []>} : vector<64x32xf32>, vector<32x128xf32>, vector<64x128xf32> -> vector<64x128xf32>
    %457 = vector.broadcast %447 : vector<64x1xf32> to vector<64x128xf32>
    %458 = arith.addf %456, %457 : vector<64x128xf32>
    %cst_167 = arith.constant 0.000000e+00 : f32
    %459 = vector.broadcast %cst_167 : f32 to vector<64x128xf32>
    %460 = arith.maximumf %458, %459 : vector<64x128xf32>
    %cst_168 = arith.constant dense<0.000000e+00> : vector<12x128xf32>
    %461 = tpu.matmul %448, %460, %cst_168 {dimension_numbers = #tpu.dot_dimension_numbers<[1], [0], [0], [1], [0, 0, 1, 1], [], []>} : vector<12x64xf32>, vector<64x128xf32>, vector<12x128xf32> -> vector<12x128xf32>
    %462 = vector.broadcast %449 : vector<12x1xf32> to vector<12x128xf32>
    %463 = arith.addf %461, %462 : vector<12x128xf32>
    %c0_169 = arith.constant 0 : index
    %c0_170 = arith.constant 0 : index
    %c0_171 = arith.constant 0 : index
    %464 = vector.load %arg39[%c0_169, %c0_170, %c0_171] : memref<1x12x128xf32, #tpu.memory_space<vmem>>, vector<1x12x128xf32>
    %465 = vector.shape_cast %464 : vector<1x12x128xf32> to vector<12x128xf32>
    %466 = vector.shape_cast %463 : vector<12x128xf32> to vector<1x12x128xf32>
    tpu.vector_store %arg39[%c0_169, %c0_170, %c0_171], %466 {strides = array<i32>} : memref<1x12x128xf32, #tpu.memory_space<vmem>>, vector<1x12x128xf32>,
    return
  }
  func.func @transform_0(%arg0: i32) -> (i32, i32, i32) {
    %c0_i32 = arith.constant 0 : i32
    %c0_i32_0 = arith.constant 0 : i32
    %c0_i32_1 = arith.constant 0 : i32
    return %arg0, %c0_i32, %c0_i32_0 : i32, i32, i32
  }
  func.func @transform_1(%arg0: i32) -> (i32, i32, i32) {
    %c0_i32 = arith.constant 0 : i32
    %c0_i32_0 = arith.constant 0 : i32
    %c0_i32_1 = arith.constant 0 : i32
    return %arg0, %c0_i32, %c0_i32_0 : i32, i32, i32
  }
  func.func @transform_2(%arg0: i32) -> (i32, i32) {
    %c0_i32 = arith.constant 0 : i32
    %c0_i32_0 = arith.constant 0 : i32
    %c0_i32_1 = arith.constant 0 : i32
    return %c0_i32, %c0_i32_0 : i32, i32
  }
  func.func @transform_3(%arg0: i32) -> (i32, i32) {
    %c0_i32 = arith.constant 0 : i32
    %c0_i32_0 = arith.constant 0 : i32
    %c0_i32_1 = arith.constant 0 : i32
    return %c0_i32, %c0_i32_0 : i32, i32
  }
  func.func @transform_4(%arg0: i32) -> (i32, i32) {
    %c0_i32 = arith.constant 0 : i32
    %c0_i32_0 = arith.constant 0 : i32
    %c0_i32_1 = arith.constant 0 : i32
    return %c0_i32, %c0_i32_0 : i32, i32
  }
  func.func @transform_5(%arg0: i32) -> (i32, i32) {
    %c0_i32 = arith.constant 0 : i32
    %c0_i32_0 = arith.constant 0 : i32
    %c0_i32_1 = arith.constant 0 : i32
    return %c0_i32, %c0_i32_0 : i32, i32
  }
  func.func @transform_6(%arg0: i32) -> (i32, i32) {
    %c0_i32 = arith.constant 0 : i32
    %c0_i32_0 = arith.constant 0 : i32
    %c0_i32_1 = arith.constant 0 : i32
    return %c0_i32, %c0_i32_0 : i32, i32
  }
  func.func @transform_7(%arg0: i32) -> (i32, i32) {
    %c0_i32 = arith.constant 0 : i32
    %c0_i32_0 = arith.constant 0 : i32
    %c0_i32_1 = arith.constant 0 : i32
    return %c0_i32, %c0_i32_0 : i32, i32
  }
  func.func @transform_8(%arg0: i32) -> (i32, i32) {
    %c0_i32 = arith.constant 0 : i32
    %c0_i32_0 = arith.constant 0 : i32
    %c0_i32_1 = arith.constant 0 : i32
    return %c0_i32, %c0_i32_0 : i32, i32
  }
  func.func @transform_9(%arg0: i32) -> (i32, i32) {
    %c0_i32 = arith.constant 0 : i32
    %c0_i32_0 = arith.constant 0 : i32
    %c0_i32_1 = arith.constant 0 : i32
    return %c0_i32, %c0_i32_0 : i32, i32
  }
  func.func @transform_10(%arg0: i32) -> (i32, i32) {
    %c0_i32 = arith.constant 0 : i32
    %c0_i32_0 = arith.constant 0 : i32
    %c0_i32_1 = arith.constant 0 : i32
    return %c0_i32, %c0_i32_0 : i32, i32
  }
  func.func @transform_11(%arg0: i32) -> (i32, i32) {
    %c0_i32 = arith.constant 0 : i32
    %c0_i32_0 = arith.constant 0 : i32
    %c0_i32_1 = arith.constant 0 : i32
    return %c0_i32, %c0_i32_0 : i32, i32
  }
  func.func @transform_12(%arg0: i32) -> (i32, i32) {
    %c0_i32 = arith.constant 0 : i32
    %c0_i32_0 = arith.constant 0 : i32
    %c0_i32_1 = arith.constant 0 : i32
    return %c0_i32, %c0_i32_0 : i32, i32
  }
  func.func @transform_13(%arg0: i32) -> (i32, i32) {
    %c0_i32 = arith.constant 0 : i32
    %c0_i32_0 = arith.constant 0 : i32
    %c0_i32_1 = arith.constant 0 : i32
    return %c0_i32, %c0_i32_0 : i32, i32
  }
  func.func @transform_14(%arg0: i32) -> (i32, i32) {
    %c0_i32 = arith.constant 0 : i32
    %c0_i32_0 = arith.constant 0 : i32
    %c0_i32_1 = arith.constant 0 : i32
    return %c0_i32, %c0_i32_0 : i32, i32
  }
  func.func @transform_15(%arg0: i32) -> (i32, i32) {
    %c0_i32 = arith.constant 0 : i32
    %c0_i32_0 = arith.constant 0 : i32
    %c0_i32_1 = arith.constant 0 : i32
    return %c0_i32, %c0_i32_0 : i32, i32
  }
  func.func @transform_16(%arg0: i32) -> (i32, i32) {
    %c0_i32 = arith.constant 0 : i32
    %c0_i32_0 = arith.constant 0 : i32
    %c0_i32_1 = arith.constant 0 : i32
    return %c0_i32, %c0_i32_0 : i32, i32
  }
  func.func @transform_17(%arg0: i32) -> (i32, i32) {
    %c0_i32 = arith.constant 0 : i32
    %c0_i32_0 = arith.constant 0 : i32
    %c0_i32_1 = arith.constant 0 : i32
    return %c0_i32, %c0_i32_0 : i32, i32
  }
  func.func @transform_18(%arg0: i32) -> (i32, i32) {
    %c0_i32 = arith.constant 0 : i32
    %c0_i32_0 = arith.constant 0 : i32
    %c0_i32_1 = arith.constant 0 : i32
    return %c0_i32, %c0_i32_0 : i32, i32
  }
  func.func @transform_19(%arg0: i32) -> (i32, i32) {
    %c0_i32 = arith.constant 0 : i32
    %c0_i32_0 = arith.constant 0 : i32
    %c0_i32_1 = arith.constant 0 : i32
    return %c0_i32, %c0_i32_0 : i32, i32
  }
  func.func @transform_20(%arg0: i32) -> (i32, i32) {
    %c0_i32 = arith.constant 0 : i32
    %c0_i32_0 = arith.constant 0 : i32
    %c0_i32_1 = arith.constant 0 : i32
    return %c0_i32, %c0_i32_0 : i32, i32
  }
  func.func @transform_21(%arg0: i32) -> (i32, i32) {
    %c0_i32 = arith.constant 0 : i32
    %c0_i32_0 = arith.constant 0 : i32
    %c0_i32_1 = arith.constant 0 : i32
    return %c0_i32, %c0_i32_0 : i32, i32
  }
  func.func @transform_22(%arg0: i32) -> (i32, i32) {
    %c0_i32 = arith.constant 0 : i32
    %c0_i32_0 = arith.constant 0 : i32
    %c0_i32_1 = arith.constant 0 : i32
    return %c0_i32, %c0_i32_0 : i32, i32
  }
  func.func @transform_23(%arg0: i32) -> (i32, i32) {
    %c0_i32 = arith.constant 0 : i32
    %c0_i32_0 = arith.constant 0 : i32
    %c0_i32_1 = arith.constant 0 : i32
    return %c0_i32, %c0_i32_0 : i32, i32
  }
  func.func @transform_24(%arg0: i32) -> (i32, i32) {
    %c0_i32 = arith.constant 0 : i32
    %c0_i32_0 = arith.constant 0 : i32
    %c0_i32_1 = arith.constant 0 : i32
    return %c0_i32, %c0_i32_0 : i32, i32
  }
  func.func @transform_25(%arg0: i32) -> (i32, i32) {
    %c0_i32 = arith.constant 0 : i32
    %c0_i32_0 = arith.constant 0 : i32
    %c0_i32_1 = arith.constant 0 : i32
    return %c0_i32, %c0_i32_0 : i32, i32
  }
  func.func @transform_26(%arg0: i32) -> (i32, i32) {
    %c0_i32 = arith.constant 0 : i32
    %c0_i32_0 = arith.constant 0 : i32
    %c0_i32_1 = arith.constant 0 : i32
    return %c0_i32, %c0_i32_0 : i32, i32
  }
  func.func @transform_27(%arg0: i32) -> (i32, i32) {
    %c0_i32 = arith.constant 0 : i32
    %c0_i32_0 = arith.constant 0 : i32
    %c0_i32_1 = arith.constant 0 : i32
    return %c0_i32, %c0_i32_0 : i32, i32
  }
  func.func @transform_28(%arg0: i32) -> (i32, i32) {
    %c0_i32 = arith.constant 0 : i32
    %c0_i32_0 = arith.constant 0 : i32
    %c0_i32_1 = arith.constant 0 : i32
    return %c0_i32, %c0_i32_0 : i32, i32
  }
  func.func @transform_29(%arg0: i32) -> (i32, i32) {
    %c0_i32 = arith.constant 0 : i32
    %c0_i32_0 = arith.constant 0 : i32
    %c0_i32_1 = arith.constant 0 : i32
    return %c0_i32, %c0_i32_0 : i32, i32
  }
  func.func @transform_30(%arg0: i32) -> (i32, i32) {
    %c0_i32 = arith.constant 0 : i32
    %c0_i32_0 = arith.constant 0 : i32
    %c0_i32_1 = arith.constant 0 : i32
    return %c0_i32, %c0_i32_0 : i32, i32
  }
  func.func @transform_31(%arg0: i32) -> (i32, i32) {
    %c0_i32 = arith.constant 0 : i32
    %c0_i32_0 = arith.constant 0 : i32
    %c0_i32_1 = arith.constant 0 : i32
    return %c0_i32, %c0_i32_0 : i32, i32
  }
  func.func @transform_32(%arg0: i32) -> (i32, i32) {
    %c0_i32 = arith.constant 0 : i32
    %c0_i32_0 = arith.constant 0 : i32
    %c0_i32_1 = arith.constant 0 : i32
    return %c0_i32, %c0_i32_0 : i32, i32
  }
  func.func @transform_33(%arg0: i32) -> (i32, i32) {
    %c0_i32 = arith.constant 0 : i32
    %c0_i32_0 = arith.constant 0 : i32
    %c0_i32_1 = arith.constant 0 : i32
    return %c0_i32, %c0_i32_0 : i32, i32
  }
  func.func @transform_34(%arg0: i32) -> (i32, i32) {
    %c0_i32 = arith.constant 0 : i32
    %c0_i32_0 = arith.constant 0 : i32
    %c0_i32_1 = arith.constant 0 : i32
    return %c0_i32, %c0_i32_0 : i32, i32
  }
  func.func @transform_35(%arg0: i32) -> (i32, i32) {
    %c0_i32 = arith.constant 0 : i32
    %c0_i32_0 = arith.constant 0 : i32
    %c0_i32_1 = arith.constant 0 : i32
    return %c0_i32, %c0_i32_0 : i32, i32
  }
  func.func @transform_36(%arg0: i32) -> (i32, i32) {
    %c0_i32 = arith.constant 0 : i32
    %c0_i32_0 = arith.constant 0 : i32
    %c0_i32_1 = arith.constant 0 : i32
    return %c0_i32, %c0_i32_0 : i32, i32
  }
  func.func @transform_37(%arg0: i32) -> (i32, i32) {
    %c0_i32 = arith.constant 0 : i32
    %c0_i32_0 = arith.constant 0 : i32
    %c0_i32_1 = arith.constant 0 : i32
    return %c0_i32, %c0_i32_0 : i32, i32
  }
  func.func @transform_38(%arg0: i32) -> (i32, i32, i32) {
    %c0_i32 = arith.constant 0 : i32
    %c0_i32_0 = arith.constant 0 : i32
    %c0_i32_1 = arith.constant 0 : i32
    return %arg0, %c0_i32, %c0_i32_0 : i32, i32, i32
  }
}

</mosaic_0001>

<bundles_post_ra>
// kernel: _lambda_.1
= control target key start
LH: loop header
LB: loop body
LE: loop exit
PB: predicated region body
PF: predicated region fallthrough
CT: control target
= control target key end

     0   :  { %s11402_s6 = smov 1   ;;  %s11403_s10 = smov 2   ;;  %s14669_s0 = inlined_call_operand.smem [shape: u32[39], index: -1, kind: input, shape index: {}] }
   0x1   :  { %s11452_s5 = sld [smem:[%s14669_s0]]   ;;  %s11404_s14 = smov 3  }
   0x2   :  { %s11457_s9 = sld [smem:[%s14669_s0 + %s11402_s6]]   ;;  %s11405_s18 = smov 4  }
   0x3   :  { %s11462_s13 = sld [smem:[%s14669_s0 + %s11403_s10]]   ;;  %s11406_s22 = smov 5  }
   0x4   :  { %s11467_s17 = sld [smem:[%s14669_s0 + %s11404_s14]]   ;;  %s11407_s26 = smov 6  }
   0x5   :  { %s11472_s21 = sld [smem:[%s14669_s0 + %s11405_s18]]   ;;  %s11408_s30 = smov 7  }
   0x6   :  { %s11477_s25 = sld [smem:[%s14669_s0 + %s11406_s22]]   ;;  %s11409_s4 = smov 8  }
   0x7   :  { %14849 = sst [smem:[#allocation2_spill]] %s11452_s5  ;;  %s11410_s10 = smov 9  }
   0x8   :  { %s11482_s29 = sld [smem:[%s14669_s0 + %s11407_s26]]   ;;  %s11411_s15 = smov 10  }
   0x9   :  { %s11487_s3 = sld [smem:[%s14669_s0 + %s11408_s30]]   ;;  %s11412_s20 = smov 11  }
   0xa   :  { %s11492_s8 = sld [smem:[%s14669_s0 + %s11409_s4]]   ;;  %s11413_s26 = smov 12  }
   0xb   :  { %s11497_s14 = sld [smem:[%s14669_s0 + %s11410_s10]]   ;;  %s11414_s1 = smov 13  }
   0xc   :  { %14850 = sst [smem:[#allocation3_spill]] %s11477_s25  ;;  %s11415_s7 = smov 14  }
   0xd   :  { %s11502_s19 = sld [smem:[%s14669_s0 + %s11411_s15]]   ;;  %s11416_s15 = smov 15  }
   0xe   :  { %s11507_s24 = sld [smem:[%s14669_s0 + %s11412_s20]]   ;;  %s11417_s22 = smov 16  }
   0xf   :  { %14851 = sst [smem:[#allocation4_spill]] %s11487_s3  ;;  %s11418_s28 = smov 17  }
  0x10   :  { %s11512_s30 = sld [smem:[%s14669_s0 + %s11413_s26]]  }
  0x11   :  { %s11517_s6 = sld [smem:[%s14669_s0 + %s11414_s1]]  }
  0x12   :  { %s11522_s12 = sld [smem:[%s14669_s0 + %s11415_s7]]   ;;  %s11419_s7 = smov 18  }
  0x13   :  { %s11527_s20 = sld [smem:[%s14669_s0 + %s11416_s15]]   ;;  %s11420_s15 = smov 19  }
  0x14   :  { %14852 = sst [smem:[#allocation5_spill]] %s11507_s24 }
  0x15   :  { %s11532_s27 = sld [smem:[%s14669_s0 + %s11417_s22]]   ;;  %s11421_s22 = smov 20  }
  0x16   :  { %s11537_s4 = sld [smem:[%s14669_s0 + %s11418_s28]]   ;;  %s11422_s28 = smov 21  }
  0x17   :  { %14853 = sst [smem:[#allocation6_spill]] %s11517_s6 }
  0x18   :  { %14854 = sst [smem:[#allocation7_spill]] %s11522_s12 }
  0x19   :  { %14855 = sst [smem:[#allocation8_spill]] %s11527_s20 }
  0x1a   :  { %s11542_s24 = sld [smem:[%s14669_s0 + %s11419_s7]]   ;;  %s11423_s7 = smov 22  }
  0x1b   :  { %14856 = sst [smem:[#allocation9_spill]] %s11532_s27 }
  0x1c   :  { %14857 = sst [smem:[#allocation10_spill]] %s11537_s4 }
  0x1d   :  { %s11547_s25 = sld [smem:[%s14669_s0 + %s11420_s15]]   ;;  %s11424_s15 = smov 23  }
  0x1e   :  { %s11552_s27 = sld [smem:[%s14669_s0 + %s11421_s22]]   ;;  %s11425_s22 = smov 24  }
  0x1f   :  { %s11557_s20 = sld [smem:[%s14669_s0 + %s11422_s28]]   ;;  %s11426_s28 = smov 25  }
  0x20   :  { %14858 = sst [smem:[#allocation11_spill]] %s11542_s24 }
  0x21   :  { %s11562_s24 = sld [smem:[%s14669_s0 + %s11423_s7]]   ;;  %s11427_s7 = smov 26  }
  0x22   :  { %s11577_s12 = sld [smem:[%s14669_s0 + %s11426_s28]]   ;;  %s11430_s28 = smov 29  }
  0x23   :  { %14859 = sst [smem:[#allocation12_spill]] %s11547_s25 }
  0x24   :  { %14860 = sst [smem:[#allocation13_spill]] %s11552_s27 }
  0x25   :  { %s11567_s25 = sld [smem:[%s14669_s0 + %s11424_s15]]   ;;  %s11428_s15 = smov 27  }
  0x26   :  { %s11572_s27 = sld [smem:[%s14669_s0 + %s11425_s22]]   ;;  %s11429_s22 = smov 28  }
  0x27   :  { %14861 = sst [smem:[#allocation14_spill]] %s11562_s24 }
  0x28   :  { %14864 = sst [smem:[#allocation17_spill]] %s11577_s12 }
  0x29   :  { %s11582_s24 = sld [smem:[%s14669_s0 + %s11427_s7]]   ;;  %s11431_s7 = smov 30  }
  0x2a   :  { %s11597_s12 = sld [smem:[%s14669_s0 + %s11430_s28]]   ;;  %s11434_s28 = smov 33  }
  0x2b   :  { %14862 = sst [smem:[#allocation15_spill]] %s11567_s25 }
  0x2c   :  { %14863 = sst [smem:[#allocation16_spill]] %s11572_s27 }
  0x2d   :  { %s11587_s25 = sld [smem:[%s14669_s0 + %s11428_s15]]   ;;  %s11432_s15 = smov 31  }
  0x2e   :  { %s11592_s27 = sld [smem:[%s14669_s0 + %s11429_s22]]   ;;  %s11433_s22 = smov 32  }
  0x2f   :  { %14865 = sst [smem:[#allocation18_spill]] %s11582_s24 }
  0x30   :  { %14868 = sst [smem:[#allocation21_spill]] %s11597_s12 }
  0x31   :  { %s11602_s24 = sld [smem:[%s14669_s0 + %s11431_s7]]   ;;  %s11435_s7 = smov 34  }
  0x32   :  { %s11617_s12 = sld [smem:[%s14669_s0 + %s11434_s28]]   ;;  %s11438_s28 = smov 37  }
  0x33   :  { %14866 = sst [smem:[#allocation19_spill]] %s11587_s25 }
  0x34   :  { %14867 = sst [smem:[#allocation20_spill]] %s11592_s27 }
  0x35   :  { %s11607_s25 = sld [smem:[%s14669_s0 + %s11432_s15]]   ;;  %s11436_s15 = smov 35  }
  0x36   :  { %s11612_s27 = sld [smem:[%s14669_s0 + %s11433_s22]]   ;;  %s11437_s22 = smov 36  }
  0x37   :  { %14869 = sst [smem:[#allocation22_spill]] %s11602_s24 }
  0x38   :  { %14872 = sst [smem:[#allocation25_spill]] %s11617_s12 }
  0x39   :  { %s11622_s24 = sld [smem:[%s14669_s0 + %s11435_s7]]   ;;  %s11439_s7 = smov 38  }
  0x3a   :  { %s11637_s12 = sld [smem:[%s14669_s0 + %s11438_s28]]  }
  0x3b   :  { %14870 = sst [smem:[#allocation23_spill]] %s11607_s25 }
  0x3c   :  { %14871 = sst [smem:[#allocation24_spill]] %s11612_s27 }
  0x3d   :  { %s11627_s25 = sld [smem:[%s14669_s0 + %s11436_s15]]   ;;  %s11644_s15 = smov 0  }
  0x3e   :  { %s11632_s27 = sld [smem:[%s14669_s0 + %s11437_s22]]  }
  0x3f   :  { %14873 = sst [smem:[#allocation26_spill]] %s11622_s24 }
  0x40   :  { %s11642_s24 = sld [smem:[%s14669_s0 + %s11439_s7]]  }
  0x41 LB: > { %s14874_s6 = sld [smem:[#allocation6_spill]]  ;;  %s14875_s4 = sld [smem:[#allocation10_spill]]  ;;  %s11400_s15 = sphi %s11644_s15, %s87_s15  }
  0x42   : > { %s14876_s3 = sld [smem:[#allocation4_spill]]  ;;  %s8406_s16 = sadd.s32 4294967295, %s11400_s15  }
  0x43   : > { %p8410_p0 = scmp.ge.s32.totalorder %s11400_s15, 1  ;;  %p1061_p1 = scmp.lt.s32.totalorder %s11400_s15, 3 }
  0x45   : > { %p1062_p2 = pnand %p8410_p0, %p1061_p1 }
  0x47   : > { %1065 = sbr.rel (%p1062_p2) target bundleno = 5741 (0x166d), region = 172 }
  0x4e   : > { %p1160_p3 = scmp.lt.s32.totalorder %s8406_s16, 1  ;;  %v14691_v0 = vlaneseq  ;;  %v11440_v1 = vmov 1983009808   ;;  %s14877_s5 = sld [smem:[#allocation2_spill]]  ;;  %v14692_v3 = vmov 0.0   ;;  %v1177_v4 = vld [vmem:[%s11467_s17] sm:$0xff] }
  0x4f   : > { %v1241_v2 = vunpack.c.l.s4 %v11440_v1  ;;  %1433 = vmatprep.mubr.f32.mxu0 %v14692_v3  ;;  %1439 = vmatprep.mubr.f32.mxu1 %v14692_v3  ;;  %v11442_v6 = vmov 0   ;;  %v1178_v8 = vld [vmem:[%s11467_s17 + $0x8] sm:$0xff]  ;;  %v2268_v17 = vld [vmem:[%s11497_s14] sm:$0xff]  ;;  %vm1330_vm0 = vcmask 1041408   ;;  %vm1323_vm1 = vcmask 15360   ;;  %v1181_v52 = vld [vmem:[%s11472_s21 + $0x10] sm:$0xff] }
  0x50   : > { %s15176_s16 = smov (!%p1160_p3, %s8406_s16), 1  ;;  %v1244_v5 = vshrl.u32 %v14691_v0, 7  ;;  %11213 = vset.pattern.permute.xlu0 %v11442_v6  ;;  %11214 = vset.pattern.permute.xlu1 %v11442_v6  ;;  %v11673_v20 = vld [vmem:[%s11462_s13] sm:$0xff]  ;;  %v11676_v21 = vld [vmem:[%s11462_s13 + $0x8] sm:$0xff]  ;;  %vm2175_vm2 = vcmask 1045504   ;;  %vm2162_vm3 = vcmask 310272  }
  0x51   : > { %v1242_v7 = vunpack.c.0.s8 %v1241_v2  ;;  %1226 = vperm.xlu0 %11213, %v1177_v4   ;;  %s11143_s0 = smul.u32 38, %s15176_s16  ;;  %v2286_v38 = vld [vmem:[%s14874_s6] sm:$0xff]  ;;  %v1180_v51 = vld [vmem:[%s11472_s21 + $0x8] sm:$0xff]  ;;  %v1182_v53 = vld [vmem:[%s11472_s21 + $0x18] sm:$0xff]  ;;  %vm2360_vm4 = vcmask 916480   ;;  %vm3148_vm5 = vcmask 654336  }
  0x52   : > { %s11144_s22 = smul.u32 40, %s15176_s16  ;;  %v1179_v50 = vld [vmem:[%s11472_s21] sm:$0xff]  ;;  %v2270_v55 = vld [vmem:[%s11497_s14 + $0x10] sm:$0xff]  ;;  %v2271_v57 = vld [vmem:[%s11497_s14 + $0x18] sm:$0xff]  ;;  %vm4298_vm6 = vcmask 785408   ;;  %s15071_s1 = sld [smem:[#allocation7_spill]] }
  0x53   : > { %v11660_v9 = vsub.s32 %v1242_v7, %v1244_v5  ;;  %2352 = vperm.xlu1 %11214, %v2270_v55   ;;  %v2269_v5 = vld [vmem:[%s11497_s14 + $0x8] sm:$0xff]  ;;  %s15072_s2 = sld [smem:[#allocation8_spill]] }
  0x54   : > { %s11663_s18 = scalar_lea.vmem %s14877_s5, %s11143_s0  ;;  %s1169_s23 = scalar_lea.vmem %s11457_s9, %s11144_s22 }
  0x55   : > { %v1219_v10 = vld [vmem:[%s11663_s18] sm:$0xff]  ;;  %v1220_v11 = vld [vmem:[%s11663_s18 + $0x8] sm:$0xff]  ;;  %1231 = vperm.xlu0 %11213, %v1178_v8   ;;  %v1221_v16 = vld [vmem:[%s11663_s18 + $0x10] sm:$0xff]  ;;  %s15088_s22 = sld [smem:[#allocation11_spill]] }
  0x56   : > { %v1239_v12 = vcombine.high %v1219_v10, %v1219_v10  ;;  %v1246_v13 = vrot.slane %v1219_v10, %v11660_v9  ;;  %v1263_v14 = vrot.slane %v1220_v11, %v11660_v9  ;;  %v1256_v15 = vcombine.high %v1220_v11, %v1220_v11  ;;  %v1222_v27 = vld [vmem:[%s11663_s18 + $0x18] sm:$0xff]  ;;  %v1223_v33 = vld [vmem:[%s11663_s18 + $0x20] sm:$0x3f]  ;;  %v2138_v44 = vld [vmem:[%s1169_s23 + $0x8] sm:$0xff]  ;;  %s15076_s18 = sld [smem:[#allocation9_spill]] }
  0x57   : > { %v1280_v23 = vrot.slane %v1221_v16, %v11660_v9  ;;  %v1273_v26 = vcombine.high %v1221_v16, %v1221_v16  ;;  %v1297_v28 = vrot.slane %v1222_v27, %v11660_v9  ;;  %v1290_v32 = vcombine.high %v1222_v27, %v1222_v27  ;;  %v2137_v43 = vld [vmem:[%s1169_s23] sm:$0xff]  ;;  %v2139_v46 = vld [vmem:[%s1169_s23 + $0x10] sm:$0xff]  ;;  %v2140_v47 = vld [vmem:[%s1169_s23 + $0x18] sm:$0xff]  ;;  %2357 = vperm.xlu1 %11214, %v2271_v57  }
  0x58   : > { %v1254_v18 = vcombine.high %v1246_v13, %v1246_v13  ;;  %v1253_v19 = vrot.slane %v1239_v12, %v11660_v9  ;;  %v1271_v22 = vcombine.high %v1263_v14, %v1263_v14  ;;  %v1270_v25 = vrot.slane %v1256_v15, %v11660_v9  ;;  %v2141_v49 = vld [vmem:[%s1169_s23 + $0x20] sm:$0x3f]  ;;  %v2287_v11 = vld [vmem:[%s14874_s6 + $0x8] sm:$0xff]  ;;  %s15111_s23 = sld [smem:[#allocation13_spill]] }
  0x59   : > { %2342 = vperm.xlu0 %11213, %v2268_v17   ;;  %v1288_v30 = vcombine.high %v1280_v23, %v1280_v23  ;;  %v1287_v31 = vrot.slane %v1273_v26, %v11660_v9  ;;  %v1305_v35 = vcombine.high %v1297_v28, %v1297_v28  ;;  %v1304_v36 = vrot.slane %v1290_v32, %v11660_v9 }
  0x5a   : > { %8415 = vmatprep.subr.msk.mxu0 %vm1330_vm0, %v1254_v18  ;;  %11141 = vmatprep.subr.msk.mxu1 %vm1330_vm0, %v1254_v18  ;;  %v1255_v24 = vcombine.high %v1253_v19, %v1253_v19  ;;  %v1272_v29 = vcombine.high %v1270_v25, %v1270_v25  ;;  %v1314_v37 = vrot.slane %v1223_v33, %v11660_v9 }
  0x5b   : > { %8416 = vmatpush1.msk.msra.mxu0 %vm1330_vm0, %v1246_v13  ;;  %11142 = vmatpush1.msk.msra.mxu1 %vm1330_vm0, %v1246_v13  ;;  %v1289_v34 = vcombine.high %v1287_v31, %v1287_v31  ;;  %v1306_v39 = vcombine.high %v1304_v36, %v1304_v36  ;;  %v1307_v41 = vcombine.high %v1223_v33, %v1223_v33 }
  0x5c   : > { %8417 = vmatmul.mubr.msk.f32.vlgmr.msra.gmra.mrb[0].mxu0 %vm1323_vm1, %v11673_v20  ;;  %8418 = vmatmul.mubr.msk.f32.vlgmr.msra.gmra.mrb[0].mxu1 %vm1323_vm1, %v11676_v21  ;;  %v1322_v40 = vcombine.high %v1314_v37, %v1314_v37  ;;  %v10026_v45 = vpack.c.bf16 %v2138_v44, %v2137_v43  ;;  %v10030_v48 = vpack.c.bf16 %v2140_v47, %v2139_v46 }
  0x5d   : > { %8419 = vmatprep.subr.msk.mxu1 %vm1330_vm0, %v1255_v24  ;;  %8423 = vmatprep.subr.msk.mxu0 %vm1330_vm0, %v1271_v22  ;;  %v1321_v42 = vrot.slane %v1307_v41, %v11660_v9 }
  0x5e   : > { %8420 = vmatpush1.msk.msra.mxu1 %vm1330_vm0, %v1253_v19  ;;  %1510 = vmatprep.mubr.f32.mxu1 %v14692_v3 }
  0x5f   : > { %8424 = vmatpush1.msk.msra.mxu0 %vm1330_vm0, %v1263_v14  ;;  %1587 = vmatprep.mubr.f32.mxu0 %v14692_v3 }
  0x60   : > { %8421 = vmatmul.mubr.msk.f32.vlgmr.msra.gmra.mrb[2].mxu1 %vm1323_vm1, %v11673_v20  ;;  %8425 = vmatmul.mubr.msk.f32.vlgmr.msra.gmra.mrb[2].mxu0 %vm1323_vm1, %v11673_v20 }
  0x61   : > { %1516 = vmatprep.mubr.f32.mxu1 %v14692_v3  ;;  %1593 = vmatprep.mubr.f32.mxu0 %v14692_v3 }
  0x62   : > { %8427 = vmatprep.subr.msk.mxu1 %vm1330_vm0, %v1272_v29  ;;  %8431 = vmatprep.subr.msk.mxu0 %vm1330_vm0, %v1288_v30 }
  0x63   : > { %8428 = vmatpush1.msk.msra.mxu1 %vm1330_vm0, %v1270_v25  ;;  %8432 = vmatpush1.msk.msra.mxu0 %vm1330_vm0, %v1280_v23 }
  0x64   : > { %8422 = vmatmul.mubr.msk.f32.gmra.mrb[4].mxu1 %vm1323_vm1, %v11676_v21  ;;  %8426 = vmatmul.mubr.msk.f32.gmra.mrb[4].mxu0 %vm1323_vm1, %v11676_v21 }
  0x65   : > { %1664 = vmatprep.mubr.f32.mxu1 %v14692_v3  ;;  %1741 = vmatprep.mubr.f32.mxu0 %v14692_v3 }
  0x66   : > { %8435 = vmatprep.subr.msk.mxu1 %vm1330_vm0, %v1289_v34  ;;  %8439 = vmatprep.subr.msk.mxu0 %vm1330_vm0, %v1305_v35 }
  0x67   : > { %4290 = vperm.xlu0 %11213, %v2286_v38   ;;  %2347 = vperm.xlu1 %11214, %v2269_v5  }
  0x68   : > { %8429 = vmatmul.mubr.msk.f32.vlgmr.msra.gmra.mrb[6].mxu1 %vm1323_vm1, %v11673_v20  ;;  %8433 = vmatmul.mubr.msk.f32.vlgmr.msra.gmra.mrb[6].mxu0 %vm1323_vm1, %v11673_v20 }
  0x69   : > { %1670 = vmatprep.mubr.f32.mxu1 %v14692_v3  ;;  %1747 = vmatprep.mubr.f32.mxu0 %v14692_v3 }
  0x6a   : > { %8436 = vmatpush1.msk.msra.mxu1 %vm1330_vm0, %v1287_v31  ;;  %8440 = vmatpush1.msk.msra.mxu0 %vm1330_vm0, %v1297_v28 }
  0x6b   : > { %8443 = vmatprep.subr.msk.mxu1 %vm1330_vm0, %v1306_v39  ;;  %8447 = vmatprep.subr.msk.mxu0 %vm1330_vm0, %v1322_v40 }
  0x6c   : > { %8430 = vmatmul.mubr.msk.f32.gmra.mrb[8].mxu1 %vm1323_vm1, %v11676_v21  ;;  %8434 = vmatmul.mubr.msk.f32.gmra.mrb[8].mxu0 %vm1323_vm1, %v11676_v21 }
  0x6d   : > { %1818 = vmatprep.mubr.f32.mxu1 %v14692_v3  ;;  %1895 = vmatprep.mubr.f32.mxu0 %v14692_v3 }
  0x6e   : > { %4295 = vperm.xlu1 %11214, %v2287_v11  }
  0x70   : > { %8437 = vmatmul.mubr.msk.f32.vlgmr.msra.gmra.mrb[10].mxu1 %vm1323_vm1, %v11673_v20  ;;  %8441 = vmatmul.mubr.msk.f32.vlgmr.msra.gmra.mrb[10].mxu0 %vm1323_vm1, %v11673_v20 }
  0x71   : > { %1824 = vmatprep.mubr.f32.mxu1 %v14692_v3  ;;  %1901 = vmatprep.mubr.f32.mxu0 %v14692_v3 }
  0x72   : > { %8444 = vmatpush1.msk.msra.mxu1 %vm1330_vm0, %v1304_v36  ;;  %8448 = vmatpush1.msk.msra.mxu0 %vm1330_vm0, %v1314_v37 }
  0x73   : > { %9093 = vmatprep.subr.msk.mxu1 %vm1330_vm0, %v1321_v42  ;;  %10027 = vmatprep.subr.bf16.mxu0 %v10026_v45 }
  0x74   : > { %8438 = vmatmul.mubr.msk.f32.gmra.mrb[12].mxu1 %vm1323_vm1, %v11676_v21  ;;  %8442 = vmatmul.mubr.msk.f32.gmra.mrb[12].mxu0 %vm1323_vm1, %v11676_v21 }
  0x75   : > { %1972 = vmatprep.mubr.f32.mxu1 %v14692_v3  ;;  %2049 = vmatprep.mubr.f32.mxu0 %v14692_v3 }
  0x78   : > { %8445 = vmatmul.mubr.msk.f32.vlgmr.msra.gmra.mrb[14].mxu1 %vm1323_vm1, %v11673_v20  ;;  %8449 = vmatmul.mubr.msk.f32.vlgmr.msra.gmra.mrb[14].mxu0 %vm1323_vm1, %v11673_v20 }
  0x79   : > { %1978 = vmatprep.mubr.f32.mxu1 %v14692_v3  ;;  %2055 = vmatprep.mubr.f32.mxu0 %v14692_v3 }
  0x7a   : > { %9094 = vmatpush3.msk.msra.mxu1 %vm1330_vm0, %v1321_v42  ;;  %10029 = vmatpush3.bf16.msra.mxu0 %v10026_v45 }
  0x7b   : > { %10031 = vmatprep.subr.bf16.mxu0 %v10030_v48 }
  0x7c   : > { %8446 = vmatmul.mubr.msk.f32.gmra.mrb[16].mxu1 %vm1323_vm1, %v11676_v21  ;;  %8450 = vmatmul.mubr.msk.f32.gmra.mrb[16].mxu0 %vm1323_vm1, %v11676_v21 }
  0x7d   : > { %9095 = vmatprep.mubr.msk.f32.mxu1 %vm1323_vm1, %v11673_v20  ;;  %9108 = vmatprep.mubr.msk.f32.mxu0 %vm2162_vm3, %v1179_v50 }
  0x7e   : > { %10033 = vmatpush3.bf16.msra.mxu0 %v10030_v48 }
  0x7f   : > { %9106 = vmatprep.subr.msk.mxu0 %vm2175_vm2, %v2141_v49 }
  0x80   : > { %9096 = vmatmul.mubr.msk.f32.vlgmr.msra.gmra.mrb[18].mxu1 %vm1323_vm1, %v11676_v21 }
  0x81   : > { %2437 = vmatprep.mubr.f32.mxu1 %v14692_v3 }
  0x82   : > { %9107 = vmatpush3.msk.msra.mxu0 %vm2175_vm2, %v2141_v49 }
  0x83   : > { %9109 = vmatmul.mubr.msk.f32.vlgmr.msra.gmra.mrb[18].mxu0 %vm2162_vm3, %v1180_v51 }
  0x84   : > { %9111 = vmatprep.mubr.msk.f32.mxu0 %vm2162_vm3, %v1181_v52 }
  0x87   : > { %9112 = vmatmul.mubr.msk.f32.gmra.mrb[20].mxu0 %vm2162_vm3, %v1182_v53 }
  0x88   : > { %2526 = vmatprep.mubr.f32.mxu0 %v14692_v3 }
  0xd0   : > { %v11774_v54 = vpop.permute.xlu0 %1226 }
  0xd4   : > { %v11777_v56 = vpop.permute.xlu0 %1231 }
 0x12f   : > { %v1435_v58 = vpop.f32.mrb[0].mxu0  ;;  %v1441_v59 = vpop.f32.mrb[0].mxu1 }
 0x130   : > { %v1436_v60 = vadd.f32 %v1435_v58, %v11774_v54  ;;  %v1442_v61 = vadd.f32 %v1441_v59, %v11777_v56  ;;  %v1437_v62 = vpop.f32.mrb[1].mxu0  ;;  %v1443_v63 = vpop.f32.mrb[1].mxu1 }
 0x131   : > { %v1438_v1 = vadd.f32 %v1437_v62, %v11774_v54  ;;  %v1444_v2 = vadd.f32 %v1443_v63, %v11777_v56 }
 0x132   : > { %v10036_v4 = vpack.c.bf16 %v1442_v61, %v1436_v60 }
 0x133   : > { %v10034_v6 = vpack.c.bf16 %v1444_v2, %v1438_v1  ;;  %v1512_v7 = vpop.f32.mrb[2].mxu1  ;;  %v1589_v8 = vpop.f32.mrb[2].mxu0 }
 0x134   : > { %v1514_v9 = vpop.f32.mrb[3].mxu1  ;;  %v1591_v10 = vpop.f32.mrb[3].mxu0  ;;  %v1513_v14 = vadd.f32 %v1512_v7, %v11774_v54  ;;  %v1590_v15 = vadd.f32 %v1589_v8, %v11774_v54  ;;  %v11885_v7 = vld [vmem:[%s11492_s8 + $0x8] sm:$0xff]  ;;  %v11894_v8 = vld [vmem:[%s11492_s8 + $0x10] sm:$0xff] }
 0x135   : > { %10035 = vmatprep.subr.bf16.mxu1 %v10034_v6  ;;  %v1515_v20 = vadd.f32 %v1514_v9, %v11774_v54  ;;  %v1592_v21 = vadd.f32 %v1591_v10, %v11774_v54  ;;  %v11907_v10 = vld [vmem:[%s11492_s8 + $0x18] sm:$0xff] }
 0x136   : > { %10037 = vmatpush1.bf16.msra.mxu1 %v10036_v4  ;;  %v11872_v4 = vld [vmem:[%s11492_s8] sm:$0xff] }
 0x137   : > { %v1518_v12 = vpop.f32.mrb[4].mxu1  ;;  %v1595_v13 = vpop.f32.mrb[4].mxu0 }
 0x138   : > { %v1519_v16 = vadd.f32 %v1518_v12, %v11777_v56  ;;  %v1596_v17 = vadd.f32 %v1595_v13, %v11777_v56  ;;  %v1520_v18 = vpop.f32.mrb[5].mxu1  ;;  %v1597_v19 = vpop.f32.mrb[5].mxu0 }
 0x139   : > { %v1521_v22 = vadd.f32 %v1520_v18, %v11777_v56  ;;  %v1598_v23 = vadd.f32 %v1597_v19, %v11777_v56 }
 0x13a   : > { %v10038_v24 = vpack.c.bf16 %v1519_v16, %v1513_v14  ;;  %v11794_v25 = vpack.c.bf16 %v1596_v17, %v1590_v15 }
 0x13b   : > { %v10042_v26 = vpack.c.bf16 %v1521_v22, %v1515_v20  ;;  %v11796_v27 = vpack.c.bf16 %v1598_v23, %v1592_v21  ;;  %v1666_v28 = vpop.f32.mrb[6].mxu1  ;;  %v1743_v29 = vpop.f32.mrb[6].mxu0 }
 0x13c   : > { %v1668_v30 = vpop.f32.mrb[7].mxu1  ;;  %v1745_v31 = vpop.f32.mrb[7].mxu0  ;;  %10039 = vmatprep.subr.bf16.mxu1 %v10038_v24  ;;  %v11804_v37 = vadd.f32 %v1666_v28, %v11774_v54  ;;  %v11837_v51 = vadd.f32 %v1743_v29, %v11774_v54 }
 0x13d   : > { %10041 = vmatpush1.bf16.msra.mxu1 %v10034_v6  ;;  %10063 = vmatprep.subr.bf16.mxu0 %v10042_v26  ;;  %v11823_v44 = vadd.f32 %v1668_v30, %v11774_v54  ;;  %v11856_v60 = vadd.f32 %v1745_v31, %v11774_v54 }
 0x13e   : > { %10043 = vmatprep.subr.bf16.mxu1 %v10042_v26  ;;  %10065 = vmatpush1.bf16.msra.mxu0 %v10038_v24  ;;  %14879 = vst [vmem:[#allocation28_spill] sm:$0xff] %v11804_v37  ;;  %14883 = vst [vmem:[#allocation32_spill] sm:$0xff] %v11837_v51 }
 0x13f   : > { %v1672_v32 = vpop.f32.mrb[8].mxu1  ;;  %v1749_v33 = vpop.f32.mrb[8].mxu0  ;;  %10067 = vmatprep.subr.bf16.mxu0 %v11794_v25  ;;  %14881 = vst [vmem:[#allocation30_spill] sm:$0xff] %v11823_v44  ;;  %14885 = vst [vmem:[#allocation34_spill] sm:$0xff] %v11856_v60 }
 0x140   : > { %v1674_v34 = vpop.f32.mrb[9].mxu1  ;;  %v1751_v35 = vpop.f32.mrb[9].mxu0  ;;  %v11800_v36 = vadd.f32 %v1672_v32, %v11777_v56  ;;  %v11830_v49 = vadd.f32 %v1749_v33, %v11777_v56 }
 0x141   : > { %10045 = vmatpush1.bf16.msra.mxu1 %v10038_v24  ;;  %v11818_v43 = vadd.f32 %v1674_v34, %v11777_v56  ;;  %v11852_v59 = vadd.f32 %v1751_v35, %v11777_v56 }
 0x142   : > { %14878 = vst [vmem:[#allocation27_spill] sm:$0xff] %v11800_v36  ;;  %10047 = vmatprep.subr.bf16.mxu1 %v11794_v25  ;;  %10069 = vmatpush1.bf16.msra.mxu0 %v10042_v26  ;;  %v10054_v42 = vpack.c.bf16 %v11800_v36, %v11804_v37  ;;  %14882 = vst [vmem:[#allocation31_spill] sm:$0xff] %v11830_v49  ;;  %v11849_v58 = vpack.c.bf16 %v11830_v49, %v11837_v51 }
 0x143   : > { %v11806_v38 = vpop.f32.mrb[10].mxu1  ;;  %v11808_v39 = vpop.f32.mrb[10].mxu0  ;;  %10071 = vmatprep.subr.bf16.mxu0 %v11796_v27  ;;  %14880 = vst [vmem:[#allocation29_spill] sm:$0xff] %v11818_v43  ;;  %v10058_v50 = vpack.c.bf16 %v11818_v43, %v11823_v44  ;;  %14884 = vst [vmem:[#allocation33_spill] sm:$0xff] %v11852_v59  ;;  %v11869_v2 = vpack.c.bf16 %v11852_v59, %v11856_v60 }
 0x144   : > { %v11811_v40 = vpop.f32.mrb[11].mxu1  ;;  %v11813_v41 = vpop.f32.mrb[11].mxu0  ;;  %v11912_v11 = vadd.f32 %v11806_v38, %v11774_v54  ;;  %v11946_v17 = vadd.f32 %v11808_v39, %v11774_v54 }
 0x145   : > { %10049 = vmatpush1.bf16.msra.mxu1 %v10042_v26  ;;  %v11930_v14 = vadd.f32 %v11811_v40, %v11774_v54  ;;  %v11960_v20 = vadd.f32 %v11813_v41, %v11774_v54  ;;  %v1188_v41 = vld [vmem:[%s11482_s29 + $0x8] sm:$0xff] }
 0x146   : > { %10051 = vmatprep.subr.bf16.mxu1 %v11796_v27  ;;  %10073 = vmatpush1.bf16.msra.mxu0 %v11794_v25  ;;  %14887 = vst [vmem:[#allocation36_spill] sm:$0xff] %v11912_v11  ;;  %14891 = vst [vmem:[#allocation40_spill] sm:$0xff] %v11946_v17 }
 0x147   : > { %v1826_v45 = vpop.f32.mrb[12].mxu1  ;;  %v11825_v46 = vpop.f32.mrb[12].mxu0  ;;  %10075 = vmatprep.subr.bf16.mxu0 %v10054_v42  ;;  %14889 = vst [vmem:[#allocation38_spill] sm:$0xff] %v11930_v14  ;;  %14893 = vst [vmem:[#allocation42_spill] sm:$0xff] %v11960_v20 }
 0x148   : > { %v1828_v47 = vpop.f32.mrb[13].mxu1  ;;  %v11827_v48 = vpop.f32.mrb[13].mxu0  ;;  %v11902_v9 = vadd.f32 %v1826_v45, %v11777_v56  ;;  %v11936_v15 = vadd.f32 %v11825_v46, %v11777_v56  ;;  %v1190_v45 = vld [vmem:[%s11482_s29 + $0x18] sm:$0xff] }
 0x149   : > { %10053 = vmatpush1.bf16.msra.mxu1 %v11794_v25  ;;  %v11922_v13 = vadd.f32 %v1828_v47, %v11777_v56  ;;  %v11955_v19 = vadd.f32 %v11827_v48, %v11777_v56 }
 0x14a   : > { %10055 = vmatprep.subr.bf16.mxu1 %v10054_v42  ;;  %10077 = vmatpush1.bf16.msra.mxu0 %v11796_v27  ;;  %14886 = vst [vmem:[#allocation35_spill] sm:$0xff] %v11902_v9  ;;  %v10110_v12 = vpack.c.bf16 %v11902_v9, %v11912_v11  ;;  %14890 = vst [vmem:[#allocation39_spill] sm:$0xff] %v11936_v15  ;;  %v11951_v18 = vpack.c.bf16 %v11936_v15, %v11946_v17 }
 0x14b   : > { %v11839_v52 = vpop.f32.mrb[14].mxu1  ;;  %v11841_v53 = vpop.f32.mrb[14].mxu0  ;;  %10079 = vmatprep.subr.bf16.mxu0 %v10058_v50  ;;  %14888 = vst [vmem:[#allocation37_spill] sm:$0xff] %v11922_v13  ;;  %v10114_v16 = vpack.c.bf16 %v11922_v13, %v11930_v14  ;;  %14892 = vst [vmem:[#allocation41_spill] sm:$0xff] %v11955_v19  ;;  %v11965_v21 = vpack.c.bf16 %v11955_v19, %v11960_v20 }
 0x14c   : > { %v11843_v55 = vpop.f32.mrb[15].mxu1  ;;  %v11845_v57 = vpop.f32.mrb[15].mxu0  ;;  %v11993_v23 = vadd.f32 %v11839_v52, %v11774_v54  ;;  %v12028_v29 = vadd.f32 %v11841_v53, %v11774_v54  ;;  %v1192_v52 = vld [vmem:[%s11482_s29 + $0x28] sm:$0xff] }
 0x14d   : > { %10057 = vmatpush1.bf16.msra.mxu1 %v11796_v27  ;;  %v12012_v26 = vadd.f32 %v11843_v55, %v11774_v54  ;;  %v12040_v32 = vadd.f32 %v11845_v57, %v11774_v54  ;;  %v1193_v55 = vld [vmem:[%s11482_s29 + $0x30] sm:$0xff]  ;;  %v1194_v57 = vld [vmem:[%s11482_s29 + $0x38] sm:$0xff] }
 0x14e   : > { %10059 = vmatprep.subr.bf16.mxu1 %v10058_v50  ;;  %10081 = vmatpush1.bf16.msra.mxu0 %v10054_v42  ;;  %14895 = vst [vmem:[#allocation44_spill] sm:$0xff] %v11993_v23  ;;  %14899 = vst [vmem:[#allocation48_spill] sm:$0xff] %v12028_v29 }
 0x14f   : > { %v11858_v61 = vpop.f32.mrb[16].mxu1  ;;  %v11860_v62 = vpop.f32.mrb[16].mxu0  ;;  %10083 = vmatprep.subr.bf16.mxu0 %v11849_v58  ;;  %14897 = vst [vmem:[#allocation46_spill] sm:$0xff] %v12012_v26  ;;  %14901 = vst [vmem:[#allocation50_spill] sm:$0xff] %v12040_v32 }
 0x150   : > { %v11863_v63 = vpop.f32.mrb[17].mxu1  ;;  %v11865_v1 = vpop.f32.mrb[17].mxu0  ;;  %v11986_v22 = vadd.f32 %v11858_v61, %v11777_v56  ;;  %v1195_v61 = vld [vmem:[%s11482_s29 + $0x40] sm:$0xff] }
 0x151   : > { %10061 = vmatpush1.bf16.msra.mxu1 %v10054_v42  ;;  %v12035_v31 = vadd.f32 %v11865_v1, %v11777_v56  ;;  %v1197_v1 = vld [vmem:[%s11482_s29 + $0x50] sm:$0xff] }
 0x152   : > { %10085 = vmatpush1.bf16.msra.mxu0 %v10058_v50  ;;  %10091 = vmatprep.subr.bf16.mxu1 %v11796_v27  ;;  %14894 = vst [vmem:[#allocation43_spill] sm:$0xff] %v11986_v22  ;;  %v10166_v24 = vpack.c.bf16 %v11986_v22, %v11993_v23 }
 0x153   : > { %v11875_v5 = vpop.f32.mrb[18].mxu1  ;;  %10087 = vmatprep.subr.bf16.mxu0 %v11869_v2  ;;  %14900 = vst [vmem:[#allocation49_spill] sm:$0xff] %v12035_v31  ;;  %v10198_v33 = vpack.c.bf16 %v12035_v31, %v12040_v32 }
 0x154   : > { %v11878_v6 = vpop.f32.mrb[19].mxu1  ;;  %8459 = vmatmul.mubr.msk.f32.vlgmr.msra.gmra.mrb[20].mxu1 %vm2360_vm4, %v11872_v4  ;;  %v12076_v38 = vadd.f32 %v11875_v5, %v11777_v56  ;;  %v1199_v5 = vld [vmem:[%s11482_s29 + $0x60] sm:$0xff] }
 0x155   : > { %10093 = vmatpush1.bf16.msra.mxu1 %v11794_v25  ;;  %2443 = vmatprep.mubr.f32.mxu1 %v14692_v3  ;;  %v12004_v25 = vadd.f32 %v11863_v63, %v11777_v56  ;;  %v12080_v39 = vadd.f32 %v11878_v6, %v11774_v54  ;;  %v1189_v54 = vld [vmem:[%s11482_s29 + $0x10] sm:$0xff]  ;;  %v1200_v6 = vld [vmem:[%s11482_s29 + $0x68] sm:$0xff] }
 0x156   : > { %10089 = vmatpush1.bf16.msra.mxu0 %v11849_v58  ;;  %10095 = vmatprep.subr.bf16.mxu1 %v10054_v42  ;;  %v12055_v34 = vpop.f32.mrb[18].mxu0  ;;  %14904 = vst [vmem:[#allocation53_spill] sm:$0xff] %v12076_v38  ;;  %v12100_v47 = vpack.c.bf16 %v1190_v45, %v1189_v54 }
 0x157   : > { %10119 = vmatprep.subr.bf16.mxu0 %v10058_v50  ;;  %14896 = vst [vmem:[#allocation45_spill] sm:$0xff] %v12004_v25  ;;  %v10170_v28 = vpack.c.bf16 %v12004_v25, %v12012_v26  ;;  %14902 = vst [vmem:[#allocation51_spill] sm:$0xff] %v12055_v34  ;;  %v12058_v35 = vpop.f32.mrb[19].mxu0  ;;  %v10226_v40 = vpack.c.bf16 %v12076_v38, %v12080_v39 }
 0x158   : > { %8460 = vmatmul.mubr.msk.f32.gmra.mrb[22].mxu1 %vm2360_vm4, %v11885_v7  ;;  %14903 = vst [vmem:[#allocation52_spill] sm:$0xff] %v12058_v35  ;;  %14905 = vst [vmem:[#allocation54_spill] sm:$0xff] %v12080_v39 }
 0x159   : > { %8463 = vmatmul.mubr.msk.f32.vlgmr.msra.gmra.mrb[22].mxu0 %vm2360_vm4, %v11872_v4  ;;  %10097 = vmatpush1.bf16.msra.mxu1 %v11796_v27  ;;  %v12018_v27 = vadd.f32 %v11860_v62, %v11777_v56  ;;  %v1187_v56 = vld [vmem:[%s11482_s29] sm:$0xff]  ;;  %14908 = vst [vmem:[#allocation57_spill] sm:$0xff] %v12100_v47  ;;  %v1196_v62 = vld [vmem:[%s11482_s29 + $0x48] sm:$0xff] }
 0x15a   : > { %10099 = vmatprep.subr.bf16.mxu1 %v10058_v50  ;;  %10121 = vmatpush1.bf16.msra.mxu0 %v10054_v42  ;;  %v12098_v46 = vpop.f32.mrb[20].mxu0  ;;  %v12122_v63 = vpack.c.bf16 %v1196_v62, %v1195_v61 }
 0x15b   : > { %2449 = vmatprep.mubr.f32.mxu1 %v14692_v3  ;;  %10123 = vmatprep.subr.bf16.mxu0 %v11849_v58  ;;  %14898 = vst [vmem:[#allocation47_spill] sm:$0xff] %v12018_v27  ;;  %v10194_v30 = vpack.c.bf16 %v12018_v27, %v12028_v29  ;;  %14907 = vst [vmem:[#allocation56_spill] sm:$0xff] %v12098_v46  ;;  %v12102_v48 = vpop.f32.mrb[21].mxu0 }
 0x15c   : > { %8461 = vmatmul.mubr.msk.f32.gmra.mrb[24].mxu1 %vm2360_vm4, %v11894_v8  ;;  %2532 = vmatprep.mubr.f32.mxu0 %v14692_v3  ;;  %14909 = vst [vmem:[#allocation58_spill] sm:$0xff] %v12102_v48  ;;  %14912 = vst [vmem:[#allocation61_spill] sm:$0xff] %v12122_v63 }
 0x15d   : > { %8464 = vmatmul.mubr.msk.f32.gmra.mrb[24].mxu0 %vm2360_vm4, %v11885_v7  ;;  %10101 = vmatpush1.bf16.msra.mxu1 %v10054_v42  ;;  %v12088_v42 = vpack.c.bf16 %v1188_v41, %v1187_v56 }
 0x15e   : > { %10103 = vmatprep.subr.bf16.mxu1 %v11849_v58  ;;  %10125 = vmatpush1.bf16.msra.mxu0 %v10058_v50 }
 0x15f   : > { %2455 = vmatprep.mubr.f32.mxu1 %v14692_v3  ;;  %10127 = vmatprep.subr.bf16.mxu0 %v11869_v2  ;;  %14906 = vst [vmem:[#allocation55_spill] sm:$0xff] %v12088_v42 }
 0x160   : > { %8462 = vmatmul.mubr.msk.f32.gmra.mrb[26].mxu1 %vm2360_vm4, %v11907_v10  ;;  %2538 = vmatprep.mubr.f32.mxu0 %v14692_v3 }
 0x161   : > { %8465 = vmatmul.mubr.msk.f32.gmra.mrb[26].mxu0 %vm2360_vm4, %v11894_v8  ;;  %10105 = vmatpush1.bf16.msra.mxu1 %v10058_v50  ;;  %v1191_v50 = vld [vmem:[%s11482_s29 + $0x20] sm:$0xff] }
 0x162   : > { %10107 = vmatprep.subr.bf16.mxu1 %v11869_v2  ;;  %10129 = vmatpush1.bf16.msra.mxu0 %v11849_v58  ;;  %v12110_v53 = vpack.c.bf16 %v1192_v52, %v1191_v50 }
 0x163   : > { %10131 = vmatprep.subr.bf16.mxu0 %v10110_v12  ;;  %2544 = vmatprep.mubr.f32.mxu0 %v14692_v3 }
 0x164   : > { %2615 = vmatprep.mubr.f32.mxu1 %v14692_v3  ;;  %14910 = vst [vmem:[#allocation59_spill] sm:$0xff] %v12110_v53 }
 0x165   : > { %8466 = vmatmul.mubr.msk.f32.gmra.mrb[28].mxu0 %vm2360_vm4, %v11907_v10  ;;  %10109 = vmatpush1.bf16.msra.mxu1 %v11849_v58 }
 0x166   : > { %10111 = vmatprep.subr.bf16.mxu1 %v10110_v12  ;;  %10133 = vmatpush1.bf16.msra.mxu0 %v11869_v2 }
 0x167   : > { %10135 = vmatprep.subr.bf16.mxu0 %v10114_v16  ;;  %2704 = vmatprep.mubr.f32.mxu0 %v14692_v3 }
 0x169   : > { %10113 = vmatpush1.bf16.msra.mxu1 %v11869_v2 }
 0x16a   : > { %10115 = vmatprep.subr.bf16.mxu1 %v10114_v16  ;;  %10137 = vmatpush1.bf16.msra.mxu0 %v10110_v12 }
 0x16b   : > { %10139 = vmatprep.subr.bf16.mxu0 %v11951_v18 }
 0x16d   : > { %10117 = vmatpush1.bf16.msra.mxu1 %v10110_v12 }
 0x16e   : > { %10141 = vmatpush1.bf16.msra.mxu0 %v10114_v16  ;;  %10147 = vmatprep.subr.bf16.mxu1 %v11869_v2 }
 0x16f   : > { %10143 = vmatprep.subr.bf16.mxu0 %v11965_v21 }
 0x170   : > { %8467 = vmatmul.mubr.msk.f32.vlgmr.msra.gmra.mrb[28].mxu1 %vm2360_vm4, %v11872_v4 }
 0x171   : > { %10149 = vmatpush1.bf16.msra.mxu1 %v11849_v58  ;;  %2621 = vmatprep.mubr.f32.mxu1 %v14692_v3  ;;  %v12116_v58 = vpack.c.bf16 %v1194_v57, %v1193_v55 }
 0x172   : > { %10145 = vmatpush1.bf16.msra.mxu0 %v11951_v18  ;;  %10151 = vmatprep.subr.bf16.mxu1 %v10110_v12 }
 0x173   : > { %10175 = vmatprep.subr.bf16.mxu0 %v10114_v16  ;;  %14911 = vst [vmem:[#allocation60_spill] sm:$0xff] %v12116_v58 }
 0x174   : > { %8468 = vmatmul.mubr.msk.f32.gmra.mrb[30].mxu1 %vm2360_vm4, %v11885_v7 }
 0x175   : > { %8471 = vmatmul.mubr.msk.f32.vlgmr.msra.gmra.mrb[30].mxu0 %vm2360_vm4, %v11872_v4  ;;  %10153 = vmatpush1.bf16.msra.mxu1 %v11869_v2  ;;  %v1198_v2 = vld [vmem:[%s11482_s29 + $0x58] sm:$0xff] }
 0x176   : > { %10155 = vmatprep.subr.bf16.mxu1 %v10114_v16  ;;  %10177 = vmatpush1.bf16.msra.mxu0 %v10110_v12 }
 0x177   : > { %2627 = vmatprep.mubr.f32.mxu1 %v14692_v3  ;;  %10179 = vmatprep.subr.bf16.mxu0 %v11951_v18 }
 0x178   : > { %8469 = vmatmul.mubr.msk.f32.gmra.mrb[32].mxu1 %vm2360_vm4, %v11894_v8  ;;  %2710 = vmatprep.mubr.f32.mxu0 %v14692_v3 }
 0x179   : > { %8472 = vmatmul.mubr.msk.f32.gmra.mrb[32].mxu0 %vm2360_vm4, %v11885_v7  ;;  %10157 = vmatpush1.bf16.msra.mxu1 %v10110_v12 }
 0x17a   : > { %10159 = vmatprep.subr.bf16.mxu1 %v11951_v18  ;;  %10181 = vmatpush1.bf16.msra.mxu0 %v10114_v16 }
 0x17b   : > { %2633 = vmatprep.mubr.f32.mxu1 %v14692_v3  ;;  %10183 = vmatprep.subr.bf16.mxu0 %v11965_v21 }
 0x17c   : > { %8470 = vmatmul.mubr.msk.f32.gmra.mrb[34].mxu1 %vm2360_vm4, %v11907_v10  ;;  %2716 = vmatprep.mubr.f32.mxu0 %v14692_v3 }
 0x17d   : > { %8473 = vmatmul.mubr.msk.f32.gmra.mrb[34].mxu0 %vm2360_vm4, %v11894_v8  ;;  %10161 = vmatpush1.bf16.msra.mxu1 %v10114_v16  ;;  %v14694_v16 = vmov 0.0|0.0  }
 0x17e   : > { %10163 = vmatprep.subr.bf16.mxu1 %v11965_v21  ;;  %10185 = vmatpush1.bf16.msra.mxu0 %v11951_v18 }
 0x17f   : > { %10187 = vmatprep.subr.bf16.mxu0 %v10166_v24  ;;  %2722 = vmatprep.mubr.f32.mxu0 %v14692_v3 }
 0x180   : > { %2793 = vmatprep.mubr.f32.mxu1 %v14692_v3 }
 0x181   : > { %8474 = vmatmul.mubr.msk.f32.gmra.mrb[36].mxu0 %vm2360_vm4, %v11907_v10  ;;  %10165 = vmatpush1.bf16.msra.mxu1 %v11951_v18 }
 0x182   : > { %10167 = vmatprep.subr.bf16.mxu1 %v10166_v24  ;;  %10189 = vmatpush1.bf16.msra.mxu0 %v11965_v21 }
 0x183   : > { %10191 = vmatprep.subr.bf16.mxu0 %v10170_v28  ;;  %2882 = vmatprep.mubr.f32.mxu0 %v14692_v3 }
 0x185   : > { %10169 = vmatpush1.bf16.msra.mxu1 %v11965_v21 }
 0x186   : > { %10171 = vmatprep.subr.bf16.mxu1 %v10170_v28  ;;  %10193 = vmatpush1.bf16.msra.mxu0 %v10166_v24 }
 0x187   : > { %10195 = vmatprep.subr.bf16.mxu0 %v10194_v30 }
 0x189   : > { %10173 = vmatpush1.bf16.msra.mxu1 %v10166_v24 }
 0x18a   : > { %10197 = vmatpush1.bf16.msra.mxu0 %v10170_v28  ;;  %10203 = vmatprep.subr.bf16.mxu1 %v11951_v18 }
 0x18b   : > { %10199 = vmatprep.subr.bf16.mxu0 %v10198_v33 }
 0x18c   : > { %8475 = vmatmul.mubr.msk.f32.vlgmr.msra.gmra.mrb[36].mxu1 %vm2360_vm4, %v11872_v4 }
 0x18d   : > { %10205 = vmatpush3.bf16.msra.mxu1 %v11951_v18  ;;  %2799 = vmatprep.mubr.f32.mxu1 %v14692_v3  ;;  %v2273_v18 = vld [vmem:[%s11502_s19 + $0x8] sm:$0xff] }
 0x18e   : > { %10201 = vmatpush1.bf16.msra.mxu0 %v10194_v30  ;;  %10207 = vmatprep.subr.bf16.mxu1 %v11965_v21 }
 0x18f   : > { %10230 = vmatprep.subr.bf16.mxu0 %v14694_v16 }
 0x190   : > { %8476 = vmatmul.mubr.msk.f32.gmra.mrb[38].mxu1 %vm2360_vm4, %v11885_v7 }
 0x191   : > { %8479 = vmatmul.mubr.msk.f32.vlgmr.msra.gmra.mrb[38].mxu0 %vm2360_vm4, %v11872_v4  ;;  %10209 = vmatpush3.bf16.msra.mxu1 %v11965_v21  ;;  %v12148_v21 = vpop.permute.xlu1 %2352 }
 0x192   : > { %10211 = vmatprep.subr.bf16.mxu1 %v10166_v24  ;;  %2805 = vmatprep.mubr.f32.mxu1 %v14692_v3 }
 0x193   : > { %2888 = vmatprep.mubr.f32.mxu0 %v14692_v3 }
 0x194   : > { %8477 = vmatmul.mubr.msk.f32.gmra.mrb[40].mxu1 %vm2360_vm4, %v11894_v8 }
 0x195   : > { %8480 = vmatmul.mubr.msk.f32.gmra.mrb[40].mxu0 %vm2360_vm4, %v11885_v7  ;;  %10213 = vmatpush3.bf16.msra.mxu1 %v10166_v24  ;;  %v12150_v24 = vpop.permute.xlu1 %2357 }
 0x196   : > { %10215 = vmatprep.subr.bf16.mxu1 %v10170_v28  ;;  %2811 = vmatprep.mubr.f32.mxu1 %v14692_v3 }
 0x197   : > { %2894 = vmatprep.mubr.f32.mxu0 %v14692_v3 }
 0x198   : > { %8478 = vmatmul.mubr.msk.f32.gmra.mrb[42].mxu1 %vm2360_vm4, %v11907_v10 }
 0x199   : > { %8481 = vmatmul.mubr.msk.f32.gmra.mrb[42].mxu0 %vm2360_vm4, %v11894_v8  ;;  %10217 = vmatpush3.bf16.msra.mxu1 %v10170_v28  ;;  %v12154_v56 = vpop.permute.xlu1 %2347 }
 0x19a   : > { %10219 = vmatprep.subr.bf16.mxu1 %v10194_v30  ;;  %2900 = vmatprep.mubr.f32.mxu0 %v14692_v3 }
 0x19b   : > { %9142 = vmatprep.mubr.msk.f32.mxu1 %vm2360_vm4, %v11872_v4  ;;  %v12128_v4 = vpack.c.bf16 %v1198_v2, %v1197_v1 }
 0x19d   : > { %8482 = vmatmul.mubr.msk.f32.gmra.mrb[44].mxu0 %vm2360_vm4, %v11907_v10  ;;  %10221 = vmatpush3.bf16.msra.mxu1 %v10194_v30  ;;  %14913 = vst [vmem:[#allocation62_spill] sm:$0xff] %v12128_v4 }
 0x19e   : > { %10223 = vmatprep.subr.bf16.mxu1 %v10198_v33  ;;  %8487 = vmatprep.mubr.msk.f32.mxu0 %vm3148_vm5, %v2273_v18 }
 0x1a1   : > { %10225 = vmatpush3.bf16.msra.mxu1 %v10198_v33  ;;  %v12152_v33 = vpop.permute.xlu0 %2342 }
 0x1a2   : > { %10227 = vmatprep.subr.bf16.mxu1 %v10226_v40 }
 0x1a5   : > { %10229 = vmatpush3.bf16.msra.mxu1 %v10226_v40 }
 0x1a6   : > { %10270 = vmatprep.subr.bf16.mxu1 %v12088_v42 }
 0x1a8   : > { %9143 = vmatmul.mubr.msk.f32.vlgmr.msra.gmra.mrb[44].mxu1 %vm2360_vm4, %v11885_v7  ;;  %v12134_v7 = vpack.c.bf16 %v1200_v6, %v1199_v5 }
 0x1a9   : > { %9145 = vmatprep.mubr.msk.f32.mxu1 %vm2360_vm4, %v11894_v8  ;;  %10272 = vmatpush3.bf16.msra.mxu1 %v12088_v42  ;;  %v1201_v8 = vld [vmem:[%s11482_s29 + $0x70] sm:$0xff] }
 0x1aa   : > { %10274 = vmatprep.subr.bf16.mxu1 %v12100_v47  ;;  %14914 = vst [vmem:[#allocation63_spill] sm:$0xff] %v12134_v7 }
 0x1ac   : > { %9146 = vmatmul.mubr.msk.f32.gmra.mrb[46].mxu1 %vm2360_vm4, %v11907_v10  ;;  %v1202_v10 = vld [vmem:[%s11482_s29 + $0x78] sm:$0xff] }
 0x1ad   : > { %10276 = vmatpush3.bf16.msra.mxu1 %v12100_v47  ;;  %v12140_v12 = vpack.c.bf16 %v1202_v10, %v1201_v8 }
 0x1ae   : > { %10278 = vmatprep.subr.bf16.mxu1 %v12110_v53 }
 0x1af   : > { %14915 = vst [vmem:[#allocation64_spill] sm:$0xff] %v12140_v12 }
 0x1b1   : > { %10280 = vmatpush3.bf16.msra.mxu1 %v12110_v53 }
 0x1b2   : > { %10282 = vmatprep.subr.bf16.mxu1 %v12116_v58 }
 0x1b5   : > { %10284 = vmatpush3.bf16.msra.mxu1 %v12116_v58 }
 0x1b6   : > { %10286 = vmatprep.subr.bf16.mxu1 %v12122_v63 }
 0x1b9   : > { %10288 = vmatpush3.bf16.msra.mxu1 %v12122_v63 }
 0x1ba   : > { %10290 = vmatprep.subr.bf16.mxu1 %v12128_v4 }
 0x1bd   : > { %10292 = vmatpush3.bf16.msra.mxu1 %v12128_v4 }
 0x1be   : > { %10294 = vmatprep.subr.bf16.mxu1 %v12134_v7 }
 0x1c1   : > { %10296 = vmatpush3.bf16.msra.mxu1 %v12134_v7 }
 0x1c2   : > { %10298 = vmatprep.subr.bf16.mxu1 %v12140_v12 }
 0x1c5   : > { %10300 = vmatpush3.bf16.msra.mxu1 %v12140_v12 }
 0x1c6   : > { %10334 = vmatprep.subr.bf16.mxu1 %v12088_v42 }
 0x227   : > { %v2439_v28 = vpop.f32.mrb[20].mxu1 }
 0x228   : > { %v2441_v30 = vpop.f32.mrb[21].mxu1  ;;  %v2440_v45 = vadd.f32 %v2439_v28, %v12152_v33 }
 0x229   : > { %v2442_v52 = vadd.f32 %v2441_v30, %v12152_v33 }
 0x22a   : > { %11220 = vtanh.f32 %v2440_v45 }
 0x22b   : > { %v2445_v40 = vpop.f32.mrb[22].mxu1  ;;  %11222 = vtanh.f32 %v2442_v52 }
 0x22c   : > { %v2528_v41 = vpop.f32.mrb[22].mxu0  ;;  %v2447_v54 = vpop.f32.mrb[23].mxu1  ;;  %v2446_v57 = vadd.f32 %v2445_v40, %v12154_v56 }
 0x22d   : > { %v2530_v50 = vpop.f32.mrb[23].mxu0  ;;  %v2529_v6 = vadd.f32 %v2528_v41, %v12152_v33 }
 0x22e   : > { %v2531_v10 = vadd.f32 %v2530_v50, %v12152_v33  ;;  %11224 = vtanh.f32 %v2446_v57 }
 0x22f   : > { %v2451_v55 = vpop.f32.mrb[24].mxu1 }
 0x230   : > { %v2452_v61 = vadd.f32 %v2451_v55, %v12148_v21  ;;  %v2453_v62 = vpop.f32.mrb[25].mxu1  ;;  %v2534_v1 = vpop.f32.mrb[24].mxu0 }
 0x231   : > { %v2454_v2 = vadd.f32 %v2453_v62, %v12148_v21  ;;  %v2536_v5 = vpop.f32.mrb[25].mxu0 }
 0x232   : > { %v3018_v8 = vmul.f32 0.5, %v2452_v61 }
 0x233   : > { %v3019_v18 = vmul.f32 0.5, %v2454_v2  ;;  %v2457_v28 = vpop.f32.mrb[26].mxu1 }
 0x234   : > { %11226 = vtanh.f32 %v3018_v8  ;;  %v2458_v30 = vadd.f32 %v2457_v28, %v12150_v24  ;;  %v2459_v40 = vpop.f32.mrb[27].mxu1  ;;  %v2540_v55 = vpop.f32.mrb[26].mxu0  ;;  %v2448_v8 = vadd.f32 %v2447_v54, %v12154_v56 }
 0x235   : > { %11228 = vtanh.f32 %v3019_v18  ;;  %v2460_v45 = vadd.f32 %v2459_v40, %v12150_v24  ;;  %v2541_v62 = vadd.f32 %v2540_v55, %v12148_v21  ;;  %v2542_v0 = vpop.f32.mrb[27].mxu0  ;;  %v11221_v55 = vpop.eup %11220 }
 0x236   : > { %11230 = vtanh.f32 %v2529_v6  ;;  %v3031_v52 = vmul.f32 0.5, %v2458_v30  ;;  %v2543_v41 = vadd.f32 %v2542_v0, %v12148_v21  ;;  %v2535_v6 = vadd.f32 %v2534_v1, %v12154_v56 }
 0x237   : > { %11232 = vtanh.f32 %v2531_v10  ;;  %v3032_v50 = vmul.f32 0.5, %v2460_v45  ;;  %v3020_v61 = vmul.f32 0.5, %v2541_v62  ;;  %v11223_v10 = vpop.eup %11222  ;;  %v2537_v30 = vadd.f32 %v2536_v5, %v12154_v56 }
 0x238   : > { %11234 = vtanh.f32 %v3031_v52  ;;  %v3021_v57 = vmul.f32 0.5, %v2543_v41  ;;  %v2546_v2 = vpop.f32.mrb[28].mxu0  ;;  %v11225_v62 = vpop.eup %11224 }
 0x239   : > { %11236 = vtanh.f32 %v3032_v50  ;;  %v2547_v18 = vadd.f32 %v2546_v2, %v12150_v24  ;;  %v2548_v28 = vpop.f32.mrb[29].mxu0 }
 0x23a   : > { %11238 = vtanh.f32 %v3020_v61  ;;  %v2549_v40 = vadd.f32 %v2548_v28, %v12150_v24 }
 0x23b   : > { %11240 = vtanh.f32 %v3021_v57  ;;  %v3033_v0 = vmul.f32 0.5, %v2547_v18 }
 0x23c   : > { %v3034_v45 = vmul.f32 0.5, %v2549_v40  ;;  %11242 = vtanh.f32 %v2448_v8 }
 0x23d   : > { %11244 = vtanh.f32 %v3033_v0 }
 0x23e   : > { %v11227_v54 = vpop.eup %11226  ;;  %11246 = vtanh.f32 %v3034_v45 }
 0x23f   : > { %v11229_v52 = vpop.eup %11228  ;;  %v3070_v41 = vadd.f32 1.0, %v11227_v54  ;;  %11248 = vtanh.f32 %v2535_v6 }
 0x240   : > { %v11231_v50 = vpop.eup %11230  ;;  %v3071_v61 = vadd.f32 1.0, %v11229_v52  ;;  %11250 = vtanh.f32 %v2537_v30 }
 0x241   : > { %v11233_v2 = vpop.eup %11232  ;;  %v3096_v57 = vmul.f32 0.5, %v3070_v41 }
 0x242   : > { %v11235_v28 = vpop.eup %11234  ;;  %v3097_v1 = vmul.f32 0.5, %v3071_v61 }
 0x243   : > { %v11237_v18 = vpop.eup %11236  ;;  %v12172_v3 = vmul.f32 %v11221_v55, %v3096_v57  ;;  %v3083_v5 = vadd.f32 1.0, %v11235_v28  ;;  %v2617_v40 = vpop.f32.mrb[28].mxu1 }
 0x244   : > { %v11239_v8 = vpop.eup %11238  ;;  %v12174_v16 = vmul.f32 %v11223_v10, %v3097_v1  ;;  %v3084_v0 = vadd.f32 1.0, %v11237_v18  ;;  %v2619_v45 = vpop.f32.mrb[29].mxu1 }
 0x245   : > { %v11241_v46 = vpop.eup %11240  ;;  %v3109_v54 = vmul.f32 0.5, %v3083_v5  ;;  %v3072_v6 = vadd.f32 1.0, %v11239_v8  ;;  %9180 = vmatprep.mubr.f32.mxu1 %v12172_v3 }
 0x246   : > { %v11243_v30 = vpop.eup %11242  ;;  %v3110_v52 = vmul.f32 0.5, %v3084_v0  ;;  %v3073_v41 = vadd.f32 1.0, %v11241_v46 }
 0x247   : > { %v11245_v34 = vpop.eup %11244  ;;  %v3098_v61 = vmul.f32 0.5, %v3072_v6  ;;  %v2623_v48 = vpop.f32.mrb[30].mxu1  ;;  %v12177_v55 = vmul.f32 %v11225_v62, %v3109_v54  ;;  %v2618_v54 = vadd.f32 %v2617_v40, %v12152_v33  ;;  %v2620_v6 = vadd.f32 %v2619_v45, %v12152_v33 }
 0x248   : > { %v11247_v57 = vpop.eup %11246  ;;  %v3099_v28 = vmul.f32 0.5, %v3073_v41  ;;  %v3085_v35 = vadd.f32 1.0, %v11245_v34  ;;  %v2706_v10 = vpop.f32.mrb[30].mxu0  ;;  %v12179_v18 = vmul.f32 %v11243_v30, %v3110_v52 }
 0x249   : > { %v2625_v1 = vpop.f32.mrb[31].mxu1  ;;  %v11249_v38 = vpop.eup %11248  ;;  %v12181_v5 = vmul.f32 %v11231_v50, %v3098_v61  ;;  %v3086_v8 = vadd.f32 1.0, %v11247_v57  ;;  %9181 = vmatmul.mubr.f32.vlgmr.msra.gmra.mrb[48].mxu1 %v12177_v55  ;;  %v12194_v30 = vpack.c.bf16 %v12177_v55, %v12172_v3  ;;  %11252 = vtanh.f32 %v2618_v54 }
 0x24a   : > { %v12183_v31 = vpop.f32.mrb[31].mxu0  ;;  %v11251_v46 = vpop.eup %11250  ;;  %v12186_v0 = vmul.f32 %v11233_v2, %v3099_v28  ;;  %v3111_v62 = vmul.f32 0.5, %v3085_v35  ;;  %10336 = vmatpush3.bf16.msra.mxu1 %v12088_v42  ;;  %9183 = vmatprep.mubr.f32.mxu1 %v12174_v16  ;;  %v2624_v57 = vadd.f32 %v2623_v48, %v12154_v56  ;;  %11254 = vtanh.f32 %v2620_v6 }
 0x24b   : > { %v3112_v34 = vmul.f32 0.5, %v3086_v8  ;;  %v2629_v50 = vpop.f32.mrb[32].mxu1  ;;  %10338 = vmatprep.subr.bf16.mxu1 %v12100_v47  ;;  %10232 = vmatpush1.bf16.msra.mxu0 %v12194_v30  ;;  %v2707_v8 = vadd.f32 %v2706_v10, %v12152_v33 }
 0x24c   : > { %v12197_v52 = vmul.f32 %v11249_v38, %v3111_v62  ;;  %v2630_v35 = vadd.f32 %v2629_v50, %v12148_v21  ;;  %v2631_v2 = vpop.f32.mrb[33].mxu1  ;;  %v2712_v40 = vpop.f32.mrb[32].mxu0  ;;  %v14916_v38 = vmov 0.0|0.0  }
 0x24d   : > { %v12200_v41 = vmul.f32 %v11251_v46, %v3112_v34  ;;  %v2632_v61 = vadd.f32 %v2631_v2, %v12148_v21  ;;  %v2714_v45 = vpop.f32.mrb[33].mxu0  ;;  %9184 = vmatmul.mubr.f32.gmra.mrb[50].mxu1 %v12179_v18  ;;  %10233 = vmatprep.subr.bf16.mxu0 %v14916_v38  ;;  %v12212_v34 = vpack.c.bf16 %v12179_v18, %v12174_v16 }
 0x24e   : > { %v3022_v28 = vmul.f32 0.5, %v2630_v35  ;;  %10340 = vmatpush3.bf16.msra.mxu1 %v12100_v47  ;;  %9186 = vmatprep.mubr.f32.mxu1 %v12181_v5 }
 0x24f   : > { %v3023_v46 = vmul.f32 0.5, %v2632_v61  ;;  %v2635_v62 = vpop.f32.mrb[34].mxu1  ;;  %10342 = vmatprep.subr.bf16.mxu1 %v12110_v53  ;;  %10235 = vmatpush1.bf16.msra.mxu0 %v12212_v34 }
 0x250   : > { %11256 = vtanh.f32 %v3022_v28  ;;  %v2636_v48 = vadd.f32 %v2635_v62, %v12150_v24  ;;  %v2637_v54 = vpop.f32.mrb[35].mxu1  ;;  %v2718_v50 = vpop.f32.mrb[34].mxu0  ;;  %10236 = vmatprep.subr.bf16.mxu0 %v14916_v38  ;;  %v12226_v62 = vpack.c.bf16 %v12197_v52, %v12181_v5 }
 0x251   : > { %11258 = vtanh.f32 %v3023_v46  ;;  %v2638_v10 = vadd.f32 %v2637_v54, %v12150_v24  ;;  %v2719_v6 = vadd.f32 %v2718_v50, %v12148_v21  ;;  %v2720_v35 = vpop.f32.mrb[35].mxu0  ;;  %9187 = vmatmul.mubr.f32.gmra.mrb[52].mxu1 %v12197_v52 }
 0x252   : > { %11260 = vtanh.f32 %v2624_v57  ;;  %v3035_v2 = vmul.f32 0.5, %v2636_v48  ;;  %v2721_v61 = vadd.f32 %v2720_v35, %v12148_v21  ;;  %10344 = vmatpush3.bf16.msra.mxu1 %v12110_v53  ;;  %9189 = vmatprep.mubr.f32.mxu1 %v12186_v0  ;;  %v2626_v57 = vadd.f32 %v2625_v1, %v12154_v56 }
 0x253   : > { %11262 = vtanh.f32 %v2707_v8  ;;  %v3036_v28 = vmul.f32 0.5, %v2638_v10  ;;  %v3024_v46 = vmul.f32 0.5, %v2719_v6  ;;  %10346 = vmatprep.subr.bf16.mxu1 %v12116_v58  ;;  %10238 = vmatpush1.bf16.msra.mxu0 %v12226_v62  ;;  %v2709_v1 = vadd.f32 %v12183_v31, %v12152_v33 }
 0x254   : > { %11264 = vtanh.f32 %v3035_v2  ;;  %v3025_v48 = vmul.f32 0.5, %v2721_v61  ;;  %v2724_v54 = vpop.f32.mrb[36].mxu0  ;;  %10239 = vmatprep.subr.bf16.mxu0 %v14916_v38  ;;  %v12240_v35 = vpack.c.bf16 %v12200_v41, %v12186_v0  ;;  %v11253_v2 = vpop.eup %11252  ;;  %v2715_v31 = vadd.f32 %v2714_v45, %v12154_v56 }
 0x255   : > { %11266 = vtanh.f32 %v3036_v28  ;;  %v2725_v8 = vadd.f32 %v2724_v54, %v12150_v24  ;;  %v2726_v50 = vpop.f32.mrb[37].mxu0  ;;  %9190 = vmatmul.mubr.f32.gmra.mrb[54].mxu1 %v12200_v41  ;;  %v11255_v28 = vpop.eup %11254 }
 0x256   : > { %11268 = vtanh.f32 %v3024_v46  ;;  %v2727_v10 = vadd.f32 %v2726_v50, %v12150_v24  ;;  %10348 = vmatpush3.bf16.msra.mxu1 %v12116_v58  ;;  %v2713_v46 = vadd.f32 %v2712_v40, %v12154_v56 }
 0x257   : > { %11270 = vtanh.f32 %v3025_v48  ;;  %v3037_v6 = vmul.f32 0.5, %v2725_v8  ;;  %10350 = vmatprep.subr.bf16.mxu1 %v12122_v63  ;;  %10241 = vmatpush1.bf16.msra.mxu0 %v12240_v35 }
 0x258   : > { %11272 = vtanh.f32 %v2626_v57  ;;  %v3038_v61 = vmul.f32 0.5, %v2727_v10  ;;  %10242 = vmatprep.subr.bf16.mxu0 %v14916_v38 }
 0x259   : > { %11274 = vtanh.f32 %v3037_v6 }
 0x25a   : > { %v11257_v54 = vpop.eup %11256  ;;  %11276 = vtanh.f32 %v3038_v61  ;;  %10352 = vmatpush3.bf16.msra.mxu1 %v12122_v63 }
 0x25b   : > { %v11259_v48 = vpop.eup %11258  ;;  %11278 = vtanh.f32 %v2709_v1  ;;  %v3074_v8 = vadd.f32 1.0, %v11257_v54  ;;  %10354 = vmatprep.subr.bf16.mxu1 %v12128_v4 }
 0x25c   : > { %v11261_v57 = vpop.eup %11260  ;;  %v3075_v50 = vadd.f32 1.0, %v11259_v48  ;;  %11280 = vtanh.f32 %v2713_v46 }
 0x25d   : > { %v11263_v10 = vpop.eup %11262  ;;  %v3100_v40 = vmul.f32 0.5, %v3074_v8  ;;  %11282 = vtanh.f32 %v2715_v31 }
 0x25e   : > { %v11265_v6 = vpop.eup %11264  ;;  %v3101_v58 = vmul.f32 0.5, %v3075_v50  ;;  %10356 = vmatpush3.bf16.msra.mxu1 %v12128_v4 }
 0x25f   : > { %v11267_v45 = vpop.eup %11266  ;;  %v12250_v61 = vmul.f32 %v11253_v2, %v3100_v40  ;;  %v3087_v63 = vadd.f32 1.0, %v11265_v6  ;;  %v2795_v53 = vpop.f32.mrb[36].mxu1  ;;  %10358 = vmatprep.subr.bf16.mxu1 %v12134_v7 }
 0x260   : > { %v11269_v1 = vpop.eup %11268  ;;  %v12253_v54 = vmul.f32 %v11255_v28, %v3101_v58  ;;  %v3088_v47 = vadd.f32 1.0, %v11267_v45  ;;  %v2797_v48 = vpop.f32.mrb[37].mxu1 }
 0x261   : > { %v11271_v42 = vpop.eup %11270  ;;  %v3113_v8 = vmul.f32 0.5, %v3087_v63  ;;  %v3076_v46 = vadd.f32 1.0, %v11269_v1  ;;  %9192 = vmatprep.mubr.f32.mxu1 %v12250_v61 }
 0x262   : > { %v11273_v31 = vpop.eup %11272  ;;  %v3114_v50 = vmul.f32 0.5, %v3088_v47  ;;  %v3077_v4 = vadd.f32 1.0, %v11271_v42  ;;  %10360 = vmatpush3.bf16.msra.mxu1 %v12134_v7 }
 0x263   : > { %v11275_v2 = vpop.eup %11274  ;;  %v12257_v40 = vmul.f32 %v11261_v57, %v3113_v8  ;;  %v3102_v6 = vmul.f32 0.5, %v3076_v46  ;;  %v2801_v27 = vpop.f32.mrb[38].mxu1  ;;  %10362 = vmatprep.subr.bf16.mxu1 %v12140_v12  ;;  %v2796_v46 = vadd.f32 %v2795_v53, %v12152_v33 }
 0x264   : > { %v11277_v58 = vpop.eup %11276  ;;  %v12260_v28 = vmul.f32 %v11273_v31, %v3114_v50  ;;  %v3103_v45 = vmul.f32 0.5, %v3077_v4  ;;  %v3089_v63 = vadd.f32 1.0, %v11275_v2  ;;  %v2803_v1 = vpop.f32.mrb[39].mxu1  ;;  %v2798_v50 = vadd.f32 %v2797_v48, %v12152_v33 }
 0x265   : > { %v2884_v25 = vpop.f32.mrb[38].mxu0  ;;  %v11279_v22 = vpop.eup %11278  ;;  %v12262_v19 = vmul.f32 %v11263_v10, %v3102_v6  ;;  %v3090_v42 = vadd.f32 1.0, %v11277_v58  ;;  %9193 = vmatmul.mubr.f32.gmra.mrb[56].mxu1 %v12257_v40  ;;  %v12276_v2 = vpack.c.bf16 %v12257_v40, %v12250_v61  ;;  %11284 = vtanh.f32 %v2796_v46 }
 0x266   : > { %v12264_v47 = vpop.f32.mrb[39].mxu0  ;;  %v12267_v57 = vmul.f32 %v11279_v22, %v3103_v45  ;;  %v3115_v8 = vmul.f32 0.5, %v3089_v63  ;;  %10364 = vmatpush3.bf16.msra.mxu1 %v12140_v12  ;;  %9195 = vmatprep.mubr.f32.mxu1 %v12253_v54  ;;  %v11281_v4 = vpop.eup %11280  ;;  %v2802_v12 = vadd.f32 %v2801_v27, %v12154_v56  ;;  %11286 = vtanh.f32 %v2798_v50 }
 0x267   : > { %v3116_v31 = vmul.f32 0.5, %v3090_v42  ;;  %10398 = vmatprep.subr.bf16.mxu1 %v12212_v34  ;;  %v2807_v10 = vpop.f32.mrb[40].mxu1  ;;  %v11283_v22 = vpop.eup %11282  ;;  %10244 = vmatpush1.bf16.msra.mxu0 %v12276_v2 }
 0x268   : > { %v12278_v6 = vmul.f32 %v11281_v4, %v3115_v8  ;;  %v2808_v53 = vadd.f32 %v2807_v10, %v12148_v21  ;;  %v2809_v58 = vpop.f32.mrb[41].mxu1  ;;  %v2890_v45 = vpop.f32.mrb[40].mxu0  ;;  %10245 = vmatprep.subr.bf16.mxu0 %v14916_v38  ;;  %v2804_v8 = vadd.f32 %v2803_v1, %v12154_v56  ;;  %v12292_v10 = vpack.c.bf16 %v12260_v28, %v12253_v54 }
 0x269   : > { %v12281_v63 = vmul.f32 %v11283_v22, %v3116_v31  ;;  %v2810_v48 = vadd.f32 %v2809_v58, %v12148_v21  ;;  %v2892_v42 = vpop.f32.mrb[41].mxu0  ;;  %9196 = vmatmul.mubr.f32.gmra.mrb[58].mxu1 %v12260_v28  ;;  %v12585_v17 = vmul.f32 0.05, %v12267_v57 }
 0x26a   : > { %v3026_v7 = vmul.f32 0.5, %v2808_v53  ;;  %9198 = vmatprep.mubr.f32.mxu1 %v12262_v19 }
 0x26b   : > { %v3027_v4 = vmul.f32 0.5, %v2810_v48  ;;  %v2813_v31 = vpop.f32.mrb[42].mxu1  ;;  %10247 = vmatpush1.bf16.msra.mxu0 %v12292_v10 }
 0x26c   : > { %11288 = vtanh.f32 %v3026_v7  ;;  %v2814_v22 = vadd.f32 %v2813_v31, %v12150_v24  ;;  %v2815_v46 = vpop.f32.mrb[43].mxu1  ;;  %v2896_v58 = vpop.f32.mrb[42].mxu0  ;;  %10248 = vmatprep.subr.bf16.mxu0 %v14916_v38  ;;  %v12304_v31 = vpack.c.bf16 %v12278_v6, %v12262_v19 }
 0x26d   : > { %11290 = vtanh.f32 %v3027_v4  ;;  %v2816_v27 = vadd.f32 %v2815_v46, %v12150_v24  ;;  %v2897_v50 = vadd.f32 %v2896_v58, %v12148_v21  ;;  %v2898_v53 = vpop.f32.mrb[43].mxu0  ;;  %9199 = vmatmul.mubr.f32.gmra.mrb[60].mxu1 %v12278_v6  ;;  %v2885_v46 = vadd.f32 %v2884_v25, %v12152_v33 }
 0x26e   : > { %11292 = vtanh.f32 %v2802_v12  ;;  %v3039_v1 = vmul.f32 0.5, %v2814_v22  ;;  %v2899_v48 = vadd.f32 %v2898_v53, %v12148_v21  ;;  %9201 = vmatprep.mubr.f32.mxu1 %v12267_v57  ;;  %14917 = vst [vmem:[#allocation65_spill] sm:$0xff] %v12304_v31 }
 0x26f   : > { %11294 = vtanh.f32 %v2804_v8  ;;  %v3040_v7 = vmul.f32 0.5, %v2816_v27  ;;  %v3028_v4 = vmul.f32 0.5, %v2897_v50  ;;  %10250 = vmatpush1.bf16.msra.mxu0 %v12304_v31  ;;  %v2887_v27 = vadd.f32 %v12264_v47, %v12152_v33  ;;  %v11285_v53 = vpop.eup %11284 }
 0x270   : > { %11296 = vtanh.f32 %v3039_v1  ;;  %v3029_v58 = vmul.f32 0.5, %v2899_v48  ;;  %v2902_v15 = vpop.f32.mrb[44].mxu0  ;;  %10251 = vmatprep.subr.bf16.mxu0 %v14916_v38  ;;  %v12316_v50 = vpack.c.bf16 %v12281_v63, %v12267_v57  ;;  %v11287_v1 = vpop.eup %11286  ;;  %v2891_v48 = vadd.f32 %v2890_v45, %v12154_v56 }
 0x271   : > { %11298 = vtanh.f32 %v3040_v7  ;;  %v2903_v12 = vadd.f32 %v2902_v15, %v12150_v24  ;;  %v2904_v22 = vpop.f32.mrb[45].mxu0  ;;  %9202 = vmatmul.mubr.f32.gmra.mrb[62].mxu1 %v12281_v63 }
 0x272   : > { %11300 = vtanh.f32 %v3028_v4  ;;  %v2905_v8 = vadd.f32 %v2904_v22, %v12150_v24  ;;  %14918 = vst [vmem:[#allocation66_spill] sm:$0xff] %v12316_v50  ;;  %v2893_v4 = vadd.f32 %v2892_v42, %v12154_v56 }
 0x273   : > { %11302 = vtanh.f32 %v3029_v58  ;;  %v3041_v25 = vmul.f32 0.5, %v2903_v12  ;;  %10253 = vmatpush1.bf16.msra.mxu0 %v12316_v50 }
 0x274   : > { %11304 = vtanh.f32 %v2885_v46  ;;  %v3042_v15 = vmul.f32 0.5, %v2905_v8  ;;  %10254 = vmatprep.subr.bf16.mxu0 %v14916_v38 }
 0x275   : > { %11306 = vtanh.f32 %v3041_v25 }
 0x276   : > { %v11289_v7 = vpop.eup %11288  ;;  %11308 = vtanh.f32 %v3042_v15 }
 0x277   : > { %v11291_v47 = vpop.eup %11290  ;;  %11310 = vtanh.f32 %v2887_v27  ;;  %v3078_v58 = vadd.f32 1.0, %v11289_v7 }
 0x278   : > { %v11293_v12 = vpop.eup %11292  ;;  %v3079_v22 = vadd.f32 1.0, %v11291_v47  ;;  %11312 = vtanh.f32 %v2891_v48 }
 0x279   : > { %v11295_v13 = vpop.eup %11294  ;;  %v3104_v46 = vmul.f32 0.5, %v3078_v58  ;;  %11314 = vtanh.f32 %v2893_v4 }
 0x27a   : > { %v11297_v8 = vpop.eup %11296  ;;  %v3105_v9 = vmul.f32 0.5, %v3079_v22 }
 0x27b   : > { %v11299_v45 = vpop.eup %11298  ;;  %v12322_v25 = vmul.f32 %v11285_v53, %v3104_v46  ;;  %v3091_v59 = vadd.f32 1.0, %v11297_v8  ;;  %v9144_v49 = vpop.f32.mrb[44].mxu1 }
 0x27c   : > { %v11301_v42 = vpop.eup %11300  ;;  %v12324_v15 = vmul.f32 %v11287_v1, %v3105_v9  ;;  %v3092_v43 = vadd.f32 1.0, %v11299_v45  ;;  %v2973_v36 = vpop.f32.mrb[45].mxu1 }
 0x27d   : > { %v11303_v27 = vpop.eup %11302  ;;  %v3117_v7 = vmul.f32 0.5, %v3091_v59  ;;  %v3080_v39 = vadd.f32 1.0, %v11301_v42  ;;  %9204 = vmatprep.mubr.f32.mxu1 %v12322_v25 }
 0x27e   : > { %v11305_v47 = vpop.eup %11304  ;;  %v3118_v48 = vmul.f32 0.5, %v3092_v43  ;;  %v3081_v58 = vadd.f32 1.0, %v11303_v27 }
 0x27f   : > { %v11307_v22 = vpop.eup %11306  ;;  %v12327_v4 = vmul.f32 %v11293_v12, %v3117_v7  ;;  %v3106_v53 = vmul.f32 0.5, %v3080_v39  ;;  %v9147_v46 = vpop.f32.mrb[46].mxu1 }
 0x280   : > { %v11309_v8 = vpop.eup %11308  ;;  %v12329_v32 = vmul.f32 %v11295_v13, %v3118_v48  ;;  %v3107_v9 = vmul.f32 0.5, %v3081_v58  ;;  %v3093_v1 = vadd.f32 1.0, %v11307_v22  ;;  %v2989_v45 = vadd.f32 %v9147_v46, %v12150_v24  ;;  %v2983_v29 = vpop.f32.mrb[47].mxu1 }
 0x281   : > { %v11311_v59 = vpop.eup %11310  ;;  %v12332_v42 = vmul.f32 %v11305_v47, %v3106_v53  ;;  %v3094_v26 = vadd.f32 1.0, %v11309_v8  ;;  %v2984_v43 = vadd.f32 %v2983_v29, %v12148_v21  ;;  %9205 = vmatmul.mubr.f32.gmra.mrb[64].mxu1 %v12327_v4  ;;  %v12338_v39 = vpack.c.bf16 %v12327_v4, %v12322_v25 }
 0x282   : > { %v12340_v12 = vmul.f32 %v11311_v59, %v3107_v9  ;;  %v3119_v13 = vmul.f32 0.5, %v3093_v1  ;;  %v3043_v27 = vmul.f32 0.5, %v2989_v45  ;;  %9207 = vmatprep.mubr.f32.mxu1 %v12324_v15  ;;  %v11313_v24 = vpop.eup %11312  ;;  %v2979_v29 = vadd.f32 %v9144_v49, %v12154_v56  ;;  %v1203_v45 = vld [vmem:[%s14876_s3] sm:$0xff]  ;;  %v1204_v59 = vld [vmem:[%s14876_s3 + $0x8] sm:$0xff] }
 0x283   : > { %14919 = vst [vmem:[#allocation67_spill] sm:$0xff] %v12338_v39  ;;  %v3120_v7 = vmul.f32 0.5, %v3094_v26  ;;  %v3030_v48 = vmul.f32 0.5, %v2984_v43  ;;  %10256 = vmatpush1.bf16.msra.mxu0 %v12338_v39  ;;  %v11315_v47 = vpop.eup %11314  ;;  %v2974_v22 = vadd.f32 %v2973_v36, %v12152_v33  ;;  %v12354_v26 = vpack.c.bf16 %v12329_v32, %v12324_v15 }
 0x284   : > { %v12344_v58 = vmul.f32 %v11313_v24, %v3119_v13  ;;  %11316 = vtanh.f32 %v3043_v27  ;;  %10257 = vmatprep.subr.bf16.mxu0 %v14916_v38  ;;  %v12380_v24 = vpack.c.bf16 %v1204_v59, %v1203_v45  ;;  %v2276_v45 = vld [vmem:[%s11502_s19 + $0x20] sm:$0xff]  ;;  %v2279_v59 = vld [vmem:[%s11502_s19 + $0x38] sm:$0xff] }
 0x285   : > { %v12348_v21 = vmul.f32 %v11315_v47, %v3120_v7  ;;  %11318 = vtanh.f32 %v3030_v48  ;;  %9208 = vmatmul.mubr.f32.gmra.mrb[66].mxu1 %v12329_v32  ;;  %14920 = vst [vmem:[#allocation68_spill] sm:$0xff] %v12354_v26  ;;  %v1205_v7 = vld [vmem:[%s14876_s3 + $0x10] sm:$0xff]  ;;  %v1206_v48 = vld [vmem:[%s14876_s3 + $0x18] sm:$0xff]  ;;  %v2272_v47 = vld [vmem:[%s11502_s19] sm:$0xff] }
 0x286   : > { %9210 = vmatprep.mubr.f32.mxu1 %v12332_v42  ;;  %11320 = vtanh.f32 %v2979_v29  ;;  %v12362_v36 = vpack.c.bf16 %v12344_v58, %v12332_v42  ;;  %14923 = vst [vmem:[#allocation71_spill] sm:$0xff] %v12380_v24  ;;  %v2275_v29 = vld [vmem:[%s11502_s19 + $0x18] sm:$0xff] }
 0x287   : > { %10259 = vmatpush1.bf16.msra.mxu0 %v12354_v26  ;;  %11322 = vtanh.f32 %v2974_v22  ;;  %v12370_v49 = vpack.c.bf16 %v12348_v21, %v12340_v12  ;;  %v12394_v22 = vpack.c.bf16 %v1206_v48, %v1205_v7  ;;  %v1211_v7 = vld [vmem:[%s14876_s3 + $0x40] sm:$0xff]  ;;  %v1212_v48 = vld [vmem:[%s14876_s3 + $0x48] sm:$0xff] }
 0x288   : > { %10260 = vmatprep.subr.bf16.mxu0 %v14916_v38  ;;  %14921 = vst [vmem:[#allocation69_spill] sm:$0xff] %v12362_v36 }
 0x289   : > { %9211 = vmatmul.mubr.f32.gmra.mrb[68].mxu1 %v12344_v58  ;;  %14922 = vst [vmem:[#allocation70_spill] sm:$0xff] %v12370_v49  ;;  %14925 = vst [vmem:[#allocation73_spill] sm:$0xff] %v12394_v22 }
 0x28a   : > { %9213 = vmatprep.mubr.f32.mxu1 %v12340_v12 }
 0x28b   : > { %10262 = vmatpush1.bf16.msra.mxu0 %v12362_v36 }
 0x28c   : > { %10263 = vmatprep.subr.bf16.mxu0 %v14916_v38 }
 0x28d   : > { %9214 = vmatmul.mubr.f32.gmra.mrb[70].mxu1 %v12348_v21 }
 0x28e   : > { %v11317_v33 = vpop.eup %11316 }
 0x28f   : > { %v11319_v56 = vpop.eup %11318  ;;  %v3095_v53 = vadd.f32 1.0, %v11317_v33  ;;  %10265 = vmatpush1.bf16.msra.mxu0 %v12370_v49  ;;  %v1207_v33 = vld [vmem:[%s14876_s3 + $0x20] sm:$0xff]  ;;  %v12649_v49 = vmul.f32 0.05, %v12340_v12 }
 0x290   : > { %v3082_v46 = vadd.f32 1.0, %v11319_v56  ;;  %10266 = vmatprep.subr.bf16.mxu0 %v14916_v38  ;;  %v11321_v9 = vpop.eup %11320  ;;  %v1208_v56 = vld [vmem:[%s14876_s3 + $0x28] sm:$0xff] }
 0x291   : > { %v3121_v8 = vmul.f32 0.5, %v3095_v53  ;;  %v11323_v43 = vpop.eup %11322  ;;  %v2274_v53 = vld [vmem:[%s11502_s19 + $0x10] sm:$0xff] }
 0x292   : > { %v3108_v1 = vmul.f32 0.5, %v3082_v46  ;;  %v2277_v46 = vld [vmem:[%s11502_s19 + $0x28] sm:$0xff] }
 0x293   : > { %v12376_v13 = vmul.f32 %v11321_v9, %v3121_v8  ;;  %v12403_v8 = vpack.c.bf16 %v1208_v56, %v1207_v33  ;;  %v1209_v9 = vld [vmem:[%s14876_s3 + $0x30] sm:$0xff]  ;;  %v1214_v56 = vld [vmem:[%s14876_s3 + $0x58] sm:$0xff] }
 0x294   : > { %v12378_v27 = vmul.f32 %v11323_v43, %v3108_v1  ;;  %v1210_v1 = vld [vmem:[%s14876_s3 + $0x38] sm:$0xff]  ;;  %v1213_v33 = vld [vmem:[%s14876_s3 + $0x50] sm:$0xff] }
 0x295   : > { %14926 = vst [vmem:[#allocation74_spill] sm:$0xff] %v12403_v8  ;;  %v12412_v43 = vpack.c.bf16 %v1210_v1, %v1209_v9  ;;  %v1216_v9 = vld [vmem:[%s14876_s3 + $0x68] sm:$0xff] }
 0x296   : > { %9216 = vmatprep.mubr.f32.mxu1 %v12378_v27  ;;  %v12385_v38 = vpack.c.bf16 %v12376_v13, %v12378_v27 }
 0x297   : > { %9217 = vmatmul.mubr.f32.gmra.mrb[72].mxu1 %v12376_v13  ;;  %14927 = vst [vmem:[#allocation75_spill] sm:$0xff] %v12412_v43 }
 0x298   : > { %14924 = vst [vmem:[#allocation72_spill] sm:$0xff] %v12385_v38  ;;  %10268 = vmatpush1.bf16.msra.mxu0 %v12385_v38 }
 0x299   : > { %10302 = vmatprep.subr.bf16.mxu0 %v12380_v24 }
 0x29b   : > { %3226 = vmatmul.mubr.f32.vlgmr.msra.gmra.mrb[46].mxu0 %v2272_v47  ;;  %v2278_v47 = vld [vmem:[%s11502_s19 + $0x30] sm:$0xff] }
 0x29c   : > { %10304 = vmatpush3.bf16.msra.mxu0 %v12380_v24  ;;  %8488 = vmatprep.mubr.msk.f32.mxu0 %vm3148_vm5, %v2275_v29  ;;  %v12420_v29 = vpack.c.bf16 %v1212_v48, %v1211_v7 }
 0x29d   : > { %10306 = vmatprep.subr.bf16.mxu0 %v12394_v22 }
 0x29e   : > { %14928 = vst [vmem:[#allocation76_spill] sm:$0xff] %v12420_v29 }
 0x29f   : > { %3231 = vmatmul.mubr.f32.gmra.mrb[48].mxu0 %v2274_v53  ;;  %v12427_v53 = vpack.c.bf16 %v1214_v56, %v1213_v33 }
 0x2a0   : > { %10308 = vmatpush3.bf16.msra.mxu0 %v12394_v22  ;;  %8489 = vmatprep.mubr.msk.f32.mxu0 %vm3148_vm5, %v2277_v46  ;;  %v1215_v46 = vld [vmem:[%s14876_s3 + $0x60] sm:$0xff] }
 0x2a1   : > { %10310 = vmatprep.subr.bf16.mxu0 %v12403_v8  ;;  %14929 = vst [vmem:[#allocation77_spill] sm:$0xff] %v12427_v53  ;;  %v12433_v1 = vpack.c.bf16 %v1216_v9, %v1215_v46  ;;  %v12490_v46 = vmul.f32 0.05, %v12172_v3 }
 0x2a3   : > { %3236 = vmatmul.mubr.f32.gmra.mrb[50].mxu0 %v2276_v45  ;;  %14930 = vst [vmem:[#allocation78_spill] sm:$0xff] %v12433_v1  ;;  %v1217_v45 = vld [vmem:[%s14876_s3 + $0x70] sm:$0xff] }
 0x2a4   : > { %10312 = vmatpush3.bf16.msra.mxu0 %v12403_v8  ;;  %8490 = vmatprep.mubr.msk.f32.mxu0 %vm3148_vm5, %v2279_v59  ;;  %v1218_v59 = vld [vmem:[%s14876_s3 + $0x78] sm:$0xff]  ;;  %vm8069_vm5 = vcmask 261120  }
 0x2a5   : > { %10314 = vmatprep.subr.bf16.mxu0 %v12412_v43  ;;  %v12439_v7 = vpack.c.bf16 %v1218_v59, %v1217_v45 }
 0x2a7   : > { %3241 = vmatmul.mubr.f32.gmra.mrb[52].mxu0 %v2278_v47  ;;  %14931 = vst [vmem:[#allocation79_spill] sm:$0xff] %v12439_v7  ;;  %v12487_v47 = vmul.f32 0.05, %v12177_v55 }
 0x2a8   : > { %10316 = vmatpush3.bf16.msra.mxu0 %v12412_v43  ;;  %9251 = vmatprep.mubr.f32.mxu0 %v12172_v3 }
 0x2a9   : > { %10318 = vmatprep.subr.bf16.mxu0 %v12420_v29 }
 0x2ac   : > { %10320 = vmatpush3.bf16.msra.mxu0 %v12420_v29 }
 0x2ad   : > { %10322 = vmatprep.subr.bf16.mxu0 %v12427_v53 }
 0x2b0   : > { %10324 = vmatpush3.bf16.msra.mxu0 %v12427_v53 }
 0x2b1   : > { %10326 = vmatprep.subr.bf16.mxu0 %v12433_v1 }
 0x2b4   : > { %10328 = vmatpush3.bf16.msra.mxu0 %v12433_v1 }
 0x2b5   : > { %10330 = vmatprep.subr.bf16.mxu0 %v12439_v7 }
 0x2b8   : > { %10332 = vmatpush3.bf16.msra.mxu0 %v12439_v7 }
 0x2b9   : > { %10366 = vmatprep.subr.bf16.mxu0 %v12380_v24 }
 0x2bb   : > { %9252 = vmatmul.mubr.f32.vlgmr.msra.gmra.mrb[54].mxu0 %v12177_v55  ;;  %v12498_v55 = vmul.f32 0.05, %v12174_v16 }
 0x2bc   : > { %9254 = vmatprep.mubr.f32.mxu0 %v12174_v16  ;;  %10368 = vmatpush3.bf16.msra.mxu0 %v12380_v24 }
 0x2bd   : > { %10370 = vmatprep.subr.bf16.mxu0 %v12394_v22 }
 0x2bf   : > { %9255 = vmatmul.mubr.f32.gmra.mrb[56].mxu0 %v12179_v18 }
 0x2c0   : > { %9257 = vmatprep.mubr.f32.mxu0 %v12181_v5  ;;  %10372 = vmatpush3.bf16.msra.mxu0 %v12394_v22 }
 0x2c1   : > { %10374 = vmatprep.subr.bf16.mxu0 %v12403_v8 }
 0x2c3   : > { %9258 = vmatmul.mubr.f32.gmra.mrb[58].mxu0 %v12197_v52 }
 0x2c4   : > { %9260 = vmatprep.mubr.f32.mxu0 %v12186_v0  ;;  %10376 = vmatpush3.bf16.msra.mxu0 %v12403_v8  ;;  %v12507_v8 = vmul.f32 0.05, %v12181_v5 }
 0x2c5   : > { %10378 = vmatprep.subr.bf16.mxu0 %v12412_v43 }
 0x2c7   : > { %9261 = vmatmul.mubr.f32.gmra.mrb[60].mxu0 %v12200_v41 }
 0x2c8   : > { %9263 = vmatprep.mubr.f32.mxu0 %v12250_v61  ;;  %10380 = vmatpush3.bf16.msra.mxu0 %v12412_v43 }
 0x2c9   : > { %10382 = vmatprep.subr.bf16.mxu0 %v12420_v29 }
 0x2cb   : > { %9264 = vmatmul.mubr.f32.gmra.mrb[62].mxu0 %v12257_v40 }
 0x2cc   : > { %9266 = vmatprep.mubr.f32.mxu0 %v12253_v54  ;;  %10384 = vmatpush3.bf16.msra.mxu0 %v12420_v29 }
 0x2cd   : > { %10386 = vmatprep.subr.bf16.mxu0 %v12427_v53 }
 0x2cf   : > { %9267 = vmatmul.mubr.f32.gmra.mrb[64].mxu0 %v12260_v28 }
 0x2d0   : > { %9269 = vmatprep.mubr.f32.mxu0 %v12262_v19  ;;  %10388 = vmatpush3.bf16.msra.mxu0 %v12427_v53 }
 0x2d1   : > { %10390 = vmatprep.subr.bf16.mxu0 %v12433_v1 }
 0x2d3   : > { %9270 = vmatmul.mubr.f32.gmra.mrb[66].mxu0 %v12278_v6 }
 0x2d4   : > { %9272 = vmatprep.mubr.f32.mxu0 %v12267_v57  ;;  %10392 = vmatpush3.bf16.msra.mxu0 %v12433_v1  ;;  %v12495_v1 = vmul.f32 0.05, %v12179_v18 }
 0x2d5   : > { %10394 = vmatprep.subr.bf16.mxu0 %v12439_v7 }
 0x2d7   : > { %9273 = vmatmul.mubr.f32.gmra.mrb[68].mxu0 %v12281_v63 }
 0x2d8   : > { %9275 = vmatprep.mubr.f32.mxu0 %v12322_v25  ;;  %10396 = vmatpush3.bf16.msra.mxu0 %v12439_v7 }
 0x2d9   : > { %10446 = vmatprep.subr.bf16.mxu0 %v12292_v10 }
 0x2db   : > { %9276 = vmatmul.mubr.f32.gmra.mrb[70].mxu0 %v12327_v4 }
 0x2dc   : > { %9278 = vmatprep.mubr.f32.mxu0 %v12324_v15 }
 0x2df   : > { %9279 = vmatmul.mubr.f32.gmra.mrb[72].mxu0 %v12329_v32 }
 0x2e0   : > { %9281 = vmatprep.mubr.f32.mxu0 %v12332_v42 }
 0x2e3   : > { %9282 = vmatmul.mubr.f32.gmra.mrb[74].mxu0 %v12344_v58 }
 0x2e4   : > { %9284 = vmatprep.mubr.f32.mxu0 %v12340_v12 }
 0x2e7   : > { %9285 = vmatmul.mubr.f32.gmra.mrb[76].mxu0 %v12348_v21 }
 0x2e8   : > { %9287 = vmatprep.mubr.f32.mxu0 %v12378_v27 }
 0x2eb   : > { %9288 = vmatmul.mubr.f32.gmra.mrb[78].mxu0 %v12376_v13 }
 0x31c   : > { %v9182_v48 = vpop.f32.mrb[48].mxu1 }
 0x31d   : > { %v3496_v33 = vmul.f32 0.95, %v9182_v48  ;;  %v3366_v56 = vpop.f32.mrb[49].mxu1 }
 0x31e   : > { %v3495_v9 = vmul.f32 0.95, %v3366_v56 }
 0x31f   : > { %v3522_v45 = vadd.f32 %v3496_v33, %v12487_v47 }
 0x320   : > { %v3521_v59 = vadd.f32 %v3495_v9, %v12490_v46  ;;  %v9185_v7 = vpop.f32.mrb[50].mxu1  ;;  %v12504_v9 = vmul.f32 0.05, %v12197_v52  ;;  %v12516_v52 = vmul.f32 0.05, %v12200_v41 }
 0x321   : > { %v3498_v53 = vmul.f32 0.95, %v9185_v7  ;;  %v3376_v29 = vpop.f32.mrb[51].mxu1 }
 0x322   : > { %v10403_v43 = vpack.c.bf16 %v3522_v45, %v3521_v59  ;;  %v3497_v48 = vmul.f32 0.95, %v3376_v29  ;;  %9322 = vmatprep.mubr.f32.mxu1 %v3521_v59 }
 0x323   : > { %v3524_v3 = vadd.f32 %v3498_v53, %v12495_v1  ;;  %9323 = vmatmul.mubr.f32.vlgmr.msra.gmra.mrb[74].mxu1 %v3522_v45 }
 0x324   : > { %v3523_v56 = vadd.f32 %v3497_v48, %v12498_v55  ;;  %10400 = vmatpush1.bf16.msra.mxu1 %v12194_v30  ;;  %v9188_v33 = vpop.f32.mrb[52].mxu1 }
 0x325   : > { %v3500_v18 = vmul.f32 0.95, %v9188_v33  ;;  %v3386_v7 = vpop.f32.mrb[53].mxu1 }
 0x326   : > { %v3499_v16 = vmul.f32 0.95, %v3386_v7  ;;  %9325 = vmatprep.mubr.f32.mxu1 %v3523_v56  ;;  %v10401_v29 = vpack.c.bf16 %v3524_v3, %v3523_v56  ;;  %v12521_v56 = vmul.f32 0.05, %v12186_v0  ;;  %v12536_v7 = vmul.f32 0.05, %v12257_v40 }
 0x327   : > { %v12510_v59 = vadd.f32 %v3500_v18, %v12504_v9  ;;  %9326 = vmatmul.mubr.f32.gmra.mrb[76].mxu1 %v3524_v3 }
 0x328   : > { %v12513_v53 = vadd.f32 %v3499_v16, %v12507_v8  ;;  %v9191_v45 = vpop.f32.mrb[54].mxu1  ;;  %10402 = vmatprep.subr.bf16.mxu1 %v10401_v29 }
 0x329   : > { %v3502_v48 = vmul.f32 0.95, %v9191_v45  ;;  %v3396_v33 = vpop.f32.mrb[55].mxu1  ;;  %10404 = vmatpush1.bf16.msra.mxu1 %v10403_v43  ;;  %v12539_v45 = vmul.f32 0.05, %v12250_v61 }
 0x32a   : > { %v3501_v18 = vmul.f32 0.95, %v3396_v33  ;;  %9328 = vmatprep.mubr.f32.mxu1 %v12513_v53  ;;  %v12548_v43 = vmul.f32 0.05, %v12260_v28 }
 0x32b   : > { %v12525_v3 = vadd.f32 %v3502_v48, %v12516_v52  ;;  %9329 = vmatmul.mubr.f32.gmra.mrb[78].mxu1 %v12510_v59 }
 0x32c   : > { %v12529_v41 = vadd.f32 %v3501_v18, %v12521_v56 }
 0x32e   : > { %9331 = vmatprep.mubr.f32.mxu1 %v12529_v41 }
 0x32f   : > { %9332 = vmatmul.mubr.f32.gmra.mrb[80].mxu1 %v12525_v3 }
 0x338   : > { %v9194_v0 = vpop.f32.mrb[56].mxu1 }
 0x339   : > { %v3504_v16 = vmul.f32 0.95, %v9194_v0  ;;  %v3406_v29 = vpop.f32.mrb[57].mxu1  ;;  %v12553_v0 = vmul.f32 0.05, %v12253_v54 }
 0x33a   : > { %v3503_v48 = vmul.f32 0.95, %v3406_v29  ;;  %v12567_v54 = vmul.f32 0.05, %v12262_v19 }
 0x33b   : > { %v12542_v33 = vadd.f32 %v3504_v16, %v12536_v7 }
 0x33c   : > { %v12545_v18 = vadd.f32 %v3503_v48, %v12539_v45  ;;  %v9197_v5 = vpop.f32.mrb[58].mxu1 }
 0x33d   : > { %v3506_v22 = vmul.f32 0.95, %v9197_v5  ;;  %v3416_v24 = vpop.f32.mrb[59].mxu1  ;;  %v12564_v5 = vmul.f32 0.05, %v12278_v6 }
 0x33e   : > { %v3505_v61 = vmul.f32 0.95, %v3416_v24  ;;  %9334 = vmatprep.mubr.f32.mxu1 %v12545_v18 }
 0x33f   : > { %v12557_v16 = vadd.f32 %v3506_v22, %v12548_v43  ;;  %9335 = vmatmul.mubr.f32.gmra.mrb[82].mxu1 %v12542_v33 }
 0x340   : > { %v12561_v29 = vadd.f32 %v3505_v61, %v12553_v0  ;;  %v9200_v28 = vpop.f32.mrb[60].mxu1 }
 0x341   : > { %v3508_v48 = vmul.f32 0.95, %v9200_v28  ;;  %v3426_v40 = vpop.f32.mrb[61].mxu1  ;;  %v12580_v28 = vmul.f32 0.05, %v12281_v63 }
 0x342   : > { %v3507_v24 = vmul.f32 0.95, %v3426_v40  ;;  %9337 = vmatprep.mubr.f32.mxu1 %v12561_v29  ;;  %v12612_v63 = vmul.f32 0.05, %v12329_v32 }
 0x343   : > { %v12573_v23 = vadd.f32 %v3508_v48, %v12564_v5  ;;  %9338 = vmatmul.mubr.f32.gmra.mrb[84].mxu1 %v12557_v16 }
 0x344   : > { %v12577_v61 = vadd.f32 %v3507_v24, %v12567_v54  ;;  %v9203_v6 = vpop.f32.mrb[62].mxu1 }
 0x345   : > { %14932 = vst [vmem:[#allocation80_spill] sm:$0xff] %v12573_v23  ;;  %v3510_v19 = vmul.f32 0.95, %v9203_v6  ;;  %v3436_v20 = vpop.f32.mrb[63].mxu1 }
 0x346   : > { %14933 = vst [vmem:[#allocation81_spill] sm:$0xff] %v12577_v61  ;;  %v3509_v22 = vmul.f32 0.95, %v3436_v20  ;;  %9340 = vmatprep.mubr.f32.mxu1 %v12577_v61  ;;  %v12600_v20 = vmul.f32 0.05, %v12327_v4 }
 0x347   : > { %v12589_v48 = vadd.f32 %v3510_v19, %v12580_v28  ;;  %9341 = vmatmul.mubr.f32.gmra.mrb[86].mxu1 %v12573_v23  ;;  %v12603_v19 = vmul.f32 0.05, %v12322_v25 }
 0x348   : > { %v12593_v24 = vadd.f32 %v3509_v22, %v12585_v17 }
 0x349   : > { %14934 = vst [vmem:[#allocation82_spill] sm:$0xff] %v12589_v48 }
 0x34a   : > { %14935 = vst [vmem:[#allocation83_spill] sm:$0xff] %v12593_v24  ;;  %9343 = vmatprep.mubr.f32.mxu1 %v12593_v24 }
 0x34b   : > { %9344 = vmatmul.mubr.f32.gmra.mrb[88].mxu1 %v12589_v48 }
 0x354   : > { %v9206_v57 = vpop.f32.mrb[64].mxu1 }
 0x355   : > { %v3512_v6 = vmul.f32 0.95, %v9206_v57  ;;  %v3446_v40 = vpop.f32.mrb[65].mxu1  ;;  %v12617_v57 = vmul.f32 0.05, %v12324_v15 }
 0x356   : > { %v3511_v14 = vmul.f32 0.95, %v3446_v40  ;;  %v12631_v15 = vmul.f32 0.05, %v12332_v42 }
 0x357   : > { %v12606_v22 = vadd.f32 %v3512_v6, %v12600_v20 }
 0x358   : > { %v12609_v11 = vadd.f32 %v3511_v14, %v12603_v19  ;;  %v9209_v60 = vpop.f32.mrb[66].mxu1 }
 0x359   : > { %14936 = vst [vmem:[#allocation84_spill] sm:$0xff] %v12606_v22  ;;  %v3514_v51 = vmul.f32 0.95, %v9209_v60  ;;  %v3456_v44 = vpop.f32.mrb[67].mxu1  ;;  %v12628_v60 = vmul.f32 0.05, %v12344_v58 }
 0x35a   : > { %14937 = vst [vmem:[#allocation85_spill] sm:$0xff] %v12609_v11  ;;  %v3513_v25 = vmul.f32 0.95, %v3456_v44  ;;  %9346 = vmatprep.mubr.f32.mxu1 %v12609_v11 }
 0x35b   : > { %v12621_v40 = vadd.f32 %v3514_v51, %v12612_v63  ;;  %9347 = vmatmul.mubr.f32.gmra.mrb[90].mxu1 %v12606_v22 }
 0x35c   : > { %v12625_v14 = vadd.f32 %v3513_v25, %v12617_v57  ;;  %v9212_v32 = vpop.f32.mrb[68].mxu1 }
 0x35d   : > { %14938 = vst [vmem:[#allocation86_spill] sm:$0xff] %v12621_v40  ;;  %v3516_v6 = vmul.f32 0.95, %v9212_v32  ;;  %v3466_v4 = vpop.f32.mrb[69].mxu1  ;;  %v12644_v32 = vmul.f32 0.05, %v12348_v21 }
 0x35e   : > { %14939 = vst [vmem:[#allocation87_spill] sm:$0xff] %v12625_v14  ;;  %v3515_v44 = vmul.f32 0.95, %v3466_v4  ;;  %9349 = vmatprep.mubr.f32.mxu1 %v12625_v14 }
 0x35f   : > { %v12637_v37 = vadd.f32 %v3516_v6, %v12628_v60  ;;  %9350 = vmatmul.mubr.f32.gmra.mrb[92].mxu1 %v12621_v40 }
 0x360   : > { %v12641_v25 = vadd.f32 %v3515_v44, %v12631_v15  ;;  %v9215_v58 = vpop.f32.mrb[70].mxu1 }
 0x361   : > { %14940 = vst [vmem:[#allocation88_spill] sm:$0xff] %v12637_v37  ;;  %v3518_v42 = vmul.f32 0.95, %v9215_v58  ;;  %v3476_v36 = vpop.f32.mrb[71].mxu1 }
 0x362   : > { %14941 = vst [vmem:[#allocation89_spill] sm:$0xff] %v12641_v25  ;;  %v3517_v51 = vmul.f32 0.95, %v3476_v36  ;;  %9352 = vmatprep.mubr.f32.mxu1 %v12641_v25  ;;  %v12664_v36 = vmul.f32 0.05, %v12376_v13  ;;  %v14947_v13 = vmov 0.0  }
 0x363   : > { %v12653_v6 = vadd.f32 %v3518_v42, %v12644_v32  ;;  %9353 = vmatmul.mubr.f32.gmra.mrb[94].mxu1 %v12637_v37  ;;  %v12667_v42 = vmul.f32 0.05, %v12378_v27 }
 0x364   : > { %v12657_v44 = vadd.f32 %v3517_v51, %v12649_v49 }
 0x365   : > { %14942 = vst [vmem:[#allocation90_spill] sm:$0xff] %v12653_v6 }
 0x366   : > { %14943 = vst [vmem:[#allocation91_spill] sm:$0xff] %v12657_v44  ;;  %9355 = vmatprep.mubr.f32.mxu1 %v12657_v44 }
 0x367   : > { %9356 = vmatmul.mubr.f32.gmra.mrb[96].mxu1 %v12653_v6 }
 0x36a   : > { %v9218_v12 = vpop.f32.mrb[72].mxu1 }
 0x36b   : > { %v3520_v58 = vmul.f32 0.95, %v9218_v12  ;;  %v3486_v4 = vpop.f32.mrb[73].mxu1 }
 0x36c   : > { %v3519_v25 = vmul.f32 0.95, %v3486_v4 }
 0x36d   : > { %v3546_v51 = vadd.f32 %v3520_v58, %v12664_v36 }
 0x36e   : > { %v3545_v37 = vadd.f32 %v3519_v25, %v12667_v42  ;;  %v12671_v38 = vpop.f32.mrb[46].mxu0 }
 0x36f   : > { %14944 = vst [vmem:[#allocation92_spill] sm:$0xff] %v12671_v38  ;;  %v3229_v61 = vpop.f32.mrb[47].mxu0 }
 0x370   : > { %9358 = vmatprep.mubr.f32.mxu1 %v3545_v37  ;;  %v12673_v21 = vpack.c.bf16 %v3546_v51, %v3545_v37 }
 0x371   : > { %9359 = vmatmul.mubr.f32.gmra.mrb[98].mxu1 %v3546_v51 }
 0x372   : > { %14945 = vst [vmem:[#allocation93_spill] sm:$0xff] %v12673_v21  ;;  %v12675_v44 = vpop.f32.mrb[48].mxu0  ;;  %4369 = vmatprep.mubr.f32.mxu1 %v14947_v13 }
 0x373   : > { %14946 = vst [vmem:[#allocation94_spill] sm:$0xff] %v12675_v44  ;;  %v3234_v12 = vpop.f32.mrb[49].mxu0 }
 0x376   : > { %v12678_v6 = vpop.f32.mrb[50].mxu0 }
 0x377   : > { %14948 = vst [vmem:[#allocation95_spill] sm:$0xff] %v12678_v6  ;;  %v3239_v27 = vpop.f32.mrb[51].mxu0 }
 0x37a   : > { %v12680_v4 = vpop.f32.mrb[52].mxu0 }
 0x37b   : > { %14949 = vst [vmem:[#allocation96_spill] sm:$0xff] %v12680_v4  ;;  %v3244_v58 = vpop.f32.mrb[53].mxu0 }
 0x38e   : > { %v9253_v23 = vpop.f32.mrb[54].mxu0 }
 0x38f   : > { %v3743_v25 = vmul.f32 0.95, %v9253_v23  ;;  %v3613_v24 = vpop.f32.mrb[55].mxu0 }
 0x390   : > { %v3742_v38 = vmul.f32 0.95, %v3613_v24 }
 0x391   : > { %v12683_v61 = vadd.f32 %v3743_v25, %v12487_v47  ;;  %v14950_v25 = vpack.c.bf16 %v12557_v16, %v12561_v29 }
 0x392   : > { %v12686_v37 = vadd.f32 %v3742_v38, %v12490_v46  ;;  %v9256_v51 = vpop.f32.mrb[56].mxu0 }
 0x393   : > { %v3745_v44 = vmul.f32 0.95, %v9256_v51  ;;  %v3623_v21 = vpop.f32.mrb[57].mxu0 }
 0x394   : > { %v3744_v27 = vmul.f32 0.95, %v3623_v21  ;;  %9393 = vmatprep.mubr.f32.mxu0 %v12686_v37 }
 0x395   : > { %v12692_v58 = vadd.f32 %v3745_v44, %v12495_v1  ;;  %9394 = vmatmul.mubr.f32.vlgmr.msra.gmra.mrb[80].mxu0 %v12683_v61 }
 0x396   : > { %v12696_v23 = vadd.f32 %v3744_v27, %v12498_v55  ;;  %10448 = vmatpush1.bf16.msra.mxu0 %v12276_v2  ;;  %v9259_v38 = vpop.f32.mrb[58].mxu0 }
 0x397   : > { %v3747_v24 = vmul.f32 0.95, %v9259_v38  ;;  %10450 = vmatprep.subr.bf16.mxu0 %v14950_v25  ;;  %v3633_v51 = vpop.f32.mrb[59].mxu0  ;;  %v14953_v38 = vpack.c.bf16 %v12542_v33, %v12545_v18 }
 0x398   : > { %v3746_v21 = vmul.f32 0.95, %v3633_v51  ;;  %9396 = vmatprep.mubr.f32.mxu0 %v12696_v23 }
 0x399   : > { %v12706_v12 = vadd.f32 %v3747_v24, %v12504_v9  ;;  %9397 = vmatmul.mubr.f32.gmra.mrb[82].mxu0 %v12692_v58 }
 0x39a   : > { %v12710_v27 = vadd.f32 %v3746_v21, %v12507_v8  ;;  %10452 = vmatpush1.bf16.msra.mxu0 %v14953_v38  ;;  %v9262_v16 = vpop.f32.mrb[60].mxu0 }
 0x39b   : > { %14951 = vst [vmem:[#allocation97_spill] sm:$0xff] %v12706_v12  ;;  %v3749_v29 = vmul.f32 0.95, %v9262_v16  ;;  %v3643_v25 = vpop.f32.mrb[61].mxu0 }
 0x39c   : > { %14952 = vst [vmem:[#allocation98_spill] sm:$0xff] %v12710_v27  ;;  %v3748_v4 = vmul.f32 0.95, %v3643_v25  ;;  %9399 = vmatprep.mubr.f32.mxu0 %v12710_v27 }
 0x39d   : > { %v12719_v24 = vadd.f32 %v3749_v29, %v12516_v52  ;;  %9400 = vmatmul.mubr.f32.gmra.mrb[84].mxu0 %v12706_v12 }
 0x39e   : > { %v12723_v21 = vadd.f32 %v3748_v4, %v12521_v56  ;;  %v9265_v44 = vpop.f32.mrb[62].mxu0 }
 0x39f   : > { %v3751_v33 = vmul.f32 0.95, %v9265_v44  ;;  %v3653_v18 = vpop.f32.mrb[63].mxu0 }
 0x3a0   : > { %v3750_v38 = vmul.f32 0.95, %v3653_v18  ;;  %9402 = vmatprep.mubr.f32.mxu0 %v12723_v21 }
 0x3a1   : > { %v12729_v25 = vadd.f32 %v3751_v33, %v12536_v7  ;;  %9403 = vmatmul.mubr.f32.gmra.mrb[86].mxu0 %v12719_v24 }
 0x3a2   : > { %v12733_v29 = vadd.f32 %v3750_v38, %v12539_v45  ;;  %v9268_v51 = vpop.f32.mrb[64].mxu0 }
 0x3a3   : > { %v3753_v4 = vmul.f32 0.95, %v9268_v51  ;;  %v3663_v6 = vpop.f32.mrb[65].mxu0 }
 0x3a4   : > { %v3752_v18 = vmul.f32 0.95, %v3663_v6  ;;  %9405 = vmatprep.mubr.f32.mxu0 %v12733_v29 }
 0x3a5   : > { %v12739_v48 = vadd.f32 %v3753_v4, %v12548_v43  ;;  %9406 = vmatmul.mubr.f32.gmra.mrb[88].mxu0 %v12729_v25 }
 0x3a6   : > { %v12743_v33 = vadd.f32 %v3752_v18, %v12553_v0  ;;  %v9271_v16 = vpop.f32.mrb[66].mxu0 }
 0x3a7   : > { %v3755_v38 = vmul.f32 0.95, %v9271_v16  ;;  %v3673_v31 = vpop.f32.mrb[67].mxu0 }
 0x3a8   : > { %v3754_v50 = vmul.f32 0.95, %v3673_v31  ;;  %9408 = vmatprep.mubr.f32.mxu0 %v12743_v33 }
 0x3a9   : > { %v12749_v6 = vadd.f32 %v3755_v38, %v12564_v5  ;;  %9409 = vmatmul.mubr.f32.gmra.mrb[90].mxu0 %v12739_v48 }
 0x3aa   : > { %v12753_v4 = vadd.f32 %v3754_v50, %v12567_v54  ;;  %v9274_v44 = vpop.f32.mrb[68].mxu0 }
 0x3ab   : > { %14954 = vst [vmem:[#allocation99_spill] sm:$0xff] %v12749_v6  ;;  %v3757_v18 = vmul.f32 0.95, %v9274_v44  ;;  %v3683_v11 = vpop.f32.mrb[69].mxu0 }
 0x3ac   : > { %14955 = vst [vmem:[#allocation100_spill] sm:$0xff] %v12753_v4  ;;  %v3756_v31 = vmul.f32 0.95, %v3683_v11  ;;  %9411 = vmatprep.mubr.f32.mxu0 %v12753_v4 }
 0x3ad   : > { %v12759_v22 = vadd.f32 %v3757_v18, %v12580_v28  ;;  %9412 = vmatmul.mubr.f32.gmra.mrb[92].mxu0 %v12749_v6 }
 0x3ae   : > { %v12763_v38 = vadd.f32 %v3756_v31, %v12585_v17  ;;  %v9277_v51 = vpop.f32.mrb[70].mxu0 }
 0x3af   : > { %14956 = vst [vmem:[#allocation101_spill] sm:$0xff] %v12759_v22  ;;  %v3759_v50 = vmul.f32 0.95, %v9277_v51  ;;  %v3693_v14 = vpop.f32.mrb[71].mxu0 }
 0x3b0   : > { %14957 = vst [vmem:[#allocation102_spill] sm:$0xff] %v12763_v38  ;;  %v3758_v40 = vmul.f32 0.95, %v3693_v14  ;;  %9414 = vmatprep.mubr.f32.mxu0 %v12763_v38 }
 0x3b1   : > { %v12769_v11 = vadd.f32 %v3759_v50, %v12600_v20  ;;  %9415 = vmatmul.mubr.f32.gmra.mrb[94].mxu0 %v12759_v22 }
 0x3b2   : > { %v12773_v18 = vadd.f32 %v3758_v40, %v12603_v19  ;;  %v9280_v16 = vpop.f32.mrb[72].mxu0 }
 0x3b3   : > { %14958 = vst [vmem:[#allocation103_spill] sm:$0xff] %v12769_v11  ;;  %v3761_v31 = vmul.f32 0.95, %v9280_v16  ;;  %v3703_v4 = vpop.f32.mrb[73].mxu0 }
 0x3b4   : > { %14959 = vst [vmem:[#allocation104_spill] sm:$0xff] %v12773_v18  ;;  %v3760_v14 = vmul.f32 0.95, %v3703_v4  ;;  %9417 = vmatprep.mubr.f32.mxu0 %v12773_v18 }
 0x3b5   : > { %v12779_v6 = vadd.f32 %v3761_v31, %v12612_v63  ;;  %9418 = vmatmul.mubr.f32.gmra.mrb[96].mxu0 %v12769_v11 }
 0x3b6   : > { %v12783_v50 = vadd.f32 %v3760_v14, %v12617_v57  ;;  %v9283_v44 = vpop.f32.mrb[74].mxu0 }
 0x3b7   : > { %14960 = vst [vmem:[#allocation105_spill] sm:$0xff] %v12779_v6  ;;  %v3763_v40 = vmul.f32 0.95, %v9283_v44  ;;  %v3713_v38 = vpop.f32.mrb[75].mxu0 }
 0x3b8   : > { %14961 = vst [vmem:[#allocation106_spill] sm:$0xff] %v12783_v50  ;;  %v3762_v22 = vmul.f32 0.95, %v3713_v38  ;;  %9420 = vmatprep.mubr.f32.mxu0 %v12783_v50 }
 0x3b9   : > { %v12789_v4 = vadd.f32 %v3763_v40, %v12628_v60  ;;  %9421 = vmatmul.mubr.f32.gmra.mrb[98].mxu0 %v12779_v6 }
 0x3ba   : > { %v12793_v31 = vadd.f32 %v3762_v22, %v12631_v15  ;;  %v9286_v51 = vpop.f32.mrb[76].mxu0 }
 0x3bb   : > { %14962 = vst [vmem:[#allocation107_spill] sm:$0xff] %v12789_v4  ;;  %v3765_v14 = vmul.f32 0.95, %v9286_v51  ;;  %v3723_v18 = vpop.f32.mrb[77].mxu0 }
 0x3bc   : > { %14963 = vst [vmem:[#allocation108_spill] sm:$0xff] %v12793_v31  ;;  %v3764_v38 = vmul.f32 0.95, %v3723_v18  ;;  %9423 = vmatprep.mubr.f32.mxu0 %v12793_v31 }
 0x3bd   : > { %v12799_v11 = vadd.f32 %v3765_v14, %v12644_v32  ;;  %9424 = vmatmul.mubr.f32.gmra.mrb[100].mxu0 %v12789_v4 }
 0x3be   : > { %v12803_v40 = vadd.f32 %v3764_v38, %v12649_v49  ;;  %v9289_v16 = vpop.f32.mrb[78].mxu0 }
 0x3bf   : > { %14964 = vst [vmem:[#allocation109_spill] sm:$0xff] %v12799_v11  ;;  %v3767_v22 = vmul.f32 0.95, %v9289_v16  ;;  %v3733_v50 = vpop.f32.mrb[79].mxu0 }
 0x3c0   : > { %14965 = vst [vmem:[#allocation110_spill] sm:$0xff] %v12803_v40  ;;  %v3766_v6 = vmul.f32 0.95, %v3733_v50  ;;  %9426 = vmatprep.mubr.f32.mxu0 %v12803_v40 }
 0x3c1   : > { %v3793_v18 = vadd.f32 %v3767_v22, %v12664_v36  ;;  %9427 = vmatmul.mubr.f32.gmra.mrb[102].mxu0 %v12799_v11 }
 0x3c2   : > { %v3792_v14 = vadd.f32 %v3766_v6, %v12667_v42 }
 0x3c4   : > { %9429 = vmatprep.mubr.f32.mxu0 %v3792_v14  ;;  %v12811_v44 = vpack.c.bf16 %v3793_v18, %v3792_v14 }
 0x3c5   : > { %9430 = vmatmul.mubr.f32.gmra.mrb[104].mxu0 %v3793_v18 }
 0x3c6   : > { %14966 = vst [vmem:[#allocation111_spill] sm:$0xff] %v12811_v44  ;;  %4523 = vmatprep.mubr.f32.mxu0 %v14947_v13 }
 0x3f6   : > { %v9324_v16 = vpop.f32.mrb[74].mxu1 }
 0x3f7   : > { %v3990_v38 = vmul.f32 0.95, %v9324_v16  ;;  %v3860_v50 = vpop.f32.mrb[75].mxu1 }
 0x3f8   : > { %v3989_v31 = vmul.f32 0.95, %v3860_v50 }
 0x3f9   : > { %v4016_v4 = vadd.f32 %v3990_v38, %v12487_v47 }
 0x3fa   : > { %v4015_v51 = vadd.f32 %v3989_v31, %v12490_v46  ;;  %v9327_v40 = vpop.f32.mrb[76].mxu1 }
 0x3fb   : > { %v3992_v22 = vmul.f32 0.95, %v9327_v40  ;;  %v3870_v39 = vpop.f32.mrb[77].mxu1 }
 0x3fc   : > { %v10407_v11 = vpack.c.bf16 %v4016_v4, %v4015_v51  ;;  %v3991_v27 = vmul.f32 0.95, %v3870_v39  ;;  %v14968_v51 = vpack.c.bf16 %v12683_v61, %v12686_v37 }
 0x3fd   : > { %v4018_v6 = vadd.f32 %v3992_v22, %v12495_v1 }
 0x3fe   : > { %v4017_v14 = vadd.f32 %v3991_v27, %v12498_v55  ;;  %v9330_v18 = vpop.f32.mrb[78].mxu1 }
 0x3ff   : > { %v3994_v44 = vmul.f32 0.95, %v9330_v18  ;;  %v3880_v12 = vpop.f32.mrb[79].mxu1 }
 0x400   : > { %v3993_v26 = vmul.f32 0.95, %v3880_v12  ;;  %v10405_v16 = vpack.c.bf16 %v4018_v6, %v4017_v14 }
 0x401   : > { %v12819_v50 = vadd.f32 %v3994_v44, %v12504_v9 }
 0x402   : > { %v12822_v38 = vadd.f32 %v3993_v26, %v12507_v8  ;;  %v9333_v31 = vpop.f32.mrb[80].mxu1  ;;  %10406 = vmatprep.subr.bf16.mxu1 %v10405_v16  ;;  %v14967_v26 = vpack.c.bf16 %v12692_v58, %v12696_v23 }
 0x403   : > { %v3996_v40 = vmul.f32 0.95, %v9333_v31  ;;  %v3890_v4 = vpop.f32.mrb[81].mxu1  ;;  %10408 = vmatpush1.bf16.msra.mxu1 %v10407_v11 }
 0x404   : > { %v3995_v27 = vmul.f32 0.95, %v3890_v4  ;;  %10410 = vmatprep.subr.bf16.mxu1 %v12212_v34 }
 0x405   : > { %v12828_v12 = vadd.f32 %v3996_v40, %v12516_v52 }
 0x406   : > { %v12831_v44 = vadd.f32 %v3995_v27, %v12521_v56 }
 0x407   : > { %10412 = vmatpush1.bf16.msra.mxu1 %v12194_v30 }
 0x408   : > { %10414 = vmatprep.subr.bf16.mxu1 %v14967_v26 }
 0x40b   : > { %10416 = vmatpush1.bf16.msra.mxu1 %v14968_v51 }
 0x412   : > { %v9336_v34 = vpop.f32.mrb[82].mxu1 }
 0x413   : > { %v3998_v22 = vmul.f32 0.95, %v9336_v34  ;;  %v3900_v6 = vpop.f32.mrb[83].mxu1 }
 0x414   : > { %v3997_v14 = vmul.f32 0.95, %v3900_v6 }
 0x415   : > { %v4024_v18 = vadd.f32 %v3998_v22, %v12536_v7 }
 0x416   : > { %v4023_v16 = vadd.f32 %v3997_v14, %v12539_v45  ;;  %v9339_v30 = vpop.f32.mrb[84].mxu1 }
 0x417   : > { %v4000_v31 = vmul.f32 0.95, %v9339_v30  ;;  %v3910_v40 = vpop.f32.mrb[85].mxu1 }
 0x418   : > { %v10455_v58 = vpack.c.bf16 %v4024_v18, %v4023_v16  ;;  %v3999_v23 = vmul.f32 0.95, %v3910_v40 }
 0x419   : > { %v4026_v4 = vadd.f32 %v4000_v31, %v12548_v43 }
 0x41a   : > { %v4025_v27 = vadd.f32 %v3999_v23, %v12553_v0  ;;  %v9342_v26 = vpop.f32.mrb[86].mxu1 }
 0x41b   : > { %v4002_v61 = vmul.f32 0.95, %v9342_v26  ;;  %v3920_v37 = vpop.f32.mrb[87].mxu1 }
 0x41c   : > { %v4001_v51 = vmul.f32 0.95, %v3920_v37  ;;  %v10453_v34 = vpack.c.bf16 %v4026_v4, %v4025_v27  ;;  %v14969_v4 = vpack.c.bf16 %v12739_v48, %v12743_v33  ;;  %v14970_v27 = vpack.c.bf16 %v12729_v25, %v12733_v29 }
 0x41d   : > { %v12847_v6 = vadd.f32 %v4002_v61, %v12564_v5 }
 0x41e   : > { %v12850_v22 = vadd.f32 %v4001_v51, %v12567_v54  ;;  %v9345_v14 = vpop.f32.mrb[88].mxu1  ;;  %10454 = vmatprep.subr.bf16.mxu0 %v10453_v34 }
 0x41f   : > { %v4004_v30 = vmul.f32 0.95, %v9345_v14  ;;  %v3930_v18 = vpop.f32.mrb[89].mxu1  ;;  %10456 = vmatpush1.bf16.msra.mxu0 %v10455_v58 }
 0x420   : > { %v4003_v31 = vmul.f32 0.95, %v3930_v18  ;;  %10458 = vmatprep.subr.bf16.mxu0 %v12292_v10 }
 0x421   : > { %v12856_v40 = vadd.f32 %v4004_v30, %v12580_v28 }
 0x422   : > { %v12859_v23 = vadd.f32 %v4003_v31, %v12585_v17 }
 0x423   : > { %10460 = vmatpush1.bf16.msra.mxu0 %v12276_v2 }
 0x424   : > { %10462 = vmatprep.subr.bf16.mxu0 %v14969_v4 }
 0x427   : > { %10464 = vmatpush1.bf16.msra.mxu0 %v14970_v27 }
 0x42e   : > { %v9348_v10 = vpop.f32.mrb[90].mxu1 }
 0x42f   : > { %v4006_v26 = vmul.f32 0.95, %v9348_v10  ;;  %v3940_v61 = vpop.f32.mrb[91].mxu1 }
 0x430   : > { %v4005_v37 = vmul.f32 0.95, %v3940_v61 }
 0x431   : > { %v12871_v51 = vadd.f32 %v4006_v26, %v12600_v20 }
 0x432   : > { %v12874_v2 = vadd.f32 %v4005_v37, %v12603_v19  ;;  %v9351_v34 = vpop.f32.mrb[92].mxu1 }
 0x433   : > { %v4008_v48 = vmul.f32 0.95, %v9351_v34  ;;  %v3950_v33 = vpop.f32.mrb[93].mxu1 }
 0x434   : > { %v4007_v30 = vmul.f32 0.95, %v3950_v33 }
 0x435   : > { %v12879_v25 = vadd.f32 %v4008_v48, %v12612_v63 }
 0x436   : > { %v12882_v29 = vadd.f32 %v4007_v30, %v12617_v57  ;;  %v9354_v18 = vpop.f32.mrb[94].mxu1 }
 0x437   : > { %v4010_v31 = vmul.f32 0.95, %v9354_v18  ;;  %v3960_v4 = vpop.f32.mrb[95].mxu1 }
 0x438   : > { %v4009_v27 = vmul.f32 0.95, %v3960_v4 }
 0x439   : > { %v12887_v26 = vadd.f32 %v4010_v31, %v12628_v60 }
 0x43a   : > { %v12890_v61 = vadd.f32 %v4009_v27, %v12631_v15  ;;  %v9357_v37 = vpop.f32.mrb[96].mxu1 }
 0x43b   : > { %14971 = vst [vmem:[#allocation112_spill] sm:$0xff] %v12887_v26  ;;  %v4012_v34 = vmul.f32 0.95, %v9357_v37  ;;  %v3970_v48 = vpop.f32.mrb[97].mxu1 }
 0x43c   : > { %14972 = vst [vmem:[#allocation113_spill] sm:$0xff] %v12890_v61  ;;  %v4011_v30 = vmul.f32 0.95, %v3970_v48 }
 0x43d   : > { %v12895_v18 = vadd.f32 %v4012_v34, %v12644_v32 }
 0x43e   : > { %v12898_v4 = vadd.f32 %v4011_v30, %v12649_v49 }
 0x43f   : > { %14973 = vst [vmem:[#allocation114_spill] sm:$0xff] %v12895_v18 }
 0x440   : > { %14974 = vst [vmem:[#allocation115_spill] sm:$0xff] %v12898_v4 }
 0x444   : > { %v9360_v16 = vpop.f32.mrb[98].mxu1 }
 0x445   : > { %v4014_v58 = vmul.f32 0.95, %v9360_v16  ;;  %v3980_v27 = vpop.f32.mrb[99].mxu1 }
 0x446   : > { %v4013_v14 = vmul.f32 0.95, %v3980_v27 }
 0x447   : > { %v4040_v37 = vadd.f32 %v4014_v58, %v12664_v36 }
 0x448   : > { %v4039_v10 = vadd.f32 %v4013_v14, %v12667_v42 }
 0x44a   : > { %v12904_v39 = vpack.c.bf16 %v4040_v37, %v4039_v10 }
 0x44c   : > { %14975 = vst [vmem:[#allocation116_spill] sm:$0xff] %v12904_v39 }
 0x468   : > { %v9395_v48 = vpop.f32.mrb[80].mxu0 }
 0x469   : > { %v4237_v33 = vmul.f32 0.95, %v9395_v48  ;;  %v4107_v34 = vpop.f32.mrb[81].mxu0 }
 0x46a   : > { %v4236_v11 = vmul.f32 0.95, %v4107_v34 }
 0x46b   : > { %v4263_v30 = vadd.f32 %v4237_v33, %v12487_v47 }
 0x46c   : > { %v4262_v61 = vadd.f32 %v4236_v11, %v12490_v46  ;;  %v9398_v26 = vpop.f32.mrb[82].mxu0 }
 0x46d   : > { %v4239_v31 = vmul.f32 0.95, %v9398_v26  ;;  %v4117_v4 = vpop.f32.mrb[83].mxu0 }
 0x46e   : > { %v10419_v16 = vpack.c.bf16 %v4263_v30, %v4262_v61  ;;  %v4238_v27 = vmul.f32 0.95, %v4117_v4  ;;  %v12929_v4 = vld [vmem:[%s11512_s30 + $0x8] sm:$0xff]  ;;  %v14976_v30 = vpack.c.bf16 %v12525_v3, %v12529_v41  ;;  %v14978_v41 = vpack.c.bf16 %v12828_v12, %v12831_v44 }
 0x46f   : > { %v4265_v58 = vadd.f32 %v4239_v31, %v12495_v1  ;;  %v12917_v1 = vld [vmem:[%s11512_s30] sm:$0xff] }
 0x470   : > { %v4264_v14 = vadd.f32 %v4238_v27, %v12498_v55  ;;  %v9401_v10 = vpop.f32.mrb[84].mxu0 }
 0x471   : > { %v4241_v37 = vmul.f32 0.95, %v9401_v10  ;;  %v4127_v18 = vpop.f32.mrb[85].mxu0  ;;  %v14977_v10 = vpack.c.bf16 %v12510_v59, %v12513_v53 }
 0x472   : > { %v4240_v48 = vmul.f32 0.95, %v4127_v18  ;;  %v10417_v39 = vpack.c.bf16 %v4265_v58, %v4264_v14 }
 0x473   : > { %v12911_v34 = vadd.f32 %v4241_v37, %v12504_v9 }
 0x474   : > { %v12914_v47 = vadd.f32 %v4240_v48, %v12507_v8  ;;  %v9404_v46 = vpop.f32.mrb[86].mxu0  ;;  %10418 = vmatprep.subr.bf16.mxu1 %v10417_v39 }
 0x475   : > { %v4243_v11 = vmul.f32 0.95, %v9404_v46  ;;  %v4137_v26 = vpop.f32.mrb[87].mxu0  ;;  %10420 = vmatpush1.bf16.msra.mxu1 %v10419_v16 }
 0x476   : > { %v10443_v55 = vpack.c.bf16 %v12911_v34, %v12914_v47  ;;  %v4242_v61 = vmul.f32 0.95, %v4137_v26  ;;  %10422 = vmatprep.subr.bf16.mxu1 %v12240_v35  ;;  %v14979_v26 = vpack.c.bf16 %v12819_v50, %v12822_v38 }
 0x477   : > { %v4269_v9 = vadd.f32 %v4243_v11, %v12516_v52 }
 0x478   : > { %v4268_v8 = vadd.f32 %v4242_v61, %v12521_v56  ;;  %v9407_v33 = vpop.f32.mrb[88].mxu0  ;;  %8491 = vmatmul.mubr.msk.f32.vlgmr.msra.gmra.mrb[100].mxu1 %vm4298_vm6, %v12917_v1 }
 0x479   : > { %v4245_v39 = vmul.f32 0.95, %v9407_v33  ;;  %v4147_v18 = vpop.f32.mrb[89].mxu0  ;;  %10424 = vmatpush1.bf16.msra.mxu1 %v12226_v62  ;;  %4375 = vmatprep.mubr.f32.mxu1 %v14947_v13 }
 0x47a   : > { %v4244_v31 = vmul.f32 0.95, %v4147_v18  ;;  %10426 = vmatprep.subr.bf16.mxu1 %v14976_v30  ;;  %v10441_v52 = vpack.c.bf16 %v4269_v9, %v4268_v8  ;;  %v14983_v18 = vld [vmem:[#allocation98_spill] sm:$0xff] }
 0x47b   : > { %v4271_v56 = vadd.f32 %v4245_v39, %v12536_v7  ;;  %v14982_v39 = vld [vmem:[#allocation97_spill] sm:$0xff]  ;;  %v14986_v30 = vld [vmem:[#allocation86_spill] sm:$0xff] }
 0x47c   : > { %v4270_v16 = vadd.f32 %v4244_v31, %v12539_v45  ;;  %v9410_v27 = vpop.f32.mrb[90].mxu0  ;;  %8492 = vmatmul.mubr.msk.f32.gmra.mrb[102].mxu1 %vm4298_vm6, %v12929_v4  ;;  %v14984_v31 = vpack.c.bf16 %v14982_v39, %v14983_v18 }
 0x47d   : > { %v4247_v58 = vmul.f32 0.95, %v9410_v27  ;;  %v4157_v14 = vpop.f32.mrb[91].mxu0  ;;  %10428 = vmatpush1.bf16.msra.mxu1 %v14977_v10  ;;  %4446 = vmatprep.mubr.f32.mxu1 %v14947_v13 }
 0x47e   : > { %v10467_v37 = vpack.c.bf16 %v4271_v56, %v4270_v16  ;;  %v4246_v3 = vmul.f32 0.95, %v4157_v14  ;;  %10430 = vmatprep.subr.bf16.mxu1 %v14978_v41 }
 0x47f   : > { %v4273_v7 = vadd.f32 %v4247_v58, %v12548_v43 }
 0x480   : > { %v4272_v45 = vadd.f32 %v4246_v3, %v12553_v0  ;;  %v9413_v48 = vpop.f32.mrb[92].mxu0 }
 0x481   : > { %v4249_v46 = vmul.f32 0.95, %v9413_v48  ;;  %v4167_v11 = vpop.f32.mrb[93].mxu0  ;;  %10432 = vmatpush1.bf16.msra.mxu1 %v14979_v26  ;;  %v14997_v26 = vld [vmem:[#allocation83_spill] sm:$0xff] }
 0x482   : > { %v4248_v59 = vmul.f32 0.95, %v4167_v11  ;;  %10434 = vmatprep.subr.bf16.mxu1 %v12240_v35  ;;  %v10465_v53 = vpack.c.bf16 %v4273_v7, %v4272_v45  ;;  %v14980_v35 = vpack.c.bf16 %v12719_v24, %v12723_v21  ;;  %v14985_v24 = vld [vmem:[#allocation67_spill] sm:$0xff]  ;;  %v14992_v7 = vld [vmem:[#allocation66_spill] sm:$0xff]  ;;  %v14995_v11 = vpack.c.bf16 %v12871_v51, %v12874_v2 }
 0x483   : > { %v12952_v61 = vadd.f32 %v4249_v46, %v12564_v5  ;;  %v14981_v5 = vld [vmem:[#allocation68_spill] sm:$0xff]  ;;  %v14994_v46 = vld [vmem:[#allocation65_spill] sm:$0xff] }
 0x484   : > { %v12955_v12 = vadd.f32 %v4248_v59, %v12567_v54  ;;  %v9416_v43 = vpop.f32.mrb[94].mxu0  ;;  %10466 = vmatprep.subr.bf16.mxu0 %v10465_v53 }
 0x485   : > { %v4251_v0 = vmul.f32 0.95, %v9416_v43  ;;  %v4177_v44 = vpop.f32.mrb[95].mxu0  ;;  %10436 = vmatpush1.bf16.msra.mxu1 %v12226_v62  ;;  %10468 = vmatpush1.bf16.msra.mxu0 %v10467_v37  ;;  %v14990_v37 = vld [vmem:[#allocation85_spill] sm:$0xff] }
 0x486   : > { %v10491_v50 = vpack.c.bf16 %v12952_v61, %v12955_v12  ;;  %v4250_v38 = vmul.f32 0.95, %v4177_v44  ;;  %10438 = vmatprep.subr.bf16.mxu1 %v14980_v35  ;;  %10494 = vmatprep.subr.bf16.mxu0 %v14981_v5  ;;  %v15000_v44 = vld [vmem:[#allocation81_spill] sm:$0xff]  ;;  %v15024_v12 = vld [vmem:[#allocation88_spill] sm:$0xff] }
 0x487   : > { %v12965_v54 = vadd.f32 %v4251_v0, %v12580_v28  ;;  %v14987_v28 = vld [vmem:[#allocation87_spill] sm:$0xff]  ;;  %v14999_v0 = vld [vmem:[#allocation80_spill] sm:$0xff] }
 0x488   : > { %v12968_v9 = vadd.f32 %v4250_v38, %v12585_v17  ;;  %v9419_v8 = vpop.f32.mrb[96].mxu0  ;;  %8495 = vmatmul.mubr.msk.f32.vlgmr.msra.gmra.mrb[106].mxu0 %vm4298_vm6, %v12917_v1  ;;  %v14988_v56 = vpack.c.bf16 %v14986_v30, %v14987_v28  ;;  %v15001_v38 = vpack.c.bf16 %v14999_v0, %v15000_v44  ;;  %v15010_v28 = vld [vmem:[#allocation101_spill] sm:$0xff]  ;;  %v15040_v44 = vlaneseq }
 0x489   : > { %v4253_v62 = vmul.f32 0.95, %v9419_v8  ;;  %v4187_v33 = vpop.f32.mrb[97].mxu0  ;;  %10440 = vmatpush1.bf16.msra.mxu1 %v14984_v31  ;;  %10496 = vmatpush1.bf16.msra.mxu0 %v14985_v24  ;;  %v15006_v31 = vpack.c.bf16 %v12847_v6, %v12850_v22  ;;  %v15013_v22 = vld [vmem:[#allocation72_spill] sm:$0xff] }
 0x48a   : > { %v4252_v21 = vmul.f32 0.95, %v4187_v33  ;;  %10442 = vmatprep.subr.bf16.mxu1 %v10441_v52  ;;  %10498 = vmatprep.subr.bf16.mxu0 %v14988_v56  ;;  %v10489_v17 = vpack.c.bf16 %v12965_v54, %v12968_v9  ;;  %v14989_v52 = vld [vmem:[#allocation84_spill] sm:$0xff]  ;;  %v15004_v54 = vld [vmem:[#allocation106_spill] sm:$0xff] }
 0x48b   : > { %v4279_v16 = vadd.f32 %v4253_v62, %v12600_v20  ;;  %4529 = vmatprep.mubr.f32.mxu0 %v14947_v13  ;;  %v14991_v3 = vpack.c.bf16 %v14989_v52, %v14990_v37  ;;  %v15011_v56 = vld [vmem:[#allocation102_spill] sm:$0xff]  ;;  %v15022_v37 = vld [vmem:[#allocation91_spill] sm:$0xff] }
 0x48c   : > { %v4278_v27 = vadd.f32 %v4252_v21, %v12603_v19  ;;  %v9422_v58 = vpop.f32.mrb[98].mxu0  ;;  %8496 = vmatmul.mubr.msk.f32.gmra.mrb[108].mxu0 %vm4298_vm6, %v12929_v4  ;;  %v14993_v19 = vpack.c.bf16 %v12879_v25, %v12882_v29  ;;  %v14996_v29 = vld [vmem:[#allocation82_spill] sm:$0xff]  ;;  %v15012_v6 = vpack.c.bf16 %v15010_v28, %v15011_v56  ;;  %v15043_v56 = vld [vmem:[#allocation32_spill] sm:$0xff] }
 0x48d   : > { %v4255_v14 = vmul.f32 0.95, %v9422_v58  ;;  %v4197_v10 = vpop.f32.mrb[99].mxu0  ;;  %10444 = vmatpush1.bf16.msra.mxu1 %v10443_v55  ;;  %10500 = vmatpush1.bf16.msra.mxu0 %v14991_v3  ;;  %v15015_v58 = vld [vmem:[#allocation100_spill] sm:$0xff]  ;;  %v15021_v52 = vld [vmem:[#allocation90_spill] sm:$0xff] }
 0x48e   : > { %v10515_v41 = vpack.c.bf16 %v4279_v16, %v4278_v27  ;;  %v4254_v20 = vmul.f32 0.95, %v4197_v10  ;;  %10470 = vmatprep.subr.bf16.mxu1 %v14992_v7  ;;  %10502 = vmatprep.subr.bf16.mxu0 %v14993_v19  ;;  %v15014_v27 = vld [vmem:[#allocation99_spill] sm:$0xff]  ;;  %v15019_v10 = vld [vmem:[#allocation116_spill] sm:$0xff]  ;;  %v15023_v61 = vpack.c.bf16 %v15021_v52, %v15022_v37  ;;  %v15044_v52 = vld [vmem:[#allocation34_spill] sm:$0xff] }
 0x48f   : > { %v4281_v45 = vadd.f32 %v4255_v14, %v12612_v63  ;;  %4677 = vmatprep.mubr.f32.mxu0 %v14947_v13  ;;  %v14998_v63 = vpack.c.bf16 %v14996_v29, %v14997_v26  ;;  %v15016_v14 = vpack.c.bf16 %v15014_v27, %v15015_v58  ;;  %v15030_v19 = vld [vmem:[#allocation111_spill] sm:$0xff] }
 0x490   : > { %v4280_v48 = vadd.f32 %v4254_v20, %v12617_v57  ;;  %v9425_v34 = vpop.f32.mrb[100].mxu0  ;;  %8493 = vmatmul.mubr.msk.f32.vlgmr.msra.gmra.mrb[104].mxu1 %vm4298_vm6, %v12917_v1  ;;  %v15028_v20 = vld [vmem:[#allocation115_spill] sm:$0xff] }
 0x491   : > { %v4257_v47 = vmul.f32 0.95, %v9425_v34  ;;  %v4207_v55 = vpop.f32.mrb[101].mxu0  ;;  %10472 = vmatpush1.bf16.msra.mxu1 %v14994_v46  ;;  %10504 = vmatpush1.bf16.msra.mxu0 %v14995_v11  ;;  %v15037_v11 = vld [vmem:[#allocation107_spill] sm:$0xff] }
 0x492   : > { %v4256_v25 = vmul.f32 0.95, %v4207_v55  ;;  %10474 = vmatprep.subr.bf16.mxu1 %v14998_v63  ;;  %10506 = vmatprep.subr.bf16.mxu0 %v14981_v5  ;;  %v10513_v57 = vpack.c.bf16 %v4281_v45, %v4280_v48  ;;  %v15003_v5 = vld [vmem:[#allocation105_spill] sm:$0xff]  ;;  %v15031_v45 = vld [vmem:[#allocation112_spill] sm:$0xff]  ;;  %v15035_v55 = vld [vmem:[#allocation110_spill] sm:$0xff] }
 0x493   : > { %v13010_v59 = vadd.f32 %v4257_v47, %v12628_v60  ;;  %4452 = vmatprep.mubr.f32.mxu1 %v14947_v13  ;;  %v15005_v9 = vpack.c.bf16 %v15003_v5, %v15004_v54  ;;  %v15032_v48 = vld [vmem:[#allocation113_spill] sm:$0xff]  ;;  %v13123_v54 = vpop.permute.xlu0 %4290 }
 0x494   : > { %v13014_v53 = vadd.f32 %v4256_v25, %v12631_v15  ;;  %v9428_v43 = vpop.f32.mrb[102].mxu0  ;;  %8494 = vmatmul.mubr.msk.f32.gmra.mrb[106].mxu1 %vm4298_vm6, %v12929_v4  ;;  %v15002_v15 = vpack.c.bf16 %v12856_v40, %v12859_v23  ;;  %v15008_v40 = vld [vmem:[#allocation104_spill] sm:$0xff]  ;;  %v15033_v34 = vpack.c.bf16 %v15031_v45, %v15032_v48  ;;  %v15034_v47 = vld [vmem:[#allocation109_spill] sm:$0xff] }
 0x495   : > { %v4259_v51 = vmul.f32 0.95, %v9428_v43  ;;  %v4217_v2 = vpop.f32.mrb[103].mxu0  ;;  %10476 = vmatpush1.bf16.msra.mxu1 %v15001_v38  ;;  %10508 = vmatpush1.bf16.msra.mxu0 %v14985_v24  ;;  %v15007_v24 = vld [vmem:[#allocation103_spill] sm:$0xff]  ;;  %v15038_v25 = vld [vmem:[#allocation108_spill] sm:$0xff]  ;;  %v13115_v38 = vand.u32 127, %v15040_v44 }
 0x496   : > { %v10539_v60 = vpack.c.bf16 %v13010_v59, %v13014_v53  ;;  %v4258_v35 = vmul.f32 0.95, %v4217_v2  ;;  %10478 = vmatprep.subr.bf16.mxu1 %v15002_v15  ;;  %10510 = vmatprep.subr.bf16.mxu0 %v15005_v9  ;;  %v15009_v23 = vpack.c.bf16 %v15007_v24, %v15008_v40  ;;  %v15039_v29 = vpack.c.bf16 %v15037_v11, %v15038_v25  ;;  %v15042_v40 = vld [vmem:[#allocation30_spill] sm:$0xff] }
 0x497   : > { %v4285_v8 = vadd.f32 %v4259_v51, %v12644_v32  ;;  %4600 = vmatprep.mubr.f32.mxu1 %v14947_v13  ;;  %v4871_v15 = vadd.s32 256, %v13115_v38  ;;  %vm5038_vm7 = vcmp.lt.s32.totalorder %v13115_v38, 10  ;;  %v4873_v28 = vadd.s32 512, %v13115_v38  ;;  %v15048_v44 = vld [vmem:[#allocation38_spill] sm:$0xff] }
 0x498   : > { %v4284_v62 = vadd.f32 %v4258_v35, %v12649_v49  ;;  %v9431_v33 = vpop.f32.mrb[104].mxu0  ;;  %v4870_v35 = vadd.s32 128, %v13115_v38 }
 0x499   : > { %v4261_v39 = vmul.f32 0.95, %v9431_v33  ;;  %v4227_v18 = vpop.f32.mrb[105].mxu0  ;;  %10480 = vmatpush1.bf16.msra.mxu1 %v15006_v31  ;;  %10512 = vmatpush1.bf16.msra.mxu0 %v15009_v23  ;;  %v4872_v33 = vadd.s32 384, %v13115_v38  ;;  %v15041_v31 = vld [vmem:[#allocation28_spill] sm:$0xff] }
 0x49a   : > { %v4260_v21 = vmul.f32 0.95, %v4227_v18  ;;  %10482 = vmatprep.subr.bf16.mxu1 %v14992_v7  ;;  %10514 = vmatprep.subr.bf16.mxu0 %v10513_v57  ;;  %v10537_v32 = vpack.c.bf16 %v4285_v8, %v4284_v62  ;;  %v4893_v5 = vand.u32 127, %v4870_v35  ;;  %v4900_v62 = vand.u32 127, %v4871_v15 }
 0x49b   : > { %v4287_v30 = vadd.f32 %v4261_v39, %v12664_v36  ;;  %v15017_v36 = vld [vmem:[#allocation93_spill] sm:$0xff] }
 0x49c   : > { %v4286_v49 = vadd.f32 %v4260_v21, %v12667_v42  ;;  %v15018_v42 = vld [vmem:[#allocation70_spill] sm:$0xff]  ;;  %vm5039_vm8 = vcmp.lt.s32.totalorder %v4893_v5, 10  ;;  %vm5040_vm9 = vcmp.lt.s32.totalorder %v4900_v62, 10  ;;  %v4907_v21 = vand.u32 127, %v4872_v33 }
 0x49d   : > { %10484 = vmatpush1.bf16.msra.mxu1 %v14994_v46  ;;  %10516 = vmatpush1.bf16.msra.mxu0 %v10515_v41  ;;  %v15027_v41 = vld [vmem:[#allocation114_spill] sm:$0xff]  ;;  %v15036_v46 = vpack.c.bf16 %v15034_v47, %v15035_v55  ;;  %v15046_v55 = vld [vmem:[#allocation36_spill] sm:$0xff] }
 0x49e   : > { %10486 = vmatprep.subr.bf16.mxu1 %v15012_v6  ;;  %10542 = vmatprep.subr.bf16.mxu0 %v15013_v22  ;;  %v10561_v16 = vpack.c.bf16 %v4287_v30, %v4286_v49  ;;  %v15029_v7 = vpack.c.bf16 %v15027_v41, %v15028_v20  ;;  %v13139_v30 = vsel %vm5038_vm7, 1.0, %v14947_v13  ;;  %v13142_v49 = vsel %vm5039_vm8, 1.0, %v14947_v13 }
 0x49f   : > { %vm5041_vm10 = vcmp.lt.s32.totalorder %v4907_v21, 10  ;;  %v15052_v21 = vld [vmem:[#allocation42_spill] sm:$0xff] }
 0x4a0   : > { %8499 = vmatmul.mubr.msk.f32.vlgmr.msra.gmra.mrb[110].mxu0 %vm4298_vm6, %v12917_v1 }
 0x4a1   : > { %10488 = vmatpush1.bf16.msra.mxu1 %v15016_v14  ;;  %10544 = vmatpush3.bf16.msra.mxu0 %v15013_v22 }
 0x4a2   : > { %10490 = vmatprep.subr.bf16.mxu1 %v10489_v17  ;;  %10546 = vmatprep.subr.bf16.mxu0 %v15017_v36  ;;  %v15020_v17 = vld [vmem:[#allocation69_spill] sm:$0xff] }
 0x4a3   : > { %4683 = vmatprep.mubr.f32.mxu0 %v14947_v13 }
 0x4a4   : > { %8500 = vmatmul.mubr.msk.f32.gmra.mrb[112].mxu0 %vm4298_vm6, %v12929_v4 }
 0x4a5   : > { %10492 = vmatpush1.bf16.msra.mxu1 %v10491_v50  ;;  %10548 = vmatpush3.bf16.msra.mxu0 %v15017_v36  ;;  %v15025_v50 = vld [vmem:[#allocation89_spill] sm:$0xff] }
 0x4a6   : > { %10518 = vmatprep.subr.bf16.mxu1 %v15018_v42  ;;  %10550 = vmatprep.subr.bf16.mxu0 %v15019_v10  ;;  %v15026_v3 = vpack.c.bf16 %v15024_v12, %v15025_v50  ;;  %v13168_v12 = vsel %vm5041_vm10, 1.0, %v14947_v13 }
 0x4a7   : > { %9456 = vmatprep.mubr.msk.f32.mxu0 %vm4298_vm6, %v12917_v1  ;;  %15045 = vst [vmem:[#allocation68_spill] sm:$0xff] %v13168_v12 }
 0x4a8   : > { %8497 = vmatmul.mubr.msk.f32.vlgmr.msra.gmra.mrb[108].mxu1 %vm4298_vm6, %v12917_v1 }
 0x4a9   : > { %10520 = vmatpush1.bf16.msra.mxu1 %v15020_v17  ;;  %10552 = vmatpush3.bf16.msra.mxu0 %v15019_v10  ;;  %v4874_v10 = vadd.s32 640, %v13115_v38 }
 0x4aa   : > { %10522 = vmatprep.subr.bf16.mxu1 %v15023_v61  ;;  %10554 = vmatprep.subr.bf16.mxu0 %v15013_v22  ;;  %v4875_v61 = vadd.s32 768, %v13115_v38 }
 0x4ab   : > { %4606 = vmatprep.mubr.f32.mxu1 %v14947_v13 }
 0x4ac   : > { %8498 = vmatmul.mubr.msk.f32.gmra.mrb[110].mxu1 %vm4298_vm6, %v12929_v4  ;;  %v4928_v48 = vand.u32 127, %v4875_v61 }
 0x4ad   : > { %10524 = vmatpush1.bf16.msra.mxu1 %v15026_v3  ;;  %10556 = vmatpush3.bf16.msra.mxu0 %v15013_v22 }
 0x4ae   : > { %10526 = vmatprep.subr.bf16.mxu1 %v15029_v7  ;;  %10558 = vmatprep.subr.bf16.mxu0 %v15030_v19  ;;  %v4921_v7 = vand.u32 127, %v4874_v10  ;;  %vm5044_vm13 = vcmp.lt.s32.totalorder %v4928_v48, 10  ;;  %v4880_v10 = vadd.s32 1408, %v13115_v38 }
 0x4af   : > { %4754 = vmatprep.mubr.f32.mxu1 %v14947_v13 }
 0x4b0   : > { %vm5043_vm12 = vcmp.lt.s32.totalorder %v4921_v7, 10 }
 0x4b1   : > { %10528 = vmatpush1.bf16.msra.mxu1 %v15033_v34  ;;  %10560 = vmatpush3.bf16.msra.mxu0 %v15030_v19  ;;  %v4876_v34 = vadd.s32 896, %v13115_v38 }
 0x4b2   : > { %10530 = vmatprep.subr.bf16.mxu1 %v15018_v42  ;;  %10562 = vmatprep.subr.bf16.mxu0 %v10561_v16  ;;  %v4914_v42 = vand.u32 127, %v4873_v28 }
 0x4b4   : > { %vm5042_vm11 = vcmp.lt.s32.totalorder %v4914_v42, 10 }
 0x4b5   : > { %10532 = vmatpush1.bf16.msra.mxu1 %v15020_v17  ;;  %10564 = vmatpush3.bf16.msra.mxu0 %v10561_v16  ;;  %v13150_v16 = vsel %vm5040_vm9, 1.0, %v14947_v13 }
 0x4b6   : > { %10534 = vmatprep.subr.bf16.mxu1 %v15036_v46 }
 0x4b8   : > { %9457 = vmatmul.mubr.msk.f32.vlgmr.msra.gmra.mrb[114].mxu0 %vm4298_vm6, %v12929_v4 }
 0x4b9   : > { %10536 = vmatpush1.bf16.msra.mxu1 %v15039_v29  ;;  %5572 = vmatprep.mubr.f32.mxu0 %v14947_v13 }
 0x4ba   : > { %10538 = vmatprep.subr.bf16.mxu1 %v10537_v32 }
 0x4bd   : > { %10540 = vmatpush1.bf16.msra.mxu1 %v10539_v60 }
 0x4c0   : > { %8501 = vmatmul.mubr.msk.f32.vlgmr.msra.gmra.mrb[112].mxu1 %vm4298_vm6, %v12917_v1 }
 0x4c1   : > { %4760 = vmatprep.mubr.f32.mxu1 %v14947_v13 }
 0x4c4   : > { %8502 = vmatmul.mubr.msk.f32.gmra.mrb[114].mxu1 %vm4298_vm6, %v12929_v4 }
 0x4c5   : > { %5483 = vmatprep.mubr.f32.mxu1 %v14947_v13 }
 0x54b   : > { %v4371_v26 = vpop.f32.mrb[100].mxu1 }
 0x54c   : > { %v4373_v63 = vpop.f32.mrb[101].mxu1  ;;  %v4372_v9 = vadd.f32 %v4371_v26, %v13123_v54  ;;  %v13184_v26 = vsel %vm5042_vm11, 1.0, %v14947_v13 }
 0x54d   : > { %v4374_v8 = vadd.f32 %v4373_v63, %v13123_v54  ;;  %15047 = vst [vmem:[#allocation97_spill] sm:$0xff] %v13184_v26 }
 0x54e   : > { %v13131_v24 = vadd.f32 %v4372_v9, %v15041_v31  ;;  %v13197_v9 = vsel %vm5043_vm12, 1.0, %v14947_v13  ;;  %v4878_v31 = vadd.s32 1152, %v13115_v38 }
 0x54f   : > { %v13106_v57 = vpop.f32.mrb[102].mxu1  ;;  %v13134_v23 = vadd.f32 %v4374_v8, %v15042_v40  ;;  %15050 = vst [vmem:[#allocation98_spill] sm:$0xff] %v13197_v9  ;;  %v13200_v8 = vsel %vm5044_vm13, 1.0, %v14947_v13 }
 0x550   : > { %v13108_v59 = vpop.f32.mrb[103].mxu1  ;;  %v5077_v58 = vmul.f32 %v13139_v30, %v13131_v24  ;;  %15051 = vst [vmem:[#allocation67_spill] sm:$0xff] %v13200_v8 }
 0x551   : > { %v5078_v14 = vmul.f32 %v13142_v49, %v13134_v23 }
 0x553   : > { %v5103_v3 = vadd.f32 %v5078_v14, %v5077_v58  ;;  %v4879_v14 = vadd.s32 1280, %v13115_v38 }
 0x555   : > { %v4956_v7 = vand.u32 127, %v4879_v14 }
 0x557   : > { %vm5048_vm1 = vcmp.lt.s32.totalorder %v4956_v7, 10  ;;  %v15059_v7 = vld [vmem:[#allocation29_spill] sm:$0xff] }
 0x55b   : > { %v4525_v53 = vpop.f32.mrb[106].mxu0 }
 0x55c   : > { %v4527_v43 = vpop.f32.mrb[107].mxu0  ;;  %v4526_v41 = vadd.f32 %v4525_v53, %v13123_v54  ;;  %v4935_v53 = vand.u32 127, %v4876_v34 }
 0x55d   : > { %v4528_v11 = vadd.f32 %v4527_v43, %v13123_v54  ;;  %v15049_v43 = vld [vmem:[#allocation40_spill] sm:$0xff] }
 0x55e   : > { %v13177_v46 = vadd.f32 %v4526_v41, %v15046_v55  ;;  %vm5045_vm14 = vcmp.lt.s32.totalorder %v4935_v53, 10  ;;  %v15053_v41 = vld [vmem:[#allocation44_spill] sm:$0xff] }
 0x55f   : > { %v13110_v51 = vpop.f32.mrb[108].mxu0  ;;  %v13190_v35 = vadd.f32 %v4528_v11, %v15048_v44  ;;  %v15054_v11 = vld [vmem:[#allocation46_spill] sm:$0xff]  ;;  %v4296_v44 = vpop.permute.xlu1 %4295 }
 0x560   : > { %v13112_v2 = vpop.f32.mrb[109].mxu0  ;;  %v4380_v14 = vadd.f32 %v13108_v59, %v4296_v44 }
 0x563   : > { %v4448_v1 = vpop.f32.mrb[104].mxu1 }
 0x564   : > { %v4450_v0 = vpop.f32.mrb[105].mxu1  ;;  %v4449_v39 = vadd.f32 %v4448_v1, %v13123_v54  ;;  %v4877_v1 = vadd.s32 1024, %v13115_v38 }
 0x565   : > { %v4451_v22 = vadd.f32 %v4450_v0, %v13123_v54  ;;  %v5081_v0 = vmul.f32 %v13184_v26, %v13177_v46 }
 0x566   : > { %v13146_v6 = vadd.f32 %v4449_v39, %v15043_v56  ;;  %v4942_v33 = vand.u32 127, %v4877_v1  ;;  %v5082_v39 = vmul.f32 %v13197_v9, %v13190_v35  ;;  %v13211_v56 = vsel %vm5045_vm14, 1.0, %v14947_v13 }
 0x567   : > { %v13117_v4 = vpop.f32.mrb[106].mxu1  ;;  %v13164_v37 = vadd.f32 %v4451_v22, %v15044_v52 }
 0x568   : > { %v13119_v60 = vpop.f32.mrb[107].mxu1  ;;  %v5079_v17 = vmul.f32 %v13150_v16, %v13146_v6  ;;  %vm5046_vm15 = vcmp.lt.s32.totalorder %v4942_v33, 10 }
 0x569   : > { %v5080_v45 = vmul.f32 %v13168_v12, %v13164_v37 }
 0x56a   : > { %v5104_v19 = vadd.f32 %v5103_v3, %v5079_v17  ;;  %v4949_v17 = vand.u32 127, %v4878_v31  ;;  %v4881_v3 = vadd.s32 1536, %v13115_v38 }
 0x56c   : > { %v5105_v63 = vadd.f32 %v5104_v19, %v5080_v45  ;;  %v13227_v19 = vsel %vm5046_vm15, 1.0, %v14947_v13  ;;  %v4963_v45 = vand.u32 127, %v4880_v10  ;;  %vm5047_vm0 = vcmp.lt.s32.totalorder %v4949_v17, 10  ;;  %v15057_v10 = vld [vmem:[#allocation54_spill] sm:$0xff] }
 0x56d   : > { %v4970_v34 = vand.u32 127, %v4881_v3  ;;  %v13235_v38 = vsel %vm5047_vm0, 1.0, %v14947_v13  ;;  %v15058_v3 = vld [vmem:[#allocation27_spill] sm:$0xff] }
 0x56e   : > { %v5106_v62 = vadd.f32 %v5105_v63, %v5081_v0  ;;  %vm5049_vm2 = vcmp.lt.s32.totalorder %v4963_v45, 10  ;;  %v13271_v45 = vadd.f32 %v4380_v14, %v15059_v7 }
 0x56f   : > { %vm5050_vm3 = vcmp.lt.s32.totalorder %v4970_v34, 10 }
 0x570   : > { %v5107_v58 = vadd.f32 %v5106_v62, %v5082_v39  ;;  %v4378_v62 = vadd.f32 %v13106_v57, %v4296_v44  ;;  %v15055_v39 = vld [vmem:[#allocation48_spill] sm:$0xff] }
 0x573   : > { %v4679_v18 = vpop.f32.mrb[110].mxu0 }
 0x574   : > { %v13136_v32 = vpop.f32.mrb[111].mxu0  ;;  %v4680_v22 = vadd.f32 %v4679_v18, %v13123_v54 }
 0x575   : > { %v4682_v18 = vadd.f32 %v13136_v32, %v13123_v54 }
 0x577   : > { %v13152_v27 = vpop.f32.mrb[112].mxu0 }
 0x578   : > { %v13158_v36 = vpop.f32.mrb[113].mxu0 }
 0x57b   : > { %v4602_v50 = vpop.f32.mrb[108].mxu1 }
 0x57c   : > { %v4604_v20 = vpop.f32.mrb[109].mxu1  ;;  %v4603_v25 = vadd.f32 %v4602_v50, %v13123_v54 }
 0x57d   : > { %v4605_v5 = vadd.f32 %v4604_v20, %v13123_v54  ;;  %v13222_v20 = vadd.f32 %v4680_v22, %v15053_v41  ;;  %v13267_v41 = vadd.f32 %v4378_v62, %v15058_v3 }
 0x57e   : > { %v13193_v15 = vadd.f32 %v4603_v25, %v15049_v43  ;;  %v13232_v25 = vadd.f32 %v4682_v18, %v15054_v11  ;;  %v13240_v43 = vsel %vm5048_vm1, 1.0, %v14947_v13  ;;  %v4455_v18 = vadd.f32 %v13117_v4, %v4296_v44 }
 0x57f   : > { %v13174_v47 = vpop.f32.mrb[110].mxu1  ;;  %v13208_v28 = vadd.f32 %v4605_v5, %v15052_v21  ;;  %v5085_v55 = vmul.f32 %v13227_v19, %v13222_v20  ;;  %v15056_v21 = vld [vmem:[#allocation50_spill] sm:$0xff]  ;;  %v5090_v11 = vmul.f32 %v13139_v30, %v13267_v41  ;;  %v5091_v4 = vmul.f32 %v13142_v49, %v13271_v45 }
 0x580   : > { %v13181_v29 = vpop.f32.mrb[111].mxu1  ;;  %v5083_v40 = vmul.f32 %v13200_v8, %v13193_v15  ;;  %v5086_v33 = vmul.f32 %v13235_v38, %v13232_v25 }
 0x581   : > { %v5084_v61 = vmul.f32 %v13211_v56, %v13208_v28 }
 0x582   : > { %v5108_v52 = vadd.f32 %v5107_v58, %v5083_v40  ;;  %v13250_v40 = vsel %vm5049_vm2, 1.0, %v14947_v13 }
 0x584   : > { %v5109_v48 = vadd.f32 %v5108_v52, %v5084_v61  ;;  %v13262_v61 = vsel %vm5050_vm3, 1.0, %v14947_v13 }
 0x586   : > { %v5110_v32 = vadd.f32 %v5109_v48, %v5085_v55  ;;  %v4457_v48 = vadd.f32 %v13119_v60, %v4296_v44 }
 0x58b   : > { %v13215_v42 = vpop.f32.mrb[114].mxu0 }
 0x58c   : > { %v4833_v50 = vpop.f32.mrb[115].mxu0 }
 0x58d   : > { %v4834_v53 = vadd.f32 %v4833_v50, %v13123_v54 }
 0x58f   : > { %v13257_v17 = vadd.f32 %v4834_v53, %v15057_v10  ;;  %v15063_v10 = vld [vmem:[#allocation37_spill] sm:$0xff] }
 0x591   : > { %v5089_v34 = vmul.f32 %v13262_v61, %v13257_v17 }
 0x593   : > { %v4756_v63 = vpop.f32.mrb[112].mxu1 }
 0x594   : > { %v4757_v1 = vadd.f32 %v4756_v63, %v13123_v54  ;;  %v4758_v0 = vpop.f32.mrb[113].mxu1  ;;  %v4532_v63 = vadd.f32 %v13110_v51, %v4296_v44  ;;  %v4609_v51 = vadd.f32 %v13174_v47, %v4296_v44 }
 0x595   : > { %v4759_v5 = vadd.f32 %v4758_v0, %v13123_v54  ;;  %v5111_v54 = vadd.f32 %v5110_v32, %v5086_v33  ;;  %v15060_v32 = vld [vmem:[#allocation31_spill] sm:$0xff]  ;;  %v4534_v0 = vadd.f32 %v13112_v2, %v4296_v44  ;;  %v4611_v2 = vadd.f32 %v13181_v29, %v4296_v44 }
 0x596   : > { %v13247_v31 = vadd.f32 %v4757_v1, %v15055_v39  ;;  %v13280_v53 = vadd.f32 %v4455_v18, %v15060_v32  ;;  %v15062_v33 = vld [vmem:[#allocation35_spill] sm:$0xff]  ;;  %v4686_v18 = vadd.f32 %v13152_v27, %v4296_v44 }
 0x597   : > { %v13253_v22 = vadd.f32 %v4759_v5, %v15056_v21  ;;  %v4762_v58 = vpop.f32.mrb[114].mxu1  ;;  %v15061_v5 = vld [vmem:[#allocation33_spill] sm:$0xff]  ;;  %v13289_v39 = vadd.f32 %v4532_v63, %v15062_v33  ;;  %v15066_v29 = vld [vmem:[#allocation43_spill] sm:$0xff] }
 0x598   : > { %v5087_v57 = vmul.f32 %v13240_v43, %v13247_v31  ;;  %v4764_v52 = vpop.f32.mrb[115].mxu1  ;;  %v13286_v60 = vadd.f32 %v4457_v48, %v15061_v5  ;;  %v5092_v21 = vmul.f32 %v13150_v16, %v13280_v53  ;;  %v13313_v32 = vadd.f32 %v4686_v18, %v15066_v29  ;;  %v5343_v29 = vld [vmem:[%s14875_s4] sm:$0xff] }
 0x599   : > { %v5088_v50 = vmul.f32 %v13250_v40, %v13253_v22  ;;  %v5094_v3 = vmul.f32 %v13184_v26, %v13289_v39  ;;  %v4763_v27 = vadd.f32 %v4762_v58, %v4296_v44  ;;  %v4765_v33 = vadd.f32 %v4764_v52, %v4296_v44 }
 0x59a   : > { %v5112_v59 = vadd.f32 %v5111_v54, %v5087_v57  ;;  %v13295_v57 = vadd.f32 %v4534_v0, %v15063_v10  ;;  %v5093_v54 = vmul.f32 %v13168_v12, %v13286_v60  ;;  %v15067_v0 = vld [vmem:[#allocation45_spill] sm:$0xff] }
 0x59c   : > { %v5113_v55 = vadd.f32 %v5112_v59, %v5088_v50  ;;  %v15064_v59 = vld [vmem:[#allocation39_spill] sm:$0xff]  ;;  %v5095_v47 = vmul.f32 %v13197_v9, %v13295_v57 }
 0x59d   : > { %v13304_v7 = vadd.f32 %v4609_v51, %v15064_v59  ;;  %v4839_v51 = vadd.f32 %v13215_v42, %v4296_v44 }
 0x59e   : > { %v5114_v1 = vadd.f32 %v5113_v55, %v5089_v34  ;;  %v4688_v34 = vadd.f32 %v13158_v36, %v4296_v44  ;;  %v15065_v55 = vld [vmem:[#allocation41_spill] sm:$0xff] }
 0x5a0   : > { %v5115_v62 = vadd.f32 %v5114_v1, %v5090_v11  ;;  %v13310_v11 = vadd.f32 %v4611_v2, %v15065_v55  ;;  %v5096_v1 = vmul.f32 %v13200_v8, %v13304_v7  ;;  %v13318_v5 = vadd.f32 %v4688_v34, %v15067_v0  ;;  %v15069_v2 = vld [vmem:[#allocation49_spill] sm:$0xff] }
 0x5a2   : > { %v5116_v14 = vadd.f32 %v5115_v62, %v5091_v4  ;;  %v5097_v62 = vmul.f32 %v13211_v56, %v13310_v11 }
 0x5a4   : > { %v5117_v50 = vadd.f32 %v5116_v14, %v5092_v21  ;;  %v5098_v21 = vmul.f32 %v13227_v19, %v13313_v32  ;;  %v15068_v14 = vld [vmem:[#allocation47_spill] sm:$0xff] }
 0x5a5   : > { %v13326_v10 = vadd.f32 %v4763_v27, %v15068_v14 }
 0x5a6   : > { %v5118_v48 = vadd.f32 %v5117_v50, %v5093_v54  ;;  %v5099_v54 = vmul.f32 %v13235_v38, %v13318_v5  ;;  %v13331_v50 = vadd.f32 %v4765_v33, %v15069_v2 }
 0x5a7   : > { %v5100_v59 = vmul.f32 %v13240_v43, %v13326_v10 }
 0x5a8   : > { %v5119_v63 = vadd.f32 %v5118_v48, %v5094_v3  ;;  %v15070_v3 = vld [vmem:[#allocation53_spill] sm:$0xff]  ;;  %v5101_v44 = vmul.f32 %v13250_v40, %v13331_v50 }
 0x5a9   : > { %v13334_v18 = vadd.f32 %v4839_v51, %v15070_v3 }
 0x5aa   : > { %v5120_v4 = vadd.f32 %v5119_v63, %v5095_v47  ;;  %v5345_v63 = vld [vmem:[%s14875_s4 + $0x10] sm:$0xff] }
 0x5ab   : > { %v5102_v47 = vmul.f32 %v13262_v61, %v13334_v18 }
 0x5ac   : > { %v5121_v36 = vadd.f32 %v5120_v4, %v5096_v1  ;;  %v5357_v1 = vld [vmem:[%s11557_s20] sm:$0xff] }
 0x5ae   : > { %v5122_v58 = vadd.f32 %v5121_v36, %v5097_v62 }
 0x5b0   : > { %v5123_v52 = vadd.f32 %v5122_v58, %v5098_v21 }
 0x5b2   : > { %v5124_v42 = vadd.f32 %v5123_v52, %v5099_v54 }
 0x5b4   : > { %v5125_v48 = vadd.f32 %v5124_v42, %v5100_v59 }
 0x5b6   : > { %v5126_v34 = vadd.f32 %v5125_v48, %v5101_v44 }
 0x5b8   : > { %v5127_v55 = vadd.f32 %v5126_v34, %v5102_v47 }
 0x5ba   : > { %5128 = vadd.xlane.f32.xlu0 %v5127_v55 }
 0x5d0   : > { %5399 = vperm.xlu0 %11213, %v5345_v63  }
 0x5d4   : > { %5389 = vperm.xlu0 %11213, %v5343_v29  }
 0x5d8   : > { %6648 = vperm.xlu0 %11213, %v5357_v1  }
 0x647   : > { %v5129_v27 = vpop.xlane.xlu0 %5128 }
 0x648   : > { %v5130_v4 = vrot.slane %v5129_v27, 4 }
 0x64a   : > { %v5131_v0 = vadd.f32 %v5130_v4, %v5129_v27 }
 0x64c   : > { %v5132_v62 = vrot.slane %v5131_v0, 2 }
 0x64e   : > { %v5133_v33 = vadd.f32 %v5132_v62, %v5131_v0 }
 0x650   : > { %v5134_v36 = vrot.slane %v5133_v33, 1 }
 0x652   : > { %v5135_v21 = vadd.f32 %v5134_v36, %v5133_v33 }
 0x654   : > { %11145 = vpush %v5135_v21 }
 0x685   : > { %s11146_s26 = spop %11145 }
 0x686   : > { %s5139_s28 = smul.f32 0.00048076923, %s11146_s26  ;;  %s15129_s26 = sld [smem:[#allocation17_spill]] }
 0x688   : > { %v13345_v51 = vstv %s5139_s28  ;;  %s15131_s28 = sld [smem:[#allocation21_spill]] }
 0x689   : > { %v13349_v14 = vsub.f32 %v13131_v24, %v13345_v51  ;;  %v13353_v58 = vsub.f32 %v13134_v23, %v13345_v51  ;;  %v13357_v54 = vsub.f32 %v13146_v6, %v13345_v51  ;;  %v13365_v3 = vsub.f32 %v13164_v37, %v13345_v51 }
 0x68a   : > { %v13369_v24 = vsub.f32 %v13177_v46, %v13345_v51  ;;  %v13377_v42 = vsub.f32 %v13190_v35, %v13345_v51  ;;  %v13383_v37 = vsub.f32 %v13193_v15, %v13345_v51  ;;  %v13390_v34 = vsub.f32 %v13208_v28, %v13345_v51 }
 0x68b   : > { %v5167_v2 = vmul.f32 %v13349_v14, %v13349_v14  ;;  %v5168_v52 = vmul.f32 %v13353_v58, %v13353_v58  ;;  %v5169_v23 = vmul.f32 %v13357_v54, %v13357_v54  ;;  %v5170_v44 = vmul.f32 %v13365_v3, %v13365_v3 }
 0x68c   : > { %v5171_v46 = vmul.f32 %v13369_v24, %v13369_v24  ;;  %v5172_v35 = vmul.f32 %v13377_v42, %v13377_v42  ;;  %v13397_v15 = vsub.f32 %v13222_v20, %v13345_v51  ;;  %v5173_v29 = vmul.f32 %v13383_v37, %v13383_v37 }
 0x68d   : > { %v5193_v6 = vmul.f32 %v13139_v30, %v5167_v2  ;;  %v5194_v59 = vmul.f32 %v13142_v49, %v5168_v52  ;;  %v5195_v48 = vmul.f32 %v13150_v16, %v5169_v23  ;;  %v5196_v55 = vmul.f32 %v13168_v12, %v5170_v44 }
 0x68e   : > { %v5197_v1 = vmul.f32 %v13184_v26, %v5171_v46  ;;  %v13404_v28 = vsub.f32 %v13232_v25, %v13345_v51  ;;  %v5174_v4 = vmul.f32 %v13390_v34, %v13390_v34  ;;  %v5198_v0 = vmul.f32 %v13197_v9, %v5172_v35 }
 0x68f   : > { %v5219_v47 = vadd.f32 %v5194_v59, %v5193_v6  ;;  %v13411_v20 = vsub.f32 %v13247_v31, %v13345_v51  ;;  %v5175_v33 = vmul.f32 %v13397_v15, %v13397_v15  ;;  %v5199_v36 = vmul.f32 %v13200_v8, %v5173_v29 }
 0x690   : > { %v13418_v25 = vsub.f32 %v13253_v22, %v13345_v51  ;;  %v5176_v2 = vmul.f32 %v13404_v28, %v13404_v28  ;;  %v5200_v52 = vmul.f32 %v13211_v56, %v5174_v4  ;;  %v13425_v31 = vsub.f32 %v13257_v17, %v13345_v51 }
 0x691   : > { %v5220_v63 = vadd.f32 %v5219_v47, %v5195_v48  ;;  %v5177_v6 = vmul.f32 %v13411_v20, %v13411_v20  ;;  %v5201_v59 = vmul.f32 %v13227_v19, %v5175_v33  ;;  %v13432_v22 = vsub.f32 %v13267_v41, %v13345_v51 }
 0x692   : > { %v5178_v46 = vmul.f32 %v13418_v25, %v13418_v25  ;;  %v5202_v48 = vmul.f32 %v13235_v38, %v5176_v2  ;;  %v13439_v17 = vsub.f32 %v13271_v45, %v13345_v51  ;;  %v5179_v35 = vmul.f32 %v13425_v31, %v13425_v31 }
 0x693   : > { %v5221_v27 = vadd.f32 %v5220_v63, %v5196_v55  ;;  %v5203_v55 = vmul.f32 %v13240_v43, %v5177_v6  ;;  %v13446_v41 = vsub.f32 %v13280_v53, %v13345_v51  ;;  %v5180_v29 = vmul.f32 %v13432_v22, %v13432_v22 }
 0x694   : > { %v13453_v45 = vsub.f32 %v13286_v60, %v13345_v51  ;;  %v5181_v4 = vmul.f32 %v13439_v17, %v13439_v17  ;;  %v13460_v53 = vsub.f32 %v13289_v39, %v13345_v51  ;;  %v13467_v60 = vsub.f32 %v13295_v57, %v13345_v51 }
 0x695   : > { %v5222_v62 = vadd.f32 %v5221_v27, %v5197_v1  ;;  %v5204_v1 = vmul.f32 %v13250_v40, %v5178_v46  ;;  %v5182_v33 = vmul.f32 %v13446_v41, %v13446_v41  ;;  %v13474_v39 = vsub.f32 %v13304_v7, %v13345_v51 }
 0x696   : > { %v5183_v2 = vmul.f32 %v13453_v45, %v13453_v45  ;;  %v5184_v6 = vmul.f32 %v13460_v53, %v13460_v53  ;;  %v13481_v57 = vsub.f32 %v13310_v11, %v13345_v51  ;;  %v5185_v46 = vmul.f32 %v13467_v60, %v13467_v60 }
 0x697   : > { %v5223_v21 = vadd.f32 %v5222_v62, %v5198_v0  ;;  %v5205_v0 = vmul.f32 %v13262_v61, %v5179_v35  ;;  %v13488_v7 = vsub.f32 %v13313_v32, %v13345_v51  ;;  %v5186_v35 = vmul.f32 %v13474_v39, %v13474_v39 }
 0x698   : > { %v13495_v11 = vsub.f32 %v13318_v5, %v13345_v51  ;;  %v13502_v32 = vsub.f32 %v13326_v10, %v13345_v51  ;;  %v13509_v5 = vsub.f32 %v13331_v50, %v13345_v51  ;;  %v13516_v10 = vsub.f32 %v13334_v18, %v13345_v51 }
 0x699   : > { %v5224_v23 = vadd.f32 %v5223_v21, %v5199_v36  ;;  %v5206_v36 = vmul.f32 %v13139_v30, %v5180_v29  ;;  %v5187_v29 = vmul.f32 %v13481_v57, %v13481_v57 }
 0x69a   : > { %v5191_v50 = vmul.f32 %v13509_v5, %v13509_v5 }
 0x69b   : > { %v5225_v44 = vadd.f32 %v5224_v23, %v5200_v52  ;;  %v5207_v52 = vmul.f32 %v13142_v49, %v5181_v4  ;;  %v5188_v4 = vmul.f32 %v13488_v7, %v13488_v7 }
 0x69d   : > { %v5226_v47 = vadd.f32 %v5225_v44, %v5201_v59  ;;  %v5208_v59 = vmul.f32 %v13150_v16, %v5182_v33  ;;  %v5189_v33 = vmul.f32 %v13495_v11, %v13495_v11 }
 0x69f   : > { %v5227_v63 = vadd.f32 %v5226_v47, %v5202_v48  ;;  %v5209_v48 = vmul.f32 %v13168_v12, %v5183_v2  ;;  %v5190_v2 = vmul.f32 %v13502_v32, %v13502_v32 }
 0x6a1   : > { %v5228_v27 = vadd.f32 %v5227_v63, %v5203_v55  ;;  %v5210_v55 = vmul.f32 %v13184_v26, %v5184_v6  ;;  %v5215_v6 = vmul.f32 %v13235_v38, %v5189_v33  ;;  %v5216_v18 = vmul.f32 %v13240_v43, %v5190_v2  ;;  %v5358_v38 = vld [vmem:[%s11557_s20 + $0x8] sm:$0xff]  ;;  %v2302_v33 = vld [vmem:[%s15071_s1 + $0x70] sm:$0xff] }
 0x6a2   : > { %v2328_v2 = vld [vmem:[%s15072_s2 + $0x70] sm:$0xff] }
 0x6a3   : > { %v5229_v62 = vadd.f32 %v5228_v27, %v5204_v1  ;;  %v5211_v1 = vmul.f32 %v13197_v9, %v5185_v46 }
 0x6a5   : > { %v5230_v21 = vadd.f32 %v5229_v62, %v5205_v0  ;;  %v5212_v0 = vmul.f32 %v13200_v8, %v5186_v35  ;;  %v5346_v35 = vld [vmem:[%s14875_s4 + $0x18] sm:$0xff] }
 0x6a7   : > { %v5231_v23 = vadd.f32 %v5230_v21, %v5206_v36  ;;  %v5213_v36 = vmul.f32 %v13211_v56, %v5187_v29 }
 0x6a9   : > { %v5232_v44 = vadd.f32 %v5231_v23, %v5207_v52  ;;  %v5214_v52 = vmul.f32 %v13227_v19, %v5188_v4 }
 0x6ab   : > { %v5233_v47 = vadd.f32 %v5232_v44, %v5208_v59  ;;  %v5192_v59 = vmul.f32 %v13516_v10, %v13516_v10  ;;  %v5217_v44 = vmul.f32 %v13250_v40, %v5191_v50  ;;  %v2288_v50 = vld [vmem:[%s15071_s1] sm:$0xff] }
 0x6ad   : > { %v5234_v63 = vadd.f32 %v5233_v47, %v5209_v48  ;;  %v5218_v19 = vmul.f32 %v13262_v61, %v5192_v59 }
 0x6af   : > { %v5235_v27 = vadd.f32 %v5234_v63, %v5210_v55  ;;  %v5344_v55 = vld [vmem:[%s14875_s4 + $0x8] sm:$0xff] }
 0x6b1   : > { %v5236_v62 = vadd.f32 %v5235_v27, %v5211_v1 }
 0x6b3   : > { %v5237_v21 = vadd.f32 %v5236_v62, %v5212_v0  ;;  %v2289_v62 = vld [vmem:[%s15071_s1 + $0x8] sm:$0xff] }
 0x6b5   : > { %v5238_v23 = vadd.f32 %v5237_v21, %v5213_v36  ;;  %v2315_v21 = vld [vmem:[%s15072_s2 + $0x8] sm:$0xff] }
 0x6b7   : > { %v5239_v56 = vadd.f32 %v5238_v23, %v5214_v52  ;;  %v2291_v52 = vld [vmem:[%s15071_s1 + $0x18] sm:$0xff]  ;;  %v2304_v23 = vld [vmem:[%s15071_s1 + $0x80] sm:$0xff] }
 0x6b9   : > { %v5240_v51 = vadd.f32 %v5239_v56, %v5215_v6 }
 0x6bb   : > { %v5241_v46 = vadd.f32 %v5240_v51, %v5216_v18  ;;  %v2301_v51 = vld [vmem:[%s15071_s1 + $0x68] sm:$0xff] }
 0x6bd   : > { %v5242_v48 = vadd.f32 %v5241_v46, %v5217_v44  ;;  %v2290_v44 = vld [vmem:[%s15071_s1 + $0x10] sm:$0xff]  ;;  %v2303_v46 = vld [vmem:[%s15071_s1 + $0x78] sm:$0xff] }
 0x6bf   : > { %v5243_v47 = vadd.f32 %v5242_v48, %v5218_v19  ;;  %v2317_v19 = vld [vmem:[%s15072_s2 + $0x18] sm:$0xff]  ;;  %v2330_v48 = vld [vmem:[%s15072_s2 + $0x80] sm:$0xff] }
 0x6c1   : > { %5244 = vadd.xlane.f32.xlu1 %v5243_v47  ;;  %v2314_v47 = vld [vmem:[%s15072_s2] sm:$0xff] }
 0x6d2   : > { %5404 = vperm.xlu1 %11214, %v5346_v35  }
 0x6d6   : > { %5394 = vperm.xlu1 %11214, %v5344_v55  }
 0x6da   : > { %6653 = vperm.xlu1 %11214, %v5358_v38  }
 0x74e   : > { %v5245_v63 = vpop.xlane.xlu1 %5244 }
 0x74f   : > { %v5246_v29 = vrot.slane %v5245_v63, 4 }
 0x751   : > { %v5247_v43 = vadd.f32 %v5246_v29, %v5245_v63  ;;  %v2327_v29 = vld [vmem:[%s15072_s2 + $0x68] sm:$0xff] }
 0x753   : > { %v5248_v1 = vrot.slane %v5247_v43, 2 }
 0x755   : > { %v5249_v40 = vadd.f32 %v5248_v1, %v5247_v43  ;;  %v2316_v43 = vld [vmem:[%s15072_s2 + $0x10] sm:$0xff]  ;;  %v2329_v1 = vld [vmem:[%s15072_s2 + $0x78] sm:$0xff] }
 0x757   : > { %v5250_v27 = vrot.slane %v5249_v40, 1 }
 0x759   : > { %v5251_v61 = vadd.f32 %v5250_v27, %v5249_v40 }
 0x75b   : > { %11147 = vpush %v5251_v61 }
 0x78c   : > { %s11148_s7 = spop %11147 }
 0x78d   : > { %s5255_s10 = smul.f32 0.00048076923, %s11148_s7 }
 0x78f   : > { %s5256_s11 = sadd.f32 1e-05, %s5255_s10 }
 0x791   : > { %v5257_v4 = vstv %s5256_s11  ;;  %s15133_s11 = sld [smem:[#allocation16_spill]] }
 0x792   : > { %11324 = vrsqrt.f32 %v5257_v4 }
 0x79c   : > { %v11325_v0 = vpop.eup %11324 }
 0x79d   : > { %11149 = vpush %v11325_v0 }
 0x7ce   : > { %s11150_s0 = spop %11149 }
 0x7cf   : > { %v13534_v36 = vstv %s11150_s0  ;;  %s15134_s0 = sld [smem:[#allocation14_spill]] }
 0x7d0   : > { %v5262_v6 = vmul.f32 %v13534_v36, %v13353_v58  ;;  %v5275_v56 = vmul.f32 %v13534_v36, %v13439_v17  ;;  %v5264_v59 = vmul.f32 %v13534_v36, %v13365_v3  ;;  %v5277_v18 = vmul.f32 %v13534_v36, %v13453_v45 }
 0x7d1   : > { %v5261_v58 = vmul.f32 %v13534_v36, %v13349_v14  ;;  %v5274_v17 = vmul.f32 %v13534_v36, %v13432_v22  ;;  %v5263_v3 = vmul.f32 %v13534_v36, %v13357_v54  ;;  %v5276_v45 = vmul.f32 %v13534_v36, %v13446_v41 }
 0x7d2   : > { %v5288_v35 = vmul.f32 %v5262_v6, %v2289_v62  ;;  %v5301_v55 = vmul.f32 %v5275_v56, %v2302_v33  ;;  %v5290_v38 = vmul.f32 %v5264_v59, %v2291_v52  ;;  %v5303_v63 = vmul.f32 %v5277_v18, %v2304_v23  ;;  %v2292_v23 = vld [vmem:[%s15071_s1 + $0x20] sm:$0xff]  ;;  %v2305_v6 = vld [vmem:[%s15071_s1 + $0x88] sm:$0xff]  ;;  %v2306_v18 = vld [vmem:[%s15071_s1 + $0x90] sm:$0xff] }
 0x7d3   : > { %v5287_v40 = vmul.f32 %v5261_v58, %v2288_v50  ;;  %v5300_v14 = vmul.f32 %v5274_v17, %v2301_v51  ;;  %v5289_v27 = vmul.f32 %v5263_v3, %v2290_v44  ;;  %v5302_v22 = vmul.f32 %v5276_v45, %v2303_v46  ;;  %v2318_v46 = vld [vmem:[%s15072_s2 + $0x20] sm:$0xff]  ;;  %v2294_v58 = vld [vmem:[%s15071_s1 + $0x30] sm:$0xff]  ;;  %v2319_v17 = vld [vmem:[%s15072_s2 + $0x28] sm:$0xff] }
 0x7d4   : > { %v5314_v61 = vadd.f32 %v5288_v35, %v2315_v21  ;;  %v5327_v54 = vadd.f32 %v5301_v55, %v2328_v2  ;;  %v5316_v4 = vadd.f32 %v5290_v38, %v2317_v19  ;;  %v5329_v41 = vadd.f32 %v5303_v63, %v2330_v48  ;;  %v2293_v2 = vld [vmem:[%s15071_s1 + $0x28] sm:$0xff]  ;;  %v2332_v3 = vld [vmem:[%s15072_s2 + $0x90] sm:$0xff]  ;;  %v2307_v45 = vld [vmem:[%s15071_s1 + $0x98] sm:$0xff] }
 0x7d5   : > { %v5313_v0 = vadd.f32 %v5287_v40, %v2314_v47  ;;  %v5326_v62 = vadd.f32 %v5300_v14, %v2327_v29  ;;  %v5315_v33 = vadd.f32 %v5289_v27, %v2316_v43  ;;  %v5328_v52 = vadd.f32 %v5302_v22, %v2329_v1  ;;  %v2331_v19 = vld [vmem:[%s15072_s2 + $0x88] sm:$0xff]  ;;  %v2320_v29 = vld [vmem:[%s15072_s2 + $0x30] sm:$0xff]  ;;  %v2295_v1 = vld [vmem:[%s15071_s1 + $0x38] sm:$0xff] }
 0x7d6   : > { %v10565_v56 = vpack.c.bf16 %v5327_v54, %v5314_v61  ;;  %v13568_v50 = vpack.c.bf16 %v5329_v41, %v5316_v4  ;;  %v5265_v59 = vmul.f32 %v13534_v36, %v13369_v24  ;;  %v5278_v21 = vmul.f32 %v13534_v36, %v13460_v53  ;;  %v2333_v27 = vld [vmem:[%s15072_s2 + $0x98] sm:$0xff]  ;;  %v2308_v61 = vld [vmem:[%s15071_s1 + $0xa0] sm:$0xff] }
 0x7d7   : > { %v10567_v51 = vpack.c.bf16 %v5326_v62, %v5313_v0  ;;  %v10569_v44 = vpack.c.bf16 %v5328_v52, %v5315_v33  ;;  %v5266_v48 = vmul.f32 %v13534_v36, %v13377_v42  ;;  %v5279_v47 = vmul.f32 %v13534_v36, %v13467_v60  ;;  %v2321_v33 = vld [vmem:[%s15072_s2 + $0x38] sm:$0xff] }
 0x7d8   : > { %10566 = vmatprep.subr.bf16.mxu1 %v10565_v56  ;;  %10594 = vmatprep.subr.bf16.mxu0 %v13568_v50  ;;  %v5291_v24 = vmul.f32 %v5265_v59, %v2292_v23  ;;  %v5304_v53 = vmul.f32 %v5278_v21, %v2305_v6  ;;  %v5267_v35 = vmul.f32 %v13534_v36, %v13383_v37  ;;  %v2334_v6 = vld [vmem:[%s15072_s2 + $0xa0] sm:$0xff] }
 0x7d9   : > { %10568 = vmatpush1.bf16.msra.mxu1 %v10567_v51  ;;  %10596 = vmatpush1.bf16.msra.mxu0 %v10569_v44  ;;  %v5292_v42 = vmul.f32 %v5266_v48, %v2293_v2  ;;  %v5305_v60 = vmul.f32 %v5279_v47, %v2306_v18  ;;  %v5280_v55 = vmul.f32 %v13534_v36, %v13474_v39  ;;  %v2322_v18 = vld [vmem:[%s15072_s2 + $0x40] sm:$0xff]  ;;  %v2310_v48 = vld [vmem:[%s15071_s1 + $0xb0] sm:$0xff] }
 0x7da   : > { %10570 = vmatprep.subr.bf16.mxu1 %v10569_v44  ;;  %v5317_v38 = vadd.f32 %v5291_v24, %v2318_v46  ;;  %v5330_v63 = vadd.f32 %v5304_v53, %v2331_v19  ;;  %v5293_v43 = vmul.f32 %v5267_v35, %v2294_v58  ;;  %v5268_v40 = vmul.f32 %v13534_v36, %v13390_v34  ;;  %v2335_v46 = vld [vmem:[%s15072_s2 + $0xa8] sm:$0xff] }
 0x7db   : > { %v5318_v14 = vadd.f32 %v5292_v42, %v2319_v17  ;;  %v5331_v37 = vadd.f32 %v5305_v60, %v2332_v3  ;;  %v5306_v22 = vmul.f32 %v5280_v55, %v2307_v45  ;;  %v5281_v39 = vmul.f32 %v13534_v36, %v13481_v57  ;;  %v2296_v57 = vld [vmem:[%s15071_s1 + $0x40] sm:$0xff]  ;;  %v2297_v19 = vld [vmem:[%s15071_s1 + $0x48] sm:$0xff]  ;;  %v2336_v17 = vld [vmem:[%s15072_s2 + $0xb0] sm:$0xff] }
 0x7dc   : > { %v10577_v54 = vpack.c.bf16 %v5330_v63, %v5317_v38  ;;  %v13601_v41 = vadd.f32 %v5293_v43, %v2320_v29  ;;  %v5294_v0 = vmul.f32 %v5268_v40, %v2295_v1  ;;  %v5269_v34 = vmul.f32 %v13534_v36, %v13397_v15  ;;  %v2323_v53 = vld [vmem:[%s15072_s2 + $0x48] sm:$0xff]  ;;  %v13668_v42 = vld [vmem:[%s15076_s18] sm:$0xff]  ;;  %v2298_v38 = vld [vmem:[%s15071_s1 + $0x50] sm:$0xff] }
 0x7dd   : > { %10572 = vmatpush1.bf16.msra.mxu1 %v10565_v56  ;;  %v13599_v4 = vpack.c.bf16 %v5331_v37, %v5318_v14  ;;  %v13606_v62 = vadd.f32 %v5306_v22, %v2333_v27  ;;  %v5307_v52 = vmul.f32 %v5281_v39, %v2308_v61  ;;  %v5282_v23 = vmul.f32 %v13534_v36, %v13488_v7  ;;  %v2309_v56 = vld [vmem:[%s15071_s1 + $0xa8] sm:$0xff]  ;;  %v2311_v29 = vld [vmem:[%s15071_s1 + $0xb8] sm:$0xff]  ;;  %v2324_v1 = vld [vmem:[%s15072_s2 + $0x50] sm:$0xff] }
 0x7de   : > { %10598 = vmatprep.subr.bf16.mxu0 %v10577_v54  ;;  %10574 = vmatprep.subr.bf16.mxu1 %v13568_v50  ;;  %v13616_v15 = vadd.f32 %v5294_v0, %v2321_v33  ;;  %v5295_v59 = vmul.f32 %v5269_v34, %v2296_v57  ;;  %v5270_v21 = vmul.f32 %v13534_v36, %v13404_v28  ;;  %v13677_v60 = vld [vmem:[%s15076_s18 + $0x8] sm:$0xff]  ;;  %v2299_v14 = vld [vmem:[%s15071_s1 + $0x58] sm:$0xff]  ;;  %v2312_v22 = vld [vmem:[%s15071_s1 + $0xc0] sm:$0xff] }
 0x7df   : > { %15073 = vst [vmem:[#allocation86_spill] sm:$0xff] %v13606_v62  ;;  %10600 = vmatpush1.bf16.msra.mxu0 %v13568_v50  ;;  %v13622_v7 = vpack.c.bf16 %v13606_v62, %v13601_v41  ;;  %v13624_v2 = vadd.f32 %v5307_v52, %v2334_v6  ;;  %v5308_v51 = vmul.f32 %v5282_v23, %v2309_v56  ;;  %v2337_v27 = vld [vmem:[%s15072_s2 + $0xb8] sm:$0xff]  ;;  %v2300_v34 = vld [vmem:[%s15071_s1 + $0x60] sm:$0xff]  ;;  %v2313_v52 = vld [vmem:[%s15071_s1 + $0xc8] sm:$0xff] }
 0x7e0   : > { %10602 = vmatprep.subr.bf16.mxu0 %v13599_v4  ;;  %v13634_v28 = vadd.f32 %v5295_v59, %v2322_v18  ;;  %v5296_v24 = vmul.f32 %v5270_v21, %v2297_v19  ;;  %v5271_v55 = vmul.f32 %v13534_v36, %v13411_v20  ;;  %v5284_v63 = vmul.f32 %v13534_v36, %v13502_v32  ;;  %v13696_v20 = vld [vmem:[%s15076_s18 + $0x10] sm:$0xff]  ;;  %v2326_v56 = vld [vmem:[%s15072_s2 + $0x60] sm:$0xff]  ;;  %v2339_v59 = vld [vmem:[%s15072_s2 + $0xc8] sm:$0xff] }
 0x7e1   : > { %10576 = vmatpush1.bf16.msra.mxu1 %v10569_v44  ;;  %15074 = vst [vmem:[#allocation87_spill] sm:$0xff] %v13624_v2  ;;  %v5283_v44 = vmul.f32 %v13534_v36, %v13495_v11  ;;  %v13639_v47 = vpack.c.bf16 %v13624_v2, %v13616_v15  ;;  %v13641_v58 = vadd.f32 %v5308_v51, %v2335_v46  ;;  %v15086_v46 = vld [vmem:[#allocation57_spill] sm:$0xff]  ;;  %v15087_v19 = vld [vmem:[#allocation59_spill] sm:$0xff] }
 0x7e2   : > { %10578 = vmatprep.subr.bf16.mxu1 %v10577_v54  ;;  %v13652_v3 = vadd.f32 %v5296_v24, %v2323_v53  ;;  %v5297_v43 = vmul.f32 %v5271_v55, %v2298_v38  ;;  %v5272_v32 = vmul.f32 %v13534_v36, %v13418_v25  ;;  %v5310_v40 = vmul.f32 %v5284_v63, %v2311_v29  ;;  %v5342_v25 = vld [vmem:[%s15076_s18 + $0x18] sm:$0xff]  ;;  %v15093_v53 = vld [vmem:[#allocation64_spill] sm:$0xff] }
 0x7e3   : > { %10604 = vmatpush1.bf16.msra.mxu0 %v10577_v54  ;;  %15075 = vst [vmem:[#allocation84_spill] sm:$0xff] %v13641_v58  ;;  %v5309_v11 = vmul.f32 %v5283_v44, %v2310_v48  ;;  %v5285_v37 = vmul.f32 %v13534_v36, %v13509_v5  ;;  %v5273_v39 = vmul.f32 %v13534_v36, %v13425_v31  ;;  %v2338_v31 = vld [vmem:[%s15072_s2 + $0xc0] sm:$0xff]  ;;  %v15089_v48 = vld [vmem:[#allocation60_spill] sm:$0xff]  ;;  %v15091_v24 = vld [vmem:[#allocation62_spill] sm:$0xff] }
 0x7e4   : > { %10606 = vmatprep.subr.bf16.mxu0 %v13622_v7  ;;  %15077 = vst [vmem:[#allocation85_spill] sm:$0xff] %v13652_v3  ;;  %v13717_v5 = vadd.f32 %v5297_v43, %v2324_v1  ;;  %v5298_v61 = vmul.f32 %v5272_v32, %v2299_v14  ;;  %v5286_v33 = vmul.f32 %v13534_v36, %v13516_v10  ;;  %v15085_v44 = vld [vmem:[#allocation55_spill] sm:$0xff] }
 0x7e5   : > { %10580 = vmatpush1.bf16.msra.mxu1 %v13568_v50  ;;  %v13650_v50 = vpack.c.bf16 %v13641_v58, %v13634_v28  ;;  %v13654_v45 = vadd.f32 %v5309_v11, %v2336_v17  ;;  %v5311_v0 = vmul.f32 %v5285_v37, %v2312_v22  ;;  %v5299_v23 = vmul.f32 %v5273_v39, %v2300_v34  ;;  %v15092_v11 = vld [vmem:[#allocation63_spill] sm:$0xff] }
 0x7e6   : > { %10582 = vmatprep.subr.bf16.mxu1 %v13599_v4  ;;  %15079 = vst [vmem:[#allocation65_spill] sm:$0xff] %v13717_v5  ;;  %v5312_v6 = vmul.f32 %v5286_v33, %v2313_v52  ;;  %v5347_v17 = vld [vmem:[%s15088_s22] sm:$0xff] }
 0x7e7   : > { %10608 = vmatpush1.bf16.msra.mxu0 %v13599_v4  ;;  %15078 = vst [vmem:[#allocation66_spill] sm:$0xff] %v13654_v45  ;;  %v13662_v35 = vpack.c.bf16 %v13654_v45, %v13652_v3  ;;  %v13744_v36 = vadd.f32 %v5311_v0, %v2338_v31 }
 0x7e8   : > { %10610 = vmatprep.subr.bf16.mxu0 %v13639_v47  ;;  %v13756_v18 = vadd.f32 %v5312_v6, %v2339_v59 }
 0x7e9   : > { %10584 = vmatpush1.bf16.msra.mxu1 %v10577_v54  ;;  %15082 = vst [vmem:[#allocation80_spill] sm:$0xff] %v13744_v36 }
 0x7ea   : > { %10586 = vmatprep.subr.bf16.mxu1 %v13622_v7  ;;  %15084 = vst [vmem:[#allocation105_spill] sm:$0xff] %v13756_v18 }
 0x7eb   : > { %10612 = vmatpush1.bf16.msra.mxu0 %v13622_v7 }
 0x7ec   : > { %10614 = vmatprep.subr.bf16.mxu0 %v13650_v50 }
 0x7ed   : > { %10588 = vmatpush1.bf16.msra.mxu1 %v13599_v4 }
 0x7ee   : > { %10590 = vmatprep.subr.bf16.mxu1 %v13639_v47 }
 0x7ef   : > { %10616 = vmatpush1.bf16.msra.mxu0 %v13639_v47 }
 0x7f0   : > { %10618 = vmatprep.subr.bf16.mxu0 %v13662_v35 }
 0x7f1   : > { %10592 = vmatpush1.bf16.msra.mxu1 %v13622_v7 }
 0x7f2   : > { %10622 = vmatprep.subr.bf16.mxu1 %v13599_v4 }
 0x7f3   : > { %10620 = vmatpush1.bf16.msra.mxu0 %v13650_v50 }
 0x7f4   : > { %10650 = vmatprep.subr.bf16.mxu0 %v13622_v7  ;;  %8518 = vmatmul.mubr.msk.f32.vlgmr.msra.gmra.mrb[116].mxu1 %vm2360_vm4, %v13668_v42 }
 0x7f5   : > { %10624 = vmatpush1.bf16.msra.mxu1 %v10577_v54  ;;  %5489 = vmatprep.mubr.f32.mxu1 %v14947_v13  ;;  %v13724_v54 = vadd.f32 %v5310_v40, %v2337_v27 }
 0x7f6   : > { %8522 = vmatmul.mubr.msk.f32.vlgmr.msra.gmra.mrb[116].mxu0 %vm2360_vm4, %v13668_v42  ;;  %10626 = vmatprep.subr.bf16.mxu1 %v13622_v7 }
 0x7f7   : > { %10652 = vmatpush3.bf16.msra.mxu0 %v13622_v7  ;;  %5578 = vmatprep.mubr.f32.mxu0 %v14947_v13  ;;  %15080 = vst [vmem:[#allocation82_spill] sm:$0xff] %v13724_v54  ;;  %v10641_v10 = vpack.c.bf16 %v13724_v54, %v13717_v5 }
 0x7f8   : > { %10654 = vmatprep.subr.bf16.mxu0 %v13639_v47  ;;  %8519 = vmatmul.mubr.msk.f32.gmra.mrb[118].mxu1 %vm2360_vm4, %v13677_v60 }
 0x7f9   : > { %10628 = vmatpush1.bf16.msra.mxu1 %v13599_v4  ;;  %5495 = vmatprep.mubr.f32.mxu1 %v14947_v13  ;;  %v2325_v4 = vld [vmem:[%s15072_s2 + $0x58] sm:$0xff] }
 0x7fa   : > { %8523 = vmatmul.mubr.msk.f32.gmra.mrb[118].mxu0 %vm2360_vm4, %v13677_v60  ;;  %10630 = vmatprep.subr.bf16.mxu1 %v13639_v47  ;;  %v13737_v57 = vadd.f32 %v5298_v61, %v2325_v4 }
 0x7fb   : > { %10656 = vmatpush3.bf16.msra.mxu0 %v13639_v47  ;;  %5584 = vmatprep.mubr.f32.mxu0 %v14947_v13 }
 0x7fc   : > { %10658 = vmatprep.subr.bf16.mxu0 %v13650_v50  ;;  %8520 = vmatmul.mubr.msk.f32.gmra.mrb[120].mxu1 %vm2360_vm4, %v13696_v20  ;;  %15081 = vst [vmem:[#allocation83_spill] sm:$0xff] %v13737_v57  ;;  %v10645_v21 = vpack.c.bf16 %v13744_v36, %v13737_v57 }
 0x7fd   : > { %10632 = vmatpush1.bf16.msra.mxu1 %v13622_v7  ;;  %5501 = vmatprep.mubr.f32.mxu1 %v14947_v13  ;;  %v13754_v7 = vadd.f32 %v5299_v23, %v2326_v56 }
 0x7fe   : > { %8524 = vmatmul.mubr.msk.f32.gmra.mrb[120].mxu0 %vm2360_vm4, %v13696_v20  ;;  %10634 = vmatprep.subr.bf16.mxu1 %v13650_v50 }
 0x7ff   : > { %10660 = vmatpush3.bf16.msra.mxu0 %v13650_v50  ;;  %5590 = vmatprep.mubr.f32.mxu0 %v14947_v13  ;;  %15083 = vst [vmem:[#allocation81_spill] sm:$0xff] %v13754_v7  ;;  %v10673_v51 = vpack.c.bf16 %v13756_v18, %v13754_v7 }
 0x800   : > { %10662 = vmatprep.subr.bf16.mxu0 %v13662_v35  ;;  %8521 = vmatmul.mubr.msk.f32.gmra.mrb[122].mxu1 %vm2360_vm4, %v5342_v25 }
 0x801   : > { %10636 = vmatpush1.bf16.msra.mxu1 %v13639_v47  ;;  %5661 = vmatprep.mubr.f32.mxu1 %v14947_v13  ;;  %v15090_v47 = vld [vmem:[#allocation61_spill] sm:$0xff] }
 0x802   : > { %8525 = vmatmul.mubr.msk.f32.gmra.mrb[122].mxu0 %vm2360_vm4, %v5342_v25  ;;  %10638 = vmatprep.subr.bf16.mxu1 %v13662_v35 }
 0x803   : > { %10664 = vmatpush3.bf16.msra.mxu0 %v13662_v35  ;;  %9487 = vmatprep.mubr.msk.f32.mxu0 %vm2360_vm4, %v13668_v42 }
 0x804   : > { %10666 = vmatprep.subr.bf16.mxu0 %v10641_v10 }
 0x805   : > { %10640 = vmatpush1.bf16.msra.mxu1 %v13650_v50  ;;  %v13795_v50 = vpop.permute.xlu0 %5399 }
 0x806   : > { %10642 = vmatprep.subr.bf16.mxu1 %v10641_v10 }
 0x807   : > { %10668 = vmatpush3.bf16.msra.mxu0 %v10641_v10 }
 0x808   : > { %10670 = vmatprep.subr.bf16.mxu0 %v10645_v21 }
 0x809   : > { %10644 = vmatpush1.bf16.msra.mxu1 %v13662_v35  ;;  %v13797_v38 = vpop.permute.xlu0 %5389 }
 0x80a   : > { %10646 = vmatprep.subr.bf16.mxu1 %v10645_v21 }
 0x80b   : > { %10672 = vmatpush3.bf16.msra.mxu0 %v10645_v21 }
 0x80c   : > { %10674 = vmatprep.subr.bf16.mxu0 %v10673_v51 }
 0x80d   : > { %10648 = vmatpush1.bf16.msra.mxu1 %v10641_v10 }
 0x80f   : > { %10676 = vmatpush3.bf16.msra.mxu0 %v10673_v51 }
 0x810   : > { %8526 = vmatmul.mubr.msk.f32.vlgmr.msra.gmra.mrb[124].mxu1 %vm2360_vm4, %v13668_v42  ;;  %10706 = vmatprep.subr.bf16.mxu0 %v15085_v44 }
 0x811   : > { %5667 = vmatprep.mubr.f32.mxu1 %v14947_v13 }
 0x812   : > { %9488 = vmatmul.mubr.msk.f32.vlgmr.msra.gmra.mrb[124].mxu0 %vm2360_vm4, %v13677_v60 }
 0x813   : > { %9490 = vmatprep.mubr.msk.f32.mxu0 %vm2360_vm4, %v13696_v20  ;;  %10708 = vmatpush3.bf16.msra.mxu0 %v15085_v44 }
 0x814   : > { %8527 = vmatmul.mubr.msk.f32.gmra.mrb[126].mxu1 %vm2360_vm4, %v13677_v60  ;;  %10710 = vmatprep.subr.bf16.mxu0 %v15086_v46 }
 0x815   : > { %5673 = vmatprep.mubr.f32.mxu1 %v14947_v13 }
 0x816   : > { %9491 = vmatmul.mubr.msk.f32.gmra.mrb[126].mxu0 %vm2360_vm4, %v5342_v25 }
 0x817   : > { %10712 = vmatpush3.bf16.msra.mxu0 %v15086_v46 }
 0x818   : > { %8528 = vmatmul.mubr.msk.f32.gmra.mrb[128].mxu1 %vm2360_vm4, %v13696_v20  ;;  %10714 = vmatprep.subr.bf16.mxu0 %v15087_v19 }
 0x819   : > { %5679 = vmatprep.mubr.f32.mxu1 %v14947_v13 }
 0x81b   : > { %10716 = vmatpush3.bf16.msra.mxu0 %v15087_v19 }
 0x81c   : > { %8529 = vmatmul.mubr.msk.f32.gmra.mrb[130].mxu1 %vm2360_vm4, %v5342_v25  ;;  %10718 = vmatprep.subr.bf16.mxu0 %v15089_v48  ;;  %v13804_v25 = vpop.permute.xlu1 %5404 }
 0x81d   : > { %9521 = vmatprep.mubr.msk.f32.mxu1 %vm2360_vm4, %v5347_v17 }
 0x81f   : > { %10720 = vmatpush3.bf16.msra.mxu0 %v15089_v48 }
 0x820   : > { %10722 = vmatprep.subr.bf16.mxu0 %v15090_v47 }
 0x823   : > { %10724 = vmatpush3.bf16.msra.mxu0 %v15090_v47 }
 0x824   : > { %10726 = vmatprep.subr.bf16.mxu0 %v15091_v24 }
 0x827   : > { %10728 = vmatpush3.bf16.msra.mxu0 %v15091_v24 }
 0x828   : > { %10730 = vmatprep.subr.bf16.mxu0 %v15092_v11 }
 0x82b   : > { %10732 = vmatpush3.bf16.msra.mxu0 %v15092_v11 }
 0x82c   : > { %10734 = vmatprep.subr.bf16.mxu0 %v15093_v53 }
 0x82f   : > { %10736 = vmatpush3.bf16.msra.mxu0 %v15093_v53 }
 0x830   : > { %10770 = vmatprep.subr.bf16.mxu0 %v15085_v44 }
 0x8c7   : > { %v5485_v35 = vpop.f32.mrb[116].mxu1 }
 0x8c8   : > { %v5487_v42 = vpop.f32.mrb[117].mxu1  ;;  %v5486_v29 = vadd.f32 %v5485_v35, %v13797_v38 }
 0x8c9   : > { %v5574_v60 = vpop.f32.mrb[116].mxu0  ;;  %v5488_v43 = vadd.f32 %v5487_v42, %v13797_v38  ;;  %v13812_v42 = vpop.permute.xlu1 %5394 }
 0x8ca   : > { %v5576_v55 = vpop.f32.mrb[117].mxu0  ;;  %v5575_v1 = vadd.f32 %v5574_v60, %v13797_v38  ;;  %11326 = vtanh.f32 %v5486_v29 }
 0x8cb   : > { %v5491_v63 = vpop.f32.mrb[118].mxu1  ;;  %v5577_v14 = vadd.f32 %v5576_v55, %v13797_v38  ;;  %11328 = vtanh.f32 %v5488_v43 }
 0x8cc   : > { %v5493_v20 = vpop.f32.mrb[119].mxu1  ;;  %11330 = vtanh.f32 %v5575_v1  ;;  %v5492_v29 = vadd.f32 %v5491_v63, %v13812_v42 }
 0x8cd   : > { %v5580_v32 = vpop.f32.mrb[118].mxu0  ;;  %11332 = vtanh.f32 %v5577_v14  ;;  %v5494_v1 = vadd.f32 %v5493_v20, %v13812_v42 }
 0x8ce   : > { %v5582_v40 = vpop.f32.mrb[119].mxu0 }
 0x8cf   : > { %v5497_v37 = vpop.f32.mrb[120].mxu1 }
 0x8d0   : > { %v5498_v27 = vadd.f32 %v5497_v37, %v13795_v50  ;;  %v5499_v22 = vpop.f32.mrb[121].mxu1 }
 0x8d1   : > { %v5586_v61 = vpop.f32.mrb[120].mxu0  ;;  %v5500_v39 = vadd.f32 %v5499_v22, %v13795_v50 }
 0x8d2   : > { %v5785_v4 = vmul.f32 0.5, %v5498_v27  ;;  %v5587_v0 = vadd.f32 %v5586_v61, %v13795_v50  ;;  %v5588_v34 = vpop.f32.mrb[121].mxu0  ;;  %v5581_v27 = vadd.f32 %v5580_v32, %v13812_v42  ;;  %v5583_v61 = vadd.f32 %v5582_v40, %v13812_v42 }
 0x8d3   : > { %v5786_v33 = vmul.f32 0.5, %v5500_v39  ;;  %v5589_v31 = vadd.f32 %v5588_v34, %v13795_v50  ;;  %v5503_v52 = vpop.f32.mrb[122].mxu1 }
 0x8d4   : > { %11334 = vtanh.f32 %v5785_v4  ;;  %v5787_v23 = vmul.f32 0.5, %v5587_v0  ;;  %v5504_v10 = vadd.f32 %v5503_v52, %v13804_v25  ;;  %v5505_v6 = vpop.f32.mrb[123].mxu1  ;;  %v11327_v37 = vpop.eup %11326 }
 0x8d5   : > { %11336 = vtanh.f32 %v5786_v33  ;;  %v5788_v56 = vmul.f32 0.5, %v5589_v31  ;;  %v5592_v59 = vpop.f32.mrb[122].mxu0  ;;  %v5506_v21 = vadd.f32 %v5505_v6, %v13804_v25  ;;  %v11329_v22 = vpop.eup %11328 }
 0x8d6   : > { %11338 = vtanh.f32 %v5787_v23  ;;  %v5792_v51 = vmul.f32 0.5, %v5504_v10  ;;  %v5593_v17 = vadd.f32 %v5592_v59, %v13804_v25  ;;  %v5594_v35 = vpop.f32.mrb[123].mxu0  ;;  %v11331_v39 = vpop.eup %11330 }
 0x8d7   : > { %11340 = vtanh.f32 %v5788_v56  ;;  %v5793_v60 = vmul.f32 0.5, %v5506_v21  ;;  %v5595_v55 = vadd.f32 %v5594_v35, %v13804_v25  ;;  %v11333_v4 = vpop.eup %11332 }
 0x8d8   : > { %11342 = vtanh.f32 %v5792_v51  ;;  %v5794_v43 = vmul.f32 0.5, %v5593_v17 }
 0x8d9   : > { %11344 = vtanh.f32 %v5793_v60  ;;  %v5795_v14 = vmul.f32 0.5, %v5595_v55 }
 0x8da   : > { %11346 = vtanh.f32 %v5794_v43 }
 0x8db   : > { %11348 = vtanh.f32 %v5795_v14 }
 0x8dc   : > { %11350 = vtanh.f32 %v5492_v29 }
 0x8dd   : > { %11352 = vtanh.f32 %v5494_v1 }
 0x8de   : > { %v11335_v0 = vpop.eup %11334  ;;  %11354 = vtanh.f32 %v5581_v27 }
 0x8df   : > { %v11337_v63 = vpop.eup %11336  ;;  %11356 = vtanh.f32 %v5583_v61  ;;  %v5813_v34 = vadd.f32 1.0, %v11335_v0 }
 0x8e0   : > { %v11339_v20 = vpop.eup %11338  ;;  %v5814_v33 = vadd.f32 1.0, %v11337_v63 }
 0x8e1   : > { %v11341_v31 = vpop.eup %11340  ;;  %v5827_v52 = vmul.f32 0.5, %v5813_v34  ;;  %v5815_v23 = vadd.f32 1.0, %v11339_v20 }
 0x8e2   : > { %v11343_v32 = vpop.eup %11342  ;;  %v5828_v10 = vmul.f32 0.5, %v5814_v33  ;;  %v5816_v6 = vadd.f32 1.0, %v11341_v31 }
 0x8e3   : > { %v11345_v56 = vpop.eup %11344  ;;  %v13819_v40 = vmul.f32 %v11327_v37, %v5827_v52  ;;  %v5829_v59 = vmul.f32 0.5, %v5815_v23  ;;  %v5820_v21 = vadd.f32 1.0, %v11343_v32  ;;  %v5663_v51 = vpop.f32.mrb[124].mxu1 }
 0x8e4   : > { %v11347_v17 = vpop.eup %11346  ;;  %v13821_v35 = vmul.f32 %v11329_v22, %v5828_v10  ;;  %v5830_v60 = vmul.f32 0.5, %v5816_v6  ;;  %v5821_v55 = vadd.f32 1.0, %v11345_v56  ;;  %v5665_v29 = vpop.f32.mrb[125].mxu1  ;;  %v5664_v10 = vadd.f32 %v5663_v51, %v13797_v38 }
 0x8e5   : > { %v11349_v43 = vpop.eup %11348  ;;  %v13823_v1 = vmul.f32 %v11331_v39, %v5829_v59  ;;  %v5834_v14 = vmul.f32 0.5, %v5820_v21  ;;  %v5822_v27 = vadd.f32 1.0, %v11347_v17  ;;  %v9489_v61 = vpop.f32.mrb[124].mxu0  ;;  %9559 = vmatprep.mubr.f32.mxu0 %v13819_v40 }
 0x8e6   : > { %v11351_v0 = vpop.eup %11350  ;;  %v13826_v37 = vmul.f32 %v11333_v4, %v5830_v60  ;;  %v5835_v63 = vmul.f32 0.5, %v5821_v55  ;;  %v5823_v34 = vadd.f32 1.0, %v11349_v43  ;;  %v5752_v20 = vpop.f32.mrb[125].mxu0  ;;  %v5666_v4 = vadd.f32 %v5665_v29, %v13797_v38 }
 0x8e7   : > { %v11353_v33 = vpop.eup %11352  ;;  %v13828_v22 = vmul.f32 %v11351_v0, %v5834_v14  ;;  %v5836_v31 = vmul.f32 0.5, %v5822_v27  ;;  %v5669_v52 = vpop.f32.mrb[126].mxu1  ;;  %11358 = vtanh.f32 %v5664_v10 }
 0x8e8   : > { %v11355_v23 = vpop.eup %11354  ;;  %v13830_v32 = vmul.f32 %v11353_v33, %v5835_v63  ;;  %v5837_v39 = vmul.f32 0.5, %v5823_v34  ;;  %v5671_v6 = vpop.f32.mrb[127].mxu1  ;;  %11360 = vtanh.f32 %v5666_v4 }
 0x8e9   : > { %v11357_v56 = vpop.eup %11356  ;;  %v13833_v59 = vmul.f32 %v11355_v23, %v5836_v31  ;;  %v9492_v21 = vpop.f32.mrb[126].mxu0  ;;  %9560 = vmatmul.mubr.f32.vlgmr.msra.gmra.mrb[128].mxu0 %v13828_v22  ;;  %v13839_v17 = vpack.c.bf16 %v13828_v22, %v13819_v40  ;;  %v5758_v31 = vadd.f32 %v9489_v61, %v13812_v42 }
 0x8ea   : > { %v13841_v60 = vmul.f32 %v11357_v56, %v5837_v39  ;;  %v5768_v55 = vadd.f32 %v9492_v21, %v13804_v25  ;;  %v5762_v43 = vpop.f32.mrb[127].mxu0  ;;  %10772 = vmatpush3.bf16.msra.mxu0 %v15085_v44  ;;  %9562 = vmatprep.mubr.f32.mxu0 %v13821_v35  ;;  %v13848_v51 = vpack.c.bf16 %v13830_v32, %v13821_v35 }
 0x8eb   : > { %v5763_v29 = vadd.f32 %v5762_v43, %v13795_v50  ;;  %v5675_v14 = vpop.f32.mrb[128].mxu1  ;;  %10678 = vmatprep.subr.bf16.mxu1 %v13839_v17  ;;  %10774 = vmatprep.subr.bf16.mxu0 %v15086_v46  ;;  %v5753_v39 = vadd.f32 %v5752_v20, %v13797_v38  ;;  %v5672_v43 = vadd.f32 %v5671_v6, %v13812_v42 }
 0x8ec   : > { %v5798_v27 = vmul.f32 0.5, %v5768_v55  ;;  %v5676_v0 = vadd.f32 %v5675_v14, %v13795_v50  ;;  %v5677_v63 = vpop.f32.mrb[129].mxu1  ;;  %10680 = vmatpush3.bf16.msra.mxu1 %v13839_v17  ;;  %v13877_v55 = vpack.c.bf16 %v13841_v60, %v13826_v37 }
 0x8ed   : > { %v5791_v34 = vmul.f32 0.5, %v5763_v29  ;;  %v5678_v33 = vadd.f32 %v5677_v63, %v13795_v50  ;;  %10682 = vmatprep.subr.bf16.mxu1 %v13848_v51  ;;  %9563 = vmatmul.mubr.f32.gmra.mrb[130].mxu0 %v13830_v32  ;;  %v13865_v50 = vpack.c.bf16 %v13833_v59, %v13823_v1 }
 0x8ee   : > { %11362 = vtanh.f32 %v5798_v27  ;;  %v5789_v23 = vmul.f32 0.5, %v5676_v0  ;;  %10776 = vmatpush3.bf16.msra.mxu0 %v15086_v46  ;;  %9565 = vmatprep.mubr.f32.mxu0 %v13823_v1 }
 0x8ef   : > { %11364 = vtanh.f32 %v5791_v34  ;;  %v5790_v10 = vmul.f32 0.5, %v5678_v33  ;;  %v5681_v56 = vpop.f32.mrb[130].mxu1  ;;  %10778 = vmatprep.subr.bf16.mxu0 %v15087_v19 }
 0x8f0   : > { %11366 = vtanh.f32 %v5789_v23  ;;  %v5682_v61 = vadd.f32 %v5681_v56, %v13804_v25  ;;  %v5683_v4 = vpop.f32.mrb[131].mxu1  ;;  %10684 = vmatpush3.bf16.msra.mxu1 %v13848_v51 }
 0x8f1   : > { %11368 = vtanh.f32 %v5790_v10  ;;  %v5684_v21 = vadd.f32 %v5683_v4, %v13804_v25  ;;  %10686 = vmatprep.subr.bf16.mxu1 %v13865_v50  ;;  %9566 = vmatmul.mubr.f32.gmra.mrb[132].mxu0 %v13833_v59  ;;  %v5670_v25 = vadd.f32 %v5669_v52, %v13812_v42  ;;  %v11359_v29 = vpop.eup %11358 }
 0x8f2   : > { %11370 = vtanh.f32 %v5758_v31  ;;  %v5796_v38 = vmul.f32 0.5, %v5682_v61  ;;  %10780 = vmatpush3.bf16.msra.mxu0 %v15087_v19  ;;  %9568 = vmatprep.mubr.f32.mxu0 %v13826_v37  ;;  %v11361_v14 = vpop.eup %11360 }
 0x8f3   : > { %11372 = vtanh.f32 %v5753_v39  ;;  %v5797_v20 = vmul.f32 0.5, %v5684_v21  ;;  %10782 = vmatprep.subr.bf16.mxu0 %v15089_v48 }
 0x8f4   : > { %11374 = vtanh.f32 %v5796_v38  ;;  %10688 = vmatpush3.bf16.msra.mxu1 %v13865_v50 }
 0x8f5   : > { %11376 = vtanh.f32 %v5797_v20  ;;  %10690 = vmatprep.subr.bf16.mxu1 %v13877_v55  ;;  %9569 = vmatmul.mubr.f32.gmra.mrb[134].mxu0 %v13841_v60 }
 0x8f6   : > { %10784 = vmatpush3.bf16.msra.mxu0 %v15089_v48  ;;  %11378 = vtanh.f32 %v5670_v25  ;;  %v13993_v48 = vmul.f32 0.05, %v13830_v32 }
 0x8f7   : > { %10786 = vmatprep.subr.bf16.mxu0 %v15090_v47  ;;  %11380 = vtanh.f32 %v5672_v43 }
 0x8f8   : > { %v11363_v27 = vpop.eup %11362  ;;  %10692 = vmatpush3.bf16.msra.mxu1 %v13877_v55 }
 0x8f9   : > { %v11365_v52 = vpop.eup %11364  ;;  %v5826_v0 = vadd.f32 1.0, %v11363_v27 }
 0x8fa   : > { %v11367_v63 = vpop.eup %11366  ;;  %v5819_v42 = vadd.f32 1.0, %v11365_v52  ;;  %10788 = vmatpush3.bf16.msra.mxu0 %v15090_v47 }
 0x8fb   : > { %v11369_v6 = vpop.eup %11368  ;;  %v5840_v34 = vmul.f32 0.5, %v5826_v0  ;;  %v5817_v33 = vadd.f32 1.0, %v11367_v63  ;;  %10790 = vmatprep.subr.bf16.mxu0 %v15091_v24 }
 0x8fc   : > { %v11371_v31 = vpop.eup %11370  ;;  %v5833_v23 = vmul.f32 0.5, %v5819_v42  ;;  %v5818_v39 = vadd.f32 1.0, %v11369_v6 }
 0x8fd   : > { %v11373_v10 = vpop.eup %11372  ;;  %v13889_v56 = vmul.f32 %v11371_v31, %v5840_v34  ;;  %v5831_v61 = vmul.f32 0.5, %v5817_v33 }
 0x8fe   : > { %v11375_v4 = vpop.eup %11374  ;;  %v13891_v21 = vmul.f32 %v11373_v10, %v5833_v23  ;;  %v5832_v38 = vmul.f32 0.5, %v5818_v39  ;;  %10792 = vmatpush3.bf16.msra.mxu0 %v15091_v24  ;;  %v5348_v23 = vld [vmem:[%s15088_s22 + $0x8] sm:$0xff]  ;;  %v15094_v39 = vld [vmem:[#allocation71_spill] sm:$0xff]  ;;  %v5349_v10 = vld [vmem:[%s15088_s22 + $0x10] sm:$0xff] }
 0x8ff   : > { %v11377_v20 = vpop.eup %11376  ;;  %v13894_v25 = vmul.f32 %v11359_v29, %v5831_v61  ;;  %v5824_v43 = vadd.f32 1.0, %v11375_v4  ;;  %10794 = vmatprep.subr.bf16.mxu0 %v15092_v11  ;;  %v5350_v61 = vld [vmem:[%s15088_s22 + $0x18] sm:$0xff]  ;;  %v15095_v4 = vld [vmem:[#allocation73_spill] sm:$0xff] }
 0x900   : > { %v13897_v27 = vmul.f32 %v11361_v14, %v5832_v38  ;;  %v5825_v52 = vadd.f32 1.0, %v11377_v20  ;;  %v11379_v63 = vpop.eup %11378  ;;  %v13925_v31 = vpack.c.bf16 %v13889_v56, %v13891_v21  ;;  %v15096_v38 = vld [vmem:[#allocation74_spill] sm:$0xff]  ;;  %v15097_v20 = vld [vmem:[#allocation75_spill] sm:$0xff] }
 0x901   : > { %v5838_v0 = vmul.f32 0.5, %v5824_v43  ;;  %9571 = vmatprep.mubr.f32.mxu0 %v13894_v25  ;;  %v11381_v6 = vpop.eup %11380  ;;  %v15098_v43 = vld [vmem:[#allocation76_spill] sm:$0xff] }
 0x902   : > { %v5839_v42 = vmul.f32 0.5, %v5825_v52  ;;  %10796 = vmatpush3.bf16.msra.mxu0 %v15092_v11  ;;  %v15099_v52 = vld [vmem:[#allocation77_spill] sm:$0xff] }
 0x903   : > { %v13901_v34 = vmul.f32 %v11379_v63, %v5838_v0  ;;  %10798 = vmatprep.subr.bf16.mxu0 %v15093_v53  ;;  %v15100_v0 = vld [vmem:[#allocation78_spill] sm:$0xff]  ;;  %v15101_v63 = vld [vmem:[#allocation79_spill] sm:$0xff] }
 0x904   : > { %v13904_v29 = vmul.f32 %v11381_v6, %v5839_v42  ;;  %v13985_v6 = vmul.f32 0.05, %v13828_v22 }
 0x905   : > { %9572 = vmatmul.mubr.f32.gmra.mrb[136].mxu0 %v13901_v34  ;;  %v13909_v14 = vpack.c.bf16 %v13901_v34, %v13894_v25 }
 0x906   : > { %10800 = vmatpush3.bf16.msra.mxu0 %v15093_v53  ;;  %9574 = vmatprep.mubr.f32.mxu0 %v13897_v27  ;;  %v13915_v33 = vpack.c.bf16 %v13904_v29, %v13897_v27 }
 0x907   : > { %10834 = vmatprep.subr.bf16.mxu0 %v13848_v51  ;;  %10694 = vmatprep.subr.bf16.mxu1 %v13909_v14 }
 0x908   : > { %10696 = vmatpush3.bf16.msra.mxu1 %v13909_v14 }
 0x909   : > { %10698 = vmatprep.subr.bf16.mxu1 %v13915_v33  ;;  %9575 = vmatmul.mubr.f32.gmra.mrb[138].mxu0 %v13904_v29 }
 0x90a   : > { %9577 = vmatprep.mubr.f32.mxu0 %v13891_v21 }
 0x90c   : > { %10700 = vmatpush3.bf16.msra.mxu1 %v13915_v33 }
 0x90d   : > { %10702 = vmatprep.subr.bf16.mxu1 %v13925_v31  ;;  %9578 = vmatmul.mubr.f32.gmra.mrb[140].mxu0 %v13889_v56 }
 0x910   : > { %10704 = vmatpush3.bf16.msra.mxu1 %v13925_v31 }
 0x911   : > { %10738 = vmatprep.subr.bf16.mxu1 %v15094_v39 }
 0x913   : > { %9522 = vmatmul.mubr.msk.f32.vlgmr.msra.gmra.mrb[132].mxu1 %vm2360_vm4, %v5348_v23 }
 0x914   : > { %10740 = vmatpush3.bf16.msra.mxu1 %v15094_v39  ;;  %9524 = vmatprep.mubr.msk.f32.mxu1 %vm2360_vm4, %v5349_v10 }
 0x915   : > { %10742 = vmatprep.subr.bf16.mxu1 %v15095_v4 }
 0x917   : > { %9525 = vmatmul.mubr.msk.f32.gmra.mrb[134].mxu1 %vm2360_vm4, %v5350_v61  ;;  %v13988_v61 = vmul.f32 0.05, %v13819_v40 }
 0x918   : > { %10744 = vmatpush3.bf16.msra.mxu1 %v15095_v4  ;;  %9612 = vmatprep.mubr.f32.mxu1 %v13819_v40 }
 0x919   : > { %10746 = vmatprep.subr.bf16.mxu1 %v15096_v38 }
 0x91c   : > { %10748 = vmatpush3.bf16.msra.mxu1 %v15096_v38 }
 0x91d   : > { %10750 = vmatprep.subr.bf16.mxu1 %v15097_v20 }
 0x920   : > { %10752 = vmatpush3.bf16.msra.mxu1 %v15097_v20 }
 0x921   : > { %10754 = vmatprep.subr.bf16.mxu1 %v15098_v43 }
 0x924   : > { %10756 = vmatpush3.bf16.msra.mxu1 %v15098_v43 }
 0x925   : > { %10758 = vmatprep.subr.bf16.mxu1 %v15099_v52 }
 0x928   : > { %10760 = vmatpush3.bf16.msra.mxu1 %v15099_v52 }
 0x929   : > { %10762 = vmatprep.subr.bf16.mxu1 %v15100_v0 }
 0x92c   : > { %10764 = vmatpush3.bf16.msra.mxu1 %v15100_v0 }
 0x92d   : > { %10766 = vmatprep.subr.bf16.mxu1 %v15101_v63 }
 0x930   : > { %10768 = vmatpush3.bf16.msra.mxu1 %v15101_v63 }
 0x931   : > { %10802 = vmatprep.subr.bf16.mxu1 %v15094_v39 }
 0x933   : > { %9613 = vmatmul.mubr.f32.vlgmr.msra.gmra.mrb[136].mxu1 %v13828_v22  ;;  %v13996_v22 = vmul.f32 0.05, %v13821_v35 }
 0x934   : > { %9615 = vmatprep.mubr.f32.mxu1 %v13821_v35  ;;  %10804 = vmatpush3.bf16.msra.mxu1 %v15094_v39 }
 0x935   : > { %10806 = vmatprep.subr.bf16.mxu1 %v15095_v4 }
 0x937   : > { %9616 = vmatmul.mubr.f32.gmra.mrb[138].mxu1 %v13830_v32 }
 0x938   : > { %9618 = vmatprep.mubr.f32.mxu1 %v13823_v1  ;;  %10808 = vmatpush3.bf16.msra.mxu1 %v15095_v4 }
 0x939   : > { %10810 = vmatprep.subr.bf16.mxu1 %v15096_v38 }
 0x93b   : > { %9619 = vmatmul.mubr.f32.gmra.mrb[140].mxu1 %v13833_v59 }
 0x93c   : > { %9621 = vmatprep.mubr.f32.mxu1 %v13826_v37  ;;  %10812 = vmatpush3.bf16.msra.mxu1 %v15096_v38 }
 0x93d   : > { %10814 = vmatprep.subr.bf16.mxu1 %v15097_v20 }
 0x93f   : > { %9622 = vmatmul.mubr.f32.gmra.mrb[142].mxu1 %v13841_v60 }
 0x940   : > { %9624 = vmatprep.mubr.f32.mxu1 %v13894_v25  ;;  %10816 = vmatpush3.bf16.msra.mxu1 %v15097_v20 }
 0x941   : > { %10818 = vmatprep.subr.bf16.mxu1 %v15098_v43 }
 0x943   : > { %9625 = vmatmul.mubr.f32.gmra.mrb[144].mxu1 %v13901_v34 }
 0x944   : > { %9627 = vmatprep.mubr.f32.mxu1 %v13897_v27  ;;  %10820 = vmatpush3.bf16.msra.mxu1 %v15098_v43 }
 0x945   : > { %10822 = vmatprep.subr.bf16.mxu1 %v15099_v52 }
 0x947   : > { %9628 = vmatmul.mubr.f32.gmra.mrb[146].mxu1 %v13904_v29 }
 0x948   : > { %9630 = vmatprep.mubr.f32.mxu1 %v13891_v21  ;;  %10824 = vmatpush3.bf16.msra.mxu1 %v15099_v52 }
 0x949   : > { %10826 = vmatprep.subr.bf16.mxu1 %v15100_v0 }
 0x94b   : > { %9631 = vmatmul.mubr.f32.gmra.mrb[148].mxu1 %v13889_v56 }
 0x94c   : > { %10828 = vmatpush3.bf16.msra.mxu1 %v15100_v0 }
 0x94d   : > { %10830 = vmatprep.subr.bf16.mxu1 %v15101_v63 }
 0x950   : > { %10832 = vmatpush3.bf16.msra.mxu1 %v15101_v63  ;;  %v14005_v63 = vmul.f32 0.05, %v13823_v1 }
 0x951   : > { %10858 = vmatprep.subr.bf16.mxu1 %v13877_v55 }
 0x9bc   : > { %v9561_v42 = vpop.f32.mrb[128].mxu0 }
 0x9bd   : > { %v6130_v23 = vmul.f32 0.95, %v9561_v42  ;;  %v6060_v10 = vpop.f32.mrb[129].mxu0 }
 0x9be   : > { %v6129_v53 = vmul.f32 0.95, %v6060_v10 }
 0x9bf   : > { %v6144_v11 = vadd.f32 %v6130_v23, %v13985_v6  ;;  %v14002_v23 = vmul.f32 0.05, %v13833_v59  ;;  %v14014_v59 = vmul.f32 0.05, %v13841_v60 }
 0x9c0   : > { %v6143_v24 = vadd.f32 %v6129_v53, %v13988_v61  ;;  %v9564_v47 = vpop.f32.mrb[130].mxu0 }
 0x9c1   : > { %v6132_v19 = vmul.f32 0.95, %v9564_v47  ;;  %v6070_v46 = vpop.f32.mrb[131].mxu0 }
 0x9c2   : > { %v10839_v44 = vpack.c.bf16 %v6144_v11, %v6143_v24  ;;  %v6131_v42 = vmul.f32 0.95, %v6070_v46  ;;  %9665 = vmatprep.mubr.f32.mxu0 %v6143_v24 }
 0x9c3   : > { %v6146_v40 = vadd.f32 %v6132_v19, %v13993_v48  ;;  %9666 = vmatmul.mubr.f32.vlgmr.msra.gmra.mrb[142].mxu0 %v6144_v11 }
 0x9c4   : > { %v6145_v10 = vadd.f32 %v6131_v42, %v13996_v22  ;;  %10836 = vmatpush1.bf16.msra.mxu0 %v13839_v17  ;;  %v9567_v53 = vpop.f32.mrb[132].mxu0 }
 0x9c5   : > { %v6134_v32 = vmul.f32 0.95, %v9567_v53  ;;  %v6080_v47 = vpop.f32.mrb[133].mxu0 }
 0x9c6   : > { %v6133_v35 = vmul.f32 0.95, %v6080_v47  ;;  %9668 = vmatprep.mubr.f32.mxu0 %v6145_v10  ;;  %v10837_v46 = vpack.c.bf16 %v6146_v40, %v6145_v10  ;;  %v14019_v10 = vmul.f32 0.05, %v13826_v37  ;;  %v14029_v37 = vmul.f32 0.05, %v13894_v25 }
 0x9c7   : > { %v14008_v24 = vadd.f32 %v6134_v32, %v14002_v23  ;;  %9669 = vmatmul.mubr.f32.gmra.mrb[144].mxu0 %v6146_v40 }
 0x9c8   : > { %v14011_v19 = vadd.f32 %v6133_v35, %v14005_v63  ;;  %v9570_v11 = vpop.f32.mrb[134].mxu0  ;;  %10838 = vmatprep.subr.bf16.mxu0 %v10837_v46 }
 0x9c9   : > { %v6136_v42 = vmul.f32 0.95, %v9570_v11  ;;  %v6090_v53 = vpop.f32.mrb[135].mxu0  ;;  %10840 = vmatpush1.bf16.msra.mxu0 %v10839_v44  ;;  %v14026_v44 = vmul.f32 0.05, %v13901_v34 }
 0x9ca   : > { %v6135_v32 = vmul.f32 0.95, %v6090_v53  ;;  %9671 = vmatprep.mubr.f32.mxu0 %v14011_v19 }
 0x9cb   : > { %v6150_v40 = vadd.f32 %v6136_v42, %v14014_v59  ;;  %9672 = vmatmul.mubr.f32.gmra.mrb[146].mxu0 %v14008_v24 }
 0x9cc   : > { %v6149_v47 = vadd.f32 %v6135_v32, %v14019_v10 }
 0x9ce   : > { %9674 = vmatprep.mubr.f32.mxu0 %v6149_v47  ;;  %v10861_v60 = vpack.c.bf16 %v6150_v40, %v6149_v47  ;;  %v14038_v47 = vmul.f32 0.05, %v13904_v29 }
 0x9cf   : > { %9675 = vmatmul.mubr.f32.gmra.mrb[148].mxu0 %v6150_v40 }
 0x9d8   : > { %v9573_v35 = vpop.f32.mrb[136].mxu0 }
 0x9d9   : > { %v6138_v46 = vmul.f32 0.95, %v9573_v35  ;;  %v6100_v11 = vpop.f32.mrb[137].mxu0  ;;  %v14043_v35 = vmul.f32 0.05, %v13897_v27 }
 0x9da   : > { %v6137_v53 = vmul.f32 0.95, %v6100_v11  ;;  %v14057_v27 = vmul.f32 0.05, %v13891_v21 }
 0x9db   : > { %v14032_v1 = vadd.f32 %v6138_v46, %v14026_v44 }
 0x9dc   : > { %v14035_v42 = vadd.f32 %v6137_v53, %v14029_v37  ;;  %v9576_v32 = vpop.f32.mrb[138].mxu0  ;;  %v14054_v53 = vmul.f32 0.05, %v13889_v56 }
 0x9dd   : > { %v6140_v40 = vmul.f32 0.95, %v9576_v32  ;;  %v6110_v0 = vpop.f32.mrb[139].mxu0 }
 0x9de   : > { %v6139_v25 = vmul.f32 0.95, %v6110_v0  ;;  %9677 = vmatprep.mubr.f32.mxu0 %v14035_v42 }
 0x9df   : > { %v14047_v46 = vadd.f32 %v6140_v40, %v14038_v47  ;;  %9678 = vmatmul.mubr.f32.gmra.mrb[150].mxu0 %v14032_v1 }
 0x9e0   : > { %v14051_v11 = vadd.f32 %v6139_v25, %v14043_v35  ;;  %v9579_v29 = vpop.f32.mrb[140].mxu0 }
 0x9e1   : > { %v6142_v32 = vmul.f32 0.95, %v9579_v29  ;;  %v6120_v34 = vpop.f32.mrb[141].mxu0 }
 0x9e2   : > { %v6141_v0 = vmul.f32 0.95, %v6120_v34  ;;  %9680 = vmatprep.mubr.f32.mxu0 %v14051_v11 }
 0x9e3   : > { %v6156_v52 = vadd.f32 %v6142_v32, %v14054_v53  ;;  %9681 = vmatmul.mubr.f32.gmra.mrb[152].mxu0 %v14047_v46 }
 0x9e4   : > { %v6155_v25 = vadd.f32 %v6141_v0, %v14057_v27 }
 0x9e6   : > { %9683 = vmatprep.mubr.f32.mxu0 %v6155_v25  ;;  %v14065_v56 = vpop.f32.mrb[132].mxu1  ;;  %v14067_v29 = vpack.c.bf16 %v6156_v52, %v6155_v25 }
 0x9e7   : > { %15102 = vst [vmem:[#allocation106_spill] sm:$0xff] %v14065_v56  ;;  %9684 = vmatmul.mubr.f32.gmra.mrb[154].mxu0 %v6156_v52  ;;  %v14069_v21 = vpop.f32.mrb[133].mxu1 }
 0x9e8   : > { %15103 = vst [vmem:[#allocation103_spill] sm:$0xff] %v14069_v21  ;;  %6726 = vmatprep.mubr.f32.mxu0 %v14947_v13  ;;  %v15106_v21 = vpack.c.bf16 %v14008_v24, %v14011_v19 }
 0x9ea   : > { %v14072_v34 = vpop.f32.mrb[134].mxu1 }
 0x9eb   : > { %15104 = vst [vmem:[#allocation104_spill] sm:$0xff] %v14072_v34  ;;  %v14074_v43 = vpop.f32.mrb[135].mxu1 }
 0x9ec   : > { %15105 = vst [vmem:[#allocation101_spill] sm:$0xff] %v14074_v43 }
 0xa06   : > { %v9614_v40 = vpop.f32.mrb[136].mxu1 }
 0xa07   : > { %v6293_v32 = vmul.f32 0.95, %v9614_v40  ;;  %v6223_v20 = vpop.f32.mrb[137].mxu1 }
 0xa08   : > { %v6292_v38 = vmul.f32 0.95, %v6223_v20 }
 0xa09   : > { %v14077_v0 = vadd.f32 %v6293_v32, %v13985_v6 }
 0xa0a   : > { %v14080_v56 = vadd.f32 %v6292_v38, %v13988_v61  ;;  %v9617_v25 = vpop.f32.mrb[138].mxu1 }
 0xa0b   : > { %v6295_v52 = vmul.f32 0.95, %v9617_v25  ;;  %v6233_v4 = vpop.f32.mrb[139].mxu1 }
 0xa0c   : > { %v6294_v39 = vmul.f32 0.95, %v6233_v4  ;;  %9718 = vmatprep.mubr.f32.mxu1 %v14080_v56 }
 0xa0d   : > { %v14086_v34 = vadd.f32 %v6295_v52, %v13993_v48  ;;  %9719 = vmatmul.mubr.f32.vlgmr.msra.gmra.mrb[150].mxu1 %v14077_v0 }
 0xa0e   : > { %v14090_v20 = vadd.f32 %v6294_v39, %v13996_v22  ;;  %10860 = vmatpush1.bf16.msra.mxu1 %v13865_v50  ;;  %v9620_v38 = vpop.f32.mrb[140].mxu1 }
 0xa0f   : > { %v6297_v40 = vmul.f32 0.95, %v9620_v38  ;;  %10862 = vmatprep.subr.bf16.mxu1 %v10861_v60  ;;  %v6243_v32 = vpop.f32.mrb[141].mxu1 }
 0xa10   : > { %v6296_v25 = vmul.f32 0.95, %v6243_v32  ;;  %9721 = vmatprep.mubr.f32.mxu1 %v14090_v20 }
 0xa11   : > { %v14097_v52 = vadd.f32 %v6297_v40, %v14002_v23  ;;  %9722 = vmatmul.mubr.f32.gmra.mrb[152].mxu1 %v14086_v34 }
 0xa12   : > { %v14101_v39 = vadd.f32 %v6296_v25, %v14005_v63  ;;  %10864 = vmatpush1.bf16.msra.mxu1 %v15106_v21  ;;  %v9623_v60 = vpop.f32.mrb[142].mxu1 }
 0xa13   : > { %v6299_v38 = vmul.f32 0.95, %v9623_v60  ;;  %v6253_v32 = vpop.f32.mrb[143].mxu1 }
 0xa14   : > { %v6298_v18 = vmul.f32 0.95, %v6253_v32  ;;  %9724 = vmatprep.mubr.f32.mxu1 %v14101_v39 }
 0xa15   : > { %v14110_v40 = vadd.f32 %v6299_v38, %v14014_v59  ;;  %9725 = vmatmul.mubr.f32.gmra.mrb[154].mxu1 %v14097_v52 }
 0xa16   : > { %v14114_v25 = vadd.f32 %v6298_v18, %v14019_v10  ;;  %v9626_v4 = vpop.f32.mrb[144].mxu1 }
 0xa17   : > { %v6301_v24 = vmul.f32 0.95, %v9626_v4  ;;  %v6263_v19 = vpop.f32.mrb[145].mxu1 }
 0xa18   : > { %v6300_v21 = vmul.f32 0.95, %v6263_v19  ;;  %9727 = vmatprep.mubr.f32.mxu1 %v14114_v25 }
 0xa19   : > { %v14120_v32 = vadd.f32 %v6301_v24, %v14026_v44  ;;  %9728 = vmatmul.mubr.f32.gmra.mrb[156].mxu1 %v14110_v40 }
 0xa1a   : > { %v14124_v38 = vadd.f32 %v6300_v21, %v14029_v37  ;;  %v9629_v43 = vpop.f32.mrb[146].mxu1 }
 0xa1b   : > { %v6303_v18 = vmul.f32 0.95, %v9629_v43  ;;  %v6273_v36 = vpop.f32.mrb[147].mxu1 }
 0xa1c   : > { %v6302_v19 = vmul.f32 0.95, %v6273_v36  ;;  %9730 = vmatprep.mubr.f32.mxu1 %v14124_v38 }
 0xa1d   : > { %v14130_v54 = vadd.f32 %v6303_v18, %v14038_v47  ;;  %9731 = vmatmul.mubr.f32.gmra.mrb[158].mxu1 %v14120_v32 }
 0xa1e   : > { %v14134_v24 = vadd.f32 %v6302_v19, %v14043_v35  ;;  %v9632_v60 = vpop.f32.mrb[148].mxu1 }
 0xa1f   : > { %v6305_v21 = vmul.f32 0.95, %v9632_v60  ;;  %v6283_v45 = vpop.f32.mrb[149].mxu1 }
 0xa20   : > { %v6304_v58 = vmul.f32 0.95, %v6283_v45  ;;  %9733 = vmatprep.mubr.f32.mxu1 %v14134_v24 }
 0xa21   : > { %v6319_v36 = vadd.f32 %v6305_v21, %v14054_v53  ;;  %9734 = vmatmul.mubr.f32.gmra.mrb[160].mxu1 %v14130_v54 }
 0xa22   : > { %v6318_v18 = vadd.f32 %v6304_v58, %v14057_v27 }
 0xa24   : > { %9736 = vmatprep.mubr.f32.mxu1 %v6318_v18  ;;  %v14142_v4 = vpack.c.bf16 %v6319_v36, %v6318_v18 }
 0xa25   : > { %9737 = vmatmul.mubr.f32.gmra.mrb[162].mxu1 %v6319_v36 }
 0xa26   : > { %6803 = vmatprep.mubr.f32.mxu1 %v14947_v13 }
 0xa96   : > { %v9667_v60 = vpop.f32.mrb[142].mxu0 }
 0xa97   : > { %v6456_v19 = vmul.f32 0.95, %v9667_v60  ;;  %v6386_v45 = vpop.f32.mrb[143].mxu0 }
 0xa98   : > { %v6455_v8 = vmul.f32 0.95, %v6386_v45 }
 0xa99   : > { %v6470_v2 = vadd.f32 %v6456_v19, %v13985_v6 }
 0xa9a   : > { %v6469_v43 = vadd.f32 %v6455_v8, %v13988_v61  ;;  %v9670_v7 = vpop.f32.mrb[144].mxu0 }
 0xa9b   : > { %v6458_v21 = vmul.f32 0.95, %v9670_v7  ;;  %v6396_v62 = vpop.f32.mrb[145].mxu0 }
 0xa9c   : > { %v10843_v9 = vpack.c.bf16 %v6470_v2, %v6469_v43  ;;  %v6457_v57 = vmul.f32 0.95, %v6396_v62 }
 0xa9d   : > { %v6472_v58 = vadd.f32 %v6458_v21, %v13993_v48 }
 0xa9e   : > { %v6471_v18 = vadd.f32 %v6457_v57, %v13996_v22  ;;  %v9673_v36 = vpop.f32.mrb[146].mxu0 }
 0xa9f   : > { %v6460_v26 = vmul.f32 0.95, %v9673_v36  ;;  %v6406_v12 = vpop.f32.mrb[147].mxu0 }
 0xaa0   : > { %v6459_v5 = vmul.f32 0.95, %v6406_v12  ;;  %v10841_v60 = vpack.c.bf16 %v6472_v58, %v6471_v18  ;;  %v15107_v12 = vpack.c.bf16 %v14086_v34, %v14090_v20  ;;  %v15110_v34 = vpack.c.bf16 %v14097_v52, %v14101_v39 }
 0xaa1   : > { %v6474_v45 = vadd.f32 %v6460_v26, %v14002_v23 }
 0xaa2   : > { %v6473_v19 = vadd.f32 %v6459_v5, %v14005_v63  ;;  %v9676_v3 = vpop.f32.mrb[148].mxu0  ;;  %10842 = vmatprep.subr.bf16.mxu0 %v10841_v60 }
 0xaa3   : > { %v6462_v8 = vmul.f32 0.95, %v9676_v3  ;;  %v6416_v7 = vpop.f32.mrb[149].mxu0  ;;  %10844 = vmatpush1.bf16.msra.mxu0 %v10843_v9  ;;  %v15108_v3 = vpack.c.bf16 %v14077_v0, %v14080_v56  ;;  %v15109_v9 = vpack.c.bf16 %v14110_v40, %v14114_v25 }
 0xaa4   : > { %v10867_v2 = vpack.c.bf16 %v6474_v45, %v6473_v19  ;;  %v6461_v62 = vmul.f32 0.95, %v6416_v7  ;;  %10846 = vmatprep.subr.bf16.mxu0 %v13848_v51 }
 0xaa5   : > { %v6476_v57 = vadd.f32 %v6462_v8, %v14014_v59 }
 0xaa6   : > { %v6475_v43 = vadd.f32 %v6461_v62, %v14019_v10 }
 0xaa7   : > { %10848 = vmatpush1.bf16.msra.mxu0 %v13839_v17 }
 0xaa8   : > { %10850 = vmatprep.subr.bf16.mxu0 %v15107_v12  ;;  %v10865_v26 = vpack.c.bf16 %v6476_v57, %v6475_v43 }
 0xaaa   : > { %10866 = vmatprep.subr.bf16.mxu1 %v10865_v26 }
 0xaab   : > { %10852 = vmatpush1.bf16.msra.mxu0 %v15108_v3  ;;  %10868 = vmatpush1.bf16.msra.mxu1 %v10867_v2 }
 0xaac   : > { %10870 = vmatprep.subr.bf16.mxu1 %v13877_v55 }
 0xaaf   : > { %10872 = vmatpush1.bf16.msra.mxu1 %v13865_v50 }
 0xab0   : > { %10874 = vmatprep.subr.bf16.mxu1 %v15109_v9 }
 0xab2   : > { %v9679_v5 = vpop.f32.mrb[150].mxu0 }
 0xab3   : > { %v6464_v17 = vmul.f32 0.95, %v9679_v5  ;;  %v6426_v51 = vpop.f32.mrb[151].mxu0  ;;  %10876 = vmatpush1.bf16.msra.mxu1 %v15110_v34 }
 0xab4   : > { %v6463_v20 = vmul.f32 0.95, %v6426_v51 }
 0xab5   : > { %v14170_v56 = vadd.f32 %v6464_v17, %v14026_v44 }
 0xab6   : > { %v14173_v0 = vadd.f32 %v6463_v20, %v14029_v37  ;;  %v9682_v55 = vpop.f32.mrb[152].mxu0 }
 0xab7   : > { %v6466_v50 = vmul.f32 0.95, %v9682_v55  ;;  %v6436_v21 = vpop.f32.mrb[153].mxu0 }
 0xab8   : > { %v10891_v40 = vpack.c.bf16 %v14170_v56, %v14173_v0  ;;  %v6465_v25 = vmul.f32 0.95, %v6436_v21  ;;  %v15114_v56 = vpack.c.bf16 %v14130_v54, %v14134_v24  ;;  %v6649_v24 = vpop.permute.xlu0 %6648 }
 0xab9   : > { %v6480_v58 = vadd.f32 %v6466_v50, %v14038_v47 }
 0xaba   : > { %v6479_v18 = vadd.f32 %v6465_v25, %v14043_v35  ;;  %v9685_v52 = vpop.f32.mrb[154].mxu0 }
 0xabb   : > { %v6468_v39 = vmul.f32 0.95, %v9685_v52  ;;  %v6446_v36 = vpop.f32.mrb[155].mxu0 }
 0xabc   : > { %v6467_v60 = vmul.f32 0.95, %v6446_v36  ;;  %v10889_v45 = vpack.c.bf16 %v6480_v58, %v6479_v18  ;;  %v5355_v36 = vld [vmem:[%s15111_s23] sm:$0xff] }
 0xabd   : > { %v6482_v19 = vadd.f32 %v6468_v39, %v14054_v53 }
 0xabe   : > { %v6481_v8 = vadd.f32 %v6467_v60, %v14057_v27 }
 0xac0   : > { %v14181_v7 = vpack.c.bf16 %v6482_v19, %v6481_v8 }
 0xae0   : > { %v9720_v2 = vpop.f32.mrb[150].mxu1 }
 0xae1   : > { %v6619_v62 = vmul.f32 0.95, %v9720_v2  ;;  %v6549_v57 = vpop.f32.mrb[151].mxu1  ;;  %v5356_v2 = vld [vmem:[%s15111_s23 + $0x8] sm:$0xff] }
 0xae2   : > { %v6618_v43 = vmul.f32 0.95, %v6549_v57  ;;  %v15112_v57 = vpack.c.bf16 %v14047_v46, %v14051_v11 }
 0xae3   : > { %v6633_v12 = vadd.f32 %v6619_v62, %v13985_v6 }
 0xae4   : > { %v6632_v26 = vadd.f32 %v6618_v43, %v13988_v61  ;;  %v9723_v3 = vpop.f32.mrb[152].mxu1 }
 0xae5   : > { %v6621_v9 = vmul.f32 0.95, %v9723_v3  ;;  %v6559_v5 = vpop.f32.mrb[153].mxu1 }
 0xae6   : > { %v10855_v17 = vpack.c.bf16 %v6633_v12, %v6632_v26  ;;  %v6620_v51 = vmul.f32 0.95, %v6559_v5 }
 0xae7   : > { %v6635_v34 = vadd.f32 %v6621_v9, %v13993_v48  ;;  %v15113_v9 = vpack.c.bf16 %v14032_v1, %v14035_v42 }
 0xae8   : > { %v6634_v20 = vadd.f32 %v6620_v51, %v13996_v22  ;;  %v9726_v55 = vpop.f32.mrb[154].mxu1 }
 0xae9   : > { %v6623_v50 = vmul.f32 0.95, %v9726_v55  ;;  %v6569_v21 = vpop.f32.mrb[155].mxu1 }
 0xaea   : > { %v6622_v25 = vmul.f32 0.95, %v6569_v21  ;;  %v10853_v58 = vpack.c.bf16 %v6635_v34, %v6634_v20 }
 0xaeb   : > { %v6637_v18 = vadd.f32 %v6623_v50, %v14002_v23 }
 0xaec   : > { %v6636_v6 = vadd.f32 %v6622_v25, %v14005_v63  ;;  %v9729_v61 = vpop.f32.mrb[156].mxu1  ;;  %10854 = vmatprep.subr.bf16.mxu0 %v10853_v58  ;;  %v15116_v25 = vld [vmem:[#allocation85_spill] sm:$0xff] }
 0xaed   : > { %v6625_v52 = vmul.f32 0.95, %v9729_v61  ;;  %v6579_v39 = vpop.f32.mrb[157].mxu1  ;;  %10856 = vmatpush1.bf16.msra.mxu0 %v10855_v17 }
 0xaee   : > { %v10879_v60 = vpack.c.bf16 %v6637_v18, %v6636_v6  ;;  %v6624_v48 = vmul.f32 0.95, %v6579_v39  ;;  %10882 = vmatprep.subr.bf16.mxu0 %v13915_v33 }
 0xaef   : > { %v6639_v22 = vadd.f32 %v6625_v52, %v14014_v59 }
 0xaf0   : > { %v6638_v19 = vadd.f32 %v6624_v48, %v14019_v10  ;;  %v9732_v8 = vpop.f32.mrb[158].mxu1  ;;  %8538 = vmatmul.mubr.msk.f32.vlgmr.msra.gmra.mrb[156].mxu0 %vm4298_vm6, %v5355_v36 }
 0xaf1   : > { %v6627_v23 = vmul.f32 0.95, %v9732_v8  ;;  %v6589_v63 = vpop.f32.mrb[159].mxu1  ;;  %10884 = vmatpush1.bf16.msra.mxu0 %v13909_v14  ;;  %6732 = vmatprep.mubr.f32.mxu0 %v14947_v13 }
 0xaf2   : > { %v6626_v62 = vmul.f32 0.95, %v6589_v63  ;;  %10886 = vmatprep.subr.bf16.mxu0 %v15112_v57  ;;  %v10877_v43 = vpack.c.bf16 %v6639_v22, %v6638_v19  ;;  %v15119_v19 = vld [vmem:[#allocation97_spill] sm:$0xff] }
 0xaf3   : > { %v6641_v59 = vadd.f32 %v6627_v23, %v14026_v44  ;;  %v15120_v23 = vld [vmem:[#allocation83_spill] sm:$0xff] }
 0xaf4   : > { %v6640_v10 = vadd.f32 %v6626_v62, %v14029_v37  ;;  %v9735_v12 = vpop.f32.mrb[160].mxu1  ;;  %8539 = vmatmul.mubr.msk.f32.gmra.mrb[158].mxu0 %vm4298_vm6, %v5356_v2  ;;  %10878 = vmatprep.subr.bf16.mxu1 %v10877_v43 }
 0xaf5   : > { %v6629_v26 = vmul.f32 0.95, %v9735_v12  ;;  %v6599_v3 = vpop.f32.mrb[161].mxu1  ;;  %10880 = vmatpush1.bf16.msra.mxu1 %v10879_v60  ;;  %10888 = vmatpush1.bf16.msra.mxu0 %v15113_v9 }
 0xaf6   : > { %v10903_v5 = vpack.c.bf16 %v6641_v59, %v6640_v10  ;;  %v6628_v17 = vmul.f32 0.95, %v6599_v3  ;;  %10890 = vmatprep.subr.bf16.mxu0 %v10889_v45  ;;  %10906 = vmatprep.subr.bf16.mxu1 %v13925_v31 }
 0xaf7   : > { %v6643_v44 = vadd.f32 %v6629_v26, %v14038_v47  ;;  %6880 = vmatprep.mubr.f32.mxu0 %v14947_v13  ;;  %v15121_v26 = vld [vmem:[#allocation98_spill] sm:$0xff] }
 0xaf8   : > { %v6642_v37 = vadd.f32 %v6628_v17, %v14043_v35  ;;  %v9738_v46 = vpop.f32.mrb[162].mxu1  ;;  %8540 = vmatmul.mubr.msk.f32.vlgmr.msra.gmra.mrb[164].mxu1 %vm4298_vm6, %v5355_v36 }
 0xaf9   : > { %v6631_v11 = vmul.f32 0.95, %v9738_v46  ;;  %v6609_v51 = vpop.f32.mrb[163].mxu1  ;;  %10892 = vmatpush1.bf16.msra.mxu0 %v10891_v40  ;;  %10908 = vmatpush3.bf16.msra.mxu1 %v13925_v31 }
 0xafa   : > { %v6630_v1 = vmul.f32 0.95, %v6609_v51  ;;  %10894 = vmatprep.subr.bf16.mxu0 %v13915_v33  ;;  %10910 = vmatprep.subr.bf16.mxu1 %v14067_v29  ;;  %v10901_v42 = vpack.c.bf16 %v6643_v44, %v6642_v37  ;;  %v15123_v37 = vld [vmem:[#allocation81_spill] sm:$0xff] }
 0xafb   : > { %v6645_v47 = vadd.f32 %v6631_v11, %v14054_v53  ;;  %6809 = vmatprep.mubr.f32.mxu1 %v14947_v13  ;;  %v15115_v53 = vpack.c.bf16 %v14120_v32, %v14124_v38  ;;  %v15124_v11 = vld [vmem:[#allocation87_spill] sm:$0xff] }
 0xafc   : > { %v6644_v35 = vadd.f32 %v6630_v1, %v14057_v27  ;;  %8541 = vmatmul.mubr.msk.f32.gmra.mrb[166].mxu1 %vm4298_vm6, %v5356_v2 }
 0xafd   : > { %10896 = vmatpush1.bf16.msra.mxu0 %v13909_v14  ;;  %10912 = vmatpush3.bf16.msra.mxu1 %v14067_v29 }
 0xafe   : > { %10898 = vmatprep.subr.bf16.mxu0 %v15114_v56  ;;  %10914 = vmatprep.subr.bf16.mxu1 %v14181_v7  ;;  %v10925_v33 = vpack.c.bf16 %v6645_v47, %v6644_v35  ;;  %v15125_v47 = vld [vmem:[#allocation67_spill] sm:$0xff] }
 0xaff   : > { %9763 = vmatprep.mubr.msk.f32.mxu1 %vm4298_vm6, %v5355_v36 }
 0xb01   : > { %10900 = vmatpush1.bf16.msra.mxu0 %v15115_v53  ;;  %10916 = vmatpush3.bf16.msra.mxu1 %v14181_v7 }
 0xb02   : > { %10902 = vmatprep.subr.bf16.mxu0 %v10901_v42  ;;  %10918 = vmatprep.subr.bf16.mxu1 %v13925_v31 }
 0xb05   : > { %10904 = vmatpush1.bf16.msra.mxu0 %v10903_v5  ;;  %10920 = vmatpush3.bf16.msra.mxu1 %v13925_v31  ;;  %v15122_v5 = vld [vmem:[#allocation86_spill] sm:$0xff] }
 0xb06   : > { %10922 = vmatprep.subr.bf16.mxu1 %v14142_v4 }
 0xb08   : > { %8542 = vmatmul.mubr.msk.f32.vlgmr.msra.gmra.mrb[160].mxu0 %vm4298_vm6, %v5355_v36  ;;  %v15118_v36 = vld [vmem:[#allocation68_spill] sm:$0xff] }
 0xb09   : > { %10924 = vmatpush3.bf16.msra.mxu1 %v14142_v4  ;;  %6886 = vmatprep.mubr.f32.mxu0 %v14947_v13 }
 0xb0a   : > { %10926 = vmatprep.subr.bf16.mxu1 %v10925_v33 }
 0xb0c   : > { %8543 = vmatmul.mubr.msk.f32.gmra.mrb[162].mxu0 %vm4298_vm6, %v5356_v2 }
 0xb0d   : > { %10928 = vmatpush3.bf16.msra.mxu1 %v10925_v33  ;;  %v15126_v33 = vld [vmem:[#allocation84_spill] sm:$0xff] }
 0xb10   : > { %9764 = vmatmul.mubr.msk.f32.vlgmr.msra.gmra.mrb[168].mxu1 %vm4298_vm6, %v5356_v2  ;;  %v6654_v2 = vpop.permute.xlu1 %6653 }
 0xbc3   : > { %v6728_v54 = vpop.f32.mrb[156].mxu0 }
 0xbc4   : > { %v6730_v14 = vpop.f32.mrb[157].mxu0  ;;  %v6729_v40 = vadd.f32 %v6728_v54, %v6649_v24 }
 0xbc5   : > { %v6731_v45 = vadd.f32 %v6730_v14, %v6649_v24 }
 0xbc6   : > { %v14241_v13 = vadd.f32 %v6729_v40, %v13601_v41 }
 0xbc7   : > { %v6734_v27 = vpop.f32.mrb[158].mxu0  ;;  %v14244_v7 = vadd.f32 %v6731_v45, %v13616_v15 }
 0xbc8   : > { %v6736_v29 = vpop.f32.mrb[159].mxu0  ;;  %v6982_v55 = vmul.f32 %v13139_v30, %v14241_v13  ;;  %v6735_v62 = vadd.f32 %v6734_v27, %v6654_v2 }
 0xbc9   : > { %v6983_v50 = vmul.f32 %v13142_v49, %v14244_v7  ;;  %v6737_v10 = vadd.f32 %v6736_v29, %v6654_v2  ;;  %v15127_v29 = vld [vmem:[#allocation66_spill] sm:$0xff] }
 0xbca   : > { %v14271_v17 = vadd.f32 %v6735_v62, %v15122_v5 }
 0xbcb   : > { %v6805_v32 = vpop.f32.mrb[164].mxu1  ;;  %v6996_v6 = vadd.f32 %v6983_v50, %v6982_v55  ;;  %v14275_v51 = vadd.f32 %v6737_v10, %v15124_v11  ;;  %v15130_v55 = vld [vmem:[#allocation80_spill] sm:$0xff] }
 0xbcc   : > { %v6807_v31 = vpop.f32.mrb[165].mxu1  ;;  %v6806_v4 = vadd.f32 %v6805_v32, %v6649_v24  ;;  %v6989_v56 = vmul.f32 %v13139_v30, %v14271_v17 }
 0xbcd   : > { %v6808_v20 = vadd.f32 %v6807_v31, %v6649_v24  ;;  %v6990_v27 = vmul.f32 %v13142_v49, %v14275_v51 }
 0xbce   : > { %v14247_v34 = vadd.f32 %v6806_v4, %v13634_v28  ;;  %v15117_v28 = vld [vmem:[#allocation65_spill] sm:$0xff] }
 0xbcf   : > { %v6811_v38 = vpop.f32.mrb[166].mxu1  ;;  %v14256_v58 = vadd.f32 %v6808_v20, %v15116_v25 }
 0xbd0   : > { %v6813_v0 = vpop.f32.mrb[167].mxu1  ;;  %v6984_v21 = vmul.f32 %v13150_v16, %v14247_v34  ;;  %v6812_v44 = vadd.f32 %v6811_v38, %v6654_v2 }
 0xbd1   : > { %v6985_v60 = vmul.f32 %v15118_v36, %v14256_v58  ;;  %v6814_v1 = vadd.f32 %v6813_v0, %v6654_v2  ;;  %v15128_v0 = vld [vmem:[#allocation82_spill] sm:$0xff] }
 0xbd2   : > { %v6997_v39 = vadd.f32 %v6996_v6, %v6984_v21  ;;  %v14281_v53 = vadd.f32 %v6812_v44, %v15126_v33 }
 0xbd3   : > { %v14286_v32 = vadd.f32 %v6814_v1, %v15127_v29 }
 0xbd4   : > { %v6998_v57 = vadd.f32 %v6997_v39, %v6985_v60 }
 0xbd5   : > { %v6992_v20 = vmul.f32 %v15118_v36, %v14286_v32 }
 0xbdb   : > { %v6882_v41 = vpop.f32.mrb[160].mxu0 }
 0xbdc   : > { %v6883_v18 = vadd.f32 %v6882_v41, %v6649_v24  ;;  %v6884_v15 = vpop.f32.mrb[161].mxu0  ;;  %v15132_v41 = vld [vmem:[#allocation105_spill] sm:$0xff] }
 0xbdd   : > { %v6885_v61 = vadd.f32 %v6884_v15, %v6649_v24 }
 0xbde   : > { %v14259_v52 = vadd.f32 %v6883_v18, %v15117_v28 }
 0xbdf   : > { %v6888_v48 = vpop.f32.mrb[162].mxu0  ;;  %v14266_v63 = vadd.f32 %v6885_v61, %v15120_v23 }
 0xbe0   : > { %v6890_v22 = vpop.f32.mrb[163].mxu0  ;;  %v6986_v8 = vmul.f32 %v15119_v19, %v14259_v52  ;;  %v6889_v54 = vadd.f32 %v6888_v48, %v6654_v2  ;;  %v7142_v48 = vld [vmem:[%s15129_s26 + $0x10] sm:$0xff] }
 0xbe1   : > { %v6987_v3 = vmul.f32 %v15121_v26, %v14266_v63  ;;  %v6891_v31 = vadd.f32 %v6890_v22, %v6654_v2  ;;  %v7140_v22 = vld [vmem:[%s15129_s26] sm:$0xff] }
 0xbe2   : > { %v6999_v12 = vadd.f32 %v6998_v57, %v6986_v8  ;;  %v14291_v40 = vadd.f32 %v6889_v54, %v15128_v0  ;;  %v7154_v8 = vld [vmem:[%s15131_s28] sm:$0xff] }
 0xbe3   : > { %v9765_v43 = vpop.f32.mrb[168].mxu1  ;;  %v14296_v50 = vadd.f32 %v6891_v31, %v15130_v55 }
 0xbe4   : > { %v6959_v59 = vpop.f32.mrb[169].mxu1  ;;  %v7000_v42 = vadd.f32 %v6999_v12, %v6987_v3  ;;  %v6965_v45 = vadd.f32 %v9765_v43, %v6654_v2  ;;  %v6993_v25 = vmul.f32 %v15119_v19, %v14291_v40 }
 0xbe5   : > { %v6960_v9 = vadd.f32 %v6959_v59, %v6649_v24  ;;  %v6991_v24 = vmul.f32 %v13150_v16, %v14281_v53  ;;  %v6994_v6 = vmul.f32 %v15121_v26, %v14296_v50 }
 0xbe6   : > { %v14301_v18 = vadd.f32 %v6965_v45, %v15132_v41 }
 0xbe7   : > { %v6974_v46 = vadd.f32 %v6960_v9, %v15123_v37 }
 0xbe8   : > { %v6995_v28 = vmul.f32 %v15125_v47, %v14301_v18 }
 0xbe9   : > { %v6988_v35 = vmul.f32 %v15125_v47, %v6974_v46 }
 0xbeb   : > { %v7001_v14 = vadd.f32 %v7000_v42, %v6988_v35 }
 0xbed   : > { %v7002_v38 = vadd.f32 %v7001_v14, %v6989_v56 }
 0xbef   : > { %v7003_v4 = vadd.f32 %v7002_v38, %v6990_v27 }
 0xbf1   : > { %v7004_v21 = vadd.f32 %v7003_v4, %v6991_v24 }
 0xbf3   : > { %v7005_v15 = vadd.f32 %v7004_v21, %v6992_v20 }
 0xbf5   : > { %v7006_v61 = vadd.f32 %v7005_v15, %v6993_v25 }
 0xbf7   : > { %v7007_v39 = vadd.f32 %v7006_v61, %v6994_v6 }
 0xbf9   : > { %v7008_v60 = vadd.f32 %v7007_v39, %v6995_v28 }
 0xbfb   : > { %7009 = vadd.xlane.f32.xlu0 %v7008_v60 }
 0xc11   : > { %7172 = vperm.xlu0 %11213, %v7142_v48  }
 0xc15   : > { %7162 = vperm.xlu0 %11213, %v7140_v22  }
 0xc19   : > { %7735 = vperm.xlu0 %11213, %v7154_v8  }
 0xc88   : > { %v7010_v23 = vpop.xlane.xlu0 %7009 }
 0xc89   : > { %v7011_v2 = vrot.slane %v7010_v23, 4 }
 0xc8b   : > { %v7012_v62 = vadd.f32 %v7011_v2, %v7010_v23 }
 0xc8d   : > { %v7013_v57 = vrot.slane %v7012_v62, 2 }
 0xc8f   : > { %v7014_v43 = vadd.f32 %v7013_v57, %v7012_v62 }
 0xc91   : > { %v7015_v59 = vrot.slane %v7014_v43, 1 }
 0xc93   : > { %v7016_v10 = vadd.f32 %v7015_v59, %v7014_v43  ;;  %v7143_v43 = vld [vmem:[%s15129_s26 + $0x18] sm:$0xff]  ;;  %v7141_v59 = vld [vmem:[%s15129_s26 + $0x8] sm:$0xff] }
 0xc95   : > { %11151 = vpush %v7016_v10 }
 0xcc6   : > { %s11152_s7 = spop %11151 }
 0xcc7   : > { %s7020_s10 = smul.f32 0.00089285715, %s11152_s7  ;;  %s15135_s7 = sld [smem:[#allocation15_spill]] }
 0xcc9   : > { %v7021_v12 = vstv %s7020_s10 }
 0xcca   : > { %v14311_v3 = vsub.f32 %v14241_v13, %v7021_v12  ;;  %v14314_v9 = vsub.f32 %v14244_v7, %v7021_v12  ;;  %v14317_v5 = vsub.f32 %v14247_v34, %v7021_v12  ;;  %v14324_v11 = vsub.f32 %v14256_v58, %v7021_v12 }
 0xccb   : > { %v14327_v1 = vsub.f32 %v14259_v52, %v7021_v12  ;;  %v14334_v42 = vsub.f32 %v14266_v63, %v7021_v12  ;;  %v14338_v56 = vsub.f32 %v6974_v46, %v7021_v12  ;;  %v14344_v54 = vsub.f32 %v14271_v17, %v7021_v12 }
 0xccc   : > { %v7036_v44 = vmul.f32 %v14311_v3, %v14311_v3  ;;  %v7037_v37 = vmul.f32 %v14314_v9, %v14314_v9  ;;  %v7038_v13 = vmul.f32 %v14317_v5, %v14317_v5  ;;  %v7039_v35 = vmul.f32 %v14324_v11, %v14324_v11 }
 0xccd   : > { %v7040_v58 = vmul.f32 %v14327_v1, %v14327_v1  ;;  %v7041_v14 = vmul.f32 %v14334_v42, %v14334_v42  ;;  %v14350_v29 = vsub.f32 %v14275_v51, %v7021_v12  ;;  %v7042_v46 = vmul.f32 %v14338_v56, %v14338_v56 }
 0xcce   : > { %v7050_v7 = vmul.f32 %v13139_v30, %v7036_v44  ;;  %v7051_v34 = vmul.f32 %v13142_v49, %v7037_v37  ;;  %v7052_v52 = vmul.f32 %v13150_v16, %v7038_v13  ;;  %v7053_v63 = vmul.f32 %v15118_v36, %v7039_v35  ;;  %v7136_v13 = vld [vmem:[%s15133_s11] sm:$0xff] }
 0xccf   : > { %v7054_v31 = vmul.f32 %v15119_v19, %v7040_v58  ;;  %v14356_v24 = vsub.f32 %v14281_v53, %v7021_v12  ;;  %v7043_v17 = vmul.f32 %v14344_v54, %v14344_v54  ;;  %v7055_v0 = vmul.f32 %v15121_v26, %v7041_v14  ;;  %9794 = vmatprep.mubr.msk.f32.mxu0 %vm2360_vm4, %v7136_v13  ;;  %v5359_v35 = vld [vmem:[%s15134_s0] sm:$0xff] }
 0xcd0   : > { %v7064_v33 = vadd.f32 %v7051_v34, %v7050_v7  ;;  %v14362_v4 = vsub.f32 %v14286_v32, %v7021_v12  ;;  %v7044_v51 = vmul.f32 %v14350_v29, %v14350_v29  ;;  %v7056_v20 = vmul.f32 %v15125_v47, %v7042_v46  ;;  %v5367_v14 = vld [vmem:[%s15134_s0 + $0x40] sm:$0xff] }
 0xcd1   : > { %v14368_v21 = vsub.f32 %v14291_v40, %v7021_v12  ;;  %v7045_v53 = vmul.f32 %v14356_v24, %v14356_v24  ;;  %v7057_v25 = vmul.f32 %v13139_v30, %v7043_v17  ;;  %v14374_v15 = vsub.f32 %v14296_v50, %v7021_v12  ;;  %v5361_v17 = vld [vmem:[%s15134_s0 + $0x10] sm:$0xff] }
 0xcd2   : > { %v7065_v27 = vadd.f32 %v7064_v33, %v7052_v52  ;;  %v7046_v32 = vmul.f32 %v14362_v4, %v14362_v4  ;;  %v7058_v6 = vmul.f32 %v13142_v49, %v7044_v51  ;;  %v14380_v28 = vsub.f32 %v14301_v18, %v7021_v12  ;;  %v5366_v52 = vld [vmem:[%s15134_s0 + $0x38] sm:$0xff]  ;;  %v5360_v33 = vld [vmem:[%s15134_s0 + $0x8] sm:$0xff] }
 0xcd3   : > { %v7047_v40 = vmul.f32 %v14368_v21, %v14368_v21  ;;  %v7059_v39 = vmul.f32 %v13150_v16, %v7045_v53  ;;  %v7048_v50 = vmul.f32 %v14374_v15, %v14374_v15  ;;  %v5374_v51 = vld [vmem:[%s15135_s7 + $0x8] sm:$0xff] }
 0xcd4   : > { %v7066_v38 = vadd.f32 %v7065_v27, %v7053_v63  ;;  %v7060_v48 = vmul.f32 %v15118_v36, %v7046_v32  ;;  %v7049_v49 = vmul.f32 %v14380_v28, %v14380_v28  ;;  %v7155_v36 = vld [vmem:[%s15131_s28 + $0x8] sm:$0xff]  ;;  %v5373_v63 = vld [vmem:[%s15135_s7] sm:$0xff]  ;;  %v5375_v32 = vld [vmem:[%s15135_s7 + $0x10] sm:$0xff] }
 0xcd5   : > { %v7061_v18 = vmul.f32 %v15119_v19, %v7047_v40  ;;  %v7062_v23 = vmul.f32 %v15121_v26, %v7048_v50  ;;  %v5362_v50 = vld [vmem:[%s15134_s0 + $0x18] sm:$0xff] }
 0xcd6   : > { %v7067_v45 = vadd.f32 %v7066_v38, %v7054_v31  ;;  %v7063_v16 = vmul.f32 %v15125_v47, %v7049_v49 }
 0xcd8   : > { %v7068_v55 = vadd.f32 %v7067_v45, %v7055_v0  ;;  %v5368_v0 = vld [vmem:[%s15134_s0 + $0x48] sm:$0xff]  ;;  %v5380_v45 = vld [vmem:[%s15135_s7 + $0x38] sm:$0xff] }
 0xcda   : > { %v7069_v41 = vadd.f32 %v7068_v55, %v7056_v20  ;;  %v5381_v20 = vld [vmem:[%s15135_s7 + $0x40] sm:$0xff] }
 0xcdc   : > { %v7070_v61 = vadd.f32 %v7069_v41, %v7057_v25 }
 0xcde   : > { %v7071_v60 = vadd.f32 %v7070_v61, %v7058_v6 }
 0xce0   : > { %v7072_v22 = vadd.f32 %v7071_v60, %v7059_v39 }
 0xce2   : > { %v7073_v8 = vadd.f32 %v7072_v22, %v7060_v48  ;;  %v5369_v48 = vld [vmem:[%s15134_s0 + $0x50] sm:$0xff] }
 0xce4   : > { %v7074_v2 = vadd.f32 %v7073_v8, %v7061_v18 }
 0xce6   : > { %v7075_v62 = vadd.f32 %v7074_v2, %v7062_v23  ;;  %v5376_v2 = vld [vmem:[%s15135_s7 + $0x18] sm:$0xff] }
 0xce8   : > { %v7076_v57 = vadd.f32 %v7075_v62, %v7063_v16 }
 0xcea   : > { %7077 = vadd.xlane.f32.xlu1 %v7076_v57  ;;  %v5363_v57 = vld [vmem:[%s15134_s0 + $0x20] sm:$0xff] }
 0xcfb   : > { %7177 = vperm.xlu1 %11214, %v7143_v43   ;;  %v5370_v43 = vld [vmem:[%s15134_s0 + $0x58] sm:$0xff] }
 0xcff   : > { %7167 = vperm.xlu1 %11214, %v7141_v59  }
 0xd03   : > { %7740 = vperm.xlu1 %11214, %v7155_v36  }
 0xd77   : > { %v7078_v10 = vpop.xlane.xlu1 %7077 }
 0xd78   : > { %v7079_v12 = vrot.slane %v7078_v10, 4 }
 0xd7a   : > { %v7080_v44 = vadd.f32 %v7079_v12, %v7078_v10  ;;  %v5377_v12 = vld [vmem:[%s15135_s7 + $0x20] sm:$0xff] }
 0xd7c   : > { %v7081_v19 = vrot.slane %v7080_v44, 2 }
 0xd7e   : > { %v7082_v37 = vadd.f32 %v7081_v19, %v7080_v44 }
 0xd80   : > { %v7083_v26 = vrot.slane %v7082_v37, 1 }
 0xd82   : > { %v7084_v47 = vadd.f32 %v7083_v26, %v7082_v37  ;;  %v5364_v26 = vld [vmem:[%s15134_s0 + $0x28] sm:$0xff] }
 0xd84   : > { %11153 = vpush %v7084_v47  ;;  %v5371_v47 = vld [vmem:[%s15134_s0 + $0x60] sm:$0xff] }
 0xdb5   : > { %s11154_s10 = spop %11153 }
 0xdb6   : > { %s7088_s1 = smul.f32 0.00089285715, %s11154_s10  ;;  %s15155_s10 = sld [smem:[#allocation5_spill]] }
 0xdb8   : > { %s7089_s2 = sadd.f32 1e-05, %s7088_s1  ;;  %s15153_s1 = sld [smem:[#allocation20_spill]] }
 0xdba   : > { %v7090_v7 = vstv %s7089_s2  ;;  %s15154_s2 = sld [smem:[#allocation3_spill]] }
 0xdbb   : > { %11382 = vrsqrt.f32 %v7090_v7 }
 0xdc5   : > { %v11383_v34 = vpop.eup %11382 }
 0xdc6   : > { %11155 = vpush %v11383_v34 }
 0xdf7   : > { %s11156_s3 = spop %11155 }
 0xdf8   : > { %v7093_v58 = vstv %s11156_s3  ;;  %s15138_s3 = sld [smem:[#allocation18_spill]] }
 0xdf9   : > { %v7094_v27 = vmul.f32 %v7093_v58, %v14311_v3  ;;  %v7101_v46 = vmul.f32 %v7093_v58, %v14344_v54  ;;  %v7095_v31 = vmul.f32 %v7093_v58, %v14314_v9  ;;  %v7102_v38 = vmul.f32 %v7093_v58, %v14350_v29 }
 0xdfa   : > { %v7096_v55 = vmul.f32 %v7093_v58, %v14317_v5  ;;  %v7103_v53 = vmul.f32 %v7093_v58, %v14356_v24  ;;  %v7097_v29 = vmul.f32 %v7093_v58, %v14324_v11  ;;  %v7104_v61 = vmul.f32 %v7093_v58, %v14362_v4  ;;  %v5382_v24 = vld [vmem:[%s15135_s7 + $0x48] sm:$0xff]  ;;  %v5383_v4 = vld [vmem:[%s15135_s7 + $0x50] sm:$0xff] }
 0xdfb   : > { %v7108_v25 = vmul.f32 %v7094_v27, %v5359_v35  ;;  %v7115_v3 = vmul.f32 %v7101_v46, %v5366_v52  ;;  %v7109_v41 = vmul.f32 %v7095_v31, %v5360_v33  ;;  %v7116_v54 = vmul.f32 %v7102_v38, %v5367_v14  ;;  %v5365_v14 = vld [vmem:[%s15134_s0 + $0x30] sm:$0xff]  ;;  %v5372_v27 = vld [vmem:[%s15134_s0 + $0x68] sm:$0xff]  ;;  %s15156_s0 = sld [smem:[#allocation12_spill]] }
 0xdfc   : > { %v7110_v9 = vmul.f32 %v7096_v55, %v5361_v17  ;;  %v7117_v6 = vmul.f32 %v7103_v53, %v5368_v0  ;;  %v7111_v8 = vmul.f32 %v7097_v29, %v5362_v50  ;;  %v7118_v23 = vmul.f32 %v7104_v61, %v5369_v48  ;;  %v7137_v55 = vld [vmem:[%s15133_s11 + $0x8] sm:$0xff]  ;;  %v7138_v53 = vld [vmem:[%s15133_s11 + $0x10] sm:$0xff]  ;;  %v15143_v29 = vld [vmem:[#allocation78_spill] sm:$0xff] }
 0xdfd   : > { %v7122_v40 = vadd.f32 %v7108_v25, %v5373_v63  ;;  %v7129_v39 = vadd.f32 %v7115_v3, %v5380_v45  ;;  %v7123_v5 = vadd.f32 %v7109_v41, %v5374_v51  ;;  %v7130_v60 = vadd.f32 %v7116_v54, %v5381_v20  ;;  %v5385_v63 = vld [vmem:[%s15135_s7 + $0x60] sm:$0xff]  ;;  %v7139_v3 = vld [vmem:[%s15133_s11 + $0x18] sm:$0xff]  ;;  %v15137_v41 = vld [vmem:[#allocation73_spill] sm:$0xff] }
 0xdfe   : > { %v7124_v49 = vadd.f32 %v7110_v9, %v5375_v32  ;;  %v7131_v18 = vadd.f32 %v7117_v6, %v5382_v24  ;;  %v7098_v16 = vmul.f32 %v7093_v58, %v14327_v1  ;;  %v7105_v62 = vmul.f32 %v7093_v58, %v14368_v21  ;;  %v5384_v21 = vld [vmem:[%s15135_s7 + $0x58] sm:$0xff]  ;;  %v15136_v25 = vld [vmem:[#allocation71_spill] sm:$0xff]  ;;  %v15141_v9 = vld [vmem:[#allocation76_spill] sm:$0xff]  ;;  %v7173_v24 = vpop.permute.xlu0 %7172 }
 0xdff   : > { %v10929_v22 = vpack.c.bf16 %v7129_v39, %v7122_v40  ;;  %v10933_v11 = vpack.c.bf16 %v7130_v60, %v7123_v5  ;;  %v7125_v36 = vadd.f32 %v7111_v8, %v5376_v2  ;;  %v7132_v10 = vadd.f32 %v7118_v23, %v5383_v4  ;;  %v15139_v54 = vld [vmem:[#allocation74_spill] sm:$0xff]  ;;  %v15140_v32 = vld [vmem:[#allocation75_spill] sm:$0xff]  ;;  %v15142_v6 = vld [vmem:[#allocation77_spill] sm:$0xff]  ;;  %v7178_v60 = vpop.permute.xlu1 %7177 }
 0xe00   : > { %v10937_v59 = vpack.c.bf16 %v7131_v18, %v7124_v49  ;;  %v7112_v44 = vmul.f32 %v7098_v16, %v5363_v57  ;;  %v7119_v19 = vmul.f32 %v7105_v62, %v5370_v43  ;;  %v7099_v37 = vmul.f32 %v7093_v58, %v14334_v42  ;;  %v15144_v61 = vld [vmem:[#allocation79_spill] sm:$0xff] }
 0xe01   : > { %10930 = vmatprep.subr.bf16.mxu0 %v10929_v22  ;;  %v7106_v1 = vmul.f32 %v7093_v58, %v14374_v15  ;;  %v10941_v13 = vpack.c.bf16 %v7132_v10, %v7125_v36  ;;  %v7100_v7 = vmul.f32 %v7093_v58, %v14338_v56  ;;  %v7107_v34 = vmul.f32 %v7093_v58, %v14380_v28  ;;  %v5378_v15 = vld [vmem:[%s15135_s7 + $0x28] sm:$0xff]  ;;  %v5379_v28 = vld [vmem:[%s15135_s7 + $0x30] sm:$0xff]  ;;  %v7144_v40 = vld [vmem:[%s15138_s3] sm:$0xff] }
 0xe02   : > { %10932 = vmatpush3.bf16.msra.mxu0 %v10929_v22  ;;  %v7126_v35 = vadd.f32 %v7112_v44, %v5377_v12  ;;  %v7133_v52 = vadd.f32 %v7119_v19, %v5384_v21  ;;  %v7113_v42 = vmul.f32 %v7099_v37, %v5364_v26  ;;  %v5386_v58 = vld [vmem:[%s15135_s7 + $0x68] sm:$0xff]  ;;  %v15145_v21 = vld [vmem:[#allocation55_spill] sm:$0xff]  ;;  %v7146_v26 = vld [vmem:[%s15138_s3 + $0x10] sm:$0xff]  ;;  %s15174_s7 = sld [smem:[#allocation26_spill]] }
 0xe03   : > { %10934 = vmatprep.subr.bf16.mxu0 %v10933_v11  ;;  %v7120_v33 = vmul.f32 %v7106_v1, %v5371_v47  ;;  %v7114_v46 = vmul.f32 %v7100_v7, %v5365_v14  ;;  %v7121_v56 = vmul.f32 %v7107_v34, %v5372_v27  ;;  %v7168_v8 = vpop.permute.xlu1 %7167  ;;  %v7145_v1 = vld [vmem:[%s15138_s3 + $0x8] sm:$0xff]  ;;  %v7147_v47 = vld [vmem:[%s15138_s3 + $0x18] sm:$0xff]  ;;  %v15147_v7 = vld [vmem:[#allocation59_spill] sm:$0xff]  ;;  %s15158_s3 = sld [smem:[#allocation25_spill]] }
 0xe04   : > { %v10945_v31 = vpack.c.bf16 %v7133_v52, %v7126_v35  ;;  %v7127_v38 = vadd.f32 %v7113_v42, %v5378_v15  ;;  %v15148_v34 = vld [vmem:[#allocation60_spill] sm:$0xff]  ;;  %v15149_v35 = vld [vmem:[#allocation61_spill] sm:$0xff]  ;;  %v15150_v52 = vld [vmem:[#allocation62_spill] sm:$0xff] }
 0xe05   : > { %v7134_v17 = vadd.f32 %v7120_v33, %v5385_v63  ;;  %v14440_v45 = vadd.f32 %v7114_v46, %v5379_v28  ;;  %v14442_v51 = vadd.f32 %v7121_v56, %v5386_v58  ;;  %v15151_v42 = vld [vmem:[#allocation63_spill] sm:$0xff]  ;;  %v15152_v33 = vld [vmem:[#allocation64_spill] sm:$0xff] }
 0xe06   : > { %10936 = vmatpush3.bf16.msra.mxu0 %v10933_v11  ;;  %v7163_v11 = vpop.permute.xlu0 %7162 }
 0xe07   : > { %10938 = vmatprep.subr.bf16.mxu0 %v10937_v59  ;;  %v10949_v0 = vpack.c.bf16 %v7134_v17, %v7127_v38  ;;  %v10953_v20 = vpack.c.bf16 %v14442_v51, %v14440_v45 }
 0xe0a   : > { %10940 = vmatpush3.bf16.msra.mxu0 %v10937_v59 }
 0xe0b   : > { %10942 = vmatprep.subr.bf16.mxu0 %v10941_v13 }
 0xe0e   : > { %10944 = vmatpush3.bf16.msra.mxu0 %v10941_v13  ;;  %v15146_v13 = vld [vmem:[#allocation57_spill] sm:$0xff] }
 0xe0f   : > { %10946 = vmatprep.subr.bf16.mxu0 %v10945_v31 }
 0xe12   : > { %10948 = vmatpush3.bf16.msra.mxu0 %v10945_v31 }
 0xe13   : > { %10950 = vmatprep.subr.bf16.mxu0 %v10949_v0 }
 0xe16   : > { %10952 = vmatpush3.bf16.msra.mxu0 %v10949_v0 }
 0xe17   : > { %10954 = vmatprep.subr.bf16.mxu0 %v10953_v20 }
 0xe1a   : > { %10956 = vmatpush3.bf16.msra.mxu0 %v10953_v20 }
 0xe1b   : > { %10994 = vmatprep.subr.bf16.mxu0 %v15136_v25 }
 0xe1d   : > { %9795 = vmatmul.mubr.msk.f32.vlgmr.msra.gmra.mrb[164].mxu0 %vm2360_vm4, %v7137_v55 }
 0xe1e   : > { %9797 = vmatprep.mubr.msk.f32.mxu0 %vm2360_vm4, %v7138_v53  ;;  %10996 = vmatpush3.bf16.msra.mxu0 %v15136_v25 }
 0xe1f   : > { %10998 = vmatprep.subr.bf16.mxu0 %v15137_v41 }
 0xe21   : > { %9798 = vmatmul.mubr.msk.f32.gmra.mrb[166].mxu0 %vm2360_vm4, %v7139_v3  ;;  %vm7289_vm4 = vcmask 130048  }
 0xe22   : > { %11000 = vmatpush3.bf16.msra.mxu0 %v15137_v41  ;;  %9804 = vmatprep.mubr.msk.f32.mxu1 %vm7289_vm4, %v7144_v40 }
 0xe23   : > { %11002 = vmatprep.subr.bf16.mxu0 %v15139_v54 }
 0xe26   : > { %11004 = vmatpush3.bf16.msra.mxu0 %v15139_v54 }
 0xe27   : > { %11006 = vmatprep.subr.bf16.mxu0 %v15140_v32 }
 0xe2a   : > { %11008 = vmatpush3.bf16.msra.mxu0 %v15140_v32 }
 0xe2b   : > { %11010 = vmatprep.subr.bf16.mxu0 %v15141_v9 }
 0xe2e   : > { %11012 = vmatpush3.bf16.msra.mxu0 %v15141_v9 }
 0xe2f   : > { %11014 = vmatprep.subr.bf16.mxu0 %v15142_v6 }
 0xe32   : > { %11016 = vmatpush3.bf16.msra.mxu0 %v15142_v6 }
 0xe33   : > { %11018 = vmatprep.subr.bf16.mxu0 %v15143_v29 }
 0xe36   : > { %11020 = vmatpush3.bf16.msra.mxu0 %v15143_v29 }
 0xe37   : > { %11022 = vmatprep.subr.bf16.mxu0 %v15144_v61 }
 0xe3a   : > { %11024 = vmatpush3.bf16.msra.mxu0 %v15144_v61 }
 0xe3b   : > { %11058 = vmatprep.subr.bf16.mxu0 %v15136_v25 }
 0xef0   : > { %v9796_v39 = vpop.f32.mrb[164].mxu0 }
 0xef1   : > { %v7258_v5 = vpop.f32.mrb[165].mxu0  ;;  %v7264_v2 = vadd.f32 %v9796_v39, %v7168_v8 }
 0xef2   : > { %v7259_v4 = vadd.f32 %v7258_v5, %v7163_v11  ;;  %v7741_v11 = vpop.permute.xlu1 %7740 }
 0xef4   : > { %v9799_v50 = vpop.f32.mrb[166].mxu0 }
 0xef5   : > { %v7274_v48 = vadd.f32 %v9799_v50, %v7178_v60  ;;  %v7268_v22 = vpop.f32.mrb[167].mxu0 }
 0xef6   : > { %v7269_v49 = vadd.f32 %v7268_v22, %v7173_v24 }
 0xef7   : > { %v7280_v18 = vmul.f32 0.5, %v7274_v48 }
 0xef8   : > { %v7279_v23 = vmul.f32 0.5, %v7269_v49 }
 0xef9   : > { %11384 = vtanh.f32 %v7280_v18 }
 0xefa   : > { %11386 = vtanh.f32 %v7279_v23  ;;  %v7153_v23 = vld [vmem:[%s15153_s1 + $0x8] sm:$0xff] }
 0xefb   : > { %11388 = vtanh.f32 %v7264_v2 }
 0xefc   : > { %11390 = vtanh.f32 %v7259_v4  ;;  %v7736_v4 = vpop.permute.xlu0 %7735 }
 0xf03   : > { %v11385_v16 = vpop.eup %11384 }
 0xf04   : > { %v11387_v62 = vpop.eup %11386  ;;  %v7284_v57 = vadd.f32 1.0, %v11385_v16 }
 0xf05   : > { %v7283_v43 = vadd.f32 1.0, %v11387_v62  ;;  %v11389_v36 = vpop.eup %11388 }
 0xf06   : > { %v7286_v59 = vmul.f32 0.5, %v7284_v57  ;;  %v11391_v12 = vpop.eup %11390 }
 0xf07   : > { %v7285_v10 = vmul.f32 0.5, %v7283_v43 }
 0xf08   : > { %v14471_v44 = vmul.f32 %v11389_v36, %v7286_v59 }
 0xf09   : > { %v14473_v19 = vmul.f32 %v11391_v12, %v7285_v10 }
 0xf0a   : > { %v7416_v15 = vmul.f32 0.05, %v14471_v44 }
 0xf0b   : > { %v14477_v37 = vpack.c.bf16 %v14471_v44, %v14473_v19  ;;  %9877 = vmatprep.mubr.f32.mxu0 %v14473_v19  ;;  %v7415_v46 = vmul.f32 0.05, %v14473_v19 }
 0xf0c   : > { %9878 = vmatmul.mubr.f32.vlgmr.msra.gmra.mrb[168].mxu0 %v14471_v44 }
 0xf0d   : > { %10958 = vmatprep.subr.bf16.mxu1 %v14477_v37  ;;  %11060 = vmatpush3.bf16.msra.mxu0 %v15136_v25 }
 0xf0e   : > { %10960 = vmatpush3.bf16.msra.mxu1 %v14477_v37  ;;  %11062 = vmatprep.subr.bf16.mxu0 %v15137_v41 }
 0xf0f   : > { %10962 = vmatprep.subr.bf16.mxu1 %v15145_v21 }
 0xf11   : > { %9805 = vmatmul.mubr.msk.f32.vlgmr.msra.gmra.mrb[170].mxu1 %vm7289_vm4, %v7145_v1  ;;  %11064 = vmatpush3.bf16.msra.mxu0 %v15137_v41  ;;  %v5353_v1 = vld [vmem:[%s15156_s0 + $0x10] sm:$0xff] }
 0xf12   : > { %10964 = vmatpush3.bf16.msra.mxu1 %v15145_v21  ;;  %9807 = vmatprep.mubr.msk.f32.mxu1 %vm7289_vm4, %v7146_v26 }
 0xf13   : > { %10966 = vmatprep.subr.bf16.mxu1 %v15146_v13  ;;  %11066 = vmatprep.subr.bf16.mxu0 %v15139_v54 }
 0xf15   : > { %9808 = vmatmul.mubr.msk.f32.gmra.mrb[172].mxu1 %vm7289_vm4, %v7147_v47  ;;  %11068 = vmatpush3.bf16.msra.mxu0 %v15139_v54  ;;  %v7876_v47 = vld [vmem:[%s15158_s3] sm:$0xff] }
 0xf16   : > { %10968 = vmatpush3.bf16.msra.mxu1 %v15146_v13  ;;  %9842 = vmatprep.mubr.f32.mxu1 %v14473_v19  ;;  %v1185_v19 = vld [vmem:[%s15154_s2 + $0x10] sm:$0xff] }
 0xf17   : > { %10970 = vmatprep.subr.bf16.mxu1 %v15147_v7  ;;  %11070 = vmatprep.subr.bf16.mxu0 %v15140_v32 }
 0xf19   : > { %11072 = vmatpush3.bf16.msra.mxu0 %v15140_v32 }
 0xf1a   : > { %10972 = vmatpush3.bf16.msra.mxu1 %v15147_v7  ;;  %11074 = vmatprep.subr.bf16.mxu0 %v15141_v9 }
 0xf1b   : > { %10974 = vmatprep.subr.bf16.mxu1 %v15148_v34 }
 0xf1d   : > { %11076 = vmatpush3.bf16.msra.mxu0 %v15141_v9  ;;  %v7152_v9 = vld [vmem:[%s15153_s1] sm:$0xff]  ;;  %s15157_s1 = sld [smem:[#allocation19_spill]] }
 0xf1e   : > { %10976 = vmatpush3.bf16.msra.mxu1 %v15148_v34  ;;  %11078 = vmatprep.subr.bf16.mxu0 %v15142_v6 }
 0xf1f   : > { %10978 = vmatprep.subr.bf16.mxu1 %v15149_v35 }
 0xf21   : > { %11080 = vmatpush3.bf16.msra.mxu0 %v15142_v6 }
 0xf22   : > { %10980 = vmatpush3.bf16.msra.mxu1 %v15149_v35  ;;  %11082 = vmatprep.subr.bf16.mxu0 %v15143_v29 }
 0xf23   : > { %10982 = vmatprep.subr.bf16.mxu1 %v15150_v52  ;;  %v7150_v26 = vld [vmem:[%s15157_s1 + $0x10] sm:$0xff] }
 0xf25   : > { %11084 = vmatpush3.bf16.msra.mxu0 %v15143_v29 }
 0xf26   : > { %10984 = vmatpush3.bf16.msra.mxu1 %v15150_v52  ;;  %11086 = vmatprep.subr.bf16.mxu0 %v15144_v61 }
 0xf27   : > { %10986 = vmatprep.subr.bf16.mxu1 %v15151_v42 }
 0xf29   : > { %11088 = vmatpush3.bf16.msra.mxu0 %v15144_v61 }
 0xf2a   : > { %10988 = vmatpush3.bf16.msra.mxu1 %v15151_v42 }
 0xf2b   : > { %10990 = vmatprep.subr.bf16.mxu1 %v15152_v33 }
 0xf2e   : > { %10992 = vmatpush3.bf16.msra.mxu1 %v15152_v33 }
 0xf2f   : > { %11026 = vmatprep.subr.bf16.mxu1 %v15145_v21 }
 0xf31   : > { %9843 = vmatmul.mubr.f32.vlgmr.msra.gmra.mrb[174].mxu1 %v14471_v44  ;;  %v1183_v44 = vld [vmem:[%s15154_s2] sm:$0xff] }
 0xf32   : > { %11028 = vmatpush3.bf16.msra.mxu1 %v15145_v21  ;;  %v7148_v21 = vld [vmem:[%s15157_s1] sm:$0xff] }
 0xf33   : > { %11030 = vmatprep.subr.bf16.mxu1 %v15146_v13 }
 0xf36   : > { %11032 = vmatpush3.bf16.msra.mxu1 %v15146_v13  ;;  %v7878_v13 = vld [vmem:[%s15158_s3 + $0x10] sm:$0xff] }
 0xf37   : > { %11034 = vmatprep.subr.bf16.mxu1 %v15147_v7 }
 0xf3a   : > { %11036 = vmatpush3.bf16.msra.mxu1 %v15147_v7  ;;  %v7888_v7 = vld [vmem:[%s11627_s25] sm:$0xff] }
 0xf3b   : > { %11038 = vmatprep.subr.bf16.mxu1 %v15148_v34 }
 0xf3e   : > { %11040 = vmatpush3.bf16.msra.mxu1 %v15148_v34  ;;  %v7890_v34 = vld [vmem:[%s11627_s25 + $0x10] sm:$0xff] }
 0xf3f   : > { %11042 = vmatprep.subr.bf16.mxu1 %v15149_v35 }
 0xf42   : > { %11044 = vmatpush3.bf16.msra.mxu1 %v15149_v35  ;;  %v7892_v35 = vld [vmem:[%s11627_s25 + $0x20] sm:$0xff] }
 0xf43   : > { %11046 = vmatprep.subr.bf16.mxu1 %v15150_v52 }
 0xf46   : > { %11048 = vmatpush3.bf16.msra.mxu1 %v15150_v52  ;;  %v7894_v52 = vld [vmem:[%s11627_s25 + $0x30] sm:$0xff] }
 0xf47   : > { %11050 = vmatprep.subr.bf16.mxu1 %v15151_v42 }
 0xf4a   : > { %11052 = vmatpush3.bf16.msra.mxu1 %v15151_v42  ;;  %v7898_v42 = vld [vmem:[%s11637_s12] sm:$0xff] }
 0xf4b   : > { %11054 = vmatprep.subr.bf16.mxu1 %v15152_v33 }
 0xf4e   : > { %11056 = vmatpush3.bf16.msra.mxu1 %v15152_v33 }
 0xf4f   : > { %11090 = vmatprep.subr.bf16.mxu1 %v14477_v37 }
 0xfdf   : > { %v9879_v14 = vpop.f32.mrb[168].mxu0 }
 0xfe0   : > { %v7572_v63 = vmul.f32 0.95, %v9879_v14  ;;  %v7562_v27 = vpop.f32.mrb[169].mxu0 }
 0xfe1   : > { %v7571_v31 = vmul.f32 0.95, %v7562_v27 }
 0xfe2   : > { %v7574_v38 = vadd.f32 %v7572_v63, %v7416_v15 }
 0xfe3   : > { %v7573_v17 = vadd.f32 %v7571_v31, %v7415_v46  ;;  %v15159_v31 = vld [vmem:[#allocation52_spill] sm:$0xff] }
 0xfe4   : > { %v14541_v56 = vpop.f32.mrb[170].mxu1 }
 0xfe5   : > { %9947 = vmatprep.mubr.f32.mxu0 %v7573_v17  ;;  %v14543_v28 = vpop.f32.mrb[171].mxu1  ;;  %v11105_v58 = vpack.c.bf16 %v7574_v38, %v7573_v17 }
 0xfe6   : > { %9948 = vmatmul.mubr.f32.vlgmr.msra.gmra.mrb[170].mxu0 %v7574_v38 }
 0xfe8   : > { %v14545_v0 = vpop.f32.mrb[172].mxu1 }
 0xfe9   : > { %v14547_v20 = vpop.f32.mrb[173].mxu1 }
0x1004   : > { %v9844_v55 = vpop.f32.mrb[174].mxu1 }
0x1005   : > { %v7493_v53 = vmul.f32 0.95, %v9844_v55  ;;  %v7483_v25 = vpop.f32.mrb[175].mxu1  ;;  %v15160_v55 = vld [vmem:[#allocation92_spill] sm:$0xff] }
0x1006   : > { %v7492_v3 = vmul.f32 0.95, %v7483_v25 }
0x1007   : > { %v7495_v41 = vadd.f32 %v7493_v53, %v7416_v15 }
0x1008   : > { %v7494_v54 = vadd.f32 %v7492_v3, %v7415_v46  ;;  %v15161_v3 = vld [vmem:[#allocation58_spill] sm:$0xff] }
0x100a   : > { %9912 = vmatprep.mubr.f32.mxu1 %v7494_v54  ;;  %v11093_v32 = vpack.c.bf16 %v7495_v41, %v7494_v54  ;;  %v15162_v54 = vld [vmem:[#allocation95_spill] sm:$0xff] }
0x100b   : > { %9913 = vmatmul.mubr.f32.vlgmr.msra.gmra.mrb[176].mxu1 %v7495_v41 }
0x100c   : > { %11092 = vmatpush3.bf16.msra.mxu1 %v14477_v37  ;;  %9974 = vmatprep.mubr.msk.f32.mxu1 %vm4298_vm6, %v7152_v9 }
0x100d   : > { %11094 = vmatprep.subr.bf16.mxu1 %v11093_v32 }
0x1010   : > { %11096 = vmatpush3.bf16.msra.mxu1 %v11093_v32 }
0x10b9   : > { %v9949_v6 = vpop.f32.mrb[170].mxu0 }
0x10ba   : > { %v7730_v29 = vmul.f32 0.95, %v9949_v6  ;;  %v7720_v61 = vpop.f32.mrb[171].mxu0 }
0x10bb   : > { %v7729_v40 = vmul.f32 0.95, %v7720_v61 }
0x10bc   : > { %v7732_v39 = vadd.f32 %v7730_v29, %v7416_v15  ;;  %v15163_v29 = vld [vmem:[#allocation103_spill] sm:$0xff] }
0x10bd   : > { %v7731_v5 = vadd.f32 %v7729_v40, %v7415_v46 }
0x10bf   : > { %v11109_v60 = vpack.c.bf16 %v7732_v39, %v7731_v5  ;;  %v15164_v5 = vld [vmem:[#allocation101_spill] sm:$0xff] }
0x10de   : > { %v9914_v24 = vpop.f32.mrb[176].mxu1 }
0x10df   : > { %v7651_v50 = vmul.f32 0.95, %v9914_v24  ;;  %v7641_v48 = vpop.f32.mrb[177].mxu1 }
0x10e0   : > { %v7650_v22 = vmul.f32 0.95, %v7641_v48 }
0x10e1   : > { %v7653_v49 = vadd.f32 %v7651_v50, %v7416_v15 }
0x10e2   : > { %v7652_v18 = vadd.f32 %v7650_v22, %v7415_v46 }
0x10e4   : > { %v11097_v8 = vpack.c.bf16 %v7653_v49, %v7652_v18 }
0x10e6   : > { %11098 = vmatprep.subr.bf16.mxu1 %v11097_v8 }
0x10e7   : > { %11100 = vmatpush3.bf16.msra.mxu1 %v11097_v8 }
0x10e8   : > { %11102 = vmatprep.subr.bf16.mxu1 %v14477_v37 }
0x10eb   : > { %11104 = vmatpush3.bf16.msra.mxu1 %v14477_v37  ;;  %v5351_v37 = vld [vmem:[%s15156_s0] sm:$0xff] }
0x10ec   : > { %11106 = vmatprep.subr.bf16.mxu1 %v11105_v58 }
0x10ef   : > { %11108 = vmatpush3.bf16.msra.mxu1 %v11105_v58 }
0x10f0   : > { %11110 = vmatprep.subr.bf16.mxu1 %v11109_v60 }
0x10f3   : > { %11112 = vmatpush3.bf16.msra.mxu1 %v11109_v60 }
0x10f6   : > { %9975 = vmatmul.mubr.msk.f32.vlgmr.msra.gmra.mrb[178].mxu1 %vm4298_vm6, %v7153_v23  ;;  %vm8217_vm6 = vcmask 523264  }
0x11c9   : > { %v9976_v2 = vpop.f32.mrb[178].mxu1 }
0x11ca   : > { %v7821_v16 = vadd.f32 %v9976_v2, %v7741_v11  ;;  %v7815_v62 = vpop.f32.mrb[179].mxu1 }
0x11cb   : > { %v7816_v57 = vadd.f32 %v7815_v62, %v7736_v4  ;;  %v1184_v62 = vld [vmem:[%s15154_s2 + $0x8] sm:$0xff] }
0x11cc   : > { %v14557_v43 = vadd.f32 %v7821_v16, %v14442_v51  ;;  %v2280_v51 = vld [vmem:[%s15155_s10] sm:$0xff] }
0x11cd   : > { %v14560_v59 = vadd.f32 %v7816_v57, %v14440_v45  ;;  %v2282_v45 = vld [vmem:[%s15155_s10 + $0x10] sm:$0xff]  ;;  %v1186_v57 = vld [vmem:[%s15154_s2 + $0x18] sm:$0xff] }
0x11ce   : > { %v7827_v36 = vmul.f32 %v13139_v30, %v14557_v43 }
0x11cf   : > { %v7826_v10 = vmul.f32 %v13139_v30, %v14560_v59 }
0x11d1   : > { %v7828_v12 = vadd.f32 %v7827_v36, %v7826_v10  ;;  %v5352_v36 = vld [vmem:[%s15156_s0 + $0x8] sm:$0xff]  ;;  %v5354_v10 = vld [vmem:[%s15156_s0 + $0x18] sm:$0xff]  ;;  %s15173_s0 = sld [smem:[#allocation23_spill]] }
0x11d3   : > { %7829 = vadd.xlane.f32.xlu0 %v7828_v12  ;;  %v7151_v12 = vld [vmem:[%s15157_s1 + $0x18] sm:$0xff] }
0x11e9   : > { %2144 = vperm.xlu0 %11213, %v1183_v44   ;;  %v7877_v44 = vld [vmem:[%s15158_s3 + $0x8] sm:$0xff] }
0x11ed   : > { %2154 = vperm.xlu0 %11213, %v1185_v19   ;;  %v7879_v19 = vld [vmem:[%s15158_s3 + $0x18] sm:$0xff] }
0x11f1   : > { %3252 = vperm.xlu0 %11213, %v2280_v51   ;;  %v7889_v51 = vld [vmem:[%s11627_s25 + $0x8] sm:$0xff] }
0x11f5   : > { %3262 = vperm.xlu0 %11213, %v2282_v45   ;;  %v7891_v45 = vld [vmem:[%s11627_s25 + $0x18] sm:$0xff] }
0x11f9   : > { %5958 = vperm.xlu0 %11213, %v5351_v37   ;;  %v7893_v37 = vld [vmem:[%s11627_s25 + $0x28] sm:$0xff] }
0x11fd   : > { %5968 = vperm.xlu0 %11213, %v5353_v1   ;;  %v7895_v1 = vld [vmem:[%s11627_s25 + $0x38] sm:$0xff] }
0x1201   : > { %7393 = vperm.xlu0 %11213, %v7148_v21   ;;  %v7899_v21 = vld [vmem:[%s11637_s12 + $0x8] sm:$0xf] }
0x1205   : > { %7403 = vperm.xlu0 %11213, %v7150_v26  }
0x1209   : > { %8003 = vperm.xlu0 %11213, %v7876_v47  }
0x120d   : > { %8013 = vperm.xlu0 %11213, %v7878_v13  }
0x1211   : > { %8031 = vperm.xlu0 %11213, %v7888_v7  }
0x1215   : > { %8041 = vperm.xlu0 %11213, %v7890_v34  }
0x1219   : > { %8051 = vperm.xlu0 %11213, %v7892_v35   ;;  %v15166_v35 = vld [vmem:[#allocation51_spill] sm:$0xff] }
0x121d   : > { %8061 = vperm.xlu0 %11213, %v7894_v52  }
0x1221   : > { %8209 = vperm.xlu0 %11213, %v7898_v42   ;;  %v15167_v42 = vld [vmem:[#allocation94_spill] sm:$0xff] }
0x1260   : > { %v7830_v33 = vpop.xlane.xlu0 %7829 }
0x1261   : > { %v7831_v14 = vrot.slane %v7830_v33, 4 }
0x1263   : > { %v7832_v15 = vadd.f32 %v7831_v14, %v7830_v33 }
0x1265   : > { %v7833_v63 = vrot.slane %v7832_v15, 2 }
0x1267   : > { %v7834_v27 = vadd.f32 %v7833_v63, %v7832_v15  ;;  %v15168_v63 = vld [vmem:[#allocation56_spill] sm:$0xff] }
0x1268   : > { %v2145_v46 = vpop.permute.xlu0 %2144 }
0x1269   : > { %v2246_v38 = vadd.f32 %v15159_v31, %v2145_v46  ;;  %v7835_v17 = vrot.slane %v7834_v27, 1 }
0x126b   : > { %v7836_v58 = vadd.f32 %v7835_v17, %v7834_v27  ;;  %v3246_v53 = vadd.f32 %v15160_v55, %v2246_v38  ;;  %v15169_v38 = vld [vmem:[#allocation96_spill] sm:$0xff] }
0x126c   : > { %v2155_v25 = vpop.permute.xlu0 %2154 }
0x126d   : > { %v2256_v41 = vadd.f32 %v15161_v3, %v2155_v25  ;;  %11157 = vpush %v7836_v58  ;;  %v15170_v25 = vld [vmem:[#allocation106_spill] sm:$0xff] }
0x126f   : > { %v3248_v32 = vadd.f32 %v15162_v54, %v2256_v41 }
0x1270   : > { %v3253_v9 = vpop.permute.xlu0 %3252 }
0x1271   : > { %v3270_v6 = vadd.f32 %v3253_v9, %v3246_v53 }
0x1273   : > { %v5952_v61 = vadd.f32 %v15163_v29, %v3270_v6 }
0x1274   : > { %v3263_v40 = vpop.permute.xlu0 %3262 }
0x1275   : > { %v3272_v39 = vadd.f32 %v3263_v40, %v3248_v32  ;;  %v15171_v32 = vld [vmem:[#allocation104_spill] sm:$0xff] }
0x1277   : > { %v5954_v60 = vadd.f32 %v15164_v5, %v3272_v39 }
0x1278   : > { %v5959_v24 = vpop.permute.xlu0 %5958 }
0x1279   : > { %v5976_v50 = vadd.f32 %v5959_v24, %v5952_v61 }
0x127b   : > { %v14588_v48 = vadd.f32 %v14543_v28, %v5976_v50 }
0x127c   : > { %v5969_v22 = vpop.permute.xlu0 %5968 }
0x127d   : > { %v5978_v49 = vadd.f32 %v5969_v22, %v5954_v60 }
0x127f   : > { %v14591_v18 = vadd.f32 %v14547_v20, %v5978_v49 }
0x129e   : > { %s11158_s4 = spop %11157 }
0x129f   : > { %s7840_s5 = smul.f32 0.00625, %s11158_s4  ;;  %s15172_s4 = sld [smem:[#allocation22_spill]] }
0x12a1   : > { %v7841_v8 = vstv %s7840_s5  ;;  %s15165_s5 = sld [smem:[#allocation24_spill]] }
0x12a2   : > { %v14594_v23 = vsub.f32 %v14560_v59, %v7841_v8  ;;  %v14597_v11 = vsub.f32 %v14557_v43, %v7841_v8  ;;  %v2281_v43 = vld [vmem:[%s15155_s10 + $0x8] sm:$0xff]  ;;  %v2283_v59 = vld [vmem:[%s15155_s10 + $0x18] sm:$0xff] }
0x12a4   : > { %v7844_v28 = vmul.f32 %v14594_v23, %v14594_v23  ;;  %v7845_v20 = vmul.f32 %v14597_v11, %v14597_v11 }
0x12a5   : > { %v7156_v50 = vld [vmem:[%s15172_s4] sm:$0xff]  ;;  %v7157_v22 = vld [vmem:[%s15172_s4 + $0x8] sm:$0xff] }
0x12a6   : > { %v7846_v2 = vmul.f32 %v13139_v30, %v7844_v28  ;;  %v7847_v4 = vmul.f32 %v13139_v30, %v7845_v20  ;;  %v7149_v30 = vld [vmem:[%s15157_s1 + $0x8] sm:$0xff] }
0x12a7   : > { %v7872_v58 = vld [vmem:[%s15165_s5] sm:$0xff]  ;;  %v7159_v28 = vld [vmem:[%s15173_s0 + $0x8] sm:$0xff] }
0x12a8   : > { %v7848_v16 = vadd.f32 %v7847_v4, %v7846_v2  ;;  %9981 = vmatprep.mubr.msk.f32.mxu0 %vm7289_vm4, %v7872_v58  ;;  %v7882_v58 = vld [vmem:[%s15174_s7 + $0x10] sm:$0xff] }
0x12aa   : > { %7849 = vadd.xlane.f32.xlu1 %v7848_v16 }
0x12bb   : > { %2149 = vperm.xlu1 %11214, %v1184_v62  }
0x12bf   : > { %2159 = vperm.xlu1 %11214, %v1186_v57   ;;  %v7873_v57 = vld [vmem:[%s15165_s5 + $0x8] sm:$0xff] }
0x12c3   : > { %3257 = vperm.xlu1 %11214, %v2281_v43   ;;  %v7874_v43 = vld [vmem:[%s15165_s5 + $0x10] sm:$0xff] }
0x12c7   : > { %3267 = vperm.xlu1 %11214, %v2283_v59   ;;  %v7875_v59 = vld [vmem:[%s15165_s5 + $0x18] sm:$0xff] }
0x12cb   : > { %5963 = vperm.xlu1 %11214, %v5352_v36   ;;  %v7394_v36 = vpop.permute.xlu0 %7393 }
0x12cf   : > { %5973 = vperm.xlu1 %11214, %v5354_v10  }
0x12d3   : > { %7398 = vperm.xlu1 %11214, %v7149_v30   ;;  %v7404_v30 = vpop.permute.xlu0 %7403 }
0x12d7   : > { %7408 = vperm.xlu1 %11214, %v7151_v12  }
0x12db   : > { %8008 = vperm.xlu1 %11214, %v7877_v44   ;;  %v7411_v44 = vadd.f32 %v7394_v36, %v14588_v48 }
0x12df   : > { %8018 = vperm.xlu1 %11214, %v7879_v19  }
0x12e3   : > { %8036 = vperm.xlu1 %11214, %v7889_v51  }
0x12e7   : > { %8046 = vperm.xlu1 %11214, %v7891_v45   ;;  %v8004_v45 = vpop.permute.xlu0 %8003 }
0x12eb   : > { %8056 = vperm.xlu1 %11214, %v7893_v37  }
0x12ef   : > { %8066 = vperm.xlu1 %11214, %v7895_v1  }
0x12f3   : > { %8214 = vperm.xlu1 %11214, %v7899_v21  }
0x1337   : > { %v7850_v26 = vpop.xlane.xlu1 %7849 }
0x1338   : > { %v7851_v47 = vrot.slane %v7850_v26, 4 }
0x133a   : > { %v7852_v13 = vadd.f32 %v7851_v47, %v7850_v26 }
0x133b   : > { %v2150_v7 = vpop.permute.xlu1 %2149 }
0x133c   : > { %v7853_v34 = vrot.slane %v7852_v13, 2  ;;  %v2251_v52 = vadd.f32 %v15166_v35, %v2150_v7 }
0x133e   : > { %v3247_v33 = vadd.f32 %v15167_v42, %v2251_v52  ;;  %v7854_v14 = vadd.f32 %v7853_v34, %v7852_v13  ;;  %v7413_v13 = vadd.f32 %v7404_v30, %v14591_v18 }
0x133f   : > { %v2160_v15 = vpop.permute.xlu1 %2159 }
0x1340   : > { %v2261_v27 = vadd.f32 %v15168_v63, %v2160_v15  ;;  %v7855_v46 = vrot.slane %v7854_v14, 1  ;;  %v8014_v15 = vpop.permute.xlu0 %8013 }
0x1342   : > { %v7856_v31 = vadd.f32 %v7855_v46, %v7854_v14  ;;  %v3249_v17 = vadd.f32 %v15169_v38, %v2261_v27 }
0x1343   : > { %v3258_v55 = vpop.permute.xlu1 %3257 }
0x1344   : > { %v3271_v53 = vadd.f32 %v3258_v55, %v3247_v33  ;;  %11159 = vpush %v7856_v31  ;;  %v7883_v55 = vld [vmem:[%s15174_s7 + $0x18] sm:$0xff] }
0x1346   : > { %v5953_v3 = vadd.f32 %v15170_v25, %v3271_v53  ;;  %v7884_v53 = vld [vmem:[%s15174_s7 + $0x20] sm:$0xff]  ;;  %v7885_v25 = vld [vmem:[%s15174_s7 + $0x28] sm:$0xff] }
0x1347   : > { %v3268_v41 = vpop.permute.xlu1 %3267 }
0x1348   : > { %v3273_v54 = vadd.f32 %v3268_v41, %v3249_v17  ;;  %v7881_v17 = vld [vmem:[%s15174_s7 + $0x8] sm:$0xff]  ;;  %v7887_v41 = vld [vmem:[%s15174_s7 + $0x38] sm:$0xff] }
0x134a   : > { %v5955_v9 = vadd.f32 %v15171_v32, %v3273_v54  ;;  %v7896_v54 = vld [vmem:[%s11632_s27] sm:$0xff] }
0x134b   : > { %v5964_v6 = vpop.permute.xlu1 %5963 }
0x134c   : > { %v5977_v29 = vadd.f32 %v5964_v6, %v5953_v3  ;;  %v7886_v3 = vld [vmem:[%s15174_s7 + $0x30] sm:$0xff] }
0x134e   : > { %v7388_v61 = vadd.f32 %v14541_v56, %v5977_v29 }
0x134f   : > { %v5974_v40 = vpop.permute.xlu1 %5973 }
0x1350   : > { %v5979_v39 = vadd.f32 %v5974_v40, %v5955_v9  ;;  %v8032_v9 = vpop.permute.xlu0 %8031 }
0x1352   : > { %v7390_v5 = vadd.f32 %v14545_v0, %v5979_v39  ;;  %v7158_v0 = vld [vmem:[%s15173_s0] sm:$0xff] }
0x1375   : > { %s11160_s1 = spop %11159 }
0x1376   : > { %s7860_s2 = smul.f32 0.00625, %s11160_s1 }
0x1378   : > { %s7861_s3 = sadd.f32 1e-05, %s7860_s2 }
0x137a   : > { %v7862_v60 = vstv %s7861_s3 }
0x137b   : > { %11392 = vrsqrt.f32 %v7862_v60 }
0x1385   : > { %v11393_v24 = vpop.eup %11392 }
0x1386   : > { %11161 = vpush %v11393_v24 }
0x13b7   : > { %s11162_s6 = spop %11161 }
0x13b8   : > { %v7865_v49 = vstv %s11162_s6  ;;  %s8572_s6 = sshll.u32 %s15176_s16, 4 }
0x13b9   : > { %v7866_v56 = vmul.f32 %v7865_v49, %v14594_v23  ;;  %v7867_v8 = vmul.f32 %v7865_v49, %v14597_v11  ;;  %v7880_v23 = vld [vmem:[%s15174_s7] sm:$0xff]  ;;  %v7399_v11 = vpop.permute.xlu1 %7398  ;;  %s1174_s3 = scalar_lea.vmem %s11642_s24, %s8572_s6 }
0x13ba   : > { %v7412_v12 = vadd.f32 %v7399_v11, %v7388_v61  ;;  %v8042_v61 = vpop.permute.xlu0 %8041 }
0x13bb   : > { %v7868_v20 = vmul.f32 %v7866_v56, %v7156_v50  ;;  %v7869_v2 = vmul.f32 %v7867_v8, %v7157_v22 }
0x13bd   : > { %v7870_v4 = vadd.f32 %v7868_v20, %v7158_v0  ;;  %v7871_v16 = vadd.f32 %v7869_v2, %v7159_v28  ;;  %v7409_v10 = vpop.permute.xlu1 %7408 }
0x13be   : > { %v7414_v26 = vadd.f32 %v7409_v10, %v7390_v5  ;;  %v8052_v28 = vpop.permute.xlu0 %8051 }
0x13bf   : > { %v11113_v62 = vpack.c.bf16 %v7871_v16, %v7870_v4 }
0x13c1   : > { %11114 = vmatprep.subr.bf16.mxu0 %v11113_v62  ;;  %v8009_v19 = vpop.permute.xlu1 %8008 }
0x13c2   : > { %11116 = vmatpush3.bf16.msra.mxu0 %v11113_v62  ;;  %v8062_v10 = vpop.permute.xlu0 %8061 }
0x13c5   : > { %9982 = vmatmul.mubr.msk.f32.vlgmr.msra.gmra.mrb[172].mxu0 %vm7289_vm4, %v7873_v57  ;;  %v8019_v33 = vpop.permute.xlu1 %8018 }
0x13c6   : > { %9984 = vmatprep.mubr.msk.f32.mxu0 %vm7289_vm4, %v7874_v43 }
0x13c9   : > { %9985 = vmatmul.mubr.msk.f32.gmra.mrb[174].mxu0 %vm7289_vm4, %v7875_v59  ;;  %v8037_v32 = vpop.permute.xlu1 %8036 }
0x13ca   : > { %9995 = vmatprep.mubr.msk.f32.mxu0 %vm8069_vm5, %v7880_v23 }
0x13cd   : > { %v8047_v6 = vpop.permute.xlu1 %8046 }
0x13d1   : > { %v8057_v56 = vpop.permute.xlu1 %8056 }
0x13d5   : > { %v8067_v23 = vpop.permute.xlu1 %8066 }
0x1498   : > { %v9983_v51 = vpop.f32.mrb[172].mxu0 }
0x1499   : > { %v7998_v37 = vadd.f32 %v9983_v51, %v7412_v12  ;;  %v7978_v1 = vpop.f32.mrb[173].mxu0 }
0x149a   : > { %v7997_v21 = vadd.f32 %v7978_v1, %v7411_v44  ;;  %v7897_v1 = vld [vmem:[%s11632_s27 + $0x8] sm:$0xf] }
0x149b   : > { %v8022_v47 = vadd.f32 %v8009_v19, %v7998_v37 }
0x149c   : > { %v8021_v7 = vadd.f32 %v8004_v45, %v7997_v21  ;;  %v9986_v34 = vpop.f32.mrb[174].mxu0  ;;  %v8215_v21 = vpop.permute.xlu1 %8214 }
0x149d   : > { %v8026_v35 = vmax.f32 %v8022_v47, 0.0  ;;  %v8000_v52 = vadd.f32 %v9986_v34, %v7414_v26  ;;  %v7988_v42 = vpop.f32.mrb[175].mxu0  ;;  %v8210_v47 = vpop.permute.xlu0 %8209 }
0x149e   : > { %v8025_v14 = vmax.f32 %v8021_v7, 0.0  ;;  %v7999_v48 = vadd.f32 %v7988_v42, %v7413_v13 }
0x149f   : > { %v8024_v63 = vadd.f32 %v8019_v33, %v8000_v52 }
0x14a0   : > { %v8023_v27 = vadd.f32 %v8014_v15, %v7999_v48  ;;  %v11117_v46 = vpack.c.bf16 %v8026_v35, %v8025_v14 }
0x14a1   : > { %v8028_v31 = vmax.f32 %v8024_v63, 0.0 }
0x14a2   : > { %v8027_v18 = vmax.f32 %v8023_v27, 0.0  ;;  %11118 = vmatprep.subr.bf16.mxu0 %v11117_v46 }
0x14a3   : > { %11120 = vmatpush3.bf16.msra.mxu0 %v11117_v46 }
0x14a4   : > { %v11121_v38 = vpack.c.bf16 %v8028_v31, %v8027_v18 }
0x14a6   : > { %11122 = vmatprep.subr.bf16.mxu0 %v11121_v38 }
0x14a7   : > { %11124 = vmatpush3.bf16.msra.mxu0 %v11121_v38 }
0x14aa   : > { %9996 = vmatmul.mubr.msk.f32.vlgmr.msra.gmra.mrb[176].mxu0 %vm8069_vm5, %v7881_v17 }
0x14ab   : > { %9998 = vmatprep.mubr.msk.f32.mxu0 %vm8069_vm5, %v7882_v58 }
0x14ae   : > { %9999 = vmatmul.mubr.msk.f32.gmra.mrb[178].mxu0 %vm8069_vm5, %v7883_v55 }
0x14af   : > { %10001 = vmatprep.mubr.msk.f32.mxu0 %vm8069_vm5, %v7884_v53 }
0x14b2   : > { %10002 = vmatmul.mubr.msk.f32.gmra.mrb[180].mxu0 %vm8069_vm5, %v7885_v25 }
0x14b3   : > { %10004 = vmatprep.mubr.msk.f32.mxu0 %vm8069_vm5, %v7886_v3 }
0x14b6   : > { %10005 = vmatmul.mubr.msk.f32.gmra.mrb[182].mxu0 %vm8069_vm5, %v7887_v41 }
0x14b7   : > { %10023 = vmatprep.mubr.msk.f32.mxu0 %vm8217_vm6, %v7896_v54 }
0x157d   : > { %v9997_v29 = vpop.f32.mrb[176].mxu0 }
0x157e   : > { %v8166_v40 = vadd.f32 %v9997_v29, %v8037_v32  ;;  %v8160_v39 = vpop.f32.mrb[177].mxu0 }
0x157f   : > { %v8161_v5 = vadd.f32 %v8160_v39, %v8032_v9 }
0x1580   : > { %v8200_v60 = vmax.f32 %v8166_v40, 0.0 }
0x1581   : > { %v8199_v24 = vmax.f32 %v8161_v5, 0.0  ;;  %v10000_v50 = vpop.f32.mrb[178].mxu0 }
0x1582   : > { %v8176_v22 = vadd.f32 %v10000_v50, %v8047_v6  ;;  %v8170_v49 = vpop.f32.mrb[179].mxu0 }
0x1583   : > { %v11125_v8 = vpack.c.bf16 %v8200_v60, %v8199_v24  ;;  %v8171_v0 = vadd.f32 %v8170_v49, %v8042_v61 }
0x1584   : > { %v8202_v20 = vmax.f32 %v8176_v22, 0.0 }
0x1585   : > { %v8201_v2 = vmax.f32 %v8171_v0, 0.0  ;;  %v10003_v4 = vpop.f32.mrb[180].mxu0  ;;  %11126 = vmatprep.subr.bf16.mxu0 %v11125_v8 }
0x1586   : > { %v8186_v16 = vadd.f32 %v10003_v4, %v8057_v56  ;;  %v8180_v62 = vpop.f32.mrb[181].mxu0  ;;  %11128 = vmatpush3.bf16.msra.mxu0 %v11125_v8 }
0x1587   : > { %v11129_v57 = vpack.c.bf16 %v8202_v20, %v8201_v2  ;;  %v8181_v43 = vadd.f32 %v8180_v62, %v8052_v28 }
0x1588   : > { %v8204_v59 = vmax.f32 %v8186_v16, 0.0 }
0x1589   : > { %v8203_v11 = vmax.f32 %v8181_v43, 0.0  ;;  %v10006_v36 = vpop.f32.mrb[182].mxu0  ;;  %11130 = vmatprep.subr.bf16.mxu0 %v11129_v57 }
0x158a   : > { %v8196_v30 = vadd.f32 %v10006_v36, %v8067_v23  ;;  %v8190_v12 = vpop.f32.mrb[183].mxu0  ;;  %11132 = vmatpush3.bf16.msra.mxu0 %v11129_v57 }
0x158b   : > { %v11133_v44 = vpack.c.bf16 %v8204_v59, %v8203_v11  ;;  %v8191_v19 = vadd.f32 %v8190_v12, %v8062_v10 }
0x158c   : > { %v8206_v51 = vmax.f32 %v8196_v30, 0.0 }
0x158d   : > { %v8205_v45 = vmax.f32 %v8191_v19, 0.0  ;;  %11134 = vmatprep.subr.bf16.mxu0 %v11133_v44 }
0x158e   : > { %11136 = vmatpush3.bf16.msra.mxu0 %v11133_v44 }
0x158f   : > { %v11137_v37 = vpack.c.bf16 %v8206_v51, %v8205_v45 }
0x1591   : > { %11138 = vmatprep.subr.bf16.mxu0 %v11137_v37 }
0x1592   : > { %11140 = vmatpush3.bf16.msra.mxu0 %v11137_v37 }
0x1595   : > { %10024 = vmatmul.mubr.msk.f32.vlgmr.msra.gmra.mrb[184].mxu0 %vm8217_vm6, %v7897_v1 }
0x1668   : > { %v10025_v26 = vpop.f32.mrb[184].mxu0 }
0x1669   : > { %v8296_v13 = vadd.f32 %v10025_v26, %v8215_v21  ;;  %v8290_v7 = vpop.f32.mrb[185].mxu0 }
0x166a   : > { %v8291_v34 = vadd.f32 %v8290_v7, %v8210_v47 }
0x166b   : > { %8300 = vst [vmem:[%s1174_s3 + $0x8] sm:$0xf] %v8296_v13 }
0x166c   : > { %8299 = vst [vmem:[%s1174_s3] sm:$0xff] %v8291_v34 }
0x166d PF: > { %s87_s15 = sadd.s32 1, %s11400_s15  }
0x166e   : > { %p84_p4 = scmp.ge.s32.totalorder %s87_s15, 4  }
0x1670   :  { %86 = sbr.rel (!%p84_p4) target bundleno = 65 (0x41), region = 243 }

</bundles_post_ra>
